<compile_context>
chip_gen: v7x
topology: tpu7x:2x2x1
jax: 0.10.0
libtpu: 0.0.40
codegen_flags: <defaults>
</compile_context>

<pallas_src>
import jax
import jax.numpy as jnp
from jax.experimental import pallas as pl
from jax.experimental.pallas import tpu as pltpu


# ---------------------------------------------------------------------------
# Primary path: small Gin*Gout  ->  VPU contraction, weight/bias in SMEM.
# ---------------------------------------------------------------------------
def _fwl_vpu_kernel(x_ref, w_ref, b_ref, o_ref):
    # x_ref: (T, Gin, W) VMEM   w_ref: (Gout, Gin) SMEM (f32)
    # b_ref: (Gout,)      SMEM   o_ref: (T, Gout, W) VMEM
    gout, gin = w_ref.shape
    for o in range(gout):
        acc = x_ref[:, 0, :].astype(jnp.float32) * w_ref[o, 0]
        for i in range(1, gin):
            acc = acc + x_ref[:, i, :].astype(jnp.float32) * w_ref[o, i]
        o_ref[:, o, :] = (acc + b_ref[o]).astype(o_ref.dtype)


# ---------------------------------------------------------------------------
# Fallback path: large Gin*Gout  ->  batched MXU matmul (previous version).
# ---------------------------------------------------------------------------
def _fwl_mxu_kernel(x_ref, w_ref, b_ref, o_ref):
    # x_ref: (T, Gin, W)  w_ref: (Gout, Gin)  b_ref: (Gout, W)  o_ref: (T, Gout, W)
    t = x_ref.shape[0]
    gout, gin = w_ref.shape
    w_b = jnp.broadcast_to(w_ref[...][None, :, :], (t, gout, gin))
    acc = jnp.einsum(
        "toi,tiw->tow", w_b, x_ref[...], preferred_element_type=jnp.float32
    )
    o_ref[...] = (acc + b_ref[...].astype(jnp.float32)).astype(o_ref.dtype)


def feature_wise_linear(x, weight, bias, *, block_rows=512,
                        vpu_max_groups_product=256):
    """x: (B, N, G_in, W); weight: (G_out, G_in); bias: (G_out,)."""
    B, N, Gin, W = x.shape
    Gout = weight.shape[0]
    rows = B * N
    x2 = x.reshape(rows, Gin, W)

    # Row tile: whole problem in one block when small; otherwise as many rows
    # as fit a ~6 MiB (in+out) block, so the double-buffered footprint stays
    # well under the 32 MiB scoped-VMEM budget on v5e/v6e/v7x.
    bytes_per_row = (Gin + Gout) * W * max(jnp.dtype(x.dtype).itemsize, 4)
    cap = max(8, (6 * 1024 * 1024) // max(1, bytes_per_row))
    T = max(1, min(block_rows, rows, cap))
    grid = (pl.cdiv(rows, T),)

    compiler_params = pltpu.CompilerParams(
        dimension_semantics=("parallel",),
        vmem_limit_bytes=32 * 1024 * 1024,
    )

    if Gin * Gout <= vpu_max_groups_product:
        # VPU path: weight/bias live in SMEM (f32 scalars -> vector splats).
        out = pl.pallas_call(
            _fwl_vpu_kernel,
            out_shape=jax.ShapeDtypeStruct((rows, Gout, W), x.dtype),
            grid_spec=pltpu.PrefetchScalarGridSpec(
                num_scalar_prefetch=0,
                grid=grid,
                in_specs=[
                    pl.BlockSpec((T, Gin, W), lambda i: (i, 0, 0)),
                    pl.BlockSpec(memory_space=pltpu.MemorySpace.SMEM),
                    pl.BlockSpec(memory_space=pltpu.MemorySpace.SMEM),
                ],
                out_specs=pl.BlockSpec((T, Gout, W), lambda i: (i, 0, 0)),
            ),
            compiler_params=compiler_params,
        )(x2, weight.astype(jnp.float32), bias.astype(jnp.float32))
    else:
        # MXU path: bias pre-broadcast to a lane-dense (Gout, W) tile; weight
        # and bias use constant index_maps so they stay resident in VMEM.
        bias_b = jnp.broadcast_to(bias.reshape(Gout, 1), (Gout, W))
        out = pl.pallas_call(
            _fwl_mxu_kernel,
            out_shape=jax.ShapeDtypeStruct((rows, Gout, W), x.dtype),
            grid_spec=pltpu.PrefetchScalarGridSpec(
                num_scalar_prefetch=0,
                grid=grid,
                in_specs=[
                    pl.BlockSpec((T, Gin, W), lambda i: (i, 0, 0)),
                    pl.BlockSpec((Gout, Gin), lambda i: (0, 0)),
                    pl.BlockSpec((Gout, W), lambda i: (0, 0)),
                ],
                out_specs=pl.BlockSpec((T, Gout, W), lambda i: (i, 0, 0)),
            ),
            compiler_params=compiler_params,
        )(x2, weight, bias_b)

    return out.reshape(B, N, Gout, W)


def _reference(x, weight, bias):
    return jnp.einsum("bniw,oi->bnow", x, weight) + bias[None, None, :, None]


if __name__ == "__main__":
    key = jax.random.PRNGKey(0)
    kx, kw, kb, kx2, kw2, kb2, kx3 = jax.random.split(key, 7)

    # ---- Test 1: small problem, VPU path, single block ----
    B, N, Gin, Gout, W = 2, 4, 8, 16, 128
    x = jax.random.normal(kx, (B, N, Gin, W), dtype=jnp.float32)
    bound = 1.0 / (Gin ** 0.5)
    weight = jax.random.uniform(kw, (Gout, Gin), minval=-bound, maxval=bound,
                                dtype=jnp.float32)
    bias = jax.random.uniform(kb, (Gout,), minval=-bound, maxval=bound,
                              dtype=jnp.float32)

    out = jax.block_until_ready(feature_wise_linear(x, weight, bias))
    ref = _reference(x, weight, bias)
    assert out.shape == (B, N, Gout, W)
    assert jnp.allclose(out, ref, atol=1e-5, rtol=1e-5)

    # ---- Test 2: multi-step grid path (row-tiled, resident weight/bias) ----
    B2, N2 = 2, 12  # rows = 24, block_rows = 8 -> grid of 3 steps
    x_big = jax.random.normal(kx2, (B2, N2, Gin, W), dtype=jnp.float32)
    out_big = jax.block_until_ready(
        feature_wise_linear(x_big, weight, bias, block_rows=8)
    )
    ref_big = _reference(x_big, weight, bias)
    assert out_big.shape == (B2, N2, Gout, W)
    assert jnp.allclose(out_big, ref_big, atol=1e-5, rtol=1e-5)

    # ---- Test 3: large group counts -> MXU fallback path ----
    Gin3, Gout3 = 24, 24  # 576 > 256 -> MXU path
    x3 = jax.random.normal(kx3, (2, 4, Gin3, W), dtype=jnp.float32)
    bound3 = 1.0 / (Gin3 ** 0.5)
    w3 = jax.random.uniform(kw2, (Gout3, Gin3), minval=-bound3, maxval=bound3,
                            dtype=jnp.float32)
    b3 = jax.random.uniform(kb2, (Gout3,), minval=-bound3, maxval=bound3,
                            dtype=jnp.float32)
    out3 = jax.block_until_ready(feature_wise_linear(x3, w3, b3))
    ref3 = _reference(x3, w3, b3)
    assert out3.shape == (2, 4, Gout3, W)
    assert jnp.allclose(out3, ref3, atol=1e-5, rtol=1e-5)

    print("KERNEL_OK")
</pallas_src>

<mosaic_0001>
module attributes {stable_mosaic.version = 11 : i64} {
  func.func @_fwl_vpu_kernel(%arg0: i32, %arg1: memref<8x8x128xf32, #tpu.memory_space<vmem>>, %arg2: memref<16x8xf32, #tpu.memory_space<smem>>, %arg3: memref<16xf32, #tpu.memory_space<smem>>, %arg4: memref<8x16x128xf32, #tpu.memory_space<vmem>>) attributes {dimension_semantics = [#tpu.dimension_semantics<parallel>], iteration_bounds = array<i64: 1>, scalar_prefetch = 0 : i64, scratch_operands = 0 : i64, tpu.core_type = #tpu.core_type<tc>, window_params = [{transform_indices = @transform_0, window_bounds = array<i64: 8, 8, 128>}, {transform_indices = @transform_1, window_bounds = array<i64: 16, 8>}, {transform_indices = @transform_2, window_bounds = array<i64: 16>}, {transform_indices = @transform_3, window_bounds = array<i64: 8, 16, 128>}]} {
    %c0 = arith.constant 0 : index
    %c0_0 = arith.constant 0 : index
    %c0_1 = arith.constant 0 : index
    %0 = vector.load %arg1[%c0, %c0_0, %c0_1] : memref<8x8x128xf32, #tpu.memory_space<vmem>>, vector<8x1x128xf32>
    %1 = vector.shape_cast %0 : vector<8x1x128xf32> to vector<8x128xf32>
    %c0_2 = arith.constant 0 : index
    %c0_3 = arith.constant 0 : index
    %2 = memref.load %arg2[%c0_2, %c0_3] : memref<16x8xf32, #tpu.memory_space<smem>>
    %3 = vector.broadcast %2 : f32 to vector<8x128xf32>
    %4 = arith.mulf %1, %3 : vector<8x128xf32>
    %c0_4 = arith.constant 0 : index
    %c1 = arith.constant 1 : index
    %c0_5 = arith.constant 0 : index
    %5 = vector.load %arg1[%c0_4, %c1, %c0_5] : memref<8x8x128xf32, #tpu.memory_space<vmem>>, vector<8x1x128xf32>
    %6 = vector.shape_cast %5 : vector<8x1x128xf32> to vector<8x128xf32>
    %c0_6 = arith.constant 0 : index
    %c1_7 = arith.constant 1 : index
    %7 = memref.load %arg2[%c0_6, %c1_7] : memref<16x8xf32, #tpu.memory_space<smem>>
    %8 = vector.broadcast %7 : f32 to vector<8x128xf32>
    %9 = arith.mulf %6, %8 : vector<8x128xf32>
    %10 = arith.addf %4, %9 : vector<8x128xf32>
    %c0_8 = arith.constant 0 : index
    %c2 = arith.constant 2 : index
    %c0_9 = arith.constant 0 : index
    %11 = vector.load %arg1[%c0_8, %c2, %c0_9] : memref<8x8x128xf32, #tpu.memory_space<vmem>>, vector<8x1x128xf32>
    %12 = vector.shape_cast %11 : vector<8x1x128xf32> to vector<8x128xf32>
    %c0_10 = arith.constant 0 : index
    %c2_11 = arith.constant 2 : index
    %13 = memref.load %arg2[%c0_10, %c2_11] : memref<16x8xf32, #tpu.memory_space<smem>>
    %14 = vector.broadcast %13 : f32 to vector<8x128xf32>
    %15 = arith.mulf %12, %14 : vector<8x128xf32>
    %16 = arith.addf %10, %15 : vector<8x128xf32>
    %c0_12 = arith.constant 0 : index
    %c3 = arith.constant 3 : index
    %c0_13 = arith.constant 0 : index
    %17 = vector.load %arg1[%c0_12, %c3, %c0_13] : memref<8x8x128xf32, #tpu.memory_space<vmem>>, vector<8x1x128xf32>
    %18 = vector.shape_cast %17 : vector<8x1x128xf32> to vector<8x128xf32>
    %c0_14 = arith.constant 0 : index
    %c3_15 = arith.constant 3 : index
    %19 = memref.load %arg2[%c0_14, %c3_15] : memref<16x8xf32, #tpu.memory_space<smem>>
    %20 = vector.broadcast %19 : f32 to vector<8x128xf32>
    %21 = arith.mulf %18, %20 : vector<8x128xf32>
    %22 = arith.addf %16, %21 : vector<8x128xf32>
    %c0_16 = arith.constant 0 : index
    %c4 = arith.constant 4 : index
    %c0_17 = arith.constant 0 : index
    %23 = vector.load %arg1[%c0_16, %c4, %c0_17] : memref<8x8x128xf32, #tpu.memory_space<vmem>>, vector<8x1x128xf32>
    %24 = vector.shape_cast %23 : vector<8x1x128xf32> to vector<8x128xf32>
    %c0_18 = arith.constant 0 : index
    %c4_19 = arith.constant 4 : index
    %25 = memref.load %arg2[%c0_18, %c4_19] : memref<16x8xf32, #tpu.memory_space<smem>>
    %26 = vector.broadcast %25 : f32 to vector<8x128xf32>
    %27 = arith.mulf %24, %26 : vector<8x128xf32>
    %28 = arith.addf %22, %27 : vector<8x128xf32>
    %c0_20 = arith.constant 0 : index
    %c5 = arith.constant 5 : index
    %c0_21 = arith.constant 0 : index
    %29 = vector.load %arg1[%c0_20, %c5, %c0_21] : memref<8x8x128xf32, #tpu.memory_space<vmem>>, vector<8x1x128xf32>
    %30 = vector.shape_cast %29 : vector<8x1x128xf32> to vector<8x128xf32>
    %c0_22 = arith.constant 0 : index
    %c5_23 = arith.constant 5 : index
    %31 = memref.load %arg2[%c0_22, %c5_23] : memref<16x8xf32, #tpu.memory_space<smem>>
    %32 = vector.broadcast %31 : f32 to vector<8x128xf32>
    %33 = arith.mulf %30, %32 : vector<8x128xf32>
    %34 = arith.addf %28, %33 : vector<8x128xf32>
    %c0_24 = arith.constant 0 : index
    %c6 = arith.constant 6 : index
    %c0_25 = arith.constant 0 : index
    %35 = vector.load %arg1[%c0_24, %c6, %c0_25] : memref<8x8x128xf32, #tpu.memory_space<vmem>>, vector<8x1x128xf32>
    %36 = vector.shape_cast %35 : vector<8x1x128xf32> to vector<8x128xf32>
    %c0_26 = arith.constant 0 : index
    %c6_27 = arith.constant 6 : index
    %37 = memref.load %arg2[%c0_26, %c6_27] : memref<16x8xf32, #tpu.memory_space<smem>>
    %38 = vector.broadcast %37 : f32 to vector<8x128xf32>
    %39 = arith.mulf %36, %38 : vector<8x128xf32>
    %40 = arith.addf %34, %39 : vector<8x128xf32>
    %c0_28 = arith.constant 0 : index
    %c7 = arith.constant 7 : index
    %c0_29 = arith.constant 0 : index
    %41 = vector.load %arg1[%c0_28, %c7, %c0_29] : memref<8x8x128xf32, #tpu.memory_space<vmem>>, vector<8x1x128xf32>
    %42 = vector.shape_cast %41 : vector<8x1x128xf32> to vector<8x128xf32>
    %c0_30 = arith.constant 0 : index
    %c7_31 = arith.constant 7 : index
    %43 = memref.load %arg2[%c0_30, %c7_31] : memref<16x8xf32, #tpu.memory_space<smem>>
    %44 = vector.broadcast %43 : f32 to vector<8x128xf32>
    %45 = arith.mulf %42, %44 : vector<8x128xf32>
    %46 = arith.addf %40, %45 : vector<8x128xf32>
    %c0_32 = arith.constant 0 : index
    %47 = memref.load %arg3[%c0_32] : memref<16xf32, #tpu.memory_space<smem>>
    %48 = vector.broadcast %47 : f32 to vector<8x128xf32>
    %49 = arith.addf %46, %48 : vector<8x128xf32>
    %c0_33 = arith.constant 0 : index
    %c0_34 = arith.constant 0 : index
    %c0_35 = arith.constant 0 : index
    %50 = vector.load %arg4[%c0_33, %c0_34, %c0_35] : memref<8x16x128xf32, #tpu.memory_space<vmem>>, vector<8x1x128xf32>
    %51 = vector.shape_cast %50 : vector<8x1x128xf32> to vector<8x128xf32>
    %52 = vector.shape_cast %49 : vector<8x128xf32> to vector<8x1x128xf32>
    tpu.vector_store %arg4[%c0_33, %c0_34, %c0_35], %52 {strides = array<i32>} : memref<8x16x128xf32, #tpu.memory_space<vmem>>, vector<8x1x128xf32>,
    %c0_36 = arith.constant 0 : index
    %c0_37 = arith.constant 0 : index
    %c0_38 = arith.constant 0 : index
    %53 = vector.load %arg1[%c0_36, %c0_37, %c0_38] : memref<8x8x128xf32, #tpu.memory_space<vmem>>, vector<8x1x128xf32>
    %54 = vector.shape_cast %53 : vector<8x1x128xf32> to vector<8x128xf32>
    %c1_39 = arith.constant 1 : index
    %c0_40 = arith.constant 0 : index
    %55 = memref.load %arg2[%c1_39, %c0_40] : memref<16x8xf32, #tpu.memory_space<smem>>
    %56 = vector.broadcast %55 : f32 to vector<8x128xf32>
    %57 = arith.mulf %54, %56 : vector<8x128xf32>
    %c0_41 = arith.constant 0 : index
    %c1_42 = arith.constant 1 : index
    %c0_43 = arith.constant 0 : index
    %58 = vector.load %arg1[%c0_41, %c1_42, %c0_43] : memref<8x8x128xf32, #tpu.memory_space<vmem>>, vector<8x1x128xf32>
    %59 = vector.shape_cast %58 : vector<8x1x128xf32> to vector<8x128xf32>
    %c1_44 = arith.constant 1 : index
    %c1_45 = arith.constant 1 : index
    %60 = memref.load %arg2[%c1_44, %c1_45] : memref<16x8xf32, #tpu.memory_space<smem>>
    %61 = vector.broadcast %60 : f32 to vector<8x128xf32>
    %62 = arith.mulf %59, %61 : vector<8x128xf32>
    %63 = arith.addf %57, %62 : vector<8x128xf32>
    %c0_46 = arith.constant 0 : index
    %c2_47 = arith.constant 2 : index
    %c0_48 = arith.constant 0 : index
    %64 = vector.load %arg1[%c0_46, %c2_47, %c0_48] : memref<8x8x128xf32, #tpu.memory_space<vmem>>, vector<8x1x128xf32>
    %65 = vector.shape_cast %64 : vector<8x1x128xf32> to vector<8x128xf32>
    %c1_49 = arith.constant 1 : index
    %c2_50 = arith.constant 2 : index
    %66 = memref.load %arg2[%c1_49, %c2_50] : memref<16x8xf32, #tpu.memory_space<smem>>
    %67 = vector.broadcast %66 : f32 to vector<8x128xf32>
    %68 = arith.mulf %65, %67 : vector<8x128xf32>
    %69 = arith.addf %63, %68 : vector<8x128xf32>
    %c0_51 = arith.constant 0 : index
    %c3_52 = arith.constant 3 : index
    %c0_53 = arith.constant 0 : index
    %70 = vector.load %arg1[%c0_51, %c3_52, %c0_53] : memref<8x8x128xf32, #tpu.memory_space<vmem>>, vector<8x1x128xf32>
    %71 = vector.shape_cast %70 : vector<8x1x128xf32> to vector<8x128xf32>
    %c1_54 = arith.constant 1 : index
    %c3_55 = arith.constant 3 : index
    %72 = memref.load %arg2[%c1_54, %c3_55] : memref<16x8xf32, #tpu.memory_space<smem>>
    %73 = vector.broadcast %72 : f32 to vector<8x128xf32>
    %74 = arith.mulf %71, %73 : vector<8x128xf32>
    %75 = arith.addf %69, %74 : vector<8x128xf32>
    %c0_56 = arith.constant 0 : index
    %c4_57 = arith.constant 4 : index
    %c0_58 = arith.constant 0 : index
    %76 = vector.load %arg1[%c0_56, %c4_57, %c0_58] : memref<8x8x128xf32, #tpu.memory_space<vmem>>, vector<8x1x128xf32>
    %77 = vector.shape_cast %76 : vector<8x1x128xf32> to vector<8x128xf32>
    %c1_59 = arith.constant 1 : index
    %c4_60 = arith.constant 4 : index
    %78 = memref.load %arg2[%c1_59, %c4_60] : memref<16x8xf32, #tpu.memory_space<smem>>
    %79 = vector.broadcast %78 : f32 to vector<8x128xf32>
    %80 = arith.mulf %77, %79 : vector<8x128xf32>
    %81 = arith.addf %75, %80 : vector<8x128xf32>
    %c0_61 = arith.constant 0 : index
    %c5_62 = arith.constant 5 : index
    %c0_63 = arith.constant 0 : index
    %82 = vector.load %arg1[%c0_61, %c5_62, %c0_63] : memref<8x8x128xf32, #tpu.memory_space<vmem>>, vector<8x1x128xf32>
    %83 = vector.shape_cast %82 : vector<8x1x128xf32> to vector<8x128xf32>
    %c1_64 = arith.constant 1 : index
    %c5_65 = arith.constant 5 : index
    %84 = memref.load %arg2[%c1_64, %c5_65] : memref<16x8xf32, #tpu.memory_space<smem>>
    %85 = vector.broadcast %84 : f32 to vector<8x128xf32>
    %86 = arith.mulf %83, %85 : vector<8x128xf32>
    %87 = arith.addf %81, %86 : vector<8x128xf32>
    %c0_66 = arith.constant 0 : index
    %c6_67 = arith.constant 6 : index
    %c0_68 = arith.constant 0 : index
    %88 = vector.load %arg1[%c0_66, %c6_67, %c0_68] : memref<8x8x128xf32, #tpu.memory_space<vmem>>, vector<8x1x128xf32>
    %89 = vector.shape_cast %88 : vector<8x1x128xf32> to vector<8x128xf32>
    %c1_69 = arith.constant 1 : index
    %c6_70 = arith.constant 6 : index
    %90 = memref.load %arg2[%c1_69, %c6_70] : memref<16x8xf32, #tpu.memory_space<smem>>
    %91 = vector.broadcast %90 : f32 to vector<8x128xf32>
    %92 = arith.mulf %89, %91 : vector<8x128xf32>
    %93 = arith.addf %87, %92 : vector<8x128xf32>
    %c0_71 = arith.constant 0 : index
    %c7_72 = arith.constant 7 : index
    %c0_73 = arith.constant 0 : index
    %94 = vector.load %arg1[%c0_71, %c7_72, %c0_73] : memref<8x8x128xf32, #tpu.memory_space<vmem>>, vector<8x1x128xf32>
    %95 = vector.shape_cast %94 : vector<8x1x128xf32> to vector<8x128xf32>
    %c1_74 = arith.constant 1 : index
    %c7_75 = arith.constant 7 : index
    %96 = memref.load %arg2[%c1_74, %c7_75] : memref<16x8xf32, #tpu.memory_space<smem>>
    %97 = vector.broadcast %96 : f32 to vector<8x128xf32>
    %98 = arith.mulf %95, %97 : vector<8x128xf32>
    %99 = arith.addf %93, %98 : vector<8x128xf32>
    %c1_76 = arith.constant 1 : index
    %100 = memref.load %arg3[%c1_76] : memref<16xf32, #tpu.memory_space<smem>>
    %101 = vector.broadcast %100 : f32 to vector<8x128xf32>
    %102 = arith.addf %99, %101 : vector<8x128xf32>
    %c0_77 = arith.constant 0 : index
    %c1_78 = arith.constant 1 : index
    %c0_79 = arith.constant 0 : index
    %103 = vector.load %arg4[%c0_77, %c1_78, %c0_79] : memref<8x16x128xf32, #tpu.memory_space<vmem>>, vector<8x1x128xf32>
    %104 = vector.shape_cast %103 : vector<8x1x128xf32> to vector<8x128xf32>
    %105 = vector.shape_cast %102 : vector<8x128xf32> to vector<8x1x128xf32>
    tpu.vector_store %arg4[%c0_77, %c1_78, %c0_79], %105 {strides = array<i32>} : memref<8x16x128xf32, #tpu.memory_space<vmem>>, vector<8x1x128xf32>,
    %c0_80 = arith.constant 0 : index
    %c0_81 = arith.constant 0 : index
    %c0_82 = arith.constant 0 : index
    %106 = vector.load %arg1[%c0_80, %c0_81, %c0_82] : memref<8x8x128xf32, #tpu.memory_space<vmem>>, vector<8x1x128xf32>
    %107 = vector.shape_cast %106 : vector<8x1x128xf32> to vector<8x128xf32>
    %c2_83 = arith.constant 2 : index
    %c0_84 = arith.constant 0 : index
    %108 = memref.load %arg2[%c2_83, %c0_84] : memref<16x8xf32, #tpu.memory_space<smem>>
    %109 = vector.broadcast %108 : f32 to vector<8x128xf32>
    %110 = arith.mulf %107, %109 : vector<8x128xf32>
    %c0_85 = arith.constant 0 : index
    %c1_86 = arith.constant 1 : index
    %c0_87 = arith.constant 0 : index
    %111 = vector.load %arg1[%c0_85, %c1_86, %c0_87] : memref<8x8x128xf32, #tpu.memory_space<vmem>>, vector<8x1x128xf32>
    %112 = vector.shape_cast %111 : vector<8x1x128xf32> to vector<8x128xf32>
    %c2_88 = arith.constant 2 : index
    %c1_89 = arith.constant 1 : index
    %113 = memref.load %arg2[%c2_88, %c1_89] : memref<16x8xf32, #tpu.memory_space<smem>>
    %114 = vector.broadcast %113 : f32 to vector<8x128xf32>
    %115 = arith.mulf %112, %114 : vector<8x128xf32>
    %116 = arith.addf %110, %115 : vector<8x128xf32>
    %c0_90 = arith.constant 0 : index
    %c2_91 = arith.constant 2 : index
    %c0_92 = arith.constant 0 : index
    %117 = vector.load %arg1[%c0_90, %c2_91, %c0_92] : memref<8x8x128xf32, #tpu.memory_space<vmem>>, vector<8x1x128xf32>
    %118 = vector.shape_cast %117 : vector<8x1x128xf32> to vector<8x128xf32>
    %c2_93 = arith.constant 2 : index
    %c2_94 = arith.constant 2 : index
    %119 = memref.load %arg2[%c2_93, %c2_94] : memref<16x8xf32, #tpu.memory_space<smem>>
    %120 = vector.broadcast %119 : f32 to vector<8x128xf32>
    %121 = arith.mulf %118, %120 : vector<8x128xf32>
    %122 = arith.addf %116, %121 : vector<8x128xf32>
    %c0_95 = arith.constant 0 : index
    %c3_96 = arith.constant 3 : index
    %c0_97 = arith.constant 0 : index
    %123 = vector.load %arg1[%c0_95, %c3_96, %c0_97] : memref<8x8x128xf32, #tpu.memory_space<vmem>>, vector<8x1x128xf32>
    %124 = vector.shape_cast %123 : vector<8x1x128xf32> to vector<8x128xf32>
    %c2_98 = arith.constant 2 : index
    %c3_99 = arith.constant 3 : index
    %125 = memref.load %arg2[%c2_98, %c3_99] : memref<16x8xf32, #tpu.memory_space<smem>>
    %126 = vector.broadcast %125 : f32 to vector<8x128xf32>
    %127 = arith.mulf %124, %126 : vector<8x128xf32>
    %128 = arith.addf %122, %127 : vector<8x128xf32>
    %c0_100 = arith.constant 0 : index
    %c4_101 = arith.constant 4 : index
    %c0_102 = arith.constant 0 : index
    %129 = vector.load %arg1[%c0_100, %c4_101, %c0_102] : memref<8x8x128xf32, #tpu.memory_space<vmem>>, vector<8x1x128xf32>
    %130 = vector.shape_cast %129 : vector<8x1x128xf32> to vector<8x128xf32>
    %c2_103 = arith.constant 2 : index
    %c4_104 = arith.constant 4 : index
    %131 = memref.load %arg2[%c2_103, %c4_104] : memref<16x8xf32, #tpu.memory_space<smem>>
    %132 = vector.broadcast %131 : f32 to vector<8x128xf32>
    %133 = arith.mulf %130, %132 : vector<8x128xf32>
    %134 = arith.addf %128, %133 : vector<8x128xf32>
    %c0_105 = arith.constant 0 : index
    %c5_106 = arith.constant 5 : index
    %c0_107 = arith.constant 0 : index
    %135 = vector.load %arg1[%c0_105, %c5_106, %c0_107] : memref<8x8x128xf32, #tpu.memory_space<vmem>>, vector<8x1x128xf32>
    %136 = vector.shape_cast %135 : vector<8x1x128xf32> to vector<8x128xf32>
    %c2_108 = arith.constant 2 : index
    %c5_109 = arith.constant 5 : index
    %137 = memref.load %arg2[%c2_108, %c5_109] : memref<16x8xf32, #tpu.memory_space<smem>>
    %138 = vector.broadcast %137 : f32 to vector<8x128xf32>
    %139 = arith.mulf %136, %138 : vector<8x128xf32>
    %140 = arith.addf %134, %139 : vector<8x128xf32>
    %c0_110 = arith.constant 0 : index
    %c6_111 = arith.constant 6 : index
    %c0_112 = arith.constant 0 : index
    %141 = vector.load %arg1[%c0_110, %c6_111, %c0_112] : memref<8x8x128xf32, #tpu.memory_space<vmem>>, vector<8x1x128xf32>
    %142 = vector.shape_cast %141 : vector<8x1x128xf32> to vector<8x128xf32>
    %c2_113 = arith.constant 2 : index
    %c6_114 = arith.constant 6 : index
    %143 = memref.load %arg2[%c2_113, %c6_114] : memref<16x8xf32, #tpu.memory_space<smem>>
    %144 = vector.broadcast %143 : f32 to vector<8x128xf32>
    %145 = arith.mulf %142, %144 : vector<8x128xf32>
    %146 = arith.addf %140, %145 : vector<8x128xf32>
    %c0_115 = arith.constant 0 : index
    %c7_116 = arith.constant 7 : index
    %c0_117 = arith.constant 0 : index
    %147 = vector.load %arg1[%c0_115, %c7_116, %c0_117] : memref<8x8x128xf32, #tpu.memory_space<vmem>>, vector<8x1x128xf32>
    %148 = vector.shape_cast %147 : vector<8x1x128xf32> to vector<8x128xf32>
    %c2_118 = arith.constant 2 : index
    %c7_119 = arith.constant 7 : index
    %149 = memref.load %arg2[%c2_118, %c7_119] : memref<16x8xf32, #tpu.memory_space<smem>>
    %150 = vector.broadcast %149 : f32 to vector<8x128xf32>
    %151 = arith.mulf %148, %150 : vector<8x128xf32>
    %152 = arith.addf %146, %151 : vector<8x128xf32>
    %c2_120 = arith.constant 2 : index
    %153 = memref.load %arg3[%c2_120] : memref<16xf32, #tpu.memory_space<smem>>
    %154 = vector.broadcast %153 : f32 to vector<8x128xf32>
    %155 = arith.addf %152, %154 : vector<8x128xf32>
    %c0_121 = arith.constant 0 : index
    %c2_122 = arith.constant 2 : index
    %c0_123 = arith.constant 0 : index
    %156 = vector.load %arg4[%c0_121, %c2_122, %c0_123] : memref<8x16x128xf32, #tpu.memory_space<vmem>>, vector<8x1x128xf32>
    %157 = vector.shape_cast %156 : vector<8x1x128xf32> to vector<8x128xf32>
    %158 = vector.shape_cast %155 : vector<8x128xf32> to vector<8x1x128xf32>
    tpu.vector_store %arg4[%c0_121, %c2_122, %c0_123], %158 {strides = array<i32>} : memref<8x16x128xf32, #tpu.memory_space<vmem>>, vector<8x1x128xf32>,
    %c0_124 = arith.constant 0 : index
    %c0_125 = arith.constant 0 : index
    %c0_126 = arith.constant 0 : index
    %159 = vector.load %arg1[%c0_124, %c0_125, %c0_126] : memref<8x8x128xf32, #tpu.memory_space<vmem>>, vector<8x1x128xf32>
    %160 = vector.shape_cast %159 : vector<8x1x128xf32> to vector<8x128xf32>
    %c3_127 = arith.constant 3 : index
    %c0_128 = arith.constant 0 : index
    %161 = memref.load %arg2[%c3_127, %c0_128] : memref<16x8xf32, #tpu.memory_space<smem>>
    %162 = vector.broadcast %161 : f32 to vector<8x128xf32>
    %163 = arith.mulf %160, %162 : vector<8x128xf32>
    %c0_129 = arith.constant 0 : index
    %c1_130 = arith.constant 1 : index
    %c0_131 = arith.constant 0 : index
    %164 = vector.load %arg1[%c0_129, %c1_130, %c0_131] : memref<8x8x128xf32, #tpu.memory_space<vmem>>, vector<8x1x128xf32>
    %165 = vector.shape_cast %164 : vector<8x1x128xf32> to vector<8x128xf32>
    %c3_132 = arith.constant 3 : index
    %c1_133 = arith.constant 1 : index
    %166 = memref.load %arg2[%c3_132, %c1_133] : memref<16x8xf32, #tpu.memory_space<smem>>
    %167 = vector.broadcast %166 : f32 to vector<8x128xf32>
    %168 = arith.mulf %165, %167 : vector<8x128xf32>
    %169 = arith.addf %163, %168 : vector<8x128xf32>
    %c0_134 = arith.constant 0 : index
    %c2_135 = arith.constant 2 : index
    %c0_136 = arith.constant 0 : index
    %170 = vector.load %arg1[%c0_134, %c2_135, %c0_136] : memref<8x8x128xf32, #tpu.memory_space<vmem>>, vector<8x1x128xf32>
    %171 = vector.shape_cast %170 : vector<8x1x128xf32> to vector<8x128xf32>
    %c3_137 = arith.constant 3 : index
    %c2_138 = arith.constant 2 : index
    %172 = memref.load %arg2[%c3_137, %c2_138] : memref<16x8xf32, #tpu.memory_space<smem>>
    %173 = vector.broadcast %172 : f32 to vector<8x128xf32>
    %174 = arith.mulf %171, %173 : vector<8x128xf32>
    %175 = arith.addf %169, %174 : vector<8x128xf32>
    %c0_139 = arith.constant 0 : index
    %c3_140 = arith.constant 3 : index
    %c0_141 = arith.constant 0 : index
    %176 = vector.load %arg1[%c0_139, %c3_140, %c0_141] : memref<8x8x128xf32, #tpu.memory_space<vmem>>, vector<8x1x128xf32>
    %177 = vector.shape_cast %176 : vector<8x1x128xf32> to vector<8x128xf32>
    %c3_142 = arith.constant 3 : index
    %c3_143 = arith.constant 3 : index
    %178 = memref.load %arg2[%c3_142, %c3_143] : memref<16x8xf32, #tpu.memory_space<smem>>
    %179 = vector.broadcast %178 : f32 to vector<8x128xf32>
    %180 = arith.mulf %177, %179 : vector<8x128xf32>
    %181 = arith.addf %175, %180 : vector<8x128xf32>
    %c0_144 = arith.constant 0 : index
    %c4_145 = arith.constant 4 : index
    %c0_146 = arith.constant 0 : index
    %182 = vector.load %arg1[%c0_144, %c4_145, %c0_146] : memref<8x8x128xf32, #tpu.memory_space<vmem>>, vector<8x1x128xf32>
    %183 = vector.shape_cast %182 : vector<8x1x128xf32> to vector<8x128xf32>
    %c3_147 = arith.constant 3 : index
    %c4_148 = arith.constant 4 : index
    %184 = memref.load %arg2[%c3_147, %c4_148] : memref<16x8xf32, #tpu.memory_space<smem>>
    %185 = vector.broadcast %184 : f32 to vector<8x128xf32>
    %186 = arith.mulf %183, %185 : vector<8x128xf32>
    %187 = arith.addf %181, %186 : vector<8x128xf32>
    %c0_149 = arith.constant 0 : index
    %c5_150 = arith.constant 5 : index
    %c0_151 = arith.constant 0 : index
    %188 = vector.load %arg1[%c0_149, %c5_150, %c0_151] : memref<8x8x128xf32, #tpu.memory_space<vmem>>, vector<8x1x128xf32>
    %189 = vector.shape_cast %188 : vector<8x1x128xf32> to vector<8x128xf32>
    %c3_152 = arith.constant 3 : index
    %c5_153 = arith.constant 5 : index
    %190 = memref.load %arg2[%c3_152, %c5_153] : memref<16x8xf32, #tpu.memory_space<smem>>
    %191 = vector.broadcast %190 : f32 to vector<8x128xf32>
    %192 = arith.mulf %189, %191 : vector<8x128xf32>
    %193 = arith.addf %187, %192 : vector<8x128xf32>
    %c0_154 = arith.constant 0 : index
    %c6_155 = arith.constant 6 : index
    %c0_156 = arith.constant 0 : index
    %194 = vector.load %arg1[%c0_154, %c6_155, %c0_156] : memref<8x8x128xf32, #tpu.memory_space<vmem>>, vector<8x1x128xf32>
    %195 = vector.shape_cast %194 : vector<8x1x128xf32> to vector<8x128xf32>
    %c3_157 = arith.constant 3 : index
    %c6_158 = arith.constant 6 : index
    %196 = memref.load %arg2[%c3_157, %c6_158] : memref<16x8xf32, #tpu.memory_space<smem>>
    %197 = vector.broadcast %196 : f32 to vector<8x128xf32>
    %198 = arith.mulf %195, %197 : vector<8x128xf32>
    %199 = arith.addf %193, %198 : vector<8x128xf32>
    %c0_159 = arith.constant 0 : index
    %c7_160 = arith.constant 7 : index
    %c0_161 = arith.constant 0 : index
    %200 = vector.load %arg1[%c0_159, %c7_160, %c0_161] : memref<8x8x128xf32, #tpu.memory_space<vmem>>, vector<8x1x128xf32>
    %201 = vector.shape_cast %200 : vector<8x1x128xf32> to vector<8x128xf32>
    %c3_162 = arith.constant 3 : index
    %c7_163 = arith.constant 7 : index
    %202 = memref.load %arg2[%c3_162, %c7_163] : memref<16x8xf32, #tpu.memory_space<smem>>
    %203 = vector.broadcast %202 : f32 to vector<8x128xf32>
    %204 = arith.mulf %201, %203 : vector<8x128xf32>
    %205 = arith.addf %199, %204 : vector<8x128xf32>
    %c3_164 = arith.constant 3 : index
    %206 = memref.load %arg3[%c3_164] : memref<16xf32, #tpu.memory_space<smem>>
    %207 = vector.broadcast %206 : f32 to vector<8x128xf32>
    %208 = arith.addf %205, %207 : vector<8x128xf32>
    %c0_165 = arith.constant 0 : index
    %c3_166 = arith.constant 3 : index
    %c0_167 = arith.constant 0 : index
    %209 = vector.load %arg4[%c0_165, %c3_166, %c0_167] : memref<8x16x128xf32, #tpu.memory_space<vmem>>, vector<8x1x128xf32>
    %210 = vector.shape_cast %209 : vector<8x1x128xf32> to vector<8x128xf32>
    %211 = vector.shape_cast %208 : vector<8x128xf32> to vector<8x1x128xf32>
    tpu.vector_store %arg4[%c0_165, %c3_166, %c0_167], %211 {strides = array<i32>} : memref<8x16x128xf32, #tpu.memory_space<vmem>>, vector<8x1x128xf32>,
    %c0_168 = arith.constant 0 : index
    %c0_169 = arith.constant 0 : index
    %c0_170 = arith.constant 0 : index
    %212 = vector.load %arg1[%c0_168, %c0_169, %c0_170] : memref<8x8x128xf32, #tpu.memory_space<vmem>>, vector<8x1x128xf32>
    %213 = vector.shape_cast %212 : vector<8x1x128xf32> to vector<8x128xf32>
    %c4_171 = arith.constant 4 : index
    %c0_172 = arith.constant 0 : index
    %214 = memref.load %arg2[%c4_171, %c0_172] : memref<16x8xf32, #tpu.memory_space<smem>>
    %215 = vector.broadcast %214 : f32 to vector<8x128xf32>
    %216 = arith.mulf %213, %215 : vector<8x128xf32>
    %c0_173 = arith.constant 0 : index
    %c1_174 = arith.constant 1 : index
    %c0_175 = arith.constant 0 : index
    %217 = vector.load %arg1[%c0_173, %c1_174, %c0_175] : memref<8x8x128xf32, #tpu.memory_space<vmem>>, vector<8x1x128xf32>
    %218 = vector.shape_cast %217 : vector<8x1x128xf32> to vector<8x128xf32>
    %c4_176 = arith.constant 4 : index
    %c1_177 = arith.constant 1 : index
    %219 = memref.load %arg2[%c4_176, %c1_177] : memref<16x8xf32, #tpu.memory_space<smem>>
    %220 = vector.broadcast %219 : f32 to vector<8x128xf32>
    %221 = arith.mulf %218, %220 : vector<8x128xf32>
    %222 = arith.addf %216, %221 : vector<8x128xf32>
    %c0_178 = arith.constant 0 : index
    %c2_179 = arith.constant 2 : index
    %c0_180 = arith.constant 0 : index
    %223 = vector.load %arg1[%c0_178, %c2_179, %c0_180] : memref<8x8x128xf32, #tpu.memory_space<vmem>>, vector<8x1x128xf32>
    %224 = vector.shape_cast %223 : vector<8x1x128xf32> to vector<8x128xf32>
    %c4_181 = arith.constant 4 : index
    %c2_182 = arith.constant 2 : index
    %225 = memref.load %arg2[%c4_181, %c2_182] : memref<16x8xf32, #tpu.memory_space<smem>>
    %226 = vector.broadcast %225 : f32 to vector<8x128xf32>
    %227 = arith.mulf %224, %226 : vector<8x128xf32>
    %228 = arith.addf %222, %227 : vector<8x128xf32>
    %c0_183 = arith.constant 0 : index
    %c3_184 = arith.constant 3 : index
    %c0_185 = arith.constant 0 : index
    %229 = vector.load %arg1[%c0_183, %c3_184, %c0_185] : memref<8x8x128xf32, #tpu.memory_space<vmem>>, vector<8x1x128xf32>
    %230 = vector.shape_cast %229 : vector<8x1x128xf32> to vector<8x128xf32>
    %c4_186 = arith.constant 4 : index
    %c3_187 = arith.constant 3 : index
    %231 = memref.load %arg2[%c4_186, %c3_187] : memref<16x8xf32, #tpu.memory_space<smem>>
    %232 = vector.broadcast %231 : f32 to vector<8x128xf32>
    %233 = arith.mulf %230, %232 : vector<8x128xf32>
    %234 = arith.addf %228, %233 : vector<8x128xf32>
    %c0_188 = arith.constant 0 : index
    %c4_189 = arith.constant 4 : index
    %c0_190 = arith.constant 0 : index
    %235 = vector.load %arg1[%c0_188, %c4_189, %c0_190] : memref<8x8x128xf32, #tpu.memory_space<vmem>>, vector<8x1x128xf32>
    %236 = vector.shape_cast %235 : vector<8x1x128xf32> to vector<8x128xf32>
    %c4_191 = arith.constant 4 : index
    %c4_192 = arith.constant 4 : index
    %237 = memref.load %arg2[%c4_191, %c4_192] : memref<16x8xf32, #tpu.memory_space<smem>>
    %238 = vector.broadcast %237 : f32 to vector<8x128xf32>
    %239 = arith.mulf %236, %238 : vector<8x128xf32>
    %240 = arith.addf %234, %239 : vector<8x128xf32>
    %c0_193 = arith.constant 0 : index
    %c5_194 = arith.constant 5 : index
    %c0_195 = arith.constant 0 : index
    %241 = vector.load %arg1[%c0_193, %c5_194, %c0_195] : memref<8x8x128xf32, #tpu.memory_space<vmem>>, vector<8x1x128xf32>
    %242 = vector.shape_cast %241 : vector<8x1x128xf32> to vector<8x128xf32>
    %c4_196 = arith.constant 4 : index
    %c5_197 = arith.constant 5 : index
    %243 = memref.load %arg2[%c4_196, %c5_197] : memref<16x8xf32, #tpu.memory_space<smem>>
    %244 = vector.broadcast %243 : f32 to vector<8x128xf32>
    %245 = arith.mulf %242, %244 : vector<8x128xf32>
    %246 = arith.addf %240, %245 : vector<8x128xf32>
    %c0_198 = arith.constant 0 : index
    %c6_199 = arith.constant 6 : index
    %c0_200 = arith.constant 0 : index
    %247 = vector.load %arg1[%c0_198, %c6_199, %c0_200] : memref<8x8x128xf32, #tpu.memory_space<vmem>>, vector<8x1x128xf32>
    %248 = vector.shape_cast %247 : vector<8x1x128xf32> to vector<8x128xf32>
    %c4_201 = arith.constant 4 : index
    %c6_202 = arith.constant 6 : index
    %249 = memref.load %arg2[%c4_201, %c6_202] : memref<16x8xf32, #tpu.memory_space<smem>>
    %250 = vector.broadcast %249 : f32 to vector<8x128xf32>
    %251 = arith.mulf %248, %250 : vector<8x128xf32>
    %252 = arith.addf %246, %251 : vector<8x128xf32>
    %c0_203 = arith.constant 0 : index
    %c7_204 = arith.constant 7 : index
    %c0_205 = arith.constant 0 : index
    %253 = vector.load %arg1[%c0_203, %c7_204, %c0_205] : memref<8x8x128xf32, #tpu.memory_space<vmem>>, vector<8x1x128xf32>
    %254 = vector.shape_cast %253 : vector<8x1x128xf32> to vector<8x128xf32>
    %c4_206 = arith.constant 4 : index
    %c7_207 = arith.constant 7 : index
    %255 = memref.load %arg2[%c4_206, %c7_207] : memref<16x8xf32, #tpu.memory_space<smem>>
    %256 = vector.broadcast %255 : f32 to vector<8x128xf32>
    %257 = arith.mulf %254, %256 : vector<8x128xf32>
    %258 = arith.addf %252, %257 : vector<8x128xf32>
    %c4_208 = arith.constant 4 : index
    %259 = memref.load %arg3[%c4_208] : memref<16xf32, #tpu.memory_space<smem>>
    %260 = vector.broadcast %259 : f32 to vector<8x128xf32>
    %261 = arith.addf %258, %260 : vector<8x128xf32>
    %c0_209 = arith.constant 0 : index
    %c4_210 = arith.constant 4 : index
    %c0_211 = arith.constant 0 : index
    %262 = vector.load %arg4[%c0_209, %c4_210, %c0_211] : memref<8x16x128xf32, #tpu.memory_space<vmem>>, vector<8x1x128xf32>
    %263 = vector.shape_cast %262 : vector<8x1x128xf32> to vector<8x128xf32>
    %264 = vector.shape_cast %261 : vector<8x128xf32> to vector<8x1x128xf32>
    tpu.vector_store %arg4[%c0_209, %c4_210, %c0_211], %264 {strides = array<i32>} : memref<8x16x128xf32, #tpu.memory_space<vmem>>, vector<8x1x128xf32>,
    %c0_212 = arith.constant 0 : index
    %c0_213 = arith.constant 0 : index
    %c0_214 = arith.constant 0 : index
    %265 = vector.load %arg1[%c0_212, %c0_213, %c0_214] : memref<8x8x128xf32, #tpu.memory_space<vmem>>, vector<8x1x128xf32>
    %266 = vector.shape_cast %265 : vector<8x1x128xf32> to vector<8x128xf32>
    %c5_215 = arith.constant 5 : index
    %c0_216 = arith.constant 0 : index
    %267 = memref.load %arg2[%c5_215, %c0_216] : memref<16x8xf32, #tpu.memory_space<smem>>
    %268 = vector.broadcast %267 : f32 to vector<8x128xf32>
    %269 = arith.mulf %266, %268 : vector<8x128xf32>
    %c0_217 = arith.constant 0 : index
    %c1_218 = arith.constant 1 : index
    %c0_219 = arith.constant 0 : index
    %270 = vector.load %arg1[%c0_217, %c1_218, %c0_219] : memref<8x8x128xf32, #tpu.memory_space<vmem>>, vector<8x1x128xf32>
    %271 = vector.shape_cast %270 : vector<8x1x128xf32> to vector<8x128xf32>
    %c5_220 = arith.constant 5 : index
    %c1_221 = arith.constant 1 : index
    %272 = memref.load %arg2[%c5_220, %c1_221] : memref<16x8xf32, #tpu.memory_space<smem>>
    %273 = vector.broadcast %272 : f32 to vector<8x128xf32>
    %274 = arith.mulf %271, %273 : vector<8x128xf32>
    %275 = arith.addf %269, %274 : vector<8x128xf32>
    %c0_222 = arith.constant 0 : index
    %c2_223 = arith.constant 2 : index
    %c0_224 = arith.constant 0 : index
    %276 = vector.load %arg1[%c0_222, %c2_223, %c0_224] : memref<8x8x128xf32, #tpu.memory_space<vmem>>, vector<8x1x128xf32>
    %277 = vector.shape_cast %276 : vector<8x1x128xf32> to vector<8x128xf32>
    %c5_225 = arith.constant 5 : index
    %c2_226 = arith.constant 2 : index
    %278 = memref.load %arg2[%c5_225, %c2_226] : memref<16x8xf32, #tpu.memory_space<smem>>
    %279 = vector.broadcast %278 : f32 to vector<8x128xf32>
    %280 = arith.mulf %277, %279 : vector<8x128xf32>
    %281 = arith.addf %275, %280 : vector<8x128xf32>
    %c0_227 = arith.constant 0 : index
    %c3_228 = arith.constant 3 : index
    %c0_229 = arith.constant 0 : index
    %282 = vector.load %arg1[%c0_227, %c3_228, %c0_229] : memref<8x8x128xf32, #tpu.memory_space<vmem>>, vector<8x1x128xf32>
    %283 = vector.shape_cast %282 : vector<8x1x128xf32> to vector<8x128xf32>
    %c5_230 = arith.constant 5 : index
    %c3_231 = arith.constant 3 : index
    %284 = memref.load %arg2[%c5_230, %c3_231] : memref<16x8xf32, #tpu.memory_space<smem>>
    %285 = vector.broadcast %284 : f32 to vector<8x128xf32>
    %286 = arith.mulf %283, %285 : vector<8x128xf32>
    %287 = arith.addf %281, %286 : vector<8x128xf32>
    %c0_232 = arith.constant 0 : index
    %c4_233 = arith.constant 4 : index
    %c0_234 = arith.constant 0 : index
    %288 = vector.load %arg1[%c0_232, %c4_233, %c0_234] : memref<8x8x128xf32, #tpu.memory_space<vmem>>, vector<8x1x128xf32>
    %289 = vector.shape_cast %288 : vector<8x1x128xf32> to vector<8x128xf32>
    %c5_235 = arith.constant 5 : index
    %c4_236 = arith.constant 4 : index
    %290 = memref.load %arg2[%c5_235, %c4_236] : memref<16x8xf32, #tpu.memory_space<smem>>
    %291 = vector.broadcast %290 : f32 to vector<8x128xf32>
    %292 = arith.mulf %289, %291 : vector<8x128xf32>
    %293 = arith.addf %287, %292 : vector<8x128xf32>
    %c0_237 = arith.constant 0 : index
    %c5_238 = arith.constant 5 : index
    %c0_239 = arith.constant 0 : index
    %294 = vector.load %arg1[%c0_237, %c5_238, %c0_239] : memref<8x8x128xf32, #tpu.memory_space<vmem>>, vector<8x1x128xf32>
    %295 = vector.shape_cast %294 : vector<8x1x128xf32> to vector<8x128xf32>
    %c5_240 = arith.constant 5 : index
    %c5_241 = arith.constant 5 : index
    %296 = memref.load %arg2[%c5_240, %c5_241] : memref<16x8xf32, #tpu.memory_space<smem>>
    %297 = vector.broadcast %296 : f32 to vector<8x128xf32>
    %298 = arith.mulf %295, %297 : vector<8x128xf32>
    %299 = arith.addf %293, %298 : vector<8x128xf32>
    %c0_242 = arith.constant 0 : index
    %c6_243 = arith.constant 6 : index
    %c0_244 = arith.constant 0 : index
    %300 = vector.load %arg1[%c0_242, %c6_243, %c0_244] : memref<8x8x128xf32, #tpu.memory_space<vmem>>, vector<8x1x128xf32>
    %301 = vector.shape_cast %300 : vector<8x1x128xf32> to vector<8x128xf32>
    %c5_245 = arith.constant 5 : index
    %c6_246 = arith.constant 6 : index
    %302 = memref.load %arg2[%c5_245, %c6_246] : memref<16x8xf32, #tpu.memory_space<smem>>
    %303 = vector.broadcast %302 : f32 to vector<8x128xf32>
    %304 = arith.mulf %301, %303 : vector<8x128xf32>
    %305 = arith.addf %299, %304 : vector<8x128xf32>
    %c0_247 = arith.constant 0 : index
    %c7_248 = arith.constant 7 : index
    %c0_249 = arith.constant 0 : index
    %306 = vector.load %arg1[%c0_247, %c7_248, %c0_249] : memref<8x8x128xf32, #tpu.memory_space<vmem>>, vector<8x1x128xf32>
    %307 = vector.shape_cast %306 : vector<8x1x128xf32> to vector<8x128xf32>
    %c5_250 = arith.constant 5 : index
    %c7_251 = arith.constant 7 : index
    %308 = memref.load %arg2[%c5_250, %c7_251] : memref<16x8xf32, #tpu.memory_space<smem>>
    %309 = vector.broadcast %308 : f32 to vector<8x128xf32>
    %310 = arith.mulf %307, %309 : vector<8x128xf32>
    %311 = arith.addf %305, %310 : vector<8x128xf32>
    %c5_252 = arith.constant 5 : index
    %312 = memref.load %arg3[%c5_252] : memref<16xf32, #tpu.memory_space<smem>>
    %313 = vector.broadcast %312 : f32 to vector<8x128xf32>
    %314 = arith.addf %311, %313 : vector<8x128xf32>
    %c0_253 = arith.constant 0 : index
    %c5_254 = arith.constant 5 : index
    %c0_255 = arith.constant 0 : index
    %315 = vector.load %arg4[%c0_253, %c5_254, %c0_255] : memref<8x16x128xf32, #tpu.memory_space<vmem>>, vector<8x1x128xf32>
    %316 = vector.shape_cast %315 : vector<8x1x128xf32> to vector<8x128xf32>
    %317 = vector.shape_cast %314 : vector<8x128xf32> to vector<8x1x128xf32>
    tpu.vector_store %arg4[%c0_253, %c5_254, %c0_255], %317 {strides = array<i32>} : memref<8x16x128xf32, #tpu.memory_space<vmem>>, vector<8x1x128xf32>,
    %c0_256 = arith.constant 0 : index
    %c0_257 = arith.constant 0 : index
    %c0_258 = arith.constant 0 : index
    %318 = vector.load %arg1[%c0_256, %c0_257, %c0_258] : memref<8x8x128xf32, #tpu.memory_space<vmem>>, vector<8x1x128xf32>
    %319 = vector.shape_cast %318 : vector<8x1x128xf32> to vector<8x128xf32>
    %c6_259 = arith.constant 6 : index
    %c0_260 = arith.constant 0 : index
    %320 = memref.load %arg2[%c6_259, %c0_260] : memref<16x8xf32, #tpu.memory_space<smem>>
    %321 = vector.broadcast %320 : f32 to vector<8x128xf32>
    %322 = arith.mulf %319, %321 : vector<8x128xf32>
    %c0_261 = arith.constant 0 : index
    %c1_262 = arith.constant 1 : index
    %c0_263 = arith.constant 0 : index
    %323 = vector.load %arg1[%c0_261, %c1_262, %c0_263] : memref<8x8x128xf32, #tpu.memory_space<vmem>>, vector<8x1x128xf32>
    %324 = vector.shape_cast %323 : vector<8x1x128xf32> to vector<8x128xf32>
    %c6_264 = arith.constant 6 : index
    %c1_265 = arith.constant 1 : index
    %325 = memref.load %arg2[%c6_264, %c1_265] : memref<16x8xf32, #tpu.memory_space<smem>>
    %326 = vector.broadcast %325 : f32 to vector<8x128xf32>
    %327 = arith.mulf %324, %326 : vector<8x128xf32>
    %328 = arith.addf %322, %327 : vector<8x128xf32>
    %c0_266 = arith.constant 0 : index
    %c2_267 = arith.constant 2 : index
    %c0_268 = arith.constant 0 : index
    %329 = vector.load %arg1[%c0_266, %c2_267, %c0_268] : memref<8x8x128xf32, #tpu.memory_space<vmem>>, vector<8x1x128xf32>
    %330 = vector.shape_cast %329 : vector<8x1x128xf32> to vector<8x128xf32>
    %c6_269 = arith.constant 6 : index
    %c2_270 = arith.constant 2 : index
    %331 = memref.load %arg2[%c6_269, %c2_270] : memref<16x8xf32, #tpu.memory_space<smem>>
    %332 = vector.broadcast %331 : f32 to vector<8x128xf32>
    %333 = arith.mulf %330, %332 : vector<8x128xf32>
    %334 = arith.addf %328, %333 : vector<8x128xf32>
    %c0_271 = arith.constant 0 : index
    %c3_272 = arith.constant 3 : index
    %c0_273 = arith.constant 0 : index
    %335 = vector.load %arg1[%c0_271, %c3_272, %c0_273] : memref<8x8x128xf32, #tpu.memory_space<vmem>>, vector<8x1x128xf32>
    %336 = vector.shape_cast %335 : vector<8x1x128xf32> to vector<8x128xf32>
    %c6_274 = arith.constant 6 : index
    %c3_275 = arith.constant 3 : index
    %337 = memref.load %arg2[%c6_274, %c3_275] : memref<16x8xf32, #tpu.memory_space<smem>>
    %338 = vector.broadcast %337 : f32 to vector<8x128xf32>
    %339 = arith.mulf %336, %338 : vector<8x128xf32>
    %340 = arith.addf %334, %339 : vector<8x128xf32>
    %c0_276 = arith.constant 0 : index
    %c4_277 = arith.constant 4 : index
    %c0_278 = arith.constant 0 : index
    %341 = vector.load %arg1[%c0_276, %c4_277, %c0_278] : memref<8x8x128xf32, #tpu.memory_space<vmem>>, vector<8x1x128xf32>
    %342 = vector.shape_cast %341 : vector<8x1x128xf32> to vector<8x128xf32>
    %c6_279 = arith.constant 6 : index
    %c4_280 = arith.constant 4 : index
    %343 = memref.load %arg2[%c6_279, %c4_280] : memref<16x8xf32, #tpu.memory_space<smem>>
    %344 = vector.broadcast %343 : f32 to vector<8x128xf32>
    %345 = arith.mulf %342, %344 : vector<8x128xf32>
    %346 = arith.addf %340, %345 : vector<8x128xf32>
    %c0_281 = arith.constant 0 : index
    %c5_282 = arith.constant 5 : index
    %c0_283 = arith.constant 0 : index
    %347 = vector.load %arg1[%c0_281, %c5_282, %c0_283] : memref<8x8x128xf32, #tpu.memory_space<vmem>>, vector<8x1x128xf32>
    %348 = vector.shape_cast %347 : vector<8x1x128xf32> to vector<8x128xf32>
    %c6_284 = arith.constant 6 : index
    %c5_285 = arith.constant 5 : index
    %349 = memref.load %arg2[%c6_284, %c5_285] : memref<16x8xf32, #tpu.memory_space<smem>>
    %350 = vector.broadcast %349 : f32 to vector<8x128xf32>
    %351 = arith.mulf %348, %350 : vector<8x128xf32>
    %352 = arith.addf %346, %351 : vector<8x128xf32>
    %c0_286 = arith.constant 0 : index
    %c6_287 = arith.constant 6 : index
    %c0_288 = arith.constant 0 : index
    %353 = vector.load %arg1[%c0_286, %c6_287, %c0_288] : memref<8x8x128xf32, #tpu.memory_space<vmem>>, vector<8x1x128xf32>
    %354 = vector.shape_cast %353 : vector<8x1x128xf32> to vector<8x128xf32>
    %c6_289 = arith.constant 6 : index
    %c6_290 = arith.constant 6 : index
    %355 = memref.load %arg2[%c6_289, %c6_290] : memref<16x8xf32, #tpu.memory_space<smem>>
    %356 = vector.broadcast %355 : f32 to vector<8x128xf32>
    %357 = arith.mulf %354, %356 : vector<8x128xf32>
    %358 = arith.addf %352, %357 : vector<8x128xf32>
    %c0_291 = arith.constant 0 : index
    %c7_292 = arith.constant 7 : index
    %c0_293 = arith.constant 0 : index
    %359 = vector.load %arg1[%c0_291, %c7_292, %c0_293] : memref<8x8x128xf32, #tpu.memory_space<vmem>>, vector<8x1x128xf32>
    %360 = vector.shape_cast %359 : vector<8x1x128xf32> to vector<8x128xf32>
    %c6_294 = arith.constant 6 : index
    %c7_295 = arith.constant 7 : index
    %361 = memref.load %arg2[%c6_294, %c7_295] : memref<16x8xf32, #tpu.memory_space<smem>>
    %362 = vector.broadcast %361 : f32 to vector<8x128xf32>
    %363 = arith.mulf %360, %362 : vector<8x128xf32>
    %364 = arith.addf %358, %363 : vector<8x128xf32>
    %c6_296 = arith.constant 6 : index
    %365 = memref.load %arg3[%c6_296] : memref<16xf32, #tpu.memory_space<smem>>
    %366 = vector.broadcast %365 : f32 to vector<8x128xf32>
    %367 = arith.addf %364, %366 : vector<8x128xf32>
    %c0_297 = arith.constant 0 : index
    %c6_298 = arith.constant 6 : index
    %c0_299 = arith.constant 0 : index
    %368 = vector.load %arg4[%c0_297, %c6_298, %c0_299] : memref<8x16x128xf32, #tpu.memory_space<vmem>>, vector<8x1x128xf32>
    %369 = vector.shape_cast %368 : vector<8x1x128xf32> to vector<8x128xf32>
    %370 = vector.shape_cast %367 : vector<8x128xf32> to vector<8x1x128xf32>
    tpu.vector_store %arg4[%c0_297, %c6_298, %c0_299], %370 {strides = array<i32>} : memref<8x16x128xf32, #tpu.memory_space<vmem>>, vector<8x1x128xf32>,
    %c0_300 = arith.constant 0 : index
    %c0_301 = arith.constant 0 : index
    %c0_302 = arith.constant 0 : index
    %371 = vector.load %arg1[%c0_300, %c0_301, %c0_302] : memref<8x8x128xf32, #tpu.memory_space<vmem>>, vector<8x1x128xf32>
    %372 = vector.shape_cast %371 : vector<8x1x128xf32> to vector<8x128xf32>
    %c7_303 = arith.constant 7 : index
    %c0_304 = arith.constant 0 : index
    %373 = memref.load %arg2[%c7_303, %c0_304] : memref<16x8xf32, #tpu.memory_space<smem>>
    %374 = vector.broadcast %373 : f32 to vector<8x128xf32>
    %375 = arith.mulf %372, %374 : vector<8x128xf32>
    %c0_305 = arith.constant 0 : index
    %c1_306 = arith.constant 1 : index
    %c0_307 = arith.constant 0 : index
    %376 = vector.load %arg1[%c0_305, %c1_306, %c0_307] : memref<8x8x128xf32, #tpu.memory_space<vmem>>, vector<8x1x128xf32>
    %377 = vector.shape_cast %376 : vector<8x1x128xf32> to vector<8x128xf32>
    %c7_308 = arith.constant 7 : index
    %c1_309 = arith.constant 1 : index
    %378 = memref.load %arg2[%c7_308, %c1_309] : memref<16x8xf32, #tpu.memory_space<smem>>
    %379 = vector.broadcast %378 : f32 to vector<8x128xf32>
    %380 = arith.mulf %377, %379 : vector<8x128xf32>
    %381 = arith.addf %375, %380 : vector<8x128xf32>
    %c0_310 = arith.constant 0 : index
    %c2_311 = arith.constant 2 : index
    %c0_312 = arith.constant 0 : index
    %382 = vector.load %arg1[%c0_310, %c2_311, %c0_312] : memref<8x8x128xf32, #tpu.memory_space<vmem>>, vector<8x1x128xf32>
    %383 = vector.shape_cast %382 : vector<8x1x128xf32> to vector<8x128xf32>
    %c7_313 = arith.constant 7 : index
    %c2_314 = arith.constant 2 : index
    %384 = memref.load %arg2[%c7_313, %c2_314] : memref<16x8xf32, #tpu.memory_space<smem>>
    %385 = vector.broadcast %384 : f32 to vector<8x128xf32>
    %386 = arith.mulf %383, %385 : vector<8x128xf32>
    %387 = arith.addf %381, %386 : vector<8x128xf32>
    %c0_315 = arith.constant 0 : index
    %c3_316 = arith.constant 3 : index
    %c0_317 = arith.constant 0 : index
    %388 = vector.load %arg1[%c0_315, %c3_316, %c0_317] : memref<8x8x128xf32, #tpu.memory_space<vmem>>, vector<8x1x128xf32>
    %389 = vector.shape_cast %388 : vector<8x1x128xf32> to vector<8x128xf32>
    %c7_318 = arith.constant 7 : index
    %c3_319 = arith.constant 3 : index
    %390 = memref.load %arg2[%c7_318, %c3_319] : memref<16x8xf32, #tpu.memory_space<smem>>
    %391 = vector.broadcast %390 : f32 to vector<8x128xf32>
    %392 = arith.mulf %389, %391 : vector<8x128xf32>
    %393 = arith.addf %387, %392 : vector<8x128xf32>
    %c0_320 = arith.constant 0 : index
    %c4_321 = arith.constant 4 : index
    %c0_322 = arith.constant 0 : index
    %394 = vector.load %arg1[%c0_320, %c4_321, %c0_322] : memref<8x8x128xf32, #tpu.memory_space<vmem>>, vector<8x1x128xf32>
    %395 = vector.shape_cast %394 : vector<8x1x128xf32> to vector<8x128xf32>
    %c7_323 = arith.constant 7 : index
    %c4_324 = arith.constant 4 : index
    %396 = memref.load %arg2[%c7_323, %c4_324] : memref<16x8xf32, #tpu.memory_space<smem>>
    %397 = vector.broadcast %396 : f32 to vector<8x128xf32>
    %398 = arith.mulf %395, %397 : vector<8x128xf32>
    %399 = arith.addf %393, %398 : vector<8x128xf32>
    %c0_325 = arith.constant 0 : index
    %c5_326 = arith.constant 5 : index
    %c0_327 = arith.constant 0 : index
    %400 = vector.load %arg1[%c0_325, %c5_326, %c0_327] : memref<8x8x128xf32, #tpu.memory_space<vmem>>, vector<8x1x128xf32>
    %401 = vector.shape_cast %400 : vector<8x1x128xf32> to vector<8x128xf32>
    %c7_328 = arith.constant 7 : index
    %c5_329 = arith.constant 5 : index
    %402 = memref.load %arg2[%c7_328, %c5_329] : memref<16x8xf32, #tpu.memory_space<smem>>
    %403 = vector.broadcast %402 : f32 to vector<8x128xf32>
    %404 = arith.mulf %401, %403 : vector<8x128xf32>
    %405 = arith.addf %399, %404 : vector<8x128xf32>
    %c0_330 = arith.constant 0 : index
    %c6_331 = arith.constant 6 : index
    %c0_332 = arith.constant 0 : index
    %406 = vector.load %arg1[%c0_330, %c6_331, %c0_332] : memref<8x8x128xf32, #tpu.memory_space<vmem>>, vector<8x1x128xf32>
    %407 = vector.shape_cast %406 : vector<8x1x128xf32> to vector<8x128xf32>
    %c7_333 = arith.constant 7 : index
    %c6_334 = arith.constant 6 : index
    %408 = memref.load %arg2[%c7_333, %c6_334] : memref<16x8xf32, #tpu.memory_space<smem>>
    %409 = vector.broadcast %408 : f32 to vector<8x128xf32>
    %410 = arith.mulf %407, %409 : vector<8x128xf32>
    %411 = arith.addf %405, %410 : vector<8x128xf32>
    %c0_335 = arith.constant 0 : index
    %c7_336 = arith.constant 7 : index
    %c0_337 = arith.constant 0 : index
    %412 = vector.load %arg1[%c0_335, %c7_336, %c0_337] : memref<8x8x128xf32, #tpu.memory_space<vmem>>, vector<8x1x128xf32>
    %413 = vector.shape_cast %412 : vector<8x1x128xf32> to vector<8x128xf32>
    %c7_338 = arith.constant 7 : index
    %c7_339 = arith.constant 7 : index
    %414 = memref.load %arg2[%c7_338, %c7_339] : memref<16x8xf32, #tpu.memory_space<smem>>
    %415 = vector.broadcast %414 : f32 to vector<8x128xf32>
    %416 = arith.mulf %413, %415 : vector<8x128xf32>
    %417 = arith.addf %411, %416 : vector<8x128xf32>
    %c7_340 = arith.constant 7 : index
    %418 = memref.load %arg3[%c7_340] : memref<16xf32, #tpu.memory_space<smem>>
    %419 = vector.broadcast %418 : f32 to vector<8x128xf32>
    %420 = arith.addf %417, %419 : vector<8x128xf32>
    %c0_341 = arith.constant 0 : index
    %c7_342 = arith.constant 7 : index
    %c0_343 = arith.constant 0 : index
    %421 = vector.load %arg4[%c0_341, %c7_342, %c0_343] : memref<8x16x128xf32, #tpu.memory_space<vmem>>, vector<8x1x128xf32>
    %422 = vector.shape_cast %421 : vector<8x1x128xf32> to vector<8x128xf32>
    %423 = vector.shape_cast %420 : vector<8x128xf32> to vector<8x1x128xf32>
    tpu.vector_store %arg4[%c0_341, %c7_342, %c0_343], %423 {strides = array<i32>} : memref<8x16x128xf32, #tpu.memory_space<vmem>>, vector<8x1x128xf32>,
    %c0_344 = arith.constant 0 : index
    %c0_345 = arith.constant 0 : index
    %c0_346 = arith.constant 0 : index
    %424 = vector.load %arg1[%c0_344, %c0_345, %c0_346] : memref<8x8x128xf32, #tpu.memory_space<vmem>>, vector<8x1x128xf32>
    %425 = vector.shape_cast %424 : vector<8x1x128xf32> to vector<8x128xf32>
    %c8 = arith.constant 8 : index
    %c0_347 = arith.constant 0 : index
    %426 = memref.load %arg2[%c8, %c0_347] : memref<16x8xf32, #tpu.memory_space<smem>>
    %427 = vector.broadcast %426 : f32 to vector<8x128xf32>
    %428 = arith.mulf %425, %427 : vector<8x128xf32>
    %c0_348 = arith.constant 0 : index
    %c1_349 = arith.constant 1 : index
    %c0_350 = arith.constant 0 : index
    %429 = vector.load %arg1[%c0_348, %c1_349, %c0_350] : memref<8x8x128xf32, #tpu.memory_space<vmem>>, vector<8x1x128xf32>
    %430 = vector.shape_cast %429 : vector<8x1x128xf32> to vector<8x128xf32>
    %c8_351 = arith.constant 8 : index
    %c1_352 = arith.constant 1 : index
    %431 = memref.load %arg2[%c8_351, %c1_352] : memref<16x8xf32, #tpu.memory_space<smem>>
    %432 = vector.broadcast %431 : f32 to vector<8x128xf32>
    %433 = arith.mulf %430, %432 : vector<8x128xf32>
    %434 = arith.addf %428, %433 : vector<8x128xf32>
    %c0_353 = arith.constant 0 : index
    %c2_354 = arith.constant 2 : index
    %c0_355 = arith.constant 0 : index
    %435 = vector.load %arg1[%c0_353, %c2_354, %c0_355] : memref<8x8x128xf32, #tpu.memory_space<vmem>>, vector<8x1x128xf32>
    %436 = vector.shape_cast %435 : vector<8x1x128xf32> to vector<8x128xf32>
    %c8_356 = arith.constant 8 : index
    %c2_357 = arith.constant 2 : index
    %437 = memref.load %arg2[%c8_356, %c2_357] : memref<16x8xf32, #tpu.memory_space<smem>>
    %438 = vector.broadcast %437 : f32 to vector<8x128xf32>
    %439 = arith.mulf %436, %438 : vector<8x128xf32>
    %440 = arith.addf %434, %439 : vector<8x128xf32>
    %c0_358 = arith.constant 0 : index
    %c3_359 = arith.constant 3 : index
    %c0_360 = arith.constant 0 : index
    %441 = vector.load %arg1[%c0_358, %c3_359, %c0_360] : memref<8x8x128xf32, #tpu.memory_space<vmem>>, vector<8x1x128xf32>
    %442 = vector.shape_cast %441 : vector<8x1x128xf32> to vector<8x128xf32>
    %c8_361 = arith.constant 8 : index
    %c3_362 = arith.constant 3 : index
    %443 = memref.load %arg2[%c8_361, %c3_362] : memref<16x8xf32, #tpu.memory_space<smem>>
    %444 = vector.broadcast %443 : f32 to vector<8x128xf32>
    %445 = arith.mulf %442, %444 : vector<8x128xf32>
    %446 = arith.addf %440, %445 : vector<8x128xf32>
    %c0_363 = arith.constant 0 : index
    %c4_364 = arith.constant 4 : index
    %c0_365 = arith.constant 0 : index
    %447 = vector.load %arg1[%c0_363, %c4_364, %c0_365] : memref<8x8x128xf32, #tpu.memory_space<vmem>>, vector<8x1x128xf32>
    %448 = vector.shape_cast %447 : vector<8x1x128xf32> to vector<8x128xf32>
    %c8_366 = arith.constant 8 : index
    %c4_367 = arith.constant 4 : index
    %449 = memref.load %arg2[%c8_366, %c4_367] : memref<16x8xf32, #tpu.memory_space<smem>>
    %450 = vector.broadcast %449 : f32 to vector<8x128xf32>
    %451 = arith.mulf %448, %450 : vector<8x128xf32>
    %452 = arith.addf %446, %451 : vector<8x128xf32>
    %c0_368 = arith.constant 0 : index
    %c5_369 = arith.constant 5 : index
    %c0_370 = arith.constant 0 : index
    %453 = vector.load %arg1[%c0_368, %c5_369, %c0_370] : memref<8x8x128xf32, #tpu.memory_space<vmem>>, vector<8x1x128xf32>
    %454 = vector.shape_cast %453 : vector<8x1x128xf32> to vector<8x128xf32>
    %c8_371 = arith.constant 8 : index
    %c5_372 = arith.constant 5 : index
    %455 = memref.load %arg2[%c8_371, %c5_372] : memref<16x8xf32, #tpu.memory_space<smem>>
    %456 = vector.broadcast %455 : f32 to vector<8x128xf32>
    %457 = arith.mulf %454, %456 : vector<8x128xf32>
    %458 = arith.addf %452, %457 : vector<8x128xf32>
    %c0_373 = arith.constant 0 : index
    %c6_374 = arith.constant 6 : index
    %c0_375 = arith.constant 0 : index
    %459 = vector.load %arg1[%c0_373, %c6_374, %c0_375] : memref<8x8x128xf32, #tpu.memory_space<vmem>>, vector<8x1x128xf32>
    %460 = vector.shape_cast %459 : vector<8x1x128xf32> to vector<8x128xf32>
    %c8_376 = arith.constant 8 : index
    %c6_377 = arith.constant 6 : index
    %461 = memref.load %arg2[%c8_376, %c6_377] : memref<16x8xf32, #tpu.memory_space<smem>>
    %462 = vector.broadcast %461 : f32 to vector<8x128xf32>
    %463 = arith.mulf %460, %462 : vector<8x128xf32>
    %464 = arith.addf %458, %463 : vector<8x128xf32>
    %c0_378 = arith.constant 0 : index
    %c7_379 = arith.constant 7 : index
    %c0_380 = arith.constant 0 : index
    %465 = vector.load %arg1[%c0_378, %c7_379, %c0_380] : memref<8x8x128xf32, #tpu.memory_space<vmem>>, vector<8x1x128xf32>
    %466 = vector.shape_cast %465 : vector<8x1x128xf32> to vector<8x128xf32>
    %c8_381 = arith.constant 8 : index
    %c7_382 = arith.constant 7 : index
    %467 = memref.load %arg2[%c8_381, %c7_382] : memref<16x8xf32, #tpu.memory_space<smem>>
    %468 = vector.broadcast %467 : f32 to vector<8x128xf32>
    %469 = arith.mulf %466, %468 : vector<8x128xf32>
    %470 = arith.addf %464, %469 : vector<8x128xf32>
    %c8_383 = arith.constant 8 : index
    %471 = memref.load %arg3[%c8_383] : memref<16xf32, #tpu.memory_space<smem>>
    %472 = vector.broadcast %471 : f32 to vector<8x128xf32>
    %473 = arith.addf %470, %472 : vector<8x128xf32>
    %c0_384 = arith.constant 0 : index
    %c8_385 = arith.constant 8 : index
    %c0_386 = arith.constant 0 : index
    %474 = vector.load %arg4[%c0_384, %c8_385, %c0_386] : memref<8x16x128xf32, #tpu.memory_space<vmem>>, vector<8x1x128xf32>
    %475 = vector.shape_cast %474 : vector<8x1x128xf32> to vector<8x128xf32>
    %476 = vector.shape_cast %473 : vector<8x128xf32> to vector<8x1x128xf32>
    tpu.vector_store %arg4[%c0_384, %c8_385, %c0_386], %476 {strides = array<i32>} : memref<8x16x128xf32, #tpu.memory_space<vmem>>, vector<8x1x128xf32>,
    %c0_387 = arith.constant 0 : index
    %c0_388 = arith.constant 0 : index
    %c0_389 = arith.constant 0 : index
    %477 = vector.load %arg1[%c0_387, %c0_388, %c0_389] : memref<8x8x128xf32, #tpu.memory_space<vmem>>, vector<8x1x128xf32>
    %478 = vector.shape_cast %477 : vector<8x1x128xf32> to vector<8x128xf32>
    %c9 = arith.constant 9 : index
    %c0_390 = arith.constant 0 : index
    %479 = memref.load %arg2[%c9, %c0_390] : memref<16x8xf32, #tpu.memory_space<smem>>
    %480 = vector.broadcast %479 : f32 to vector<8x128xf32>
    %481 = arith.mulf %478, %480 : vector<8x128xf32>
    %c0_391 = arith.constant 0 : index
    %c1_392 = arith.constant 1 : index
    %c0_393 = arith.constant 0 : index
    %482 = vector.load %arg1[%c0_391, %c1_392, %c0_393] : memref<8x8x128xf32, #tpu.memory_space<vmem>>, vector<8x1x128xf32>
    %483 = vector.shape_cast %482 : vector<8x1x128xf32> to vector<8x128xf32>
    %c9_394 = arith.constant 9 : index
    %c1_395 = arith.constant 1 : index
    %484 = memref.load %arg2[%c9_394, %c1_395] : memref<16x8xf32, #tpu.memory_space<smem>>
    %485 = vector.broadcast %484 : f32 to vector<8x128xf32>
    %486 = arith.mulf %483, %485 : vector<8x128xf32>
    %487 = arith.addf %481, %486 : vector<8x128xf32>
    %c0_396 = arith.constant 0 : index
    %c2_397 = arith.constant 2 : index
    %c0_398 = arith.constant 0 : index
    %488 = vector.load %arg1[%c0_396, %c2_397, %c0_398] : memref<8x8x128xf32, #tpu.memory_space<vmem>>, vector<8x1x128xf32>
    %489 = vector.shape_cast %488 : vector<8x1x128xf32> to vector<8x128xf32>
    %c9_399 = arith.constant 9 : index
    %c2_400 = arith.constant 2 : index
    %490 = memref.load %arg2[%c9_399, %c2_400] : memref<16x8xf32, #tpu.memory_space<smem>>
    %491 = vector.broadcast %490 : f32 to vector<8x128xf32>
    %492 = arith.mulf %489, %491 : vector<8x128xf32>
    %493 = arith.addf %487, %492 : vector<8x128xf32>
    %c0_401 = arith.constant 0 : index
    %c3_402 = arith.constant 3 : index
    %c0_403 = arith.constant 0 : index
    %494 = vector.load %arg1[%c0_401, %c3_402, %c0_403] : memref<8x8x128xf32, #tpu.memory_space<vmem>>, vector<8x1x128xf32>
    %495 = vector.shape_cast %494 : vector<8x1x128xf32> to vector<8x128xf32>
    %c9_404 = arith.constant 9 : index
    %c3_405 = arith.constant 3 : index
    %496 = memref.load %arg2[%c9_404, %c3_405] : memref<16x8xf32, #tpu.memory_space<smem>>
    %497 = vector.broadcast %496 : f32 to vector<8x128xf32>
    %498 = arith.mulf %495, %497 : vector<8x128xf32>
    %499 = arith.addf %493, %498 : vector<8x128xf32>
    %c0_406 = arith.constant 0 : index
    %c4_407 = arith.constant 4 : index
    %c0_408 = arith.constant 0 : index
    %500 = vector.load %arg1[%c0_406, %c4_407, %c0_408] : memref<8x8x128xf32, #tpu.memory_space<vmem>>, vector<8x1x128xf32>
    %501 = vector.shape_cast %500 : vector<8x1x128xf32> to vector<8x128xf32>
    %c9_409 = arith.constant 9 : index
    %c4_410 = arith.constant 4 : index
    %502 = memref.load %arg2[%c9_409, %c4_410] : memref<16x8xf32, #tpu.memory_space<smem>>
    %503 = vector.broadcast %502 : f32 to vector<8x128xf32>
    %504 = arith.mulf %501, %503 : vector<8x128xf32>
    %505 = arith.addf %499, %504 : vector<8x128xf32>
    %c0_411 = arith.constant 0 : index
    %c5_412 = arith.constant 5 : index
    %c0_413 = arith.constant 0 : index
    %506 = vector.load %arg1[%c0_411, %c5_412, %c0_413] : memref<8x8x128xf32, #tpu.memory_space<vmem>>, vector<8x1x128xf32>
    %507 = vector.shape_cast %506 : vector<8x1x128xf32> to vector<8x128xf32>
    %c9_414 = arith.constant 9 : index
    %c5_415 = arith.constant 5 : index
    %508 = memref.load %arg2[%c9_414, %c5_415] : memref<16x8xf32, #tpu.memory_space<smem>>
    %509 = vector.broadcast %508 : f32 to vector<8x128xf32>
    %510 = arith.mulf %507, %509 : vector<8x128xf32>
    %511 = arith.addf %505, %510 : vector<8x128xf32>
    %c0_416 = arith.constant 0 : index
    %c6_417 = arith.constant 6 : index
    %c0_418 = arith.constant 0 : index
    %512 = vector.load %arg1[%c0_416, %c6_417, %c0_418] : memref<8x8x128xf32, #tpu.memory_space<vmem>>, vector<8x1x128xf32>
    %513 = vector.shape_cast %512 : vector<8x1x128xf32> to vector<8x128xf32>
    %c9_419 = arith.constant 9 : index
    %c6_420 = arith.constant 6 : index
    %514 = memref.load %arg2[%c9_419, %c6_420] : memref<16x8xf32, #tpu.memory_space<smem>>
    %515 = vector.broadcast %514 : f32 to vector<8x128xf32>
    %516 = arith.mulf %513, %515 : vector<8x128xf32>
    %517 = arith.addf %511, %516 : vector<8x128xf32>
    %c0_421 = arith.constant 0 : index
    %c7_422 = arith.constant 7 : index
    %c0_423 = arith.constant 0 : index
    %518 = vector.load %arg1[%c0_421, %c7_422, %c0_423] : memref<8x8x128xf32, #tpu.memory_space<vmem>>, vector<8x1x128xf32>
    %519 = vector.shape_cast %518 : vector<8x1x128xf32> to vector<8x128xf32>
    %c9_424 = arith.constant 9 : index
    %c7_425 = arith.constant 7 : index
    %520 = memref.load %arg2[%c9_424, %c7_425] : memref<16x8xf32, #tpu.memory_space<smem>>
    %521 = vector.broadcast %520 : f32 to vector<8x128xf32>
    %522 = arith.mulf %519, %521 : vector<8x128xf32>
    %523 = arith.addf %517, %522 : vector<8x128xf32>
    %c9_426 = arith.constant 9 : index
    %524 = memref.load %arg3[%c9_426] : memref<16xf32, #tpu.memory_space<smem>>
    %525 = vector.broadcast %524 : f32 to vector<8x128xf32>
    %526 = arith.addf %523, %525 : vector<8x128xf32>
    %c0_427 = arith.constant 0 : index
    %c9_428 = arith.constant 9 : index
    %c0_429 = arith.constant 0 : index
    %527 = vector.load %arg4[%c0_427, %c9_428, %c0_429] : memref<8x16x128xf32, #tpu.memory_space<vmem>>, vector<8x1x128xf32>
    %528 = vector.shape_cast %527 : vector<8x1x128xf32> to vector<8x128xf32>
    %529 = vector.shape_cast %526 : vector<8x128xf32> to vector<8x1x128xf32>
    tpu.vector_store %arg4[%c0_427, %c9_428, %c0_429], %529 {strides = array<i32>} : memref<8x16x128xf32, #tpu.memory_space<vmem>>, vector<8x1x128xf32>,
    %c0_430 = arith.constant 0 : index
    %c0_431 = arith.constant 0 : index
    %c0_432 = arith.constant 0 : index
    %530 = vector.load %arg1[%c0_430, %c0_431, %c0_432] : memref<8x8x128xf32, #tpu.memory_space<vmem>>, vector<8x1x128xf32>
    %531 = vector.shape_cast %530 : vector<8x1x128xf32> to vector<8x128xf32>
    %c10 = arith.constant 10 : index
    %c0_433 = arith.constant 0 : index
    %532 = memref.load %arg2[%c10, %c0_433] : memref<16x8xf32, #tpu.memory_space<smem>>
    %533 = vector.broadcast %532 : f32 to vector<8x128xf32>
    %534 = arith.mulf %531, %533 : vector<8x128xf32>
    %c0_434 = arith.constant 0 : index
    %c1_435 = arith.constant 1 : index
    %c0_436 = arith.constant 0 : index
    %535 = vector.load %arg1[%c0_434, %c1_435, %c0_436] : memref<8x8x128xf32, #tpu.memory_space<vmem>>, vector<8x1x128xf32>
    %536 = vector.shape_cast %535 : vector<8x1x128xf32> to vector<8x128xf32>
    %c10_437 = arith.constant 10 : index
    %c1_438 = arith.constant 1 : index
    %537 = memref.load %arg2[%c10_437, %c1_438] : memref<16x8xf32, #tpu.memory_space<smem>>
    %538 = vector.broadcast %537 : f32 to vector<8x128xf32>
    %539 = arith.mulf %536, %538 : vector<8x128xf32>
    %540 = arith.addf %534, %539 : vector<8x128xf32>
    %c0_439 = arith.constant 0 : index
    %c2_440 = arith.constant 2 : index
    %c0_441 = arith.constant 0 : index
    %541 = vector.load %arg1[%c0_439, %c2_440, %c0_441] : memref<8x8x128xf32, #tpu.memory_space<vmem>>, vector<8x1x128xf32>
    %542 = vector.shape_cast %541 : vector<8x1x128xf32> to vector<8x128xf32>
    %c10_442 = arith.constant 10 : index
    %c2_443 = arith.constant 2 : index
    %543 = memref.load %arg2[%c10_442, %c2_443] : memref<16x8xf32, #tpu.memory_space<smem>>
    %544 = vector.broadcast %543 : f32 to vector<8x128xf32>
    %545 = arith.mulf %542, %544 : vector<8x128xf32>
    %546 = arith.addf %540, %545 : vector<8x128xf32>
    %c0_444 = arith.constant 0 : index
    %c3_445 = arith.constant 3 : index
    %c0_446 = arith.constant 0 : index
    %547 = vector.load %arg1[%c0_444, %c3_445, %c0_446] : memref<8x8x128xf32, #tpu.memory_space<vmem>>, vector<8x1x128xf32>
    %548 = vector.shape_cast %547 : vector<8x1x128xf32> to vector<8x128xf32>
    %c10_447 = arith.constant 10 : index
    %c3_448 = arith.constant 3 : index
    %549 = memref.load %arg2[%c10_447, %c3_448] : memref<16x8xf32, #tpu.memory_space<smem>>
    %550 = vector.broadcast %549 : f32 to vector<8x128xf32>
    %551 = arith.mulf %548, %550 : vector<8x128xf32>
    %552 = arith.addf %546, %551 : vector<8x128xf32>
    %c0_449 = arith.constant 0 : index
    %c4_450 = arith.constant 4 : index
    %c0_451 = arith.constant 0 : index
    %553 = vector.load %arg1[%c0_449, %c4_450, %c0_451] : memref<8x8x128xf32, #tpu.memory_space<vmem>>, vector<8x1x128xf32>
    %554 = vector.shape_cast %553 : vector<8x1x128xf32> to vector<8x128xf32>
    %c10_452 = arith.constant 10 : index
    %c4_453 = arith.constant 4 : index
    %555 = memref.load %arg2[%c10_452, %c4_453] : memref<16x8xf32, #tpu.memory_space<smem>>
    %556 = vector.broadcast %555 : f32 to vector<8x128xf32>
    %557 = arith.mulf %554, %556 : vector<8x128xf32>
    %558 = arith.addf %552, %557 : vector<8x128xf32>
    %c0_454 = arith.constant 0 : index
    %c5_455 = arith.constant 5 : index
    %c0_456 = arith.constant 0 : index
    %559 = vector.load %arg1[%c0_454, %c5_455, %c0_456] : memref<8x8x128xf32, #tpu.memory_space<vmem>>, vector<8x1x128xf32>
    %560 = vector.shape_cast %559 : vector<8x1x128xf32> to vector<8x128xf32>
    %c10_457 = arith.constant 10 : index
    %c5_458 = arith.constant 5 : index
    %561 = memref.load %arg2[%c10_457, %c5_458] : memref<16x8xf32, #tpu.memory_space<smem>>
    %562 = vector.broadcast %561 : f32 to vector<8x128xf32>
    %563 = arith.mulf %560, %562 : vector<8x128xf32>
    %564 = arith.addf %558, %563 : vector<8x128xf32>
    %c0_459 = arith.constant 0 : index
    %c6_460 = arith.constant 6 : index
    %c0_461 = arith.constant 0 : index
    %565 = vector.load %arg1[%c0_459, %c6_460, %c0_461] : memref<8x8x128xf32, #tpu.memory_space<vmem>>, vector<8x1x128xf32>
    %566 = vector.shape_cast %565 : vector<8x1x128xf32> to vector<8x128xf32>
    %c10_462 = arith.constant 10 : index
    %c6_463 = arith.constant 6 : index
    %567 = memref.load %arg2[%c10_462, %c6_463] : memref<16x8xf32, #tpu.memory_space<smem>>
    %568 = vector.broadcast %567 : f32 to vector<8x128xf32>
    %569 = arith.mulf %566, %568 : vector<8x128xf32>
    %570 = arith.addf %564, %569 : vector<8x128xf32>
    %c0_464 = arith.constant 0 : index
    %c7_465 = arith.constant 7 : index
    %c0_466 = arith.constant 0 : index
    %571 = vector.load %arg1[%c0_464, %c7_465, %c0_466] : memref<8x8x128xf32, #tpu.memory_space<vmem>>, vector<8x1x128xf32>
    %572 = vector.shape_cast %571 : vector<8x1x128xf32> to vector<8x128xf32>
    %c10_467 = arith.constant 10 : index
    %c7_468 = arith.constant 7 : index
    %573 = memref.load %arg2[%c10_467, %c7_468] : memref<16x8xf32, #tpu.memory_space<smem>>
    %574 = vector.broadcast %573 : f32 to vector<8x128xf32>
    %575 = arith.mulf %572, %574 : vector<8x128xf32>
    %576 = arith.addf %570, %575 : vector<8x128xf32>
    %c10_469 = arith.constant 10 : index
    %577 = memref.load %arg3[%c10_469] : memref<16xf32, #tpu.memory_space<smem>>
    %578 = vector.broadcast %577 : f32 to vector<8x128xf32>
    %579 = arith.addf %576, %578 : vector<8x128xf32>
    %c0_470 = arith.constant 0 : index
    %c10_471 = arith.constant 10 : index
    %c0_472 = arith.constant 0 : index
    %580 = vector.load %arg4[%c0_470, %c10_471, %c0_472] : memref<8x16x128xf32, #tpu.memory_space<vmem>>, vector<8x1x128xf32>
    %581 = vector.shape_cast %580 : vector<8x1x128xf32> to vector<8x128xf32>
    %582 = vector.shape_cast %579 : vector<8x128xf32> to vector<8x1x128xf32>
    tpu.vector_store %arg4[%c0_470, %c10_471, %c0_472], %582 {strides = array<i32>} : memref<8x16x128xf32, #tpu.memory_space<vmem>>, vector<8x1x128xf32>,
    %c0_473 = arith.constant 0 : index
    %c0_474 = arith.constant 0 : index
    %c0_475 = arith.constant 0 : index
    %583 = vector.load %arg1[%c0_473, %c0_474, %c0_475] : memref<8x8x128xf32, #tpu.memory_space<vmem>>, vector<8x1x128xf32>
    %584 = vector.shape_cast %583 : vector<8x1x128xf32> to vector<8x128xf32>
    %c11 = arith.constant 11 : index
    %c0_476 = arith.constant 0 : index
    %585 = memref.load %arg2[%c11, %c0_476] : memref<16x8xf32, #tpu.memory_space<smem>>
    %586 = vector.broadcast %585 : f32 to vector<8x128xf32>
    %587 = arith.mulf %584, %586 : vector<8x128xf32>
    %c0_477 = arith.constant 0 : index
    %c1_478 = arith.constant 1 : index
    %c0_479 = arith.constant 0 : index
    %588 = vector.load %arg1[%c0_477, %c1_478, %c0_479] : memref<8x8x128xf32, #tpu.memory_space<vmem>>, vector<8x1x128xf32>
    %589 = vector.shape_cast %588 : vector<8x1x128xf32> to vector<8x128xf32>
    %c11_480 = arith.constant 11 : index
    %c1_481 = arith.constant 1 : index
    %590 = memref.load %arg2[%c11_480, %c1_481] : memref<16x8xf32, #tpu.memory_space<smem>>
    %591 = vector.broadcast %590 : f32 to vector<8x128xf32>
    %592 = arith.mulf %589, %591 : vector<8x128xf32>
    %593 = arith.addf %587, %592 : vector<8x128xf32>
    %c0_482 = arith.constant 0 : index
    %c2_483 = arith.constant 2 : index
    %c0_484 = arith.constant 0 : index
    %594 = vector.load %arg1[%c0_482, %c2_483, %c0_484] : memref<8x8x128xf32, #tpu.memory_space<vmem>>, vector<8x1x128xf32>
    %595 = vector.shape_cast %594 : vector<8x1x128xf32> to vector<8x128xf32>
    %c11_485 = arith.constant 11 : index
    %c2_486 = arith.constant 2 : index
    %596 = memref.load %arg2[%c11_485, %c2_486] : memref<16x8xf32, #tpu.memory_space<smem>>
    %597 = vector.broadcast %596 : f32 to vector<8x128xf32>
    %598 = arith.mulf %595, %597 : vector<8x128xf32>
    %599 = arith.addf %593, %598 : vector<8x128xf32>
    %c0_487 = arith.constant 0 : index
    %c3_488 = arith.constant 3 : index
    %c0_489 = arith.constant 0 : index
    %600 = vector.load %arg1[%c0_487, %c3_488, %c0_489] : memref<8x8x128xf32, #tpu.memory_space<vmem>>, vector<8x1x128xf32>
    %601 = vector.shape_cast %600 : vector<8x1x128xf32> to vector<8x128xf32>
    %c11_490 = arith.constant 11 : index
    %c3_491 = arith.constant 3 : index
    %602 = memref.load %arg2[%c11_490, %c3_491] : memref<16x8xf32, #tpu.memory_space<smem>>
    %603 = vector.broadcast %602 : f32 to vector<8x128xf32>
    %604 = arith.mulf %601, %603 : vector<8x128xf32>
    %605 = arith.addf %599, %604 : vector<8x128xf32>
    %c0_492 = arith.constant 0 : index
    %c4_493 = arith.constant 4 : index
    %c0_494 = arith.constant 0 : index
    %606 = vector.load %arg1[%c0_492, %c4_493, %c0_494] : memref<8x8x128xf32, #tpu.memory_space<vmem>>, vector<8x1x128xf32>
    %607 = vector.shape_cast %606 : vector<8x1x128xf32> to vector<8x128xf32>
    %c11_495 = arith.constant 11 : index
    %c4_496 = arith.constant 4 : index
    %608 = memref.load %arg2[%c11_495, %c4_496] : memref<16x8xf32, #tpu.memory_space<smem>>
    %609 = vector.broadcast %608 : f32 to vector<8x128xf32>
    %610 = arith.mulf %607, %609 : vector<8x128xf32>
    %611 = arith.addf %605, %610 : vector<8x128xf32>
    %c0_497 = arith.constant 0 : index
    %c5_498 = arith.constant 5 : index
    %c0_499 = arith.constant 0 : index
    %612 = vector.load %arg1[%c0_497, %c5_498, %c0_499] : memref<8x8x128xf32, #tpu.memory_space<vmem>>, vector<8x1x128xf32>
    %613 = vector.shape_cast %612 : vector<8x1x128xf32> to vector<8x128xf32>
    %c11_500 = arith.constant 11 : index
    %c5_501 = arith.constant 5 : index
    %614 = memref.load %arg2[%c11_500, %c5_501] : memref<16x8xf32, #tpu.memory_space<smem>>
    %615 = vector.broadcast %614 : f32 to vector<8x128xf32>
    %616 = arith.mulf %613, %615 : vector<8x128xf32>
    %617 = arith.addf %611, %616 : vector<8x128xf32>
    %c0_502 = arith.constant 0 : index
    %c6_503 = arith.constant 6 : index
    %c0_504 = arith.constant 0 : index
    %618 = vector.load %arg1[%c0_502, %c6_503, %c0_504] : memref<8x8x128xf32, #tpu.memory_space<vmem>>, vector<8x1x128xf32>
    %619 = vector.shape_cast %618 : vector<8x1x128xf32> to vector<8x128xf32>
    %c11_505 = arith.constant 11 : index
    %c6_506 = arith.constant 6 : index
    %620 = memref.load %arg2[%c11_505, %c6_506] : memref<16x8xf32, #tpu.memory_space<smem>>
    %621 = vector.broadcast %620 : f32 to vector<8x128xf32>
    %622 = arith.mulf %619, %621 : vector<8x128xf32>
    %623 = arith.addf %617, %622 : vector<8x128xf32>
    %c0_507 = arith.constant 0 : index
    %c7_508 = arith.constant 7 : index
    %c0_509 = arith.constant 0 : index
    %624 = vector.load %arg1[%c0_507, %c7_508, %c0_509] : memref<8x8x128xf32, #tpu.memory_space<vmem>>, vector<8x1x128xf32>
    %625 = vector.shape_cast %624 : vector<8x1x128xf32> to vector<8x128xf32>
    %c11_510 = arith.constant 11 : index
    %c7_511 = arith.constant 7 : index
    %626 = memref.load %arg2[%c11_510, %c7_511] : memref<16x8xf32, #tpu.memory_space<smem>>
    %627 = vector.broadcast %626 : f32 to vector<8x128xf32>
    %628 = arith.mulf %625, %627 : vector<8x128xf32>
    %629 = arith.addf %623, %628 : vector<8x128xf32>
    %c11_512 = arith.constant 11 : index
    %630 = memref.load %arg3[%c11_512] : memref<16xf32, #tpu.memory_space<smem>>
    %631 = vector.broadcast %630 : f32 to vector<8x128xf32>
    %632 = arith.addf %629, %631 : vector<8x128xf32>
    %c0_513 = arith.constant 0 : index
    %c11_514 = arith.constant 11 : index
    %c0_515 = arith.constant 0 : index
    %633 = vector.load %arg4[%c0_513, %c11_514, %c0_515] : memref<8x16x128xf32, #tpu.memory_space<vmem>>, vector<8x1x128xf32>
    %634 = vector.shape_cast %633 : vector<8x1x128xf32> to vector<8x128xf32>
    %635 = vector.shape_cast %632 : vector<8x128xf32> to vector<8x1x128xf32>
    tpu.vector_store %arg4[%c0_513, %c11_514, %c0_515], %635 {strides = array<i32>} : memref<8x16x128xf32, #tpu.memory_space<vmem>>, vector<8x1x128xf32>,
    %c0_516 = arith.constant 0 : index
    %c0_517 = arith.constant 0 : index
    %c0_518 = arith.constant 0 : index
    %636 = vector.load %arg1[%c0_516, %c0_517, %c0_518] : memref<8x8x128xf32, #tpu.memory_space<vmem>>, vector<8x1x128xf32>
    %637 = vector.shape_cast %636 : vector<8x1x128xf32> to vector<8x128xf32>
    %c12 = arith.constant 12 : index
    %c0_519 = arith.constant 0 : index
    %638 = memref.load %arg2[%c12, %c0_519] : memref<16x8xf32, #tpu.memory_space<smem>>
    %639 = vector.broadcast %638 : f32 to vector<8x128xf32>
    %640 = arith.mulf %637, %639 : vector<8x128xf32>
    %c0_520 = arith.constant 0 : index
    %c1_521 = arith.constant 1 : index
    %c0_522 = arith.constant 0 : index
    %641 = vector.load %arg1[%c0_520, %c1_521, %c0_522] : memref<8x8x128xf32, #tpu.memory_space<vmem>>, vector<8x1x128xf32>
    %642 = vector.shape_cast %641 : vector<8x1x128xf32> to vector<8x128xf32>
    %c12_523 = arith.constant 12 : index
    %c1_524 = arith.constant 1 : index
    %643 = memref.load %arg2[%c12_523, %c1_524] : memref<16x8xf32, #tpu.memory_space<smem>>
    %644 = vector.broadcast %643 : f32 to vector<8x128xf32>
    %645 = arith.mulf %642, %644 : vector<8x128xf32>
    %646 = arith.addf %640, %645 : vector<8x128xf32>
    %c0_525 = arith.constant 0 : index
    %c2_526 = arith.constant 2 : index
    %c0_527 = arith.constant 0 : index
    %647 = vector.load %arg1[%c0_525, %c2_526, %c0_527] : memref<8x8x128xf32, #tpu.memory_space<vmem>>, vector<8x1x128xf32>
    %648 = vector.shape_cast %647 : vector<8x1x128xf32> to vector<8x128xf32>
    %c12_528 = arith.constant 12 : index
    %c2_529 = arith.constant 2 : index
    %649 = memref.load %arg2[%c12_528, %c2_529] : memref<16x8xf32, #tpu.memory_space<smem>>
    %650 = vector.broadcast %649 : f32 to vector<8x128xf32>
    %651 = arith.mulf %648, %650 : vector<8x128xf32>
    %652 = arith.addf %646, %651 : vector<8x128xf32>
    %c0_530 = arith.constant 0 : index
    %c3_531 = arith.constant 3 : index
    %c0_532 = arith.constant 0 : index
    %653 = vector.load %arg1[%c0_530, %c3_531, %c0_532] : memref<8x8x128xf32, #tpu.memory_space<vmem>>, vector<8x1x128xf32>
    %654 = vector.shape_cast %653 : vector<8x1x128xf32> to vector<8x128xf32>
    %c12_533 = arith.constant 12 : index
    %c3_534 = arith.constant 3 : index
    %655 = memref.load %arg2[%c12_533, %c3_534] : memref<16x8xf32, #tpu.memory_space<smem>>
    %656 = vector.broadcast %655 : f32 to vector<8x128xf32>
    %657 = arith.mulf %654, %656 : vector<8x128xf32>
    %658 = arith.addf %652, %657 : vector<8x128xf32>
    %c0_535 = arith.constant 0 : index
    %c4_536 = arith.constant 4 : index
    %c0_537 = arith.constant 0 : index
    %659 = vector.load %arg1[%c0_535, %c4_536, %c0_537] : memref<8x8x128xf32, #tpu.memory_space<vmem>>, vector<8x1x128xf32>
    %660 = vector.shape_cast %659 : vector<8x1x128xf32> to vector<8x128xf32>
    %c12_538 = arith.constant 12 : index
    %c4_539 = arith.constant 4 : index
    %661 = memref.load %arg2[%c12_538, %c4_539] : memref<16x8xf32, #tpu.memory_space<smem>>
    %662 = vector.broadcast %661 : f32 to vector<8x128xf32>
    %663 = arith.mulf %660, %662 : vector<8x128xf32>
    %664 = arith.addf %658, %663 : vector<8x128xf32>
    %c0_540 = arith.constant 0 : index
    %c5_541 = arith.constant 5 : index
    %c0_542 = arith.constant 0 : index
    %665 = vector.load %arg1[%c0_540, %c5_541, %c0_542] : memref<8x8x128xf32, #tpu.memory_space<vmem>>, vector<8x1x128xf32>
    %666 = vector.shape_cast %665 : vector<8x1x128xf32> to vector<8x128xf32>
    %c12_543 = arith.constant 12 : index
    %c5_544 = arith.constant 5 : index
    %667 = memref.load %arg2[%c12_543, %c5_544] : memref<16x8xf32, #tpu.memory_space<smem>>
    %668 = vector.broadcast %667 : f32 to vector<8x128xf32>
    %669 = arith.mulf %666, %668 : vector<8x128xf32>
    %670 = arith.addf %664, %669 : vector<8x128xf32>
    %c0_545 = arith.constant 0 : index
    %c6_546 = arith.constant 6 : index
    %c0_547 = arith.constant 0 : index
    %671 = vector.load %arg1[%c0_545, %c6_546, %c0_547] : memref<8x8x128xf32, #tpu.memory_space<vmem>>, vector<8x1x128xf32>
    %672 = vector.shape_cast %671 : vector<8x1x128xf32> to vector<8x128xf32>
    %c12_548 = arith.constant 12 : index
    %c6_549 = arith.constant 6 : index
    %673 = memref.load %arg2[%c12_548, %c6_549] : memref<16x8xf32, #tpu.memory_space<smem>>
    %674 = vector.broadcast %673 : f32 to vector<8x128xf32>
    %675 = arith.mulf %672, %674 : vector<8x128xf32>
    %676 = arith.addf %670, %675 : vector<8x128xf32>
    %c0_550 = arith.constant 0 : index
    %c7_551 = arith.constant 7 : index
    %c0_552 = arith.constant 0 : index
    %677 = vector.load %arg1[%c0_550, %c7_551, %c0_552] : memref<8x8x128xf32, #tpu.memory_space<vmem>>, vector<8x1x128xf32>
    %678 = vector.shape_cast %677 : vector<8x1x128xf32> to vector<8x128xf32>
    %c12_553 = arith.constant 12 : index
    %c7_554 = arith.constant 7 : index
    %679 = memref.load %arg2[%c12_553, %c7_554] : memref<16x8xf32, #tpu.memory_space<smem>>
    %680 = vector.broadcast %679 : f32 to vector<8x128xf32>
    %681 = arith.mulf %678, %680 : vector<8x128xf32>
    %682 = arith.addf %676, %681 : vector<8x128xf32>
    %c12_555 = arith.constant 12 : index
    %683 = memref.load %arg3[%c12_555] : memref<16xf32, #tpu.memory_space<smem>>
    %684 = vector.broadcast %683 : f32 to vector<8x128xf32>
    %685 = arith.addf %682, %684 : vector<8x128xf32>
    %c0_556 = arith.constant 0 : index
    %c12_557 = arith.constant 12 : index
    %c0_558 = arith.constant 0 : index
    %686 = vector.load %arg4[%c0_556, %c12_557, %c0_558] : memref<8x16x128xf32, #tpu.memory_space<vmem>>, vector<8x1x128xf32>
    %687 = vector.shape_cast %686 : vector<8x1x128xf32> to vector<8x128xf32>
    %688 = vector.shape_cast %685 : vector<8x128xf32> to vector<8x1x128xf32>
    tpu.vector_store %arg4[%c0_556, %c12_557, %c0_558], %688 {strides = array<i32>} : memref<8x16x128xf32, #tpu.memory_space<vmem>>, vector<8x1x128xf32>,
    %c0_559 = arith.constant 0 : index
    %c0_560 = arith.constant 0 : index
    %c0_561 = arith.constant 0 : index
    %689 = vector.load %arg1[%c0_559, %c0_560, %c0_561] : memref<8x8x128xf32, #tpu.memory_space<vmem>>, vector<8x1x128xf32>
    %690 = vector.shape_cast %689 : vector<8x1x128xf32> to vector<8x128xf32>
    %c13 = arith.constant 13 : index
    %c0_562 = arith.constant 0 : index
    %691 = memref.load %arg2[%c13, %c0_562] : memref<16x8xf32, #tpu.memory_space<smem>>
    %692 = vector.broadcast %691 : f32 to vector<8x128xf32>
    %693 = arith.mulf %690, %692 : vector<8x128xf32>
    %c0_563 = arith.constant 0 : index
    %c1_564 = arith.constant 1 : index
    %c0_565 = arith.constant 0 : index
    %694 = vector.load %arg1[%c0_563, %c1_564, %c0_565] : memref<8x8x128xf32, #tpu.memory_space<vmem>>, vector<8x1x128xf32>
    %695 = vector.shape_cast %694 : vector<8x1x128xf32> to vector<8x128xf32>
    %c13_566 = arith.constant 13 : index
    %c1_567 = arith.constant 1 : index
    %696 = memref.load %arg2[%c13_566, %c1_567] : memref<16x8xf32, #tpu.memory_space<smem>>
    %697 = vector.broadcast %696 : f32 to vector<8x128xf32>
    %698 = arith.mulf %695, %697 : vector<8x128xf32>
    %699 = arith.addf %693, %698 : vector<8x128xf32>
    %c0_568 = arith.constant 0 : index
    %c2_569 = arith.constant 2 : index
    %c0_570 = arith.constant 0 : index
    %700 = vector.load %arg1[%c0_568, %c2_569, %c0_570] : memref<8x8x128xf32, #tpu.memory_space<vmem>>, vector<8x1x128xf32>
    %701 = vector.shape_cast %700 : vector<8x1x128xf32> to vector<8x128xf32>
    %c13_571 = arith.constant 13 : index
    %c2_572 = arith.constant 2 : index
    %702 = memref.load %arg2[%c13_571, %c2_572] : memref<16x8xf32, #tpu.memory_space<smem>>
    %703 = vector.broadcast %702 : f32 to vector<8x128xf32>
    %704 = arith.mulf %701, %703 : vector<8x128xf32>
    %705 = arith.addf %699, %704 : vector<8x128xf32>
    %c0_573 = arith.constant 0 : index
    %c3_574 = arith.constant 3 : index
    %c0_575 = arith.constant 0 : index
    %706 = vector.load %arg1[%c0_573, %c3_574, %c0_575] : memref<8x8x128xf32, #tpu.memory_space<vmem>>, vector<8x1x128xf32>
    %707 = vector.shape_cast %706 : vector<8x1x128xf32> to vector<8x128xf32>
    %c13_576 = arith.constant 13 : index
    %c3_577 = arith.constant 3 : index
    %708 = memref.load %arg2[%c13_576, %c3_577] : memref<16x8xf32, #tpu.memory_space<smem>>
    %709 = vector.broadcast %708 : f32 to vector<8x128xf32>
    %710 = arith.mulf %707, %709 : vector<8x128xf32>
    %711 = arith.addf %705, %710 : vector<8x128xf32>
    %c0_578 = arith.constant 0 : index
    %c4_579 = arith.constant 4 : index
    %c0_580 = arith.constant 0 : index
    %712 = vector.load %arg1[%c0_578, %c4_579, %c0_580] : memref<8x8x128xf32, #tpu.memory_space<vmem>>, vector<8x1x128xf32>
    %713 = vector.shape_cast %712 : vector<8x1x128xf32> to vector<8x128xf32>
    %c13_581 = arith.constant 13 : index
    %c4_582 = arith.constant 4 : index
    %714 = memref.load %arg2[%c13_581, %c4_582] : memref<16x8xf32, #tpu.memory_space<smem>>
    %715 = vector.broadcast %714 : f32 to vector<8x128xf32>
    %716 = arith.mulf %713, %715 : vector<8x128xf32>
    %717 = arith.addf %711, %716 : vector<8x128xf32>
    %c0_583 = arith.constant 0 : index
    %c5_584 = arith.constant 5 : index
    %c0_585 = arith.constant 0 : index
    %718 = vector.load %arg1[%c0_583, %c5_584, %c0_585] : memref<8x8x128xf32, #tpu.memory_space<vmem>>, vector<8x1x128xf32>
    %719 = vector.shape_cast %718 : vector<8x1x128xf32> to vector<8x128xf32>
    %c13_586 = arith.constant 13 : index
    %c5_587 = arith.constant 5 : index
    %720 = memref.load %arg2[%c13_586, %c5_587] : memref<16x8xf32, #tpu.memory_space<smem>>
    %721 = vector.broadcast %720 : f32 to vector<8x128xf32>
    %722 = arith.mulf %719, %721 : vector<8x128xf32>
    %723 = arith.addf %717, %722 : vector<8x128xf32>
    %c0_588 = arith.constant 0 : index
    %c6_589 = arith.constant 6 : index
    %c0_590 = arith.constant 0 : index
    %724 = vector.load %arg1[%c0_588, %c6_589, %c0_590] : memref<8x8x128xf32, #tpu.memory_space<vmem>>, vector<8x1x128xf32>
    %725 = vector.shape_cast %724 : vector<8x1x128xf32> to vector<8x128xf32>
    %c13_591 = arith.constant 13 : index
    %c6_592 = arith.constant 6 : index
    %726 = memref.load %arg2[%c13_591, %c6_592] : memref<16x8xf32, #tpu.memory_space<smem>>
    %727 = vector.broadcast %726 : f32 to vector<8x128xf32>
    %728 = arith.mulf %725, %727 : vector<8x128xf32>
    %729 = arith.addf %723, %728 : vector<8x128xf32>
    %c0_593 = arith.constant 0 : index
    %c7_594 = arith.constant 7 : index
    %c0_595 = arith.constant 0 : index
    %730 = vector.load %arg1[%c0_593, %c7_594, %c0_595] : memref<8x8x128xf32, #tpu.memory_space<vmem>>, vector<8x1x128xf32>
    %731 = vector.shape_cast %730 : vector<8x1x128xf32> to vector<8x128xf32>
    %c13_596 = arith.constant 13 : index
    %c7_597 = arith.constant 7 : index
    %732 = memref.load %arg2[%c13_596, %c7_597] : memref<16x8xf32, #tpu.memory_space<smem>>
    %733 = vector.broadcast %732 : f32 to vector<8x128xf32>
    %734 = arith.mulf %731, %733 : vector<8x128xf32>
    %735 = arith.addf %729, %734 : vector<8x128xf32>
    %c13_598 = arith.constant 13 : index
    %736 = memref.load %arg3[%c13_598] : memref<16xf32, #tpu.memory_space<smem>>
    %737 = vector.broadcast %736 : f32 to vector<8x128xf32>
    %738 = arith.addf %735, %737 : vector<8x128xf32>
    %c0_599 = arith.constant 0 : index
    %c13_600 = arith.constant 13 : index
    %c0_601 = arith.constant 0 : index
    %739 = vector.load %arg4[%c0_599, %c13_600, %c0_601] : memref<8x16x128xf32, #tpu.memory_space<vmem>>, vector<8x1x128xf32>
    %740 = vector.shape_cast %739 : vector<8x1x128xf32> to vector<8x128xf32>
    %741 = vector.shape_cast %738 : vector<8x128xf32> to vector<8x1x128xf32>
    tpu.vector_store %arg4[%c0_599, %c13_600, %c0_601], %741 {strides = array<i32>} : memref<8x16x128xf32, #tpu.memory_space<vmem>>, vector<8x1x128xf32>,
    %c0_602 = arith.constant 0 : index
    %c0_603 = arith.constant 0 : index
    %c0_604 = arith.constant 0 : index
    %742 = vector.load %arg1[%c0_602, %c0_603, %c0_604] : memref<8x8x128xf32, #tpu.memory_space<vmem>>, vector<8x1x128xf32>
    %743 = vector.shape_cast %742 : vector<8x1x128xf32> to vector<8x128xf32>
    %c14 = arith.constant 14 : index
    %c0_605 = arith.constant 0 : index
    %744 = memref.load %arg2[%c14, %c0_605] : memref<16x8xf32, #tpu.memory_space<smem>>
    %745 = vector.broadcast %744 : f32 to vector<8x128xf32>
    %746 = arith.mulf %743, %745 : vector<8x128xf32>
    %c0_606 = arith.constant 0 : index
    %c1_607 = arith.constant 1 : index
    %c0_608 = arith.constant 0 : index
    %747 = vector.load %arg1[%c0_606, %c1_607, %c0_608] : memref<8x8x128xf32, #tpu.memory_space<vmem>>, vector<8x1x128xf32>
    %748 = vector.shape_cast %747 : vector<8x1x128xf32> to vector<8x128xf32>
    %c14_609 = arith.constant 14 : index
    %c1_610 = arith.constant 1 : index
    %749 = memref.load %arg2[%c14_609, %c1_610] : memref<16x8xf32, #tpu.memory_space<smem>>
    %750 = vector.broadcast %749 : f32 to vector<8x128xf32>
    %751 = arith.mulf %748, %750 : vector<8x128xf32>
    %752 = arith.addf %746, %751 : vector<8x128xf32>
    %c0_611 = arith.constant 0 : index
    %c2_612 = arith.constant 2 : index
    %c0_613 = arith.constant 0 : index
    %753 = vector.load %arg1[%c0_611, %c2_612, %c0_613] : memref<8x8x128xf32, #tpu.memory_space<vmem>>, vector<8x1x128xf32>
    %754 = vector.shape_cast %753 : vector<8x1x128xf32> to vector<8x128xf32>
    %c14_614 = arith.constant 14 : index
    %c2_615 = arith.constant 2 : index
    %755 = memref.load %arg2[%c14_614, %c2_615] : memref<16x8xf32, #tpu.memory_space<smem>>
    %756 = vector.broadcast %755 : f32 to vector<8x128xf32>
    %757 = arith.mulf %754, %756 : vector<8x128xf32>
    %758 = arith.addf %752, %757 : vector<8x128xf32>
    %c0_616 = arith.constant 0 : index
    %c3_617 = arith.constant 3 : index
    %c0_618 = arith.constant 0 : index
    %759 = vector.load %arg1[%c0_616, %c3_617, %c0_618] : memref<8x8x128xf32, #tpu.memory_space<vmem>>, vector<8x1x128xf32>
    %760 = vector.shape_cast %759 : vector<8x1x128xf32> to vector<8x128xf32>
    %c14_619 = arith.constant 14 : index
    %c3_620 = arith.constant 3 : index
    %761 = memref.load %arg2[%c14_619, %c3_620] : memref<16x8xf32, #tpu.memory_space<smem>>
    %762 = vector.broadcast %761 : f32 to vector<8x128xf32>
    %763 = arith.mulf %760, %762 : vector<8x128xf32>
    %764 = arith.addf %758, %763 : vector<8x128xf32>
    %c0_621 = arith.constant 0 : index
    %c4_622 = arith.constant 4 : index
    %c0_623 = arith.constant 0 : index
    %765 = vector.load %arg1[%c0_621, %c4_622, %c0_623] : memref<8x8x128xf32, #tpu.memory_space<vmem>>, vector<8x1x128xf32>
    %766 = vector.shape_cast %765 : vector<8x1x128xf32> to vector<8x128xf32>
    %c14_624 = arith.constant 14 : index
    %c4_625 = arith.constant 4 : index
    %767 = memref.load %arg2[%c14_624, %c4_625] : memref<16x8xf32, #tpu.memory_space<smem>>
    %768 = vector.broadcast %767 : f32 to vector<8x128xf32>
    %769 = arith.mulf %766, %768 : vector<8x128xf32>
    %770 = arith.addf %764, %769 : vector<8x128xf32>
    %c0_626 = arith.constant 0 : index
    %c5_627 = arith.constant 5 : index
    %c0_628 = arith.constant 0 : index
    %771 = vector.load %arg1[%c0_626, %c5_627, %c0_628] : memref<8x8x128xf32, #tpu.memory_space<vmem>>, vector<8x1x128xf32>
    %772 = vector.shape_cast %771 : vector<8x1x128xf32> to vector<8x128xf32>
    %c14_629 = arith.constant 14 : index
    %c5_630 = arith.constant 5 : index
    %773 = memref.load %arg2[%c14_629, %c5_630] : memref<16x8xf32, #tpu.memory_space<smem>>
    %774 = vector.broadcast %773 : f32 to vector<8x128xf32>
    %775 = arith.mulf %772, %774 : vector<8x128xf32>
    %776 = arith.addf %770, %775 : vector<8x128xf32>
    %c0_631 = arith.constant 0 : index
    %c6_632 = arith.constant 6 : index
    %c0_633 = arith.constant 0 : index
    %777 = vector.load %arg1[%c0_631, %c6_632, %c0_633] : memref<8x8x128xf32, #tpu.memory_space<vmem>>, vector<8x1x128xf32>
    %778 = vector.shape_cast %777 : vector<8x1x128xf32> to vector<8x128xf32>
    %c14_634 = arith.constant 14 : index
    %c6_635 = arith.constant 6 : index
    %779 = memref.load %arg2[%c14_634, %c6_635] : memref<16x8xf32, #tpu.memory_space<smem>>
    %780 = vector.broadcast %779 : f32 to vector<8x128xf32>
    %781 = arith.mulf %778, %780 : vector<8x128xf32>
    %782 = arith.addf %776, %781 : vector<8x128xf32>
    %c0_636 = arith.constant 0 : index
    %c7_637 = arith.constant 7 : index
    %c0_638 = arith.constant 0 : index
    %783 = vector.load %arg1[%c0_636, %c7_637, %c0_638] : memref<8x8x128xf32, #tpu.memory_space<vmem>>, vector<8x1x128xf32>
    %784 = vector.shape_cast %783 : vector<8x1x128xf32> to vector<8x128xf32>
    %c14_639 = arith.constant 14 : index
    %c7_640 = arith.constant 7 : index
    %785 = memref.load %arg2[%c14_639, %c7_640] : memref<16x8xf32, #tpu.memory_space<smem>>
    %786 = vector.broadcast %785 : f32 to vector<8x128xf32>
    %787 = arith.mulf %784, %786 : vector<8x128xf32>
    %788 = arith.addf %782, %787 : vector<8x128xf32>
    %c14_641 = arith.constant 14 : index
    %789 = memref.load %arg3[%c14_641] : memref<16xf32, #tpu.memory_space<smem>>
    %790 = vector.broadcast %789 : f32 to vector<8x128xf32>
    %791 = arith.addf %788, %790 : vector<8x128xf32>
    %c0_642 = arith.constant 0 : index
    %c14_643 = arith.constant 14 : index
    %c0_644 = arith.constant 0 : index
    %792 = vector.load %arg4[%c0_642, %c14_643, %c0_644] : memref<8x16x128xf32, #tpu.memory_space<vmem>>, vector<8x1x128xf32>
    %793 = vector.shape_cast %792 : vector<8x1x128xf32> to vector<8x128xf32>
    %794 = vector.shape_cast %791 : vector<8x128xf32> to vector<8x1x128xf32>
    tpu.vector_store %arg4[%c0_642, %c14_643, %c0_644], %794 {strides = array<i32>} : memref<8x16x128xf32, #tpu.memory_space<vmem>>, vector<8x1x128xf32>,
    %c0_645 = arith.constant 0 : index
    %c0_646 = arith.constant 0 : index
    %c0_647 = arith.constant 0 : index
    %795 = vector.load %arg1[%c0_645, %c0_646, %c0_647] : memref<8x8x128xf32, #tpu.memory_space<vmem>>, vector<8x1x128xf32>
    %796 = vector.shape_cast %795 : vector<8x1x128xf32> to vector<8x128xf32>
    %c15 = arith.constant 15 : index
    %c0_648 = arith.constant 0 : index
    %797 = memref.load %arg2[%c15, %c0_648] : memref<16x8xf32, #tpu.memory_space<smem>>
    %798 = vector.broadcast %797 : f32 to vector<8x128xf32>
    %799 = arith.mulf %796, %798 : vector<8x128xf32>
    %c0_649 = arith.constant 0 : index
    %c1_650 = arith.constant 1 : index
    %c0_651 = arith.constant 0 : index
    %800 = vector.load %arg1[%c0_649, %c1_650, %c0_651] : memref<8x8x128xf32, #tpu.memory_space<vmem>>, vector<8x1x128xf32>
    %801 = vector.shape_cast %800 : vector<8x1x128xf32> to vector<8x128xf32>
    %c15_652 = arith.constant 15 : index
    %c1_653 = arith.constant 1 : index
    %802 = memref.load %arg2[%c15_652, %c1_653] : memref<16x8xf32, #tpu.memory_space<smem>>
    %803 = vector.broadcast %802 : f32 to vector<8x128xf32>
    %804 = arith.mulf %801, %803 : vector<8x128xf32>
    %805 = arith.addf %799, %804 : vector<8x128xf32>
    %c0_654 = arith.constant 0 : index
    %c2_655 = arith.constant 2 : index
    %c0_656 = arith.constant 0 : index
    %806 = vector.load %arg1[%c0_654, %c2_655, %c0_656] : memref<8x8x128xf32, #tpu.memory_space<vmem>>, vector<8x1x128xf32>
    %807 = vector.shape_cast %806 : vector<8x1x128xf32> to vector<8x128xf32>
    %c15_657 = arith.constant 15 : index
    %c2_658 = arith.constant 2 : index
    %808 = memref.load %arg2[%c15_657, %c2_658] : memref<16x8xf32, #tpu.memory_space<smem>>
    %809 = vector.broadcast %808 : f32 to vector<8x128xf32>
    %810 = arith.mulf %807, %809 : vector<8x128xf32>
    %811 = arith.addf %805, %810 : vector<8x128xf32>
    %c0_659 = arith.constant 0 : index
    %c3_660 = arith.constant 3 : index
    %c0_661 = arith.constant 0 : index
    %812 = vector.load %arg1[%c0_659, %c3_660, %c0_661] : memref<8x8x128xf32, #tpu.memory_space<vmem>>, vector<8x1x128xf32>
    %813 = vector.shape_cast %812 : vector<8x1x128xf32> to vector<8x128xf32>
    %c15_662 = arith.constant 15 : index
    %c3_663 = arith.constant 3 : index
    %814 = memref.load %arg2[%c15_662, %c3_663] : memref<16x8xf32, #tpu.memory_space<smem>>
    %815 = vector.broadcast %814 : f32 to vector<8x128xf32>
    %816 = arith.mulf %813, %815 : vector<8x128xf32>
    %817 = arith.addf %811, %816 : vector<8x128xf32>
    %c0_664 = arith.constant 0 : index
    %c4_665 = arith.constant 4 : index
    %c0_666 = arith.constant 0 : index
    %818 = vector.load %arg1[%c0_664, %c4_665, %c0_666] : memref<8x8x128xf32, #tpu.memory_space<vmem>>, vector<8x1x128xf32>
    %819 = vector.shape_cast %818 : vector<8x1x128xf32> to vector<8x128xf32>
    %c15_667 = arith.constant 15 : index
    %c4_668 = arith.constant 4 : index
    %820 = memref.load %arg2[%c15_667, %c4_668] : memref<16x8xf32, #tpu.memory_space<smem>>
    %821 = vector.broadcast %820 : f32 to vector<8x128xf32>
    %822 = arith.mulf %819, %821 : vector<8x128xf32>
    %823 = arith.addf %817, %822 : vector<8x128xf32>
    %c0_669 = arith.constant 0 : index
    %c5_670 = arith.constant 5 : index
    %c0_671 = arith.constant 0 : index
    %824 = vector.load %arg1[%c0_669, %c5_670, %c0_671] : memref<8x8x128xf32, #tpu.memory_space<vmem>>, vector<8x1x128xf32>
    %825 = vector.shape_cast %824 : vector<8x1x128xf32> to vector<8x128xf32>
    %c15_672 = arith.constant 15 : index
    %c5_673 = arith.constant 5 : index
    %826 = memref.load %arg2[%c15_672, %c5_673] : memref<16x8xf32, #tpu.memory_space<smem>>
    %827 = vector.broadcast %826 : f32 to vector<8x128xf32>
    %828 = arith.mulf %825, %827 : vector<8x128xf32>
    %829 = arith.addf %823, %828 : vector<8x128xf32>
    %c0_674 = arith.constant 0 : index
    %c6_675 = arith.constant 6 : index
    %c0_676 = arith.constant 0 : index
    %830 = vector.load %arg1[%c0_674, %c6_675, %c0_676] : memref<8x8x128xf32, #tpu.memory_space<vmem>>, vector<8x1x128xf32>
    %831 = vector.shape_cast %830 : vector<8x1x128xf32> to vector<8x128xf32>
    %c15_677 = arith.constant 15 : index
    %c6_678 = arith.constant 6 : index
    %832 = memref.load %arg2[%c15_677, %c6_678] : memref<16x8xf32, #tpu.memory_space<smem>>
    %833 = vector.broadcast %832 : f32 to vector<8x128xf32>
    %834 = arith.mulf %831, %833 : vector<8x128xf32>
    %835 = arith.addf %829, %834 : vector<8x128xf32>
    %c0_679 = arith.constant 0 : index
    %c7_680 = arith.constant 7 : index
    %c0_681 = arith.constant 0 : index
    %836 = vector.load %arg1[%c0_679, %c7_680, %c0_681] : memref<8x8x128xf32, #tpu.memory_space<vmem>>, vector<8x1x128xf32>
    %837 = vector.shape_cast %836 : vector<8x1x128xf32> to vector<8x128xf32>
    %c15_682 = arith.constant 15 : index
    %c7_683 = arith.constant 7 : index
    %838 = memref.load %arg2[%c15_682, %c7_683] : memref<16x8xf32, #tpu.memory_space<smem>>
    %839 = vector.broadcast %838 : f32 to vector<8x128xf32>
    %840 = arith.mulf %837, %839 : vector<8x128xf32>
    %841 = arith.addf %835, %840 : vector<8x128xf32>
    %c15_684 = arith.constant 15 : index
    %842 = memref.load %arg3[%c15_684] : memref<16xf32, #tpu.memory_space<smem>>
    %843 = vector.broadcast %842 : f32 to vector<8x128xf32>
    %844 = arith.addf %841, %843 : vector<8x128xf32>
    %c0_685 = arith.constant 0 : index
    %c15_686 = arith.constant 15 : index
    %c0_687 = arith.constant 0 : index
    %845 = vector.load %arg4[%c0_685, %c15_686, %c0_687] : memref<8x16x128xf32, #tpu.memory_space<vmem>>, vector<8x1x128xf32>
    %846 = vector.shape_cast %845 : vector<8x1x128xf32> to vector<8x128xf32>
    %847 = vector.shape_cast %844 : vector<8x128xf32> to vector<8x1x128xf32>
    tpu.vector_store %arg4[%c0_685, %c15_686, %c0_687], %847 {strides = array<i32>} : memref<8x16x128xf32, #tpu.memory_space<vmem>>, vector<8x1x128xf32>,
    return
  }
  func.func @transform_0(%arg0: i32) -> (i32, i32, i32) {
    %c0_i32 = arith.constant 0 : i32
    %c0_i32_0 = arith.constant 0 : i32
    %c0_i32_1 = arith.constant 0 : i32
    return %arg0, %c0_i32, %c0_i32_0 : i32, i32, i32
  }
  func.func @transform_1(%arg0: i32) -> (i32, i32) {
    %c0_i32 = arith.constant 0 : i32
    %c0_i32_0 = arith.constant 0 : i32
    %c0_i32_1 = arith.constant 0 : i32
    return %c0_i32, %c0_i32_0 : i32, i32
  }
  func.func @transform_2(%arg0: i32) -> i32 {
    %c0_i32 = arith.constant 0 : i32
    %c0_i32_0 = arith.constant 0 : i32
    return %c0_i32 : i32
  }
  func.func @transform_3(%arg0: i32) -> (i32, i32, i32) {
    %c0_i32 = arith.constant 0 : i32
    %c0_i32_0 = arith.constant 0 : i32
    %c0_i32_1 = arith.constant 0 : i32
    return %arg0, %c0_i32, %c0_i32_0 : i32, i32, i32
  }
}

</mosaic_0001>

<bundles_post_ra>
// kernel: tpu_custom_call.1
= control target key start
LH: loop header
LB: loop body
LE: loop exit
PB: predicated region body
PF: predicated region fallthrough
CT: control target
= control target key end

     0   :  { %8 = vsyncpa [#allocation3], 0  ;;  %s5700_s0 = inlined_call_operand.hbm [shape: f32[8,8,128], index: 0, kind: input, shape index: {}]   ;;  %s5701_s1 = inlined_call_operand.vmem [shape: f32[16,8], index: 1, kind: input, shape index: {}]   ;;  %s5702_s2 = inlined_call_operand.vmem [shape: f32[16], index: 2, kind: input, shape index: {}]   ;;  %s5703_s3 = inlined_call_operand.hbm [shape: f32[8,16,128], index: 3, kind: output, shape index: {}]  }
   0x1   :  { %9 = vsyncpa [#allocation5], 0 }
   0x2   :  { %10 = vsyncpa [#allocation8], 0 }
   0x3   :  { %11 = vsyncpa [#allocation4], 0  ;;  %s3787_s12 = smov [#allocation2]   ;;  %s29_s16 = sshll.u32 %s5701_s1, 4  ;;  %s30_s16 = int_to_ptr.vmem [resolvable:$true] %s29_s16 }
   0x4   :  { %s17_s13 = sshll.u32 %s3787_s12, 4  ;;  %s3711_s19 = scalar_lea.hbm %s5700_s0, 1024  ;;  %s18_s13 = int_to_ptr.vmem [resolvable:$true] %s17_s13 }
   0x5   :  { %p3712_p0 = scmp.ne.s32.totalorder %s5700_s0, %s3711_s19  ;;  %p3715_p1 = scmp.lt.u32.totalorder %s3711_s19, %s5700_s0 }
   0x7   :  { %p3717_p2 = pnand %p3715_p1, %p3712_p0 }
   0x9   :  { %3720 = shalt.err (!%p3717_p2)
}
   0xa   :  { %s3721_s24 = scalar_lea.vmem %s18_s13, 1024  ;;  %p3726_p4 = scmp.lt.s32.totalorder %s18_s13, %s18_s13 }
   0xb   :  { %p3722_p3 = scmp.ne.s32.totalorder %s18_s13, %s3721_s24  ;;  %p3727_p5 = scmp.lt.s32.totalorder %s3721_s24, %s3721_s24 }
   0xd   :  { %p3728_p6 = por %p3727_p5, %p3726_p4 }
   0xf   :  { %p3729_p7 = pnand %p3728_p6, %p3722_p3 }
  0x11   :  { %3732 = shalt.err (!%p3729_p7)
}
  0x12   :  { %s3788_s1 = smov 128   ;;  %s3789_s25 = smov 8  }
  0x13   :  { %23 = dma.hbm_to_vmem [thread:$0]  %s5700_s0, 1024, %s18_s13, [#allocation3], %s3788_s1, %s3788_s1, %s3789_s25  }
  0x14   :  { %s3733_s28 = scalar_lea.vmem %s30_s16, 256  ;;  %p3738_p9 = scmp.lt.s32.totalorder %s30_s16, %s30_s16 }
  0x15   :  { %p3734_p8 = scmp.ne.s32.totalorder %s30_s16, %s3733_s28  ;;  %p3739_p10 = scmp.lt.s32.totalorder %s3733_s28, %s3733_s28 }
  0x17   :  { %p3740_p11 = por %p3739_p10, %p3738_p9 }
  0x19   :  { %p3741_p12 = pnand %p3740_p11, %p3734_p8 }
  0x1b   :  { %3744 = shalt.err (!%p3741_p12)
}
  0x1c   :  { %s3790_s29 = smov [#allocation6]   ;;  %s42_s5 = sshll.u32 %s5702_s2, 4  ;;  %s43_s5 = int_to_ptr.vmem [resolvable:$true] %s42_s5 }
  0x1d   :  { %35 = dma.vmem_to_smem %s30_s16, 256, %s3790_s29, [#allocation5], %s3788_s1, %s3788_s1, %s3789_s25  }
  0x1e   :  { %s3745_s6 = scalar_lea.vmem %s43_s5, 16  ;;  %p3750_p0 = scmp.lt.s32.totalorder %s43_s5, %s43_s5 }
  0x1f   :  { %p3746_p13 = scmp.ne.s32.totalorder %s43_s5, %s3745_s6  ;;  %p3751_p1 = scmp.lt.s32.totalorder %s3745_s6, %s3745_s6 }
  0x21   :  { %p3752_p2 = por %p3751_p1, %p3750_p0 }
  0x23   :  { %p3753_p3 = pnand %p3752_p2, %p3746_p13 }
  0x25   :  { %3756 = shalt.err (!%p3753_p3)
}
  0x26   :  { %s3791_s0 = smov [#allocation7]  }
  0x27   :  { %45 = dma.vmem_to_smem %s43_s5, 16, %s3791_s0, [#allocation8]  }
  0x28   :  { %3779 = dma.done.wait [#allocation3], 1024  }
  0x29   :  { %3780 = vsyncadd [#allocation3], 4294966272 }
  0x2a   :  { %3781 = dma.done.wait [#allocation5], 256  }
  0x2b   :  { %3782 = vsyncadd [#allocation5], 4294967040 }
  0x2c   :  { %3783 = dma.done.wait [#allocation8], 16  }
  0x2d   :  { %3784 = vsyncadd [#allocation8], 4294967280 }
  0x2e   :  { %55 = sfence }
  0x2f   :  { %s64_s7 = sld [smem:[#allocation6]]  ;;  %s3563_s8 = sld [smem:[#allocation6 + $0x1]]  ;;  %v56_v0 = vld [vmem:[#allocation2] sm:$0x1]  ;;  %v74_v1 = vld [vmem:[#allocation2 + $0x1] sm:$0x1] }
  0x30   :  { %s3564_s2 = sld [smem:[#allocation6 + $0x2]]  ;;  %s3565_s9 = sld [smem:[#allocation6 + $0x3]]  ;;  %v100_v2 = vld [vmem:[#allocation2 + $0x2] sm:$0x1]  ;;  %v57_v3 = vld [vmem:[#allocation2 + $0x8] sm:$0x1] }
  0x31   :  { %s3566_s10 = sld [smem:[#allocation6 + $0x4]]  ;;  %s3567_s11 = sld [smem:[#allocation6 + $0x5]]  ;;  %v75_v5 = vld [vmem:[#allocation2 + $0x9] sm:$0x1]  ;;  %v101_v6 = vld [vmem:[#allocation2 + $0xa] sm:$0x1] }
  0x32   :  { %s3568_s12 = sld [smem:[#allocation6 + $0x6]]  ;;  %s3569_s13 = sld [smem:[#allocation6 + $0x7]]  ;;  %v126_v10 = vld [vmem:[#allocation2 + $0x3] sm:$0x1]  ;;  %v152_v15 = vld [vmem:[#allocation2 + $0x4] sm:$0x1] }
  0x33   :  { %s3837_s14 = sld [smem:[#allocation7]]  ;;  %v178_v16 = vld [vmem:[#allocation2 + $0x5] sm:$0x1]  ;;  %v204_v20 = vld [vmem:[#allocation2 + $0x6] sm:$0x1]  ;;  %s3910_s16 = sld [smem:[#allocation6 + $0x81]] }
  0x34   :  { %v127_v22 = vld [vmem:[#allocation2 + $0xb] sm:$0x1]  ;;  %v230_v26 = vld [vmem:[#allocation2 + $0x7] sm:$0x1]  ;;  %v153_v27 = vld [vmem:[#allocation2 + $0xc] sm:$0x1] }
  0x35   :  { %v3839_v4 = vstv %s64_s7  ;;  %v3842_v8 = vstv %s3563_s8  ;;  %v179_v28 = vld [vmem:[#allocation2 + $0xd] sm:$0x1]  ;;  %v58_v33 = vld [vmem:[#allocation2 + $0x10] sm:$0x1]  ;;  %v76_v34 = vld [vmem:[#allocation2 + $0x11] sm:$0x1] }
  0x36   :  { %v66_v7 = vmul.f32 %v3839_v4, %v56_v0  ;;  %v3844_v9 = vstv %s3564_s2  ;;  %v67_v11 = vmul.f32 %v3839_v4, %v57_v3  ;;  %v84_v12 = vmul.f32 %v3842_v8, %v74_v1  ;;  %v102_v35 = vld [vmem:[#allocation2 + $0x12] sm:$0x1]  ;;  %v205_v40 = vld [vmem:[#allocation2 + $0xe] sm:$0x1]  ;;  %v231_v41 = vld [vmem:[#allocation2 + $0xf] sm:$0x1] }
  0x37   :  { %v110_v13 = vmul.f32 %v3844_v9, %v100_v2  ;;  %v3849_v14 = vstv %s3565_s9  ;;  %v85_v17 = vmul.f32 %v3842_v8, %v75_v5  ;;  %v3852_v18 = vstv %s3566_s10  ;;  %v128_v42 = vld [vmem:[#allocation2 + $0x13] sm:$0x1]  ;;  %v154_v47 = vld [vmem:[#allocation2 + $0x14] sm:$0x1]  ;;  %v180_v48 = vld [vmem:[#allocation2 + $0x15] sm:$0x1] }
  0x38   :  { %v3854_v19 = vstv %s3567_s11  ;;  %v111_v21 = vmul.f32 %v3844_v9, %v101_v6  ;;  %v92_v23 = vadd.f32 %v84_v12, %v66_v7  ;;  %v136_v24 = vmul.f32 %v3849_v14, %v126_v10  ;;  %v59_v53 = vld [vmem:[#allocation2 + $0x18] sm:$0x1]  ;;  %v77_v54 = vld [vmem:[#allocation2 + $0x19] sm:$0x1]  ;;  %v103_v55 = vld [vmem:[#allocation2 + $0x1a] sm:$0x1] }
  0x39   :  { %v3858_v25 = vstv %s3568_s12  ;;  %v162_v29 = vmul.f32 %v3852_v18, %v152_v15  ;;  %v188_v30 = vmul.f32 %v3854_v19, %v178_v16  ;;  %v3862_v31 = vstv %s3569_s13  ;;  %v206_v60 = vld [vmem:[#allocation2 + $0x16] sm:$0x1]  ;;  %v232_v61 = vld [vmem:[#allocation2 + $0x17] sm:$0x1]  ;;  %v129_v2 = vld [vmem:[#allocation2 + $0x1b] sm:$0x1] }
  0x3a   :  { %v93_v32 = vadd.f32 %v85_v17, %v67_v11  ;;  %v118_v36 = vadd.f32 %v110_v13, %v92_v23  ;;  %v214_v37 = vmul.f32 %v3858_v25, %v204_v20  ;;  %v3866_v38 = vstv %s3837_s14  ;;  %v155_v3 = vld [vmem:[#allocation2 + $0x1c] sm:$0x1]  ;;  %v181_v11 = vld [vmem:[#allocation2 + $0x1d] sm:$0x1]  ;;  %v60_v12 = vld [vmem:[#allocation2 + $0x20] sm:$0x1] }
  0x3b   :  { %v137_v39 = vmul.f32 %v3849_v14, %v127_v22  ;;  %v240_v43 = vmul.f32 %v3862_v31, %v230_v26  ;;  %v163_v45 = vmul.f32 %v3852_v18, %v153_v27  ;;  %v189_v46 = vmul.f32 %v3854_v19, %v179_v28  ;;  %v78_v20 = vld [vmem:[#allocation2 + $0x21] sm:$0x1]  ;;  %v207_v27 = vld [vmem:[#allocation2 + $0x1e] sm:$0x1]  ;;  %v233_v28 = vld [vmem:[#allocation2 + $0x1f] sm:$0x1] }
  0x3c   :  { %v119_v44 = vadd.f32 %v111_v21, %v93_v32  ;;  %v144_v49 = vadd.f32 %v136_v24, %v118_v36  ;;  %v68_v50 = vmul.f32 %v3839_v4, %v58_v33  ;;  %v86_v51 = vmul.f32 %v3842_v8, %v76_v34  ;;  %v104_v21 = vld [vmem:[#allocation2 + $0x22] sm:$0x1]  ;;  %v130_v34 = vld [vmem:[#allocation2 + $0x23] sm:$0x1]  ;;  %s3908_s15 = sld [smem:[#allocation6 + $0x80]]  ;;  %s3915_s17 = sld [smem:[#allocation6 + $0x82]] }
  0x3d   :  { %v112_v52 = vmul.f32 %v3844_v9, %v102_v35  ;;  %v215_v57 = vmul.f32 %v3858_v25, %v205_v40  ;;  %v241_v58 = vmul.f32 %v3862_v31, %v231_v41  ;;  %v138_v59 = vmul.f32 %v3849_v14, %v128_v42  ;;  %v156_v41 = vld [vmem:[#allocation2 + $0x24] sm:$0x1]  ;;  %v182_v42 = vld [vmem:[#allocation2 + $0x25] sm:$0x1]  ;;  %s3918_s18 = sld [smem:[#allocation6 + $0x83]]  ;;  %s3920_s19 = sld [smem:[#allocation6 + $0x84]] }
  0x3e   :  { %v145_v56 = vadd.f32 %v137_v39, %v119_v44  ;;  %v170_v62 = vadd.f32 %v162_v29, %v144_v49  ;;  %v94_v63 = vadd.f32 %v86_v51, %v68_v50  ;;  %v164_v0 = vmul.f32 %v3852_v18, %v154_v47  ;;  %v61_v47 = vld [vmem:[#allocation2 + $0x28] sm:$0x1]  ;;  %s3927_s20 = sld [smem:[#allocation6 + $0x85]]  ;;  %s3934_s21 = sld [smem:[#allocation6 + $0x86]] }
  0x3f   :  { %v190_v1 = vmul.f32 %v3854_v19, %v180_v48  ;;  %v69_v6 = vmul.f32 %v3839_v4, %v59_v53  ;;  %v87_v7 = vmul.f32 %v3842_v8, %v77_v54  ;;  %v113_v10 = vmul.f32 %v3844_v9, %v103_v55  ;;  %v79_v53 = vld [vmem:[#allocation2 + $0x29] sm:$0x1]  ;;  %v105_v54 = vld [vmem:[#allocation2 + $0x2a] sm:$0x1]  ;;  %s3936_s22 = sld [smem:[#allocation6 + $0x87]]  ;;  %s3940_s23 = sld [smem:[#allocation7 + $0x1]] }
  0x40   :  { %v171_v5 = vadd.f32 %v163_v45, %v145_v56  ;;  %v196_v13 = vadd.f32 %v188_v30, %v170_v62  ;;  %v120_v15 = vadd.f32 %v112_v52, %v94_v63  ;;  %v216_v16 = vmul.f32 %v3858_v25, %v206_v60  ;;  %v208_v52 = vld [vmem:[#allocation2 + $0x26] sm:$0x1]  ;;  %v131_v60 = vld [vmem:[#allocation2 + $0x2b] sm:$0x1]  ;;  %s4024_s24 = sld [smem:[#allocation6 + $0x100]]  ;;  %s4029_s26 = sld [smem:[#allocation6 + $0x101]] }
  0x41   :  { %v242_v17 = vmul.f32 %v3862_v31, %v232_v61  ;;  %v95_v23 = vadd.f32 %v87_v7, %v69_v6  ;;  %v139_v24 = vmul.f32 %v3849_v14, %v129_v2  ;;  %v165_v26 = vmul.f32 %v3852_v18, %v155_v3  ;;  %v183_v2 = vld [vmem:[#allocation2 + $0x2d] sm:$0x1]  ;;  %v62_v7 = vld [vmem:[#allocation2 + $0x30] sm:$0x1]  ;;  %s4033_s27 = sld [smem:[#allocation6 + $0x102]]  ;;  %s4035_s28 = sld [smem:[#allocation6 + $0x103]] }
  0x42   :  { %v197_v22 = vadd.f32 %v189_v46, %v171_v5  ;;  %v222_v29 = vadd.f32 %v214_v37, %v196_v13  ;;  %v146_v32 = vadd.f32 %v138_v59, %v120_v15  ;;  %v191_v33 = vmul.f32 %v3854_v19, %v181_v11  ;;  %v234_v59 = vld [vmem:[#allocation2 + $0x27] sm:$0x1]  ;;  %s4041_s29 = sld [smem:[#allocation6 + $0x104]]  ;;  %s4043_s30 = sld [smem:[#allocation6 + $0x105]] }
  0x43   :  { %v70_v30 = vmul.f32 %v3839_v4, %v60_v12  ;;  %v121_v36 = vadd.f32 %v113_v10, %v95_v23  ;;  %v88_v39 = vmul.f32 %v3842_v8, %v78_v20  ;;  %v114_v40 = vmul.f32 %v3844_v9, %v104_v21  ;;  %v80_v10 = vld [vmem:[#allocation2 + $0x31] sm:$0x1]  ;;  %v209_v20 = vld [vmem:[#allocation2 + $0x2e] sm:$0x1]  ;;  %v235_v21 = vld [vmem:[#allocation2 + $0x2f] sm:$0x1] }
  0x44   :  { %v223_v35 = vadd.f32 %v215_v57, %v197_v22  ;;  %v248_v44 = vadd.f32 %v240_v43, %v222_v29  ;;  %v172_v45 = vadd.f32 %v164_v0, %v146_v32  ;;  %v217_v46 = vmul.f32 %v3858_v25, %v207_v27  ;;  %v157_v0 = vld [vmem:[#allocation2 + $0x2c] sm:$0x1]  ;;  %v106_v22 = vld [vmem:[#allocation2 + $0x32] sm:$0x1]  ;;  %v132_v27 = vld [vmem:[#allocation2 + $0x33] sm:$0x1] }
  0x45   :  { %v243_v37 = vmul.f32 %v3862_v31, %v233_v28  ;;  %v147_v49 = vadd.f32 %v139_v24, %v121_v36  ;;  %v96_v50 = vadd.f32 %v88_v39, %v70_v30  ;;  %v140_v51 = vmul.f32 %v3849_v14, %v130_v34  ;;  %v158_v28 = vld [vmem:[#allocation2 + $0x34] sm:$0x1]  ;;  %v184_v29 = vld [vmem:[#allocation2 + $0x35] sm:$0x1]  ;;  %s4050_s4 = sld [smem:[#allocation6 + $0x106]]  ;;  %s4052_s5 = sld [smem:[#allocation6 + $0x107]] }
  0x46   :  { %v249_v48 = vadd.f32 %v241_v58, %v223_v35  ;;  %v258_v55 = vadd.f32 %v3866_v38, %v248_v44  ;;  %v198_v56 = vadd.f32 %v190_v1, %v172_v45  ;;  %v166_v57 = vmul.f32 %v3852_v18, %v156_v41  ;;  %v210_v35 = vld [vmem:[#allocation2 + $0x36] sm:$0x1]  ;;  %v63_v41 = vld [vmem:[#allocation2 + $0x38] sm:$0x1]  ;;  %s4056_s6 = sld [smem:[#allocation7 + $0x2]]  ;;  %s4141_s0 = sld [smem:[#allocation6 + $0x180]] }
  0x47   :  { %v192_v43 = vmul.f32 %v3854_v19, %v182_v42  ;;  %v173_v62 = vadd.f32 %v165_v26, %v147_v49  ;;  %v122_v58 = vadd.f32 %v114_v40, %v96_v50  ;;  %v71_v63 = vmul.f32 %v3839_v4, %v61_v47  ;;  %v81_v42 = vld [vmem:[#allocation2 + $0x39] sm:$0x1]  ;;  %s4145_s7 = sld [smem:[#allocation6 + $0x181]]  ;;  %s4150_s8 = sld [smem:[#allocation6 + $0x182]] }
  0x48   :  { %v259_v61 = vadd.f32 %v3866_v38, %v249_v48  ;;  %266 = vst [vmem:[#allocation9] sm:$0x1] %v258_v55  ;;  %v224_v3 = vadd.f32 %v216_v16, %v198_v56  ;;  %v218_v5 = vmul.f32 %v3858_v25, %v208_v52  ;;  %v89_v1 = vmul.f32 %v3842_v8, %v79_v53  ;;  %v107_v48 = vld [vmem:[#allocation2 + $0x3a] sm:$0x1]  ;;  %v236_v53 = vld [vmem:[#allocation2 + $0x37] sm:$0x1] }
  0x49   :  { %v115_v6 = vmul.f32 %v3844_v9, %v105_v54  ;;  %v199_v11 = vadd.f32 %v191_v33, %v173_v62  ;;  %v148_v12 = vadd.f32 %v140_v51, %v122_v58  ;;  %v244_v13 = vmul.f32 %v3862_v31, %v234_v59  ;;  %v133_v54 = vld [vmem:[#allocation2 + $0x3b] sm:$0x1]  ;;  %v185_v59 = vld [vmem:[#allocation2 + $0x3d] sm:$0x1]  ;;  %s4152_s2 = sld [smem:[#allocation6 + $0x183]]  ;;  %s4158_s9 = sld [smem:[#allocation6 + $0x184]] }
  0x4a   :  { %267 = vst [vmem:[#allocation9 + $0x10] sm:$0x1] %v259_v61  ;;  %v141_v15 = vmul.f32 %v3849_v14, %v131_v60  ;;  %v250_v23 = vadd.f32 %v242_v17, %v224_v3  ;;  %v97_v16 = vadd.f32 %v89_v1, %v71_v63  ;;  %v167_v24 = vmul.f32 %v3852_v18, %v157_v0  ;;  %v274_v63 = vld [vmem:[#allocation2] sm:$0x1]  ;;  %s4160_s10 = sld [smem:[#allocation6 + $0x185]]  ;;  %s4167_s11 = sld [smem:[#allocation6 + $0x186]] }
  0x4b   :  { %v193_v26 = vmul.f32 %v3854_v19, %v183_v2  ;;  %v225_v32 = vadd.f32 %v217_v46, %v199_v11  ;;  %v174_v30 = vadd.f32 %v166_v57, %v148_v12  ;;  %v72_v33 = vmul.f32 %v3839_v4, %v62_v7  ;;  %v318_v12 = vld [vmem:[#allocation2 + $0x2] sm:$0x1]  ;;  %s4170_s12 = sld [smem:[#allocation6 + $0x187]]  ;;  %s4177_s13 = sld [smem:[#allocation7 + $0x3]] }
  0x4c   :  { %v90_v34 = vmul.f32 %v3842_v8, %v80_v10  ;;  %v260_v17 = vadd.f32 %v3866_v38, %v250_v23  ;;  %v123_v36 = vadd.f32 %v115_v6, %v97_v16  ;;  %v219_v39 = vmul.f32 %v3858_v25, %v209_v20  ;;  %v211_v20 = vld [vmem:[#allocation2 + $0x3e] sm:$0x1]  ;;  %s4258_s14 = sld [smem:[#allocation6 + $0x200]] }
  0x4d   :  { %v116_v40 = vmul.f32 %v3844_v9, %v106_v22  ;;  %v251_v44 = vadd.f32 %v243_v37, %v225_v32  ;;  %v200_v45 = vadd.f32 %v192_v43, %v174_v30  ;;  %v142_v47 = vmul.f32 %v3849_v14, %v132_v27  ;;  %v159_v43 = vld [vmem:[#allocation2 + $0x3c] sm:$0x1] }
  0x4e   :  { %v98_v46 = vadd.f32 %v90_v34, %v72_v33  ;;  %268 = vst [vmem:[#allocation9 + $0x20] sm:$0x1] %v260_v17  ;;  %v149_v49 = vadd.f32 %v141_v15, %v123_v36  ;;  %v245_v50 = vmul.f32 %v3862_v31, %v235_v21  ;;  %v168_v51 = vmul.f32 %v3852_v18, %v158_v28  ;;  %v396_v17 = vld [vmem:[#allocation2 + $0x5] sm:$0x1] }
  0x4f   :  { %v194_v52 = vmul.f32 %v3854_v19, %v184_v29  ;;  %v261_v37 = vadd.f32 %v3866_v38, %v251_v44  ;;  %v226_v55 = vadd.f32 %v218_v5, %v200_v45  ;;  %v73_v57 = vmul.f32 %v3839_v4, %v63_v41  ;;  %v292_v5 = vld [vmem:[#allocation2 + $0x1] sm:$0x1]  ;;  %v237_v29 = vld [vmem:[#allocation2 + $0x3f] sm:$0x1]  ;;  %v275_v44 = vld [vmem:[#allocation2 + $0x8] sm:$0x1] }
  0x50   :  { %v124_v56 = vadd.f32 %v116_v40, %v98_v46  ;;  %v175_v60 = vadd.f32 %v167_v24, %v149_v49  ;;  %v220_v61 = vmul.f32 %v3858_v25, %v210_v35  ;;  %v91_v62 = vmul.f32 %v3842_v8, %v81_v42  ;;  %v370_v24 = vld [vmem:[#allocation2 + $0x4] sm:$0x1]  ;;  %v293_v45 = vld [vmem:[#allocation2 + $0x9] sm:$0x1]  ;;  %v319_v46 = vld [vmem:[#allocation2 + $0xa] sm:$0x1] }
  0x51   :  { %v117_v58 = vmul.f32 %v3844_v9, %v107_v48  ;;  %269 = vst [vmem:[#allocation9 + $0x30] sm:$0x1] %v261_v37  ;;  %v252_v0 = vadd.f32 %v244_v13, %v226_v55  ;;  %v246_v3 = vmul.f32 %v3862_v31, %v236_v53  ;;  %v143_v4 = vmul.f32 %v3849_v14, %v133_v54  ;;  %v345_v55 = vld [vmem:[#allocation2 + $0xb] sm:$0x1] }
  0x52   :  { %v150_v2 = vadd.f32 %v142_v47, %v124_v56  ;;  %v201_v1 = vadd.f32 %v193_v26, %v175_v60  ;;  %v99_v6 = vadd.f32 %v91_v62, %v73_v57  ;;  %v169_v8 = vmul.f32 %v3852_v18, %v159_v43  ;;  %v371_v56 = vld [vmem:[#allocation2 + $0xc] sm:$0x1]  ;;  %v397_v57 = vld [vmem:[#allocation2 + $0xd] sm:$0x1]  ;;  %v294_v62 = vld [vmem:[#allocation2 + $0x11] sm:$0x1] }
  0x53   :  { %v195_v9 = vmul.f32 %v3854_v19, %v185_v59  ;;  %v262_v7 = vadd.f32 %v3866_v38, %v252_v0  ;;  %v3944_v14 = vstv %s3908_s15  ;;  %v3947_v11 = vstv %s3910_s16  ;;  %v344_v19 = vld [vmem:[#allocation2 + $0x3] sm:$0x1]  ;;  %s4261_s15 = sld [smem:[#allocation6 + $0x201]]  ;;  %s4267_s16 = sld [smem:[#allocation6 + $0x202]] }
  0x54   :  { %v176_v10 = vadd.f32 %v168_v51, %v150_v2  ;;  %v227_v13 = vadd.f32 %v219_v39, %v201_v1  ;;  %v125_v15 = vadd.f32 %v117_v58, %v99_v6  ;;  %v284_v18 = vmul.f32 %v3944_v14, %v274_v63 }
  0x55   :  { %v302_v21 = vmul.f32 %v3947_v11, %v292_v5  ;;  %270 = vst [vmem:[#allocation9 + $0x40] sm:$0x1] %v262_v7  ;;  %v3952_v23 = vstv %s3915_s17  ;;  %v3955_v16 = vstv %s3918_s18  ;;  %v3958_v26 = vstv %s3920_s19  ;;  %v320_v5 = vld [vmem:[#allocation2 + $0x12] sm:$0x1]  ;;  %v346_v7 = vld [vmem:[#allocation2 + $0x13] sm:$0x1] }
  0x56   :  { %v202_v22 = vadd.f32 %v194_v52, %v176_v10  ;;  %v253_v27 = vadd.f32 %v245_v50, %v227_v13  ;;  %v151_v28 = vadd.f32 %v143_v4, %v125_v15  ;;  %v328_v30 = vmul.f32 %v3952_v23, %v318_v12  ;;  %v448_v50 = vld [vmem:[#allocation2 + $0x7] sm:$0x1]  ;;  %v449_v4 = vld [vmem:[#allocation2 + $0xf] sm:$0x1]  ;;  %s4269_s17 = sld [smem:[#allocation6 + $0x203]]  ;;  %s4275_s18 = sld [smem:[#allocation6 + $0x204]] }
  0x57   :  { %v310_v32 = vadd.f32 %v302_v21, %v284_v18  ;;  %v221_v34 = vmul.f32 %v3858_v25, %v211_v20  ;;  %v354_v35 = vmul.f32 %v3955_v16, %v344_v19  ;;  %v3964_v36 = vstv %s3927_s20  ;;  %v422_v25 = vld [vmem:[#allocation2 + $0x6] sm:$0x1]  ;;  %v372_v20 = vld [vmem:[#allocation2 + $0x14] sm:$0x1]  ;;  %v398_v18 = vld [vmem:[#allocation2 + $0x15] sm:$0x1] }
  0x58   :  { %v228_v33 = vadd.f32 %v220_v61, %v202_v22  ;;  %v263_v39 = vadd.f32 %v3866_v38, %v253_v27  ;;  %v177_v40 = vadd.f32 %v169_v8, %v151_v28  ;;  %v380_v42 = vmul.f32 %v3958_v26, %v370_v24  ;;  %v276_v61 = vld [vmem:[#allocation2 + $0x10] sm:$0x1]  ;;  %v277_v21 = vld [vmem:[#allocation2 + $0x18] sm:$0x1]  ;;  %v295_v28 = vld [vmem:[#allocation2 + $0x19] sm:$0x1] }
  0x59   :  { %v336_v41 = vadd.f32 %v328_v30, %v310_v32  ;;  %v247_v48 = vmul.f32 %v3862_v31, %v237_v29  ;;  %v3970_v49 = vstv %s3934_s21  ;;  %v3973_v51 = vstv %s3936_s22  ;;  %v321_v29 = vld [vmem:[#allocation2 + $0x1a] sm:$0x1]  ;;  %s4277_s19 = sld [smem:[#allocation6 + $0x205]]  ;;  %s4284_s20 = sld [smem:[#allocation6 + $0x206]] }
  0x5a   :  { %v254_v47 = vadd.f32 %v246_v3, %v228_v33  ;;  %271 = vst [vmem:[#allocation9 + $0x50] sm:$0x1] %v263_v39  ;;  %v203_v52 = vadd.f32 %v195_v9, %v177_v40  ;;  %v406_v54 = vmul.f32 %v3964_v36, %v396_v17  ;;  %v3977_v37 = vstv %s3940_s23  ;;  %v423_v3 = vld [vmem:[#allocation2 + $0xe] sm:$0x1]  ;;  %v450_v17 = vld [vmem:[#allocation2 + $0x17] sm:$0x1] }
  0x5b   :  { %v362_v53 = vadd.f32 %v354_v35, %v336_v41  ;;  %v285_v31 = vmul.f32 %v3944_v14, %v275_v44  ;;  %v303_v59 = vmul.f32 %v3947_v11, %v293_v45  ;;  %v329_v60 = vmul.f32 %v3952_v23, %v319_v46  ;;  %v424_v35 = vld [vmem:[#allocation2 + $0x16] sm:$0x1]  ;;  %v347_v39 = vld [vmem:[#allocation2 + $0x1b] sm:$0x1]  ;;  %v373_v45 = vld [vmem:[#allocation2 + $0x1c] sm:$0x1] }
  0x5c   :  { %v264_v43 = vadd.f32 %v3866_v38, %v254_v47  ;;  %v229_v58 = vadd.f32 %v221_v34, %v203_v52  ;;  %v432_v0 = vmul.f32 %v3970_v49, %v422_v25  ;;  %v458_v2 = vmul.f32 %v3973_v51, %v448_v50  ;;  %v399_v25 = vld [vmem:[#allocation2 + $0x1d] sm:$0x1]  ;;  %v278_v50 = vld [vmem:[#allocation2 + $0x20] sm:$0x1]  ;;  %v296_v52 = vld [vmem:[#allocation2 + $0x21] sm:$0x1] }
  0x5d   :  { %v388_v63 = vadd.f32 %v380_v42, %v362_v53  ;;  %v311_v1 = vadd.f32 %v303_v59, %v285_v31  ;;  %v355_v6 = vmul.f32 %v3955_v16, %v345_v55  ;;  %v381_v8 = vmul.f32 %v3958_v26, %v371_v56  ;;  %s4286_s21 = sld [smem:[#allocation6 + $0x207]]  ;;  %s4305_s22 = sld [smem:[#allocation7 + $0x4]] }
  0x5e   :  { %272 = vst [vmem:[#allocation9 + $0x60] sm:$0x1] %v264_v43  ;;  %v407_v9 = vmul.f32 %v3964_v36, %v397_v57  ;;  %v255_v10 = vadd.f32 %v247_v48, %v229_v58  ;;  %v286_v13 = vmul.f32 %v3944_v14, %v276_v61  ;;  %v304_v15 = vmul.f32 %v3947_v11, %v294_v62  ;;  %v425_v57 = vld [vmem:[#allocation2 + $0x1e] sm:$0x1]  ;;  %v322_v43 = vld [vmem:[#allocation2 + $0x22] sm:$0x1] }
  0x5f   :  { %v414_v12 = vadd.f32 %v406_v54, %v388_v63  ;;  %v337_v19 = vadd.f32 %v329_v60, %v311_v1  ;;  %v433_v22 = vmul.f32 %v3970_v49, %v423_v3  ;;  %v459_v24 = vmul.f32 %v3973_v51, %v449_v4  ;;  %v451_v62 = vld [vmem:[#allocation2 + $0x1f] sm:$0x1]  ;;  %v348_v58 = vld [vmem:[#allocation2 + $0x23] sm:$0x1]  ;;  %v374_v4 = vld [vmem:[#allocation2 + $0x24] sm:$0x1] }
  0x60   :  { %v330_v27 = vmul.f32 %v3952_v23, %v320_v5  ;;  %v265_v32 = vadd.f32 %v3866_v38, %v255_v10  ;;  %v312_v33 = vadd.f32 %v304_v15, %v286_v13  ;;  %v356_v34 = vmul.f32 %v3955_v16, %v346_v7  ;;  %v400_v5 = vld [vmem:[#allocation2 + $0x25] sm:$0x1]  ;;  %v279_v10 = vld [vmem:[#allocation2 + $0x28] sm:$0x1]  ;;  %s4375_s23 = sld [smem:[#allocation6 + $0x280]] }
  0x61   :  { %v440_v30 = vadd.f32 %v432_v0, %v414_v12  ;;  %v363_v40 = vadd.f32 %v355_v6, %v337_v19  ;;  %v382_v41 = vmul.f32 %v3958_v26, %v372_v20  ;;  %v408_v42 = vmul.f32 %v3964_v36, %v398_v18  ;;  %v297_v12 = vld [vmem:[#allocation2 + $0x29] sm:$0x1]  ;;  %v426_v18 = vld [vmem:[#allocation2 + $0x26] sm:$0x1] }
  0x62   :  { %v287_v44 = vmul.f32 %v3944_v14, %v277_v21  ;;  %273 = vst [vmem:[#allocation9 + $0x70] sm:$0x1] %v265_v32  ;;  %v338_v47 = vadd.f32 %v330_v27, %v312_v33  ;;  %v305_v38 = vmul.f32 %v3947_v11, %v295_v28  ;;  %v331_v48 = vmul.f32 %v3952_v23, %v321_v29  ;;  %v323_v21 = vld [vmem:[#allocation2 + $0x2a] sm:$0x1]  ;;  %v349_v32 = vld [vmem:[#allocation2 + $0x2b] sm:$0x1] }
  0x63   :  { %v466_v46 = vadd.f32 %v458_v2, %v440_v30  ;;  %v389_v53 = vadd.f32 %v381_v8, %v363_v40  ;;  %v434_v54 = vmul.f32 %v3970_v49, %v424_v35  ;;  %v460_v55 = vmul.f32 %v3973_v51, %v450_v17  ;;  %v375_v17 = vld [vmem:[#allocation2 + $0x2c] sm:$0x1] }
  0x64   :  { %v357_v56 = vmul.f32 %v3955_v16, %v347_v39  ;;  %v364_v59 = vadd.f32 %v356_v34, %v338_v47  ;;  %v313_v60 = vadd.f32 %v305_v38, %v287_v44  ;;  %v383_v61 = vmul.f32 %v3958_v26, %v373_v45  ;;  %v452_v34 = vld [vmem:[#allocation2 + $0x27] sm:$0x1]  ;;  %v401_v44 = vld [vmem:[#allocation2 + $0x2d] sm:$0x1]  ;;  %v280_v45 = vld [vmem:[#allocation2 + $0x30] sm:$0x1] }
  0x65   :  { %v476_v31 = vadd.f32 %v3977_v37, %v466_v46  ;;  %v415_v63 = vadd.f32 %v407_v9, %v389_v53  ;;  %v409_v0 = vmul.f32 %v3964_v36, %v399_v25  ;;  %v288_v2 = vmul.f32 %v3944_v14, %v278_v50  ;;  %v324_v25 = vld [vmem:[#allocation2 + $0x32] sm:$0x1] }
  0x66   :  { %v306_v3 = vmul.f32 %v3947_v11, %v296_v52  ;;  %v390_v1 = vadd.f32 %v382_v41, %v364_v59  ;;  %v339_v6 = vadd.f32 %v331_v48, %v313_v60  ;;  %v435_v8 = vmul.f32 %v3970_v49, %v425_v57  ;;  %v298_v48 = vld [vmem:[#allocation2 + $0x31] sm:$0x1]  ;;  %v453_v57 = vld [vmem:[#allocation2 + $0x2f] sm:$0x1] }
  0x67   :  { %484 = vst [vmem:[#allocation9 + $0x1] sm:$0x1] %v476_v31  ;;  %v332_v7 = vmul.f32 %v3952_v23, %v322_v43  ;;  %v441_v13 = vadd.f32 %v433_v22, %v415_v63  ;;  %v461_v9 = vmul.f32 %v3973_v51, %v451_v62  ;;  %v358_v20 = vmul.f32 %v3955_v16, %v348_v58  ;;  %v350_v43 = vld [vmem:[#allocation2 + $0x33] sm:$0x1]  ;;  %v376_v62 = vld [vmem:[#allocation2 + $0x34] sm:$0x1] }
  0x68   :  { %v314_v15 = vadd.f32 %v306_v3, %v288_v2  ;;  %v416_v19 = vadd.f32 %v408_v42, %v390_v1  ;;  %v365_v27 = vadd.f32 %v357_v56, %v339_v6  ;;  %v384_v28 = vmul.f32 %v3958_v26, %v374_v4  ;;  %v427_v56 = vld [vmem:[#allocation2 + $0x2e] sm:$0x1]  ;;  %v402_v58 = vld [vmem:[#allocation2 + $0x35] sm:$0x1]  ;;  %v281_v3 = vld [vmem:[#allocation2 + $0x38] sm:$0x1] }
  0x69   :  { %v410_v29 = vmul.f32 %v3964_v36, %v400_v5  ;;  %v467_v30 = vadd.f32 %v459_v24, %v441_v13  ;;  %v289_v35 = vmul.f32 %v3944_v14, %v279_v10  ;;  %v307_v22 = vmul.f32 %v3947_v11, %v297_v12  ;;  %v299_v4 = vld [vmem:[#allocation2 + $0x39] sm:$0x1]  ;;  %v325_v10 = vld [vmem:[#allocation2 + $0x3a] sm:$0x1] }
  0x6a   :  { %v340_v33 = vadd.f32 %v332_v7, %v314_v15  ;;  %v442_v39 = vadd.f32 %v434_v54, %v416_v19  ;;  %v391_v40 = vadd.f32 %v383_v61, %v365_v27  ;;  %v436_v41 = vmul.f32 %v3970_v49, %v426_v18  ;;  %v454_v18 = vld [vmem:[#allocation2 + $0x37] sm:$0x1] }
  0x6b   :  { %v333_v42 = vmul.f32 %v3952_v23, %v323_v21  ;;  %v477_v46 = vadd.f32 %v3977_v37, %v467_v30  ;;  %v315_v38 = vadd.f32 %v307_v22, %v289_v35  ;;  %v359_v24 = vmul.f32 %v3955_v16, %v349_v32  ;;  %v351_v21 = vld [vmem:[#allocation2 + $0x3b] sm:$0x1]  ;;  %v377_v32 = vld [vmem:[#allocation2 + $0x3c] sm:$0x1]  ;;  %v403_v35 = vld [vmem:[#allocation2 + $0x3d] sm:$0x1] }
  0x6c   :  { %v366_v47 = vadd.f32 %v358_v20, %v340_v33  ;;  %v468_v50 = vadd.f32 %v460_v55, %v442_v39  ;;  %v417_v52 = vadd.f32 %v409_v0, %v391_v40  ;;  %v462_v53 = vmul.f32 %v3973_v51, %v452_v34  ;;  %v428_v20 = vld [vmem:[#allocation2 + $0x36] sm:$0x1]  ;;  %v492_v40 = vld [vmem:[#allocation2] sm:$0x1] }
  0x6d   :  { %v385_v54 = vmul.f32 %v3958_v26, %v375_v17  ;;  %485 = vst [vmem:[#allocation9 + $0x11] sm:$0x1] %v477_v46  ;;  %v341_v59 = vadd.f32 %v333_v42, %v315_v38  ;;  %v411_v60 = vmul.f32 %v3964_v36, %v401_v44  ;;  %v290_v61 = vmul.f32 %v3944_v14, %v280_v45  ;;  %v510_v44 = vld [vmem:[#allocation2 + $0x1] sm:$0x1] }
  0x6e   :  { %v392_v31 = vadd.f32 %v384_v28, %v366_v47  ;;  %v478_v55 = vadd.f32 %v3977_v37, %v468_v50  ;;  %v443_v63 = vadd.f32 %v435_v8, %v417_v52  ;;  %v308_v0 = vmul.f32 %v3947_v11, %v298_v48  ;;  %v562_v48 = vld [vmem:[#allocation2 + $0x3] sm:$0x1] }
  0x6f   :  { %v334_v2 = vmul.f32 %v3952_v23, %v324_v25  ;;  %v367_v1 = vadd.f32 %v359_v24, %v341_v59  ;;  %v437_v6 = vmul.f32 %v3970_v49, %v427_v56  ;;  %v463_v7 = vmul.f32 %v3973_v51, %v453_v57  ;;  %v536_v24 = vld [vmem:[#allocation2 + $0x2] sm:$0x1] }
  0x70   :  { %v418_v5 = vadd.f32 %v410_v29, %v392_v31  ;;  %486 = vst [vmem:[#allocation9 + $0x21] sm:$0x1] %v478_v55  ;;  %v469_v8 = vadd.f32 %v461_v9, %v443_v63  ;;  %v316_v12 = vadd.f32 %v308_v0, %v290_v61  ;;  %v360_v13 = vmul.f32 %v3955_v16, %v350_v43  ;;  %v588_v61 = vld [vmem:[#allocation2 + $0x4] sm:$0x1]  ;;  %v614_v63 = vld [vmem:[#allocation2 + $0x5] sm:$0x1] }
  0x71   :  { %v386_v15 = vmul.f32 %v3958_v26, %v376_v62  ;;  %v393_v27 = vadd.f32 %v385_v54, %v367_v1  ;;  %v412_v28 = vmul.f32 %v3964_v36, %v402_v58  ;;  %v291_v29 = vmul.f32 %v3944_v14, %v281_v3  ;;  %v455_v54 = vld [vmem:[#allocation2 + $0x3f] sm:$0x1]  ;;  %v493_v1 = vld [vmem:[#allocation2 + $0x8] sm:$0x1] }
  0x72   :  { %v444_v19 = vadd.f32 %v436_v41, %v418_v5  ;;  %v479_v9 = vadd.f32 %v3977_v37, %v469_v8  ;;  %v342_v30 = vadd.f32 %v334_v2, %v316_v12  ;;  %v309_v33 = vmul.f32 %v3947_v11, %v299_v4  ;;  %v640_v12 = vld [vmem:[#allocation2 + $0x6] sm:$0x1] }
  0x73   :  { %v335_v34 = vmul.f32 %v3952_v23, %v325_v10  ;;  %v419_v17 = vadd.f32 %v411_v60, %v393_v27  ;;  %v438_v39 = vmul.f32 %v3970_v49, %v428_v20  ;;  %v464_v14 = vmul.f32 %v3973_v51, %v454_v18  ;;  %v589_v27 = vld [vmem:[#allocation2 + $0xc] sm:$0x1] }
  0x74   :  { %v470_v22 = vadd.f32 %v462_v53, %v444_v19  ;;  %487 = vst [vmem:[#allocation9 + $0x31] sm:$0x1] %v479_v9  ;;  %v368_v41 = vadd.f32 %v360_v13, %v342_v30  ;;  %v317_v42 = vadd.f32 %v309_v33, %v291_v29  ;;  %v361_v11 = vmul.f32 %v3955_v16, %v351_v21  ;;  %v429_v53 = vld [vmem:[#allocation2 + $0x3e] sm:$0x1]  ;;  %v615_v30 = vld [vmem:[#allocation2 + $0xd] sm:$0x1] }
  0x75   :  { %v387_v23 = vmul.f32 %v3958_v26, %v377_v32  ;;  %v445_v46 = vadd.f32 %v437_v6, %v419_v17  ;;  %v413_v47 = vmul.f32 %v3964_v36, %v403_v35  ;;  %v4061_v38 = vstv %s4024_s24  ;;  %v511_v6 = vld [vmem:[#allocation2 + $0x9] sm:$0x1]  ;;  %v494_v33 = vld [vmem:[#allocation2 + $0x10] sm:$0x1]  ;;  %s4377_s24 = sld [smem:[#allocation6 + $0x281]] }
  0x76   :  { %v480_v45 = vadd.f32 %v3977_v37, %v470_v22  ;;  %v394_v25 = vadd.f32 %v386_v15, %v368_v41  ;;  %v343_v50 = vadd.f32 %v335_v34, %v317_v42  ;;  %v502_v16 = vmul.f32 %v4061_v38, %v492_v40  ;;  %v666_v15 = vld [vmem:[#allocation2 + $0x7] sm:$0x1]  ;;  %v512_v34 = vld [vmem:[#allocation2 + $0x11] sm:$0x1]  ;;  %v538_v40 = vld [vmem:[#allocation2 + $0x12] sm:$0x1] }
  0x77   :  { %v4065_v26 = vstv %s4029_s26  ;;  %v471_v52 = vadd.f32 %v463_v7, %v445_v46  ;;  %v4069_v57 = vstv %s4033_s27  ;;  %v4072_v36 = vstv %s4035_s28  ;;  %v537_v7 = vld [vmem:[#allocation2 + $0xa] sm:$0x1]  ;;  %s4383_s26 = sld [smem:[#allocation6 + $0x282]]  ;;  %s4386_s27 = sld [smem:[#allocation6 + $0x283]] }
  0x78   :  { %488 = vst [vmem:[#allocation9 + $0x41] sm:$0x1] %v480_v45  ;;  %v520_v56 = vmul.f32 %v4065_v26, %v510_v44  ;;  %v420_v43 = vadd.f32 %v412_v28, %v394_v25  ;;  %v369_v31 = vadd.f32 %v361_v11, %v343_v50  ;;  %v546_v59 = vmul.f32 %v4069_v57, %v536_v24  ;;  %v667_v44 = vld [vmem:[#allocation2 + $0xf] sm:$0x1]  ;;  %v564_v45 = vld [vmem:[#allocation2 + $0x13] sm:$0x1] }
  0x79   :  { %v572_v60 = vmul.f32 %v4072_v36, %v562_v48  ;;  %v481_v62 = vadd.f32 %v3977_v37, %v471_v52  ;;  %v4078_v55 = vstv %s4041_s29  ;;  %v4081_v0 = vstv %s4043_s30  ;;  %v590_v25 = vld [vmem:[#allocation2 + $0x14] sm:$0x1]  ;;  %v616_v50 = vld [vmem:[#allocation2 + $0x15] sm:$0x1]  ;;  %s4388_s28 = sld [smem:[#allocation6 + $0x284]]  ;;  %s4395_s29 = sld [smem:[#allocation6 + $0x285]] }
  0x7a   :  { %v528_v58 = vadd.f32 %v520_v56, %v502_v16  ;;  %v446_v2 = vadd.f32 %v438_v39, %v420_v43  ;;  %v395_v3 = vadd.f32 %v387_v23, %v369_v31  ;;  %v439_v4 = vmul.f32 %v3970_v49, %v429_v53  ;;  %v495_v56 = vld [vmem:[#allocation2 + $0x18] sm:$0x1]  ;;  %v513_v43 = vld [vmem:[#allocation2 + $0x19] sm:$0x1]  ;;  %v539_v31 = vld [vmem:[#allocation2 + $0x1a] sm:$0x1] }
  0x7b   :  { %v465_v5 = vmul.f32 %v3973_v51, %v455_v54  ;;  %489 = vst [vmem:[#allocation9 + $0x51] sm:$0x1] %v481_v62  ;;  %v598_v8 = vmul.f32 %v4078_v55, %v588_v61  ;;  %v4087_v13 = vstv %s4050_s4  ;;  %v4090_v20 = vstv %s4052_s5  ;;  %v563_v51 = vld [vmem:[#allocation2 + $0xb] sm:$0x1]  ;;  %s4402_s30 = sld [smem:[#allocation6 + $0x286]]  ;;  %s4404_s4 = sld [smem:[#allocation6 + $0x287]] }
  0x7c   :  { %v554_v10 = vadd.f32 %v546_v59, %v528_v58  ;;  %v472_v18 = vadd.f32 %v464_v14, %v446_v2  ;;  %v421_v21 = vadd.f32 %v413_v47, %v395_v3  ;;  %v624_v19 = vmul.f32 %v4081_v0, %v614_v63  ;;  %v641_v14 = vld [vmem:[#allocation2 + $0xe] sm:$0x1]  ;;  %v642_v58 = vld [vmem:[#allocation2 + $0x16] sm:$0x1]  ;;  %v668_v63 = vld [vmem:[#allocation2 + $0x17] sm:$0x1] }
  0x7d   :  { %v4094_v49 = vstv %s4056_s6  ;;  %v503_v29 = vmul.f32 %v4061_v38, %v493_v1  ;;  %v521_v32 = vmul.f32 %v4065_v26, %v511_v6  ;;  %v547_v9 = vmul.f32 %v4069_v57, %v537_v7  ;;  %v565_v1 = vld [vmem:[#allocation2 + $0x1b] sm:$0x1]  ;;  %v591_v6 = vld [vmem:[#allocation2 + $0x1c] sm:$0x1]  ;;  %s4415_s5 = sld [smem:[#allocation7 + $0x5]]  ;;  %s4492_s6 = sld [smem:[#allocation6 + $0x300]] }
  0x7e   :  { %v580_v28 = vadd.f32 %v572_v60, %v554_v10  ;;  %v482_v35 = vadd.f32 %v3977_v37, %v472_v18  ;;  %v447_v22 = vadd.f32 %v439_v4, %v421_v21  ;;  %v650_v17 = vmul.f32 %v4087_v13, %v640_v12  ;;  %v617_v12 = vld [vmem:[#allocation2 + $0x1d] sm:$0x1] }
  0x7f   :  { %v676_v39 = vmul.f32 %v4090_v20, %v666_v15  ;;  %v529_v42 = vadd.f32 %v521_v32, %v503_v29  ;;  %v573_v11 = vmul.f32 %v4072_v36, %v563_v51  ;;  %v599_v23 = vmul.f32 %v4078_v55, %v589_v27  ;;  %v496_v15 = vld [vmem:[#allocation2 + $0x20] sm:$0x1]  ;;  %v514_v27 = vld [vmem:[#allocation2 + $0x21] sm:$0x1] }
  0x80   :  { %v606_v41 = vadd.f32 %v598_v8, %v580_v28  ;;  %490 = vst [vmem:[#allocation9 + $0x61] sm:$0x1] %v482_v35  ;;  %v473_v46 = vadd.f32 %v465_v5, %v447_v22  ;;  %v625_v47 = vmul.f32 %v4081_v0, %v615_v30  ;;  %v504_v24 = vmul.f32 %v4061_v38, %v494_v33  ;;  %v540_v28 = vld [vmem:[#allocation2 + $0x22] sm:$0x1]  ;;  %v643_v33 = vld [vmem:[#allocation2 + $0x1e] sm:$0x1] }
  0x81   :  { %v522_v48 = vmul.f32 %v4065_v26, %v512_v34  ;;  %v555_v52 = vadd.f32 %v547_v9, %v529_v42  ;;  %v651_v53 = vmul.f32 %v4087_v13, %v641_v14  ;;  %v548_v54 = vmul.f32 %v4069_v57, %v538_v40  ;;  %v669_v34 = vld [vmem:[#allocation2 + $0x1f] sm:$0x1]  ;;  %v566_v35 = vld [vmem:[#allocation2 + $0x23] sm:$0x1]  ;;  %v592_v40 = vld [vmem:[#allocation2 + $0x24] sm:$0x1] }
  0x82   :  { %v632_v16 = vadd.f32 %v624_v19, %v606_v41  ;;  %v483_v59 = vadd.f32 %v3977_v37, %v473_v46  ;;  %v677_v60 = vmul.f32 %v4090_v20, %v667_v44  ;;  %v574_v62 = vmul.f32 %v4072_v36, %v564_v45  ;;  %v618_v44 = vld [vmem:[#allocation2 + $0x25] sm:$0x1]  ;;  %v497_v45 = vld [vmem:[#allocation2 + $0x28] sm:$0x1]  ;;  %v515_v46 = vld [vmem:[#allocation2 + $0x29] sm:$0x1] }
  0x83   :  { %v530_v61 = vadd.f32 %v522_v48, %v504_v24  ;;  %v581_v3 = vadd.f32 %v573_v11, %v555_v52  ;;  %v600_v4 = vmul.f32 %v4078_v55, %v590_v25  ;;  %v626_v5 = vmul.f32 %v4081_v0, %v616_v50  ;;  %v541_v50 = vld [vmem:[#allocation2 + $0x2a] sm:$0x1] }
  0x84   :  { %v658_v2 = vadd.f32 %v650_v17, %v632_v16  ;;  %491 = vst [vmem:[#allocation9 + $0x71] sm:$0x1] %v483_v59  ;;  %v505_v10 = vmul.f32 %v4061_v38, %v495_v56  ;;  %v523_v37 = vmul.f32 %v4065_v26, %v513_v43  ;;  %v549_v8 = vmul.f32 %v4069_v57, %v539_v31  ;;  %v644_v43 = vld [vmem:[#allocation2 + $0x26] sm:$0x1]  ;;  %v567_v31 = vld [vmem:[#allocation2 + $0x2b] sm:$0x1] }
  0x85   :  { %v556_v7 = vadd.f32 %v548_v54, %v530_v61  ;;  %v607_v21 = vadd.f32 %v599_v23, %v581_v3  ;;  %v652_v19 = vmul.f32 %v4087_v13, %v642_v58  ;;  %v678_v51 = vmul.f32 %v4090_v20, %v668_v63 }
  0x86   :  { %v684_v18 = vadd.f32 %v676_v39, %v658_v2  ;;  %v531_v32 = vadd.f32 %v523_v37, %v505_v10  ;;  %v575_v9 = vmul.f32 %v4072_v36, %v565_v1  ;;  %v601_v30 = vmul.f32 %v4078_v55, %v591_v6  ;;  %v619_v1 = vld [vmem:[#allocation2 + $0x2d] sm:$0x1]  ;;  %v498_v6 = vld [vmem:[#allocation2 + $0x30] sm:$0x1] }
  0x87   :  { %v582_v29 = vadd.f32 %v574_v62, %v556_v7  ;;  %v633_v17 = vadd.f32 %v625_v47, %v607_v21  ;;  %v627_v39 = vmul.f32 %v4081_v0, %v617_v12  ;;  %v506_v14 = vmul.f32 %v4061_v38, %v496_v15  ;;  %v670_v62 = vld [vmem:[#allocation2 + $0x27] sm:$0x1] }
  0x88   :  { %v694_v22 = vadd.f32 %v4094_v49, %v684_v18  ;;  %v557_v42 = vadd.f32 %v549_v8, %v531_v32  ;;  %v524_v11 = vmul.f32 %v4065_v26, %v514_v27  ;;  %v550_v23 = vmul.f32 %v4069_v57, %v540_v28  ;;  %v516_v8 = vld [vmem:[#allocation2 + $0x31] sm:$0x1]  ;;  %v671_v27 = vld [vmem:[#allocation2 + $0x2f] sm:$0x1]  ;;  %v542_v28 = vld [vmem:[#allocation2 + $0x32] sm:$0x1] }
  0x89   :  { %v608_v41 = vadd.f32 %v600_v4, %v582_v29  ;;  %v659_v24 = vadd.f32 %v651_v53, %v633_v17  ;;  %v653_v48 = vmul.f32 %v4087_v13, %v643_v33  ;;  %v679_v47 = vmul.f32 %v4090_v20, %v669_v34  ;;  %v568_v33 = vld [vmem:[#allocation2 + $0x33] sm:$0x1]  ;;  %v594_v34 = vld [vmem:[#allocation2 + $0x34] sm:$0x1] }
  0x8a   :  { %702 = vst [vmem:[#allocation9 + $0x2] sm:$0x1] %v694_v22  ;;  %v576_v25 = vmul.f32 %v4072_v36, %v566_v35  ;;  %v583_v52 = vadd.f32 %v575_v9, %v557_v42  ;;  %v532_v54 = vadd.f32 %v524_v11, %v506_v14  ;;  %v602_v56 = vmul.f32 %v4078_v55, %v592_v40  ;;  %v499_v14 = vld [vmem:[#allocation2 + $0x38] sm:$0x1] }
  0x8b   :  { %v634_v16 = vadd.f32 %v626_v5, %v608_v41  ;;  %v685_v59 = vadd.f32 %v677_v60, %v659_v24  ;;  %v628_v61 = vmul.f32 %v4081_v0, %v618_v44  ;;  %v507_v53 = vmul.f32 %v4061_v38, %v497_v45  ;;  %v593_v5 = vld [vmem:[#allocation2 + $0x2c] sm:$0x1] }
  0x8c   :  { %v525_v58 = vmul.f32 %v4065_v26, %v515_v46  ;;  %v609_v2 = vadd.f32 %v601_v30, %v583_v52  ;;  %v558_v3 = vadd.f32 %v550_v23, %v532_v54  ;;  %v551_v4 = vmul.f32 %v4069_v57, %v541_v50  ;;  %v517_v23 = vld [vmem:[#allocation2 + $0x39] sm:$0x1]  ;;  %v543_v50 = vld [vmem:[#allocation2 + $0x3a] sm:$0x1] }
  0x8d   :  { %v660_v63 = vadd.f32 %v652_v19, %v634_v16  ;;  %v695_v7 = vadd.f32 %v4094_v49, %v685_v59  ;;  %v654_v10 = vmul.f32 %v4087_v13, %v644_v43  ;;  %v577_v37 = vmul.f32 %v4072_v36, %v567_v31  ;;  %v645_v19 = vld [vmem:[#allocation2 + $0x2e] sm:$0x1]  ;;  %v569_v43 = vld [vmem:[#allocation2 + $0x3b] sm:$0x1] }
  0x8e   :  { %v533_v60 = vadd.f32 %v525_v58, %v507_v53  ;;  %v635_v15 = vadd.f32 %v627_v39, %v609_v2  ;;  %v584_v18 = vadd.f32 %v576_v25, %v558_v3  ;;  %v680_v21 = vmul.f32 %v4090_v20, %v670_v62  ;;  %v620_v39 = vld [vmem:[#allocation2 + $0x35] sm:$0x1]  ;;  %v672_v25 = vld [vmem:[#allocation2 + $0x37] sm:$0x1]  ;;  %v595_v62 = vld [vmem:[#allocation2 + $0x3c] sm:$0x1] }
  0x8f   :  { %v686_v12 = vadd.f32 %v678_v51, %v660_v63  ;;  %703 = vst [vmem:[#allocation9 + $0x12] sm:$0x1] %v695_v7  ;;  %v603_v32 = vmul.f32 %v4078_v55, %v593_v5  ;;  %v629_v9 = vmul.f32 %v4081_v0, %v619_v1  ;;  %v508_v30 = vmul.f32 %v4061_v38, %v498_v6  ;;  %v621_v53 = vld [vmem:[#allocation2 + $0x3d] sm:$0x1]  ;;  %v710_v3 = vld [vmem:[#allocation2] sm:$0x1] }
  0x90   :  { %v559_v29 = vadd.f32 %v551_v4, %v533_v60  ;;  %v661_v35 = vadd.f32 %v653_v48, %v635_v15  ;;  %v610_v22 = vadd.f32 %v602_v56, %v584_v18  ;;  %v526_v17 = vmul.f32 %v4065_v26, %v516_v8  ;;  %v646_v48 = vld [vmem:[#allocation2 + $0x36] sm:$0x1]  ;;  %v728_v60 = vld [vmem:[#allocation2 + $0x1] sm:$0x1] }
  0x91   :  { %v696_v51 = vadd.f32 %v4094_v49, %v686_v12  ;;  %v655_v41 = vmul.f32 %v4087_v13, %v645_v19  ;;  %v681_v42 = vmul.f32 %v4090_v20, %v671_v27  ;;  %v552_v11 = vmul.f32 %v4069_v57, %v542_v28 }
  0x92   :  { %v585_v40 = vadd.f32 %v577_v37, %v559_v29  ;;  %v687_v44 = vadd.f32 %v679_v47, %v661_v35  ;;  %v636_v45 = vadd.f32 %v628_v61, %v610_v22  ;;  %v534_v46 = vadd.f32 %v526_v17, %v508_v30  ;;  %v754_v37 = vld [vmem:[#allocation2 + $0x2] sm:$0x1] }
  0x93   :  { %704 = vst [vmem:[#allocation9 + $0x22] sm:$0x1] %v696_v51  ;;  %v578_v24 = vmul.f32 %v4072_v36, %v568_v33  ;;  %v604_v52 = vmul.f32 %v4078_v55, %v594_v34  ;;  %v630_v54 = vmul.f32 %v4081_v0, %v620_v39  ;;  %v509_v56 = vmul.f32 %v4061_v38, %v499_v14  ;;  %v806_v33 = vld [vmem:[#allocation2 + $0x4] sm:$0x1]  ;;  %v832_v34 = vld [vmem:[#allocation2 + $0x5] sm:$0x1] }
  0x94   :  { %v611_v16 = vadd.f32 %v603_v32, %v585_v40  ;;  %v697_v47 = vadd.f32 %v4094_v49, %v687_v44  ;;  %v662_v31 = vadd.f32 %v654_v10, %v636_v45  ;;  %v560_v59 = vadd.f32 %v552_v11, %v534_v46  ;;  %v673_v32 = vld [vmem:[#allocation2 + $0x3f] sm:$0x1]  ;;  %v729_v11 = vld [vmem:[#allocation2 + $0x9] sm:$0x1]  ;;  %v858_v46 = vld [vmem:[#allocation2 + $0x6] sm:$0x1] }
  0x95   :  { %v527_v61 = vmul.f32 %v4065_v26, %v517_v23  ;;  %v656_v63 = vmul.f32 %v4087_v13, %v646_v48  ;;  %v682_v2 = vmul.f32 %v4090_v20, %v672_v25  ;;  %v553_v38 = vmul.f32 %v4069_v57, %v543_v50  ;;  %v755_v23 = vld [vmem:[#allocation2 + $0xa] sm:$0x1] }
  0x96   :  { %v637_v58 = vadd.f32 %v629_v9, %v611_v16  ;;  %705 = vst [vmem:[#allocation9 + $0x32] sm:$0x1] %v697_v47  ;;  %v688_v4 = vadd.f32 %v680_v21, %v662_v31  ;;  %v586_v5 = vadd.f32 %v578_v24, %v560_v59  ;;  %v579_v26 = vmul.f32 %v4072_v36, %v569_v43  ;;  %v647_v36 = vld [vmem:[#allocation2 + $0x3e] sm:$0x1]  ;;  %v884_v16 = vld [vmem:[#allocation2 + $0x7] sm:$0x1] }
  0x97   :  { %v535_v1 = vadd.f32 %v527_v61, %v509_v56  ;;  %v605_v7 = vmul.f32 %v4078_v55, %v595_v62  ;;  %v631_v10 = vmul.f32 %v4081_v0, %v621_v53  ;;  %v4175_v57 = vstv %s4141_s0  ;;  %v780_v0 = vld [vmem:[#allocation2 + $0x3] sm:$0x1]  ;;  %v807_v56 = vld [vmem:[#allocation2 + $0xc] sm:$0x1]  ;;  %v833_v59 = vld [vmem:[#allocation2 + $0xd] sm:$0x1] }
  0x98   :  { %v663_v6 = vadd.f32 %v655_v41, %v637_v58  ;;  %v698_v8 = vadd.f32 %v4094_v49, %v688_v4  ;;  %v612_v12 = vadd.f32 %v604_v52, %v586_v5  ;;  %v720_v18 = vmul.f32 %v4175_v57, %v710_v3  ;;  %v712_v61 = vld [vmem:[#allocation2 + $0x10] sm:$0x1]  ;;  %v756_v3 = vld [vmem:[#allocation2 + $0x12] sm:$0x1]  ;;  %s4497_s0 = sld [smem:[#allocation6 + $0x301]] }
  0x99   :  { %v561_v15 = vadd.f32 %v553_v38, %v535_v1  ;;  %v4182_v19 = vstv %s4145_s7  ;;  %v4185_v55 = vstv %s4150_s8  ;;  %v4188_v27 = vstv %s4152_s2  ;;  %v730_v38 = vld [vmem:[#allocation2 + $0x11] sm:$0x1]  ;;  %s4501_s7 = sld [smem:[#allocation6 + $0x302]]  ;;  %s4503_s8 = sld [smem:[#allocation6 + $0x303]] }
  0x9a   :  { %v689_v21 = vadd.f32 %v681_v42, %v663_v6  ;;  %706 = vst [vmem:[#allocation9 + $0x42] sm:$0x1] %v698_v8  ;;  %v638_v28 = vadd.f32 %v630_v54, %v612_v12  ;;  %v738_v9 = vmul.f32 %v4182_v19, %v728_v60  ;;  %v764_v30 = vmul.f32 %v4185_v55, %v754_v37  ;;  %v711_v42 = vld [vmem:[#allocation2 + $0x8] sm:$0x1]  ;;  %v781_v54 = vld [vmem:[#allocation2 + $0xb] sm:$0x1] }
  0x9b   :  { %v587_v29 = vadd.f32 %v579_v26, %v561_v15  ;;  %v657_v35 = vmul.f32 %v4087_v13, %v647_v36  ;;  %v4195_v22 = vstv %s4158_s9  ;;  %v4198_v17 = vstv %s4160_s10  ;;  %v885_v6 = vld [vmem:[#allocation2 + $0xf] sm:$0x1]  ;;  %v808_v12 = vld [vmem:[#allocation2 + $0x14] sm:$0x1]  ;;  %v834_v15 = vld [vmem:[#allocation2 + $0x15] sm:$0x1] }
  0x9c   :  { %v699_v51 = vadd.f32 %v4094_v49, %v689_v21  ;;  %v664_v39 = vadd.f32 %v656_v63, %v638_v28  ;;  %v746_v40 = vadd.f32 %v738_v9, %v720_v18  ;;  %v790_v41 = vmul.f32 %v4188_v27, %v780_v0  ;;  %v713_v28 = vld [vmem:[#allocation2 + $0x18] sm:$0x1]  ;;  %s4509_s2 = sld [smem:[#allocation6 + $0x304]]  ;;  %s4511_s9 = sld [smem:[#allocation6 + $0x305]] }
  0x9d   :  { %v613_v14 = vadd.f32 %v605_v7, %v587_v29  ;;  %v683_v44 = vmul.f32 %v4090_v20, %v673_v32  ;;  %v816_v45 = vmul.f32 %v4195_v22, %v806_v33  ;;  %v842_v13 = vmul.f32 %v4198_v17, %v832_v34  ;;  %v782_v7 = vld [vmem:[#allocation2 + $0x13] sm:$0x1]  ;;  %v731_v29 = vld [vmem:[#allocation2 + $0x19] sm:$0x1]  ;;  %v757_v32 = vld [vmem:[#allocation2 + $0x1a] sm:$0x1] }
  0x9e   :  { %707 = vst [vmem:[#allocation9 + $0x52] sm:$0x1] %v699_v51  ;;  %v4205_v24 = vstv %s4167_s11  ;;  %v690_v48 = vadd.f32 %v682_v2, %v664_v39  ;;  %v772_v50 = vadd.f32 %v764_v30, %v746_v40  ;;  %v4208_v52 = vstv %s4170_s12  ;;  %v859_v2 = vld [vmem:[#allocation2 + $0xe] sm:$0x1]  ;;  %v860_v51 = vld [vmem:[#allocation2 + $0x16] sm:$0x1] }
  0x9f   :  { %v639_v25 = vadd.f32 %v631_v10, %v613_v14  ;;  %v4211_v43 = vstv %s4177_s13  ;;  %v721_v47 = vmul.f32 %v4175_v57, %v711_v42  ;;  %v739_v20 = vmul.f32 %v4182_v19, %v729_v11  ;;  %v783_v42 = vld [vmem:[#allocation2 + $0x1b] sm:$0x1]  ;;  %v809_v11 = vld [vmem:[#allocation2 + $0x1c] sm:$0x1]  ;;  %s4518_s10 = sld [smem:[#allocation6 + $0x306]]  ;;  %s4520_s11 = sld [smem:[#allocation6 + $0x307]] }
  0xa0   :  { %v765_v31 = vmul.f32 %v4185_v55, %v755_v23  ;;  %v700_v62 = vadd.f32 %v4094_v49, %v690_v48  ;;  %v798_v58 = vadd.f32 %v790_v41, %v772_v50  ;;  %v868_v63 = vmul.f32 %v4205_v24, %v858_v46  ;;  %v714_v46 = vld [vmem:[#allocation2 + $0x20] sm:$0x1]  ;;  %s4524_s12 = sld [smem:[#allocation7 + $0x6]]  ;;  %s4609_s13 = sld [smem:[#allocation6 + $0x380]] }
  0xa1   :  { %v665_v53 = vadd.f32 %v657_v35, %v639_v25  ;;  %v894_v4 = vmul.f32 %v4208_v52, %v884_v16  ;;  %v747_v5 = vadd.f32 %v739_v20, %v721_v47  ;;  %v791_v1 = vmul.f32 %v4188_v27, %v781_v54  ;;  %v886_v35 = vld [vmem:[#allocation2 + $0x17] sm:$0x1]  ;;  %v732_v54 = vld [vmem:[#allocation2 + $0x21] sm:$0x1] }
  0xa2   :  { %v817_v26 = vmul.f32 %v4195_v22, %v807_v56  ;;  %708 = vst [vmem:[#allocation9 + $0x62] sm:$0x1] %v700_v62  ;;  %v824_v60 = vadd.f32 %v816_v45, %v798_v58  ;;  %v843_v37 = vmul.f32 %v4198_v17, %v833_v59  ;;  %v722_v8 = vmul.f32 %v4175_v57, %v712_v61  ;;  %v758_v56 = vld [vmem:[#allocation2 + $0x22] sm:$0x1]  ;;  %v861_v61 = vld [vmem:[#allocation2 + $0x1e] sm:$0x1] }
  0xa3   :  { %v691_v10 = vadd.f32 %v683_v44, %v665_v53  ;;  %v773_v36 = vadd.f32 %v765_v31, %v747_v5  ;;  %v869_v18 = vmul.f32 %v4205_v24, %v859_v2  ;;  %v740_v21 = vmul.f32 %v4182_v19, %v730_v38  ;;  %v887_v62 = vld [vmem:[#allocation2 + $0x1f] sm:$0x1]  ;;  %v784_v38 = vld [vmem:[#allocation2 + $0x23] sm:$0x1] }
  0xa4   :  { %v766_v0 = vmul.f32 %v4185_v55, %v756_v3  ;;  %v850_v30 = vadd.f32 %v842_v13, %v824_v60  ;;  %v895_v33 = vmul.f32 %v4208_v52, %v885_v6  ;;  %v792_v34 = vmul.f32 %v4188_v27, %v782_v7  ;;  %v835_v13 = vld [vmem:[#allocation2 + $0x1d] sm:$0x1]  ;;  %v810_v3 = vld [vmem:[#allocation2 + $0x24] sm:$0x1]  ;;  %v836_v6 = vld [vmem:[#allocation2 + $0x25] sm:$0x1] }
  0xa5   :  { %v701_v9 = vadd.f32 %v4094_v49, %v691_v10  ;;  %v799_v39 = vadd.f32 %v791_v1, %v773_v36  ;;  %v748_v14 = vadd.f32 %v740_v21, %v722_v8  ;;  %v818_v40 = vmul.f32 %v4195_v22, %v808_v12  ;;  %v715_v7 = vld [vmem:[#allocation2 + $0x28] sm:$0x1]  ;;  %v733_v12 = vld [vmem:[#allocation2 + $0x29] sm:$0x1] }
  0xa6   :  { %v844_v41 = vmul.f32 %v4198_v17, %v834_v15  ;;  %v876_v23 = vadd.f32 %v868_v63, %v850_v30  ;;  %v723_v44 = vmul.f32 %v4175_v57, %v713_v28  ;;  %v741_v49 = vmul.f32 %v4182_v19, %v731_v29  ;;  %v759_v15 = vld [vmem:[#allocation2 + $0x2a] sm:$0x1]  ;;  %v862_v29 = vld [vmem:[#allocation2 + $0x26] sm:$0x1] }
  0xa7   :  { %709 = vst [vmem:[#allocation9 + $0x72] sm:$0x1] %v701_v9  ;;  %v767_v45 = vmul.f32 %v4185_v55, %v757_v32  ;;  %v825_v48 = vadd.f32 %v817_v26, %v799_v39  ;;  %v774_v25 = vadd.f32 %v766_v0, %v748_v14  ;;  %v870_v50 = vmul.f32 %v4205_v24, %v860_v51  ;;  %v888_v32 = vld [vmem:[#allocation2 + $0x27] sm:$0x1]  ;;  %v785_v51 = vld [vmem:[#allocation2 + $0x2b] sm:$0x1] }
  0xa8   :  { %v896_v16 = vmul.f32 %v4208_v52, %v886_v35  ;;  %v902_v47 = vadd.f32 %v894_v4, %v876_v23  ;;  %v749_v20 = vadd.f32 %v741_v49, %v723_v44  ;;  %v793_v31 = vmul.f32 %v4188_v27, %v783_v42  ;;  %v811_v42 = vld [vmem:[#allocation2 + $0x2c] sm:$0x1]  ;;  %v716_v23 = vld [vmem:[#allocation2 + $0x30] sm:$0x1] }
  0xa9   :  { %v819_v59 = vmul.f32 %v4195_v22, %v809_v11  ;;  %v851_v53 = vadd.f32 %v843_v37, %v825_v48  ;;  %v800_v58 = vadd.f32 %v792_v34, %v774_v25  ;;  %v845_v63 = vmul.f32 %v4198_v17, %v835_v13  ;;  %v837_v11 = vld [vmem:[#allocation2 + $0x2d] sm:$0x1] }
  0xaa   :  { %v724_v2 = vmul.f32 %v4175_v57, %v714_v46  ;;  %v912_v5 = vadd.f32 %v4211_v43, %v902_v47  ;;  %v775_v1 = vadd.f32 %v767_v45, %v749_v20  ;;  %v742_v4 = vmul.f32 %v4182_v19, %v732_v54  ;;  %v734_v45 = vld [vmem:[#allocation2 + $0x31] sm:$0x1]  ;;  %v863_v54 = vld [vmem:[#allocation2 + $0x2e] sm:$0x1]  ;;  %v786_v47 = vld [vmem:[#allocation2 + $0x33] sm:$0x1] }
  0xab   :  { %v768_v26 = vmul.f32 %v4185_v55, %v758_v56  ;;  %v877_v10 = vadd.f32 %v869_v18, %v851_v53  ;;  %v826_v60 = vadd.f32 %v818_v40, %v800_v58  ;;  %v871_v37 = vmul.f32 %v4205_v24, %v861_v61  ;;  %v760_v56 = vld [vmem:[#allocation2 + $0x32] sm:$0x1] }
  0xac   :  { %v897_v8 = vmul.f32 %v4208_v52, %v887_v62  ;;  %920 = vst [vmem:[#allocation9 + $0x3] sm:$0x1] %v912_v5  ;;  %v801_v36 = vadd.f32 %v793_v31, %v775_v1  ;;  %v750_v21 = vadd.f32 %v742_v4, %v724_v2  ;;  %v794_v0 = vmul.f32 %v4188_v27, %v784_v38  ;;  %v812_v62 = vld [vmem:[#allocation2 + $0x34] sm:$0x1]  ;;  %v838_v38 = vld [vmem:[#allocation2 + $0x35] sm:$0x1] }
  0xad   :  { %v820_v28 = vmul.f32 %v4195_v22, %v810_v3  ;;  %v903_v9 = vadd.f32 %v895_v33, %v877_v10  ;;  %v852_v30 = vadd.f32 %v844_v41, %v826_v60  ;;  %v846_v18 = vmul.f32 %v4198_v17, %v836_v6  ;;  %v717_v3 = vld [vmem:[#allocation2 + $0x38] sm:$0x1] }
  0xae   :  { %v725_v34 = vmul.f32 %v4175_v57, %v715_v7  ;;  %v827_v35 = vadd.f32 %v819_v59, %v801_v36  ;;  %v776_v39 = vadd.f32 %v768_v26, %v750_v21  ;;  %v743_v14 = vmul.f32 %v4182_v19, %v733_v12  ;;  %v864_v26 = vld [vmem:[#allocation2 + $0x36] sm:$0x1]  ;;  %v735_v12 = vld [vmem:[#allocation2 + $0x39] sm:$0x1] }
  0xaf   :  { %v769_v40 = vmul.f32 %v4185_v55, %v759_v15  ;;  %v913_v44 = vadd.f32 %v4211_v43, %v903_v9  ;;  %v878_v49 = vadd.f32 %v870_v50, %v852_v30  ;;  %v872_v33 = vmul.f32 %v4205_v24, %v862_v29  ;;  %v889_v50 = vld [vmem:[#allocation2 + $0x2f] sm:$0x1]  ;;  %v761_v15 = vld [vmem:[#allocation2 + $0x3a] sm:$0x1]  ;;  %v787_v29 = vld [vmem:[#allocation2 + $0x3b] sm:$0x1] }
  0xb0   :  { %v898_v41 = vmul.f32 %v4208_v52, %v888_v32  ;;  %v853_v13 = vadd.f32 %v845_v63, %v827_v35  ;;  %v802_v46 = vadd.f32 %v794_v0, %v776_v39  ;;  %v751_v48 = vadd.f32 %v743_v14, %v725_v34  ;;  %v839_v34 = vld [vmem:[#allocation2 + $0x3d] sm:$0x1]  ;;  %v928_v14 = vld [vmem:[#allocation2] sm:$0x1] }
  0xb1   :  { %v795_v25 = vmul.f32 %v4188_v27, %v785_v51  ;;  %921 = vst [vmem:[#allocation9 + $0x13] sm:$0x1] %v913_v44  ;;  %v904_v20 = vadd.f32 %v896_v16, %v878_v49  ;;  %v821_v31 = vmul.f32 %v4195_v22, %v811_v42  ;;  %v847_v59 = vmul.f32 %v4198_v17, %v837_v11 }
  0xb2   :  { %v726_v61 = vmul.f32 %v4175_v57, %v716_v23  ;;  %v879_v53 = vadd.f32 %v871_v37, %v853_v13  ;;  %v828_v58 = vadd.f32 %v820_v28, %v802_v46  ;;  %v777_v63 = vadd.f32 %v769_v40, %v751_v48  ;;  %v890_v37 = vld [vmem:[#allocation2 + $0x37] sm:$0x1]  ;;  %v865_v48 = vld [vmem:[#allocation2 + $0x3e] sm:$0x1] }
  0xb3   :  { %v744_v2 = vmul.f32 %v4182_v19, %v734_v45  ;;  %v914_v16 = vadd.f32 %v4211_v43, %v904_v20  ;;  %v873_v5 = vmul.f32 %v4205_v24, %v863_v54  ;;  %v770_v1 = vmul.f32 %v4185_v55, %v760_v56  ;;  %v972_v45 = vld [vmem:[#allocation2 + $0x2] sm:$0x1] }
  0xb4   :  { %v796_v4 = vmul.f32 %v4188_v27, %v786_v47  ;;  %v905_v6 = vadd.f32 %v897_v8, %v879_v53  ;;  %v854_v7 = vadd.f32 %v846_v18, %v828_v58  ;;  %v803_v10 = vadd.f32 %v795_v25, %v777_v63  ;;  %v813_v18 = vld [vmem:[#allocation2 + $0x3c] sm:$0x1]  ;;  %v1024_v53 = vld [vmem:[#allocation2 + $0x4] sm:$0x1]  ;;  %v1050_v63 = vld [vmem:[#allocation2 + $0x5] sm:$0x1] }
  0xb5   :  { %v752_v60 = vadd.f32 %v744_v2, %v726_v61  ;;  %922 = vst [vmem:[#allocation9 + $0x23] sm:$0x1] %v914_v16  ;;  %v899_v36 = vmul.f32 %v4208_v52, %v889_v50  ;;  %v822_v21 = vmul.f32 %v4195_v22, %v812_v62  ;;  %v848_v0 = vmul.f32 %v4198_v17, %v838_v38 }
  0xb6   :  { %v727_v28 = vmul.f32 %v4175_v57, %v717_v3  ;;  %v915_v8 = vadd.f32 %v4211_v43, %v905_v6  ;;  %v880_v32 = vadd.f32 %v872_v33, %v854_v7  ;;  %v829_v9 = vadd.f32 %v821_v31, %v803_v10  ;;  %v946_v33 = vld [vmem:[#allocation2 + $0x1] sm:$0x1]  ;;  %v891_v31 = vld [vmem:[#allocation2 + $0x3f] sm:$0x1]  ;;  %v1102_v10 = vld [vmem:[#allocation2 + $0x7] sm:$0x1] }
  0xb7   :  { %v778_v30 = vadd.f32 %v770_v1, %v752_v60  ;;  %v874_v51 = vmul.f32 %v4205_v24, %v864_v26  ;;  %v900_v35 = vmul.f32 %v4208_v52, %v890_v37  ;;  %v745_v39 = vmul.f32 %v4182_v19, %v735_v12  ;;  %v1076_v1 = vld [vmem:[#allocation2 + $0x6] sm:$0x1]  ;;  %v947_v26 = vld [vmem:[#allocation2 + $0x9] sm:$0x1]  ;;  %v973_v37 = vld [vmem:[#allocation2 + $0xa] sm:$0x1] }
  0xb8   :  { %v771_v57 = vmul.f32 %v4185_v55, %v761_v15  ;;  %923 = vst [vmem:[#allocation9 + $0x33] sm:$0x1] %v915_v8  ;;  %v906_v40 = vadd.f32 %v898_v41, %v880_v32  ;;  %v855_v42 = vadd.f32 %v847_v59, %v829_v9  ;;  %v797_v23 = vmul.f32 %v4188_v27, %v787_v29  ;;  %v1025_v32 = vld [vmem:[#allocation2 + $0xc] sm:$0x1]  ;;  %v1051_v9 = vld [vmem:[#allocation2 + $0xd] sm:$0x1] }
  0xb9   :  { %v804_v11 = vadd.f32 %v796_v4, %v778_v30  ;;  %v753_v44 = vadd.f32 %v745_v39, %v727_v28  ;;  %v823_v49 = vmul.f32 %v4195_v22, %v813_v18  ;;  %v849_v19 = vmul.f32 %v4198_v17, %v839_v34  ;;  %v998_v22 = vld [vmem:[#allocation2 + $0x3] sm:$0x1]  ;;  %v929_v4 = vld [vmem:[#allocation2 + $0x8] sm:$0x1]  ;;  %v930_v30 = vld [vmem:[#allocation2 + $0x10] sm:$0x1] }
  0xba   :  { %v4292_v55 = vstv %s4258_s14  ;;  %v916_v13 = vadd.f32 %v4211_v43, %v906_v40  ;;  %v881_v46 = vadd.f32 %v873_v5, %v855_v42  ;;  %v4297_v27 = vstv %s4261_s15  ;;  %v948_v39 = vld [vmem:[#allocation2 + $0x11] sm:$0x1]  ;;  %s4613_s14 = sld [smem:[#allocation6 + $0x381]]  ;;  %s4618_s15 = sld [smem:[#allocation6 + $0x382]] }
  0xbb   :  { %v830_v41 = vadd.f32 %v822_v21, %v804_v11  ;;  %v938_v25 = vmul.f32 %v4292_v55, %v928_v14  ;;  %v779_v54 = vadd.f32 %v771_v57, %v753_v44  ;;  %v4300_v56 = vstv %s4267_s16  ;;  %v974_v57 = vld [vmem:[#allocation2 + $0x12] sm:$0x1]  ;;  %v1103_v44 = vld [vmem:[#allocation2 + $0xf] sm:$0x1]  ;;  %s4620_s16 = sld [smem:[#allocation6 + $0x383]] }
  0xbc   :  { %v4303_v17 = vstv %s4269_s17  ;;  %924 = vst [vmem:[#allocation9 + $0x43] sm:$0x1] %v916_v13  ;;  %v907_v47 = vadd.f32 %v899_v36, %v881_v46  ;;  %v956_v59 = vmul.f32 %v4297_v27, %v946_v33  ;;  %v982_v50 = vmul.f32 %v4300_v56, %v972_v45  ;;  %v1026_v46 = vld [vmem:[#allocation2 + $0x14] sm:$0x1]  ;;  %s4626_s17 = sld [smem:[#allocation6 + $0x384]] }
  0xbd   :  { %v856_v20 = vadd.f32 %v848_v0, %v830_v41  ;;  %v805_v61 = vadd.f32 %v797_v23, %v779_v54  ;;  %v875_v62 = vmul.f32 %v4205_v24, %v865_v48  ;;  %v4311_v58 = vstv %s4275_s18  ;;  %v999_v0 = vld [vmem:[#allocation2 + $0xb] sm:$0x1]  ;;  %v1077_v23 = vld [vmem:[#allocation2 + $0xe] sm:$0x1]  ;;  %s4628_s18 = sld [smem:[#allocation6 + $0x385]] }
  0xbe   :  { %v4314_v2 = vstv %s4277_s19  ;;  %v917_v38 = vadd.f32 %v4211_v43, %v907_v47  ;;  %v964_v16 = vadd.f32 %v956_v59, %v938_v25  ;;  %v1008_v5 = vmul.f32 %v4303_v17, %v998_v22  ;;  %v1052_v22 = vld [vmem:[#allocation2 + $0x15] sm:$0x1]  ;;  %v931_v47 = vld [vmem:[#allocation2 + $0x18] sm:$0x1]  ;;  %s4635_s19 = sld [smem:[#allocation6 + $0x386]] }
  0xbf   :  { %v882_v3 = vadd.f32 %v874_v51, %v856_v20  ;;  %v831_v6 = vadd.f32 %v823_v49, %v805_v61  ;;  %v901_v7 = vmul.f32 %v4208_v52, %v891_v31  ;;  %v4320_v24 = vstv %s4284_s20  ;;  %v1000_v49 = vld [vmem:[#allocation2 + $0x13] sm:$0x1]  ;;  %v949_v20 = vld [vmem:[#allocation2 + $0x19] sm:$0x1]  ;;  %s4638_s20 = sld [smem:[#allocation6 + $0x387]] }
  0xc0   :  { %v4323_v60 = vstv %s4286_s21  ;;  %925 = vst [vmem:[#allocation9 + $0x53] sm:$0x1] %v917_v38  ;;  %v990_v15 = vadd.f32 %v982_v50, %v964_v16  ;;  %v1034_v36 = vmul.f32 %v4311_v58, %v1024_v53  ;;  %v1060_v21 = vmul.f32 %v4314_v2, %v1050_v63  ;;  %v975_v53 = vld [vmem:[#allocation2 + $0x1a] sm:$0x1]  ;;  %s4645_s21 = sld [smem:[#allocation7 + $0x7]] }
  0xc1   :  { %v908_v12 = vadd.f32 %v900_v35, %v882_v3  ;;  %v857_v28 = vadd.f32 %v849_v19, %v831_v6  ;;  %v1086_v29 = vmul.f32 %v4320_v24, %v1076_v1  ;;  %v939_v52 = vmul.f32 %v4292_v55, %v929_v4  ;;  %v1001_v1 = vld [vmem:[#allocation2 + $0x1b] sm:$0x1] }
  0xc2   :  { %v957_v8 = vmul.f32 %v4297_v27, %v947_v26  ;;  %v1016_v34 = vadd.f32 %v1008_v5, %v990_v15  ;;  %v1112_v51 = vmul.f32 %v4323_v60, %v1102_v10  ;;  %v983_v35 = vmul.f32 %v4300_v56, %v973_v37  ;;  %v1104_v5 = vld [vmem:[#allocation2 + $0x17] sm:$0x1]  ;;  %v1027_v10 = vld [vmem:[#allocation2 + $0x1c] sm:$0x1]  ;;  %v1053_v37 = vld [vmem:[#allocation2 + $0x1d] sm:$0x1] }
  0xc3   :  { %v918_v18 = vadd.f32 %v4211_v43, %v908_v12  ;;  %v883_v14 = vadd.f32 %v875_v62, %v857_v28  ;;  %v4334_v40 = vstv %s4305_s22  ;;  %v1009_v11 = vmul.f32 %v4303_v17, %v999_v0  ;;  %v1078_v62 = vld [vmem:[#allocation2 + $0x16] sm:$0x1]  ;;  %v950_v0 = vld [vmem:[#allocation2 + $0x21] sm:$0x1]  ;;  %s4726_s22 = sld [smem:[#allocation6 + $0x400]] }
  0xc4   :  { %v965_v42 = vadd.f32 %v957_v8, %v939_v52  ;;  %v1042_v19 = vadd.f32 %v1034_v36, %v1016_v34  ;;  %v1035_v33 = vmul.f32 %v4311_v58, %v1025_v32  ;;  %v1061_v45 = vmul.f32 %v4314_v2, %v1051_v9  ;;  %v1079_v32 = vld [vmem:[#allocation2 + $0x1e] sm:$0x1]  ;;  %v976_v9 = vld [vmem:[#allocation2 + $0x22] sm:$0x1] }
  0xc5   :  { %926 = vst [vmem:[#allocation9 + $0x63] sm:$0x1] %v918_v18  ;;  %v940_v13 = vmul.f32 %v4292_v55, %v930_v30  ;;  %v909_v41 = vadd.f32 %v901_v7, %v883_v14  ;;  %v958_v25 = vmul.f32 %v4297_v27, %v948_v39  ;;  %v984_v54 = vmul.f32 %v4300_v56, %v974_v57  ;;  %v1105_v39 = vld [vmem:[#allocation2 + $0x1f] sm:$0x1]  ;;  %v1002_v57 = vld [vmem:[#allocation2 + $0x23] sm:$0x1] }
  0xc6   :  { %v991_v48 = vadd.f32 %v983_v35, %v965_v42  ;;  %v1068_v31 = vadd.f32 %v1060_v21, %v1042_v19  ;;  %v1087_v59 = vmul.f32 %v4320_v24, %v1077_v23  ;;  %v1113_v50 = vmul.f32 %v4323_v60, %v1103_v44  ;;  %v932_v21 = vld [vmem:[#allocation2 + $0x20] sm:$0x1]  ;;  %v1028_v23 = vld [vmem:[#allocation2 + $0x24] sm:$0x1]  ;;  %v1054_v44 = vld [vmem:[#allocation2 + $0x25] sm:$0x1] }
  0xc7   :  { %v1010_v61 = vmul.f32 %v4303_v17, %v1000_v49  ;;  %v919_v63 = vadd.f32 %v4211_v43, %v909_v41  ;;  %v966_v3 = vadd.f32 %v958_v25, %v940_v13  ;;  %v1036_v16 = vmul.f32 %v4311_v58, %v1026_v46  ;;  %v933_v13 = vld [vmem:[#allocation2 + $0x28] sm:$0x1]  ;;  %v951_v46 = vld [vmem:[#allocation2 + $0x29] sm:$0x1] }
  0xc8   :  { %v1017_v38 = vadd.f32 %v1009_v11, %v991_v48  ;;  %v1094_v4 = vadd.f32 %v1086_v29, %v1068_v31  ;;  %v1062_v26 = vmul.f32 %v4314_v2, %v1052_v22  ;;  %v941_v6 = vmul.f32 %v4292_v55, %v931_v47  ;;  %v1080_v22 = vld [vmem:[#allocation2 + $0x26] sm:$0x1]  ;;  %v977_v47 = vld [vmem:[#allocation2 + $0x2a] sm:$0x1] }
  0xc9   :  { %v959_v7 = vmul.f32 %v4297_v27, %v949_v20  ;;  %927 = vst [vmem:[#allocation9 + $0x73] sm:$0x1] %v919_v63  ;;  %v992_v15 = vadd.f32 %v984_v54, %v966_v3  ;;  %v1088_v43 = vmul.f32 %v4320_v24, %v1078_v62  ;;  %v985_v36 = vmul.f32 %v4300_v56, %v975_v53  ;;  %v1003_v62 = vld [vmem:[#allocation2 + $0x2b] sm:$0x1] }
  0xca   :  { %v1043_v12 = vadd.f32 %v1035_v33, %v1017_v38  ;;  %v1120_v28 = vadd.f32 %v1112_v51, %v1094_v4  ;;  %v1114_v29 = vmul.f32 %v4323_v60, %v1104_v5  ;;  %v1011_v8 = vmul.f32 %v4303_v17, %v1001_v1  ;;  %v1106_v38 = vld [vmem:[#allocation2 + $0x27] sm:$0x1]  ;;  %v1029_v5 = vld [vmem:[#allocation2 + $0x2c] sm:$0x1]  ;;  %v1055_v1 = vld [vmem:[#allocation2 + $0x2d] sm:$0x1] }
  0xcb   :  { %v967_v52 = vadd.f32 %v959_v7, %v941_v6  ;;  %v1018_v18 = vadd.f32 %v1010_v61, %v992_v15  ;;  %v1037_v34 = vmul.f32 %v4311_v58, %v1027_v10  ;;  %v1063_v35 = vmul.f32 %v4314_v2, %v1053_v37  ;;  %v1081_v7 = vld [vmem:[#allocation2 + $0x2e] sm:$0x1]  ;;  %v934_v10 = vld [vmem:[#allocation2 + $0x30] sm:$0x1] }
  0xcc   :  { %v1069_v30 = vadd.f32 %v1061_v45, %v1043_v12  ;;  %v1130_v14 = vadd.f32 %v4334_v40, %v1120_v28  ;;  %v942_v51 = vmul.f32 %v4292_v55, %v932_v21  ;;  %v960_v11 = vmul.f32 %v4297_v27, %v950_v0  ;;  %v1107_v21 = vld [vmem:[#allocation2 + $0x2f] sm:$0x1]  ;;  %v952_v0 = vld [vmem:[#allocation2 + $0x31] sm:$0x1]  ;;  %v978_v28 = vld [vmem:[#allocation2 + $0x32] sm:$0x1] }
  0xcd   :  { %v993_v42 = vadd.f32 %v985_v36, %v967_v52  ;;  %v1044_v19 = vadd.f32 %v1036_v16, %v1018_v18  ;;  %v1089_v33 = vmul.f32 %v4320_v24, %v1079_v32  ;;  %v986_v45 = vmul.f32 %v4300_v56, %v976_v9  ;;  %v1004_v9 = vld [vmem:[#allocation2 + $0x33] sm:$0x1]  ;;  %v1056_v18 = vld [vmem:[#allocation2 + $0x35] sm:$0x1] }
  0xce   :  { %v1095_v49 = vadd.f32 %v1087_v59, %v1069_v30  ;;  %1138 = vst [vmem:[#allocation9 + $0x4] sm:$0x1] %v1130_v14  ;;  %v1115_v48 = vmul.f32 %v4323_v60, %v1105_v39  ;;  %v968_v25 = vadd.f32 %v960_v11, %v942_v51  ;;  %v1012_v54 = vmul.f32 %v4303_v17, %v1002_v57  ;;  %v1030_v30 = vld [vmem:[#allocation2 + $0x34] sm:$0x1]  ;;  %v1082_v14 = vld [vmem:[#allocation2 + $0x36] sm:$0x1] }
  0xcf   :  { %v1019_v41 = vadd.f32 %v1011_v8, %v993_v42  ;;  %v1070_v31 = vadd.f32 %v1062_v26, %v1044_v19  ;;  %v1038_v59 = vmul.f32 %v4311_v58, %v1028_v23  ;;  %v1064_v61 = vmul.f32 %v4314_v2, %v1054_v44  ;;  %v935_v23 = vld [vmem:[#allocation2 + $0x38] sm:$0x1]  ;;  %v953_v44 = vld [vmem:[#allocation2 + $0x39] sm:$0x1] }
  0xd0   :  { %v1121_v20 = vadd.f32 %v1113_v50, %v1095_v49  ;;  %v994_v63 = vadd.f32 %v986_v45, %v968_v25  ;;  %v943_v3 = vmul.f32 %v4292_v55, %v933_v13  ;;  %v961_v16 = vmul.f32 %v4297_v27, %v951_v46  ;;  %v979_v13 = vld [vmem:[#allocation2 + $0x3a] sm:$0x1] }
  0xd1   :  { %v1045_v53 = vadd.f32 %v1037_v34, %v1019_v41  ;;  %v1096_v6 = vadd.f32 %v1088_v43, %v1070_v31  ;;  %v1090_v50 = vmul.f32 %v4320_v24, %v1080_v22  ;;  %v987_v26 = vmul.f32 %v4300_v56, %v977_v47  ;;  %v1108_v22 = vld [vmem:[#allocation2 + $0x37] sm:$0x1]  ;;  %v1005_v47 = vld [vmem:[#allocation2 + $0x3b] sm:$0x1] }
  0xd2   :  { %v1131_v4 = vadd.f32 %v4334_v40, %v1121_v20  ;;  %v1020_v12 = vadd.f32 %v1012_v54, %v994_v63  ;;  %v969_v15 = vadd.f32 %v961_v16, %v943_v3  ;;  %v1013_v36 = vmul.f32 %v4303_v17, %v1003_v62  ;;  %v1057_v62 = vld [vmem:[#allocation2 + $0x3d] sm:$0x1]  ;;  %v1146_v16 = vld [vmem:[#allocation2] sm:$0x1] }
  0xd3   :  { %v1071_v37 = vadd.f32 %v1063_v35, %v1045_v53  ;;  %v1122_v52 = vadd.f32 %v1114_v29, %v1096_v6  ;;  %v1116_v8 = vmul.f32 %v4323_v60, %v1106_v38  ;;  %v1039_v43 = vmul.f32 %v4311_v58, %v1029_v5  ;;  %v1164_v6 = vld [vmem:[#allocation2 + $0x1] sm:$0x1] }
  0xd4   :  { %1139 = vst [vmem:[#allocation9 + $0x14] sm:$0x1] %v1131_v4  ;;  %v1065_v32 = vmul.f32 %v4314_v2, %v1055_v1  ;;  %v1046_v35 = vadd.f32 %v1038_v59, %v1020_v12  ;;  %v995_v39 = vadd.f32 %v987_v26, %v969_v15  ;;  %v944_v57 = vmul.f32 %v4292_v55, %v934_v10  ;;  %v1190_v12 = vld [vmem:[#allocation2 + $0x2] sm:$0x1] }
  0xd5   :  { %v1097_v34 = vadd.f32 %v1089_v33, %v1071_v37  ;;  %v1132_v29 = vadd.f32 %v4334_v40, %v1122_v52  ;;  %v1091_v42 = vmul.f32 %v4320_v24, %v1081_v7  ;;  %v962_v51 = vmul.f32 %v4297_v27, %v952_v0 }
  0xd6   :  { %v988_v11 = vmul.f32 %v4300_v56, %v978_v28  ;;  %v1072_v19 = vadd.f32 %v1064_v61, %v1046_v35  ;;  %v1021_v33 = vadd.f32 %v1013_v36, %v995_v39  ;;  %v1117_v45 = vmul.f32 %v4323_v60, %v1107_v21  ;;  %v1031_v61 = vld [vmem:[#allocation2 + $0x3c] sm:$0x1]  ;;  %v1083_v21 = vld [vmem:[#allocation2 + $0x3e] sm:$0x1]  ;;  %v1147_v39 = vld [vmem:[#allocation2 + $0x8] sm:$0x1] }
  0xd7   :  { %v1123_v49 = vadd.f32 %v1115_v48, %v1097_v34  ;;  %1140 = vst [vmem:[#allocation9 + $0x24] sm:$0x1] %v1132_v29  ;;  %v970_v46 = vadd.f32 %v962_v51, %v944_v57  ;;  %v1014_v41 = vmul.f32 %v4303_v17, %v1004_v9  ;;  %v1040_v25 = vmul.f32 %v4311_v58, %v1030_v30 }
  0xd8   :  { %v1066_v54 = vmul.f32 %v4314_v2, %v1056_v18  ;;  %v1098_v20 = vadd.f32 %v1090_v50, %v1072_v19  ;;  %v1047_v31 = vadd.f32 %v1039_v43, %v1021_v33  ;;  %v945_v59 = vmul.f32 %v4292_v55, %v935_v23  ;;  %v1242_v43 = vld [vmem:[#allocation2 + $0x4] sm:$0x1]  ;;  %v1109_v18 = vld [vmem:[#allocation2 + $0x3f] sm:$0x1]  ;;  %v1294_v19 = vld [vmem:[#allocation2 + $0x6] sm:$0x1] }
  0xd9   :  { %v1133_v48 = vadd.f32 %v4334_v40, %v1123_v49  ;;  %v996_v53 = vadd.f32 %v988_v11, %v970_v46  ;;  %v1092_v63 = vmul.f32 %v4320_v24, %v1082_v14  ;;  %v963_v38 = vmul.f32 %v4297_v27, %v953_v44  ;;  %v1165_v33 = vld [vmem:[#allocation2 + $0x9] sm:$0x1] }
  0xda   :  { %v989_v3 = vmul.f32 %v4300_v56, %v979_v13  ;;  %v1124_v5 = vadd.f32 %v1116_v8, %v1098_v20  ;;  %v1073_v1 = vadd.f32 %v1065_v32, %v1047_v31  ;;  %v1118_v4 = vmul.f32 %v4323_v60, %v1108_v22  ;;  %v1217_v20 = vld [vmem:[#allocation2 + $0xb] sm:$0x1]  ;;  %v1243_v31 = vld [vmem:[#allocation2 + $0xc] sm:$0x1] }
  0xdb   :  { %1141 = vst [vmem:[#allocation9 + $0x34] sm:$0x1] %v1133_v48  ;;  %v1015_v55 = vmul.f32 %v4303_v17, %v1005_v47  ;;  %v1022_v50 = vadd.f32 %v1014_v41, %v996_v53  ;;  %v971_v26 = vadd.f32 %v963_v38, %v945_v59  ;;  %v1041_v27 = vmul.f32 %v4311_v58, %v1031_v61  ;;  %v1269_v59 = vld [vmem:[#allocation2 + $0xd] sm:$0x1]  ;;  %v1166_v38 = vld [vmem:[#allocation2 + $0x11] sm:$0x1] }
  0xdc   :  { %v1067_v56 = vmul.f32 %v4314_v2, %v1057_v62  ;;  %v1134_v7 = vadd.f32 %v4334_v40, %v1124_v5  ;;  %v1099_v10 = vadd.f32 %v1091_v42, %v1073_v1  ;;  %v4410_v37 = vstv %s4375_s23  ;;  %v1216_v2 = vld [vmem:[#allocation2 + $0x3] sm:$0x1]  ;;  %v1268_v42 = vld [vmem:[#allocation2 + $0x5] sm:$0x1]  ;;  %s4729_s23 = sld [smem:[#allocation6 + $0x401]] }
  0xdd   :  { %v4413_v17 = vstv %s4377_s24  ;;  %v1048_v15 = vadd.f32 %v1040_v25, %v1022_v50  ;;  %v997_v36 = vadd.f32 %v989_v3, %v971_v26  ;;  %v1156_v58 = vmul.f32 %v4410_v37, %v1146_v16  ;;  %s4735_s24 = sld [smem:[#allocation6 + $0x402]] }
  0xde   :  { %v1174_v0 = vmul.f32 %v4413_v17, %v1164_v6  ;;  %1142 = vst [vmem:[#allocation9 + $0x44] sm:$0x1] %v1134_v7  ;;  %v1125_v28 = vadd.f32 %v1117_v45, %v1099_v10  ;;  %v4420_v52 = vstv %s4383_s26  ;;  %v4423_v8 = vstv %s4386_s27  ;;  %v1191_v45 = vld [vmem:[#allocation2 + $0xa] sm:$0x1]  ;;  %v1192_v6 = vld [vmem:[#allocation2 + $0x12] sm:$0x1] }
  0xdf   :  { %v4426_v32 = vstv %s4388_s28  ;;  %v1074_v9 = vadd.f32 %v1066_v54, %v1048_v15  ;;  %v1023_v30 = vadd.f32 %v1015_v55, %v997_v36  ;;  %v1200_v35 = vmul.f32 %v4420_v52, %v1190_v12  ;;  %v1321_v55 = vld [vmem:[#allocation2 + $0xf] sm:$0x1]  ;;  %v1218_v7 = vld [vmem:[#allocation2 + $0x13] sm:$0x1]  ;;  %s4737_s26 = sld [smem:[#allocation6 + $0x403]]  ;;  %s4743_s27 = sld [smem:[#allocation6 + $0x404]] }
  0xe0   :  { %v1182_v34 = vadd.f32 %v1174_v0, %v1156_v58  ;;  %v1135_v57 = vadd.f32 %v4334_v40, %v1125_v28  ;;  %v1093_v14 = vmul.f32 %v4320_v24, %v1083_v21  ;;  %v1226_v29 = vmul.f32 %v4423_v8, %v1216_v2  ;;  %v1320_v24 = vld [vmem:[#allocation2 + $0x7] sm:$0x1]  ;;  %v1244_v21 = vld [vmem:[#allocation2 + $0x14] sm:$0x1]  ;;  %v1270_v58 = vld [vmem:[#allocation2 + $0x15] sm:$0x1] }
  0xe1   :  { %v4433_v51 = vstv %s4395_s29  ;;  %v1100_v11 = vadd.f32 %v1092_v63, %v1074_v9  ;;  %v1049_v23 = vadd.f32 %v1041_v27, %v1023_v30  ;;  %v1252_v49 = vmul.f32 %v4426_v32, %v1242_v43  ;;  %v1148_v63 = vld [vmem:[#allocation2 + $0x10] sm:$0x1]  ;;  %v1149_v0 = vld [vmem:[#allocation2 + $0x18] sm:$0x1]  ;;  %v1167_v30 = vld [vmem:[#allocation2 + $0x19] sm:$0x1] }
  0xe2   :  { %v1208_v44 = vadd.f32 %v1200_v35, %v1182_v34  ;;  %1143 = vst [vmem:[#allocation9 + $0x54] sm:$0x1] %v1135_v57  ;;  %v1119_v13 = vmul.f32 %v4323_v60, %v1109_v18  ;;  %v4438_v46 = vstv %s4402_s30  ;;  %v4441_v41 = vstv %s4404_s4  ;;  %v1193_v18 = vld [vmem:[#allocation2 + $0x1a] sm:$0x1]  ;;  %s4745_s28 = sld [smem:[#allocation6 + $0x405]]  ;;  %s4752_s29 = sld [smem:[#allocation6 + $0x406]] }
  0xe3   :  { %v1157_v25 = vmul.f32 %v4410_v37, %v1147_v39  ;;  %v1126_v54 = vadd.f32 %v1118_v4, %v1100_v11  ;;  %v1075_v22 = vadd.f32 %v1067_v56, %v1049_v23  ;;  %v1278_v48 = vmul.f32 %v4433_v51, %v1268_v42  ;;  %v1295_v4 = vld [vmem:[#allocation2 + $0xe] sm:$0x1]  ;;  %v1219_v42 = vld [vmem:[#allocation2 + $0x1b] sm:$0x1]  ;;  %s4754_s30 = sld [smem:[#allocation6 + $0x407]]  ;;  %s4773_s4 = sld [smem:[#allocation7 + $0x8]] }
  0xe4   :  { %v1234_v47 = vadd.f32 %v1226_v29, %v1208_v44  ;;  %v1304_v61 = vmul.f32 %v4438_v46, %v1294_v19  ;;  %v4447_v62 = vstv %s4415_s5  ;;  %v1175_v60 = vmul.f32 %v4413_v17, %v1165_v33  ;;  %v1322_v29 = vld [vmem:[#allocation2 + $0x17] sm:$0x1]  ;;  %v1245_v19 = vld [vmem:[#allocation2 + $0x1c] sm:$0x1]  ;;  %s4843_s5 = sld [smem:[#allocation6 + $0x480]] }
  0xe5   :  { %v1201_v53 = vmul.f32 %v4420_v52, %v1191_v45  ;;  %v1136_v3 = vadd.f32 %v4334_v40, %v1126_v54  ;;  %v1101_v16 = vadd.f32 %v1093_v14, %v1075_v22  ;;  %v1330_v1 = vmul.f32 %v4441_v41, %v1320_v24  ;;  %v1296_v14 = vld [vmem:[#allocation2 + $0x16] sm:$0x1]  ;;  %v1271_v24 = vld [vmem:[#allocation2 + $0x1d] sm:$0x1]  ;;  %v1168_v54 = vld [vmem:[#allocation2 + $0x21] sm:$0x1] }
  0xe6   :  { %v1260_v5 = vadd.f32 %v1252_v49, %v1234_v47  ;;  %v1183_v50 = vadd.f32 %v1175_v60, %v1157_v25  ;;  %v1227_v26 = vmul.f32 %v4423_v8, %v1217_v20  ;;  %v1253_v27 = vmul.f32 %v4426_v32, %v1243_v31  ;;  %v1150_v25 = vld [vmem:[#allocation2 + $0x20] sm:$0x1]  ;;  %v1297_v31 = vld [vmem:[#allocation2 + $0x1e] sm:$0x1] }
  0xe7   :  { %v1279_v56 = vmul.f32 %v4433_v51, %v1269_v59  ;;  %1144 = vst [vmem:[#allocation9 + $0x64] sm:$0x1] %v1136_v3  ;;  %v1127_v10 = vadd.f32 %v1119_v13, %v1101_v16  ;;  %v1158_v15 = vmul.f32 %v4410_v37, %v1148_v63  ;;  %v1176_v36 = vmul.f32 %v4413_v17, %v1166_v38  ;;  %v1194_v59 = vld [vmem:[#allocation2 + $0x22] sm:$0x1]  ;;  %v1323_v38 = vld [vmem:[#allocation2 + $0x1f] sm:$0x1] }
  0xe8   :  { %v1286_v12 = vadd.f32 %v1278_v48, %v1260_v5  ;;  %v1209_v2 = vadd.f32 %v1201_v53, %v1183_v50  ;;  %v1305_v28 = vmul.f32 %v4438_v46, %v1295_v4  ;;  %v1331_v43 = vmul.f32 %v4441_v41, %v1321_v55  ;;  %v1220_v3 = vld [vmem:[#allocation2 + $0x23] sm:$0x1]  ;;  %v1246_v55 = vld [vmem:[#allocation2 + $0x24] sm:$0x1] }
  0xe9   :  { %v1202_v9 = vmul.f32 %v4420_v52, %v1192_v6  ;;  %v1137_v34 = vadd.f32 %v4334_v40, %v1127_v10  ;;  %v1184_v39 = vadd.f32 %v1176_v36, %v1158_v15  ;;  %v1228_v57 = vmul.f32 %v4423_v8, %v1218_v7  ;;  %v1272_v6 = vld [vmem:[#allocation2 + $0x25] sm:$0x1]  ;;  %v1151_v10 = vld [vmem:[#allocation2 + $0x28] sm:$0x1] }
  0xea   :  { %v1312_v35 = vadd.f32 %v1304_v61, %v1286_v12  ;;  %v1235_v11 = vadd.f32 %v1227_v26, %v1209_v2  ;;  %v1254_v23 = vmul.f32 %v4426_v32, %v1244_v21  ;;  %v1280_v44 = vmul.f32 %v4433_v51, %v1270_v58  ;;  %v1169_v12 = vld [vmem:[#allocation2 + $0x29] sm:$0x1]  ;;  %v1298_v58 = vld [vmem:[#allocation2 + $0x26] sm:$0x1] }
  0xeb   :  { %v1159_v49 = vmul.f32 %v4410_v37, %v1149_v0  ;;  %1145 = vst [vmem:[#allocation9 + $0x74] sm:$0x1] %v1137_v34  ;;  %v1210_v45 = vadd.f32 %v1202_v9, %v1184_v39  ;;  %v1177_v40 = vmul.f32 %v4413_v17, %v1167_v30  ;;  %v1203_v13 = vmul.f32 %v4420_v52, %v1193_v18  ;;  %v1195_v0 = vld [vmem:[#allocation2 + $0x2a] sm:$0x1]  ;;  %v1221_v34 = vld [vmem:[#allocation2 + $0x2b] sm:$0x1] }
  0xec   :  { %v1338_v33 = vadd.f32 %v1330_v1, %v1312_v35  ;;  %v1261_v22 = vadd.f32 %v1253_v27, %v1235_v11  ;;  %v1306_v47 = vmul.f32 %v4438_v46, %v1296_v14  ;;  %v1332_v48 = vmul.f32 %v4441_v41, %v1322_v29  ;;  %v1247_v29 = vld [vmem:[#allocation2 + $0x2c] sm:$0x1] }
  0xed   :  { %v1229_v20 = vmul.f32 %v4423_v8, %v1219_v42  ;;  %v1236_v60 = vadd.f32 %v1228_v57, %v1210_v45  ;;  %v1185_v53 = vadd.f32 %v1177_v40, %v1159_v49  ;;  %v1255_v63 = vmul.f32 %v4426_v32, %v1245_v19  ;;  %v1324_v57 = vld [vmem:[#allocation2 + $0x27] sm:$0x1]  ;;  %v1273_v49 = vld [vmem:[#allocation2 + $0x2d] sm:$0x1]  ;;  %v1152_v19 = vld [vmem:[#allocation2 + $0x30] sm:$0x1] }
  0xee   :  { %v1348_v61 = vadd.f32 %v4447_v62, %v1338_v33  ;;  %v1287_v16 = vadd.f32 %v1279_v56, %v1261_v22  ;;  %v1281_v5 = vmul.f32 %v4433_v51, %v1271_v24  ;;  %v1160_v1 = vmul.f32 %v4410_v37, %v1150_v25  ;;  %v1196_v24 = vld [vmem:[#allocation2 + $0x32] sm:$0x1] }
  0xef   :  { %v1178_v4 = vmul.f32 %v4413_v17, %v1168_v54  ;;  %v1262_v50 = vadd.f32 %v1254_v23, %v1236_v60  ;;  %v1211_v26 = vadd.f32 %v1203_v13, %v1185_v53  ;;  %v1307_v27 = vmul.f32 %v4438_v46, %v1297_v31  ;;  %v1170_v13 = vld [vmem:[#allocation2 + $0x31] sm:$0x1]  ;;  %v1325_v31 = vld [vmem:[#allocation2 + $0x2f] sm:$0x1] }
  0xf0   :  { %1356 = vst [vmem:[#allocation9 + $0x5] sm:$0x1] %v1348_v61  ;;  %v1204_v7 = vmul.f32 %v4420_v52, %v1194_v59  ;;  %v1313_v15 = vadd.f32 %v1305_v28, %v1287_v16  ;;  %v1333_v56 = vmul.f32 %v4441_v41, %v1323_v38  ;;  %v1230_v21 = vmul.f32 %v4423_v8, %v1220_v3  ;;  %v1222_v59 = vld [vmem:[#allocation2 + $0x33] sm:$0x1]  ;;  %v1248_v38 = vld [vmem:[#allocation2 + $0x34] sm:$0x1] }
  0xf1   :  { %v1186_v36 = vadd.f32 %v1178_v4, %v1160_v1  ;;  %v1288_v2 = vadd.f32 %v1280_v44, %v1262_v50  ;;  %v1237_v9 = vadd.f32 %v1229_v20, %v1211_v26  ;;  %v1256_v30 = vmul.f32 %v4426_v32, %v1246_v55  ;;  %v1299_v20 = vld [vmem:[#allocation2 + $0x2e] sm:$0x1]  ;;  %v1274_v3 = vld [vmem:[#allocation2 + $0x35] sm:$0x1]  ;;  %v1153_v4 = vld [vmem:[#allocation2 + $0x38] sm:$0x1] }
  0xf2   :  { %v1282_v18 = vmul.f32 %v4433_v51, %v1272_v6  ;;  %v1339_v35 = vadd.f32 %v1331_v43, %v1313_v15  ;;  %v1161_v14 = vmul.f32 %v4410_v37, %v1151_v10  ;;  %v1179_v28 = vmul.f32 %v4413_v17, %v1169_v12  ;;  %v1171_v55 = vld [vmem:[#allocation2 + $0x39] sm:$0x1]  ;;  %v1197_v10 = vld [vmem:[#allocation2 + $0x3a] sm:$0x1] }
  0xf3   :  { %v1212_v39 = vadd.f32 %v1204_v7, %v1186_v36  ;;  %v1314_v42 = vadd.f32 %v1306_v47, %v1288_v2  ;;  %v1263_v11 = vadd.f32 %v1255_v63, %v1237_v9  ;;  %v1308_v23 = vmul.f32 %v4438_v46, %v1298_v58  ;;  %v1326_v58 = vld [vmem:[#allocation2 + $0x37] sm:$0x1] }
  0xf4   :  { %v1205_v44 = vmul.f32 %v4420_v52, %v1195_v0  ;;  %v1349_v33 = vadd.f32 %v4447_v62, %v1339_v35  ;;  %v1187_v40 = vadd.f32 %v1179_v28, %v1161_v14  ;;  %v1231_v43 = vmul.f32 %v4423_v8, %v1221_v34  ;;  %v1223_v0 = vld [vmem:[#allocation2 + $0x3b] sm:$0x1]  ;;  %v1249_v34 = vld [vmem:[#allocation2 + $0x3c] sm:$0x1]  ;;  %v1275_v14 = vld [vmem:[#allocation2 + $0x3d] sm:$0x1] }
  0xf5   :  { %v1238_v45 = vadd.f32 %v1230_v21, %v1212_v39  ;;  %v1340_v25 = vadd.f32 %v1332_v48, %v1314_v42  ;;  %v1289_v54 = vadd.f32 %v1281_v5, %v1263_v11  ;;  %v1334_v22 = vmul.f32 %v4441_v41, %v1324_v57  ;;  %v1300_v21 = vld [vmem:[#allocation2 + $0x36] sm:$0x1]  ;;  %v1364_v11 = vld [vmem:[#allocation2] sm:$0x1] }
  0xf6   :  { %v1257_v47 = vmul.f32 %v4426_v32, %v1247_v29  ;;  %1357 = vst [vmem:[#allocation9 + $0x15] sm:$0x1] %v1349_v33  ;;  %v1213_v60 = vadd.f32 %v1205_v44, %v1187_v40  ;;  %v1283_v53 = vmul.f32 %v4433_v51, %v1273_v49  ;;  %v1162_v63 = vmul.f32 %v4410_v37, %v1152_v19  ;;  %v1382_v49 = vld [vmem:[#allocation2 + $0x1] sm:$0x1] }
  0xf7   :  { %v1264_v61 = vadd.f32 %v1256_v30, %v1238_v45  ;;  %v1350_v48 = vadd.f32 %v4447_v62, %v1340_v25  ;;  %v1315_v16 = vadd.f32 %v1307_v27, %v1289_v54  ;;  %v1180_v5 = vmul.f32 %v4413_v17, %v1170_v13  ;;  %v1434_v13 = vld [vmem:[#allocation2 + $0x3] sm:$0x1] }
  0xf8   :  { %v1206_v1 = vmul.f32 %v4420_v52, %v1196_v24  ;;  %v1239_v50 = vadd.f32 %v1231_v43, %v1213_v60  ;;  %v1309_v26 = vmul.f32 %v4438_v46, %v1299_v20  ;;  %v1335_v7 = vmul.f32 %v4441_v41, %v1325_v31  ;;  %v1408_v43 = vld [vmem:[#allocation2 + $0x2] sm:$0x1] }
  0xf9   :  { %v1290_v6 = vadd.f32 %v1282_v18, %v1264_v61  ;;  %1358 = vst [vmem:[#allocation9 + $0x25] sm:$0x1] %v1350_v48  ;;  %v1341_v27 = vadd.f32 %v1333_v56, %v1315_v16  ;;  %v1188_v12 = vadd.f32 %v1180_v5, %v1162_v63  ;;  %v1232_v15 = vmul.f32 %v4423_v8, %v1222_v59  ;;  %v1460_v63 = vld [vmem:[#allocation2 + $0x4] sm:$0x1]  ;;  %v1486_v16 = vld [vmem:[#allocation2 + $0x5] sm:$0x1] }
  0xfa   :  { %v1258_v36 = vmul.f32 %v4426_v32, %v1248_v38  ;;  %v1265_v9 = vadd.f32 %v1257_v47, %v1239_v50  ;;  %v1284_v30 = vmul.f32 %v4433_v51, %v1274_v3  ;;  %v1163_v18 = vmul.f32 %v4410_v37, %v1153_v4  ;;  %v1327_v47 = vld [vmem:[#allocation2 + $0x3f] sm:$0x1]  ;;  %v1365_v50 = vld [vmem:[#allocation2 + $0x8] sm:$0x1] }
  0xfb   :  { %v1316_v2 = vadd.f32 %v1308_v23, %v1290_v6  ;;  %v1351_v56 = vadd.f32 %v4447_v62, %v1341_v27  ;;  %v1214_v35 = vadd.f32 %v1206_v1, %v1188_v12  ;;  %v1181_v39 = vmul.f32 %v4413_v17, %v1171_v55  ;;  %v1512_v12 = vld [vmem:[#allocation2 + $0x6] sm:$0x1] }
  0xfc   :  { %v1207_v57 = vmul.f32 %v4420_v52, %v1197_v10  ;;  %v1291_v29 = vadd.f32 %v1283_v53, %v1265_v9  ;;  %v1310_v42 = vmul.f32 %v4438_v46, %v1300_v21  ;;  %v1336_v37 = vmul.f32 %v4441_v41, %v1326_v58  ;;  %v1461_v9 = vld [vmem:[#allocation2 + $0xc] sm:$0x1] }
  0xfd   :  { %v1342_v28 = vadd.f32 %v1334_v22, %v1316_v2  ;;  %1359 = vst [vmem:[#allocation9 + $0x35] sm:$0x1] %v1351_v56  ;;  %v1240_v23 = vadd.f32 %v1232_v15, %v1214_v35  ;;  %v1189_v44 = vadd.f32 %v1181_v39, %v1163_v18  ;;  %v1233_v17 = vmul.f32 %v4423_v8, %v1223_v0  ;;  %v1301_v22 = vld [vmem:[#allocation2 + $0x3e] sm:$0x1]  ;;  %v1487_v35 = vld [vmem:[#allocation2 + $0xd] sm:$0x1] }
  0xfe   :  { %v1259_v52 = vmul.f32 %v4426_v32, %v1249_v34  ;;  %v1317_v33 = vadd.f32 %v1309_v26, %v1291_v29  ;;  %v1285_v45 = vmul.f32 %v4433_v51, %v1275_v14  ;;  %v4529_v40 = vstv %s4492_s6  ;;  %v1383_v26 = vld [vmem:[#allocation2 + $0x9] sm:$0x1]  ;;  %v1366_v39 = vld [vmem:[#allocation2 + $0x10] sm:$0x1]  ;;  %s4845_s6 = sld [smem:[#allocation6 + $0x481]] }
  0xff   :  { %v1352_v19 = vadd.f32 %v4447_v62, %v1342_v28  ;;  %v1266_v24 = vadd.f32 %v1258_v36, %v1240_v23  ;;  %v1215_v25 = vadd.f32 %v1207_v57, %v1189_v44  ;;  %v1374_v8 = vmul.f32 %v4529_v40, %v1364_v11  ;;  %v1538_v36 = vld [vmem:[#allocation2 + $0x7] sm:$0x1]  ;;  %v1384_v57 = vld [vmem:[#allocation2 + $0x11] sm:$0x1]  ;;  %v1410_v11 = vld [vmem:[#allocation2 + $0x12] sm:$0x1] }
 0x100   :  { %v4533_v32 = vstv %s4497_s0  ;;  %v1343_v54 = vadd.f32 %v1335_v7, %v1317_v33  ;;  %v4537_v31 = vstv %s4501_s7  ;;  %v4540_v51 = vstv %s4503_s8  ;;  %v1409_v7 = vld [vmem:[#allocation2 + $0xa] sm:$0x1]  ;;  %s4851_s0 = sld [smem:[#allocation6 + $0x482]]  ;;  %s4854_s7 = sld [smem:[#allocation6 + $0x483]] }
 0x101   :  { %1360 = vst [vmem:[#allocation9 + $0x45] sm:$0x1] %v1352_v19  ;;  %v1392_v20 = vmul.f32 %v4533_v32, %v1382_v49  ;;  %v1292_v59 = vadd.f32 %v1284_v30, %v1266_v24  ;;  %v1241_v61 = vadd.f32 %v1233_v17, %v1215_v25  ;;  %v1418_v60 = vmul.f32 %v4537_v31, %v1408_v43  ;;  %v1539_v49 = vld [vmem:[#allocation2 + $0xf] sm:$0x1]  ;;  %v1436_v19 = vld [vmem:[#allocation2 + $0x13] sm:$0x1] }
 0x102   :  { %v1444_v53 = vmul.f32 %v4540_v51, %v1434_v13  ;;  %v1353_v38 = vadd.f32 %v4447_v62, %v1343_v54  ;;  %v4546_v48 = vstv %s4509_s2  ;;  %v4549_v5 = vstv %s4511_s9  ;;  %v1462_v24 = vld [vmem:[#allocation2 + $0x14] sm:$0x1]  ;;  %v1488_v25 = vld [vmem:[#allocation2 + $0x15] sm:$0x1]  ;;  %s4856_s8 = sld [smem:[#allocation6 + $0x484]]  ;;  %s4863_s2 = sld [smem:[#allocation6 + $0x485]] }
 0x103   :  { %v1400_v3 = vadd.f32 %v1392_v20, %v1374_v8  ;;  %v1318_v1 = vadd.f32 %v1310_v42, %v1292_v59  ;;  %v1267_v4 = vadd.f32 %v1259_v52, %v1241_v61  ;;  %v1311_v55 = vmul.f32 %v4438_v46, %v1301_v22  ;;  %v1367_v20 = vld [vmem:[#allocation2 + $0x18] sm:$0x1]  ;;  %v1385_v59 = vld [vmem:[#allocation2 + $0x19] sm:$0x1]  ;;  %v1411_v61 = vld [vmem:[#allocation2 + $0x1a] sm:$0x1] }
 0x104   :  { %v1337_v6 = vmul.f32 %v4441_v41, %v1327_v47  ;;  %1361 = vst [vmem:[#allocation9 + $0x55] sm:$0x1] %v1353_v38  ;;  %v1470_v27 = vmul.f32 %v4546_v48, %v1460_v63  ;;  %v4555_v15 = vstv %s4518_s10  ;;  %v4558_v21 = vstv %s4520_s11  ;;  %v1435_v41 = vld [vmem:[#allocation2 + $0xb] sm:$0x1]  ;;  %s4870_s9 = sld [smem:[#allocation6 + $0x486]]  ;;  %s4872_s10 = sld [smem:[#allocation6 + $0x487]] }
 0x105   :  { %v1426_v10 = vadd.f32 %v1418_v60, %v1400_v3  ;;  %v1344_v58 = vadd.f32 %v1336_v37, %v1318_v1  ;;  %v1293_v0 = vadd.f32 %v1285_v45, %v1267_v4  ;;  %v1496_v2 = vmul.f32 %v4549_v5, %v1486_v16  ;;  %v1513_v37 = vld [vmem:[#allocation2 + $0xe] sm:$0x1]  ;;  %v1514_v3 = vld [vmem:[#allocation2 + $0x16] sm:$0x1]  ;;  %v1540_v16 = vld [vmem:[#allocation2 + $0x17] sm:$0x1] }
 0x106   :  { %v4562_v46 = vstv %s4524_s12  ;;  %v1375_v18 = vmul.f32 %v4529_v40, %v1365_v50  ;;  %v1393_v34 = vmul.f32 %v4533_v32, %v1383_v26  ;;  %v1419_v56 = vmul.f32 %v4537_v31, %v1409_v7  ;;  %v1437_v50 = vld [vmem:[#allocation2 + $0x1b] sm:$0x1]  ;;  %v1463_v26 = vld [vmem:[#allocation2 + $0x1c] sm:$0x1]  ;;  %s4883_s11 = sld [smem:[#allocation7 + $0x9]]  ;;  %s4960_s12 = sld [smem:[#allocation6 + $0x500]] }
 0x107   :  { %v1452_v30 = vadd.f32 %v1444_v53, %v1426_v10  ;;  %v1354_v14 = vadd.f32 %v4447_v62, %v1344_v58  ;;  %v1319_v28 = vadd.f32 %v1311_v55, %v1293_v0  ;;  %v1522_v29 = vmul.f32 %v4555_v15, %v1512_v12  ;;  %v1489_v12 = vld [vmem:[#allocation2 + $0x1d] sm:$0x1] }
 0x108   :  { %v1548_v42 = vmul.f32 %v4558_v21, %v1538_v36  ;;  %v1401_v44 = vadd.f32 %v1393_v34, %v1375_v18  ;;  %v1445_v17 = vmul.f32 %v4540_v51, %v1435_v41  ;;  %v1471_v52 = vmul.f32 %v4546_v48, %v1461_v9  ;;  %v1368_v36 = vld [vmem:[#allocation2 + $0x20] sm:$0x1]  ;;  %v1386_v9 = vld [vmem:[#allocation2 + $0x21] sm:$0x1] }
 0x109   :  { %v1478_v23 = vadd.f32 %v1470_v27, %v1452_v30  ;;  %1362 = vst [vmem:[#allocation9 + $0x65] sm:$0x1] %v1354_v14  ;;  %v1345_v33 = vadd.f32 %v1337_v6, %v1319_v28  ;;  %v1497_v45 = vmul.f32 %v4549_v5, %v1487_v35  ;;  %v1376_v43 = vmul.f32 %v4529_v40, %v1366_v39  ;;  %v1412_v30 = vld [vmem:[#allocation2 + $0x22] sm:$0x1]  ;;  %v1515_v39 = vld [vmem:[#allocation2 + $0x1e] sm:$0x1] }
 0x10a   :  { %v1394_v13 = vmul.f32 %v4533_v32, %v1384_v57  ;;  %v1427_v54 = vadd.f32 %v1419_v56, %v1401_v44  ;;  %v1523_v22 = vmul.f32 %v4555_v15, %v1513_v37  ;;  %v1420_v47 = vmul.f32 %v4537_v31, %v1410_v11  ;;  %v1541_v57 = vld [vmem:[#allocation2 + $0x1f] sm:$0x1]  ;;  %v1438_v14 = vld [vmem:[#allocation2 + $0x23] sm:$0x1]  ;;  %v1464_v11 = vld [vmem:[#allocation2 + $0x24] sm:$0x1] }
 0x10b   :  { %v1504_v8 = vadd.f32 %v1496_v2, %v1478_v23  ;;  %v1355_v60 = vadd.f32 %v4447_v62, %v1345_v33  ;;  %v1549_v53 = vmul.f32 %v4558_v21, %v1539_v49  ;;  %v1446_v38 = vmul.f32 %v4540_v51, %v1436_v19  ;;  %v1490_v49 = vld [vmem:[#allocation2 + $0x25] sm:$0x1]  ;;  %v1369_v19 = vld [vmem:[#allocation2 + $0x28] sm:$0x1]  ;;  %v1387_v33 = vld [vmem:[#allocation2 + $0x29] sm:$0x1] }
 0x10c   :  { %v1402_v63 = vadd.f32 %v1394_v13, %v1376_v43  ;;  %v1453_v4 = vadd.f32 %v1445_v17, %v1427_v54  ;;  %v1472_v55 = vmul.f32 %v4546_v48, %v1462_v24  ;;  %v1498_v6 = vmul.f32 %v4549_v5, %v1488_v25  ;;  %v1413_v25 = vld [vmem:[#allocation2 + $0x2a] sm:$0x1] }
 0x10d   :  { %v1530_v1 = vadd.f32 %v1522_v29, %v1504_v8  ;;  %1363 = vst [vmem:[#allocation9 + $0x75] sm:$0x1] %v1355_v60  ;;  %v1377_v10 = vmul.f32 %v4529_v40, %v1367_v20  ;;  %v1395_v62 = vmul.f32 %v4533_v32, %v1385_v59  ;;  %v1421_v27 = vmul.f32 %v4537_v31, %v1411_v61  ;;  %v1516_v59 = vld [vmem:[#allocation2 + $0x26] sm:$0x1]  ;;  %v1439_v61 = vld [vmem:[#allocation2 + $0x2b] sm:$0x1] }
 0x10e   :  { %v1428_v7 = vadd.f32 %v1420_v47, %v1402_v63  ;;  %v1479_v0 = vadd.f32 %v1471_v52, %v1453_v4  ;;  %v1524_v2 = vmul.f32 %v4555_v15, %v1514_v3  ;;  %v1550_v41 = vmul.f32 %v4558_v21, %v1540_v16 }
 0x10f   :  { %v1556_v58 = vadd.f32 %v1548_v42, %v1530_v1  ;;  %v1403_v34 = vadd.f32 %v1395_v62, %v1377_v10  ;;  %v1447_v56 = vmul.f32 %v4540_v51, %v1437_v50  ;;  %v1473_v35 = vmul.f32 %v4546_v48, %v1463_v26  ;;  %v1491_v50 = vld [vmem:[#allocation2 + $0x2d] sm:$0x1]  ;;  %v1370_v26 = vld [vmem:[#allocation2 + $0x30] sm:$0x1] }
 0x110   :  { %v1454_v18 = vadd.f32 %v1446_v38, %v1428_v7  ;;  %v1505_v29 = vadd.f32 %v1497_v45, %v1479_v0  ;;  %v1499_v42 = vmul.f32 %v4549_v5, %v1489_v12  ;;  %v1378_v37 = vmul.f32 %v4529_v40, %v1368_v36  ;;  %v1542_v38 = vld [vmem:[#allocation2 + $0x27] sm:$0x1] }
 0x111   :  { %v1566_v28 = vadd.f32 %v4562_v46, %v1556_v58  ;;  %v1429_v44 = vadd.f32 %v1421_v27, %v1403_v34  ;;  %v1396_v17 = vmul.f32 %v4533_v32, %v1386_v9  ;;  %v1422_v52 = vmul.f32 %v4537_v31, %v1412_v30  ;;  %v1388_v27 = vld [vmem:[#allocation2 + $0x31] sm:$0x1]  ;;  %v1543_v9 = vld [vmem:[#allocation2 + $0x2f] sm:$0x1]  ;;  %v1414_v30 = vld [vmem:[#allocation2 + $0x32] sm:$0x1] }
 0x112   :  { %v1480_v23 = vadd.f32 %v1472_v55, %v1454_v18  ;;  %v1531_v43 = vadd.f32 %v1523_v22, %v1505_v29  ;;  %v1525_v13 = vmul.f32 %v4555_v15, %v1515_v39  ;;  %v1551_v45 = vmul.f32 %v4558_v21, %v1541_v57  ;;  %v1440_v39 = vld [vmem:[#allocation2 + $0x33] sm:$0x1]  ;;  %v1466_v57 = vld [vmem:[#allocation2 + $0x34] sm:$0x1] }
 0x113   :  { %1574 = vst [vmem:[#allocation9 + $0x6] sm:$0x1] %v1566_v28  ;;  %v1448_v24 = vmul.f32 %v4540_v51, %v1438_v14  ;;  %v1455_v54 = vadd.f32 %v1447_v56, %v1429_v44  ;;  %v1404_v47 = vadd.f32 %v1396_v17, %v1378_v37  ;;  %v1474_v20 = vmul.f32 %v4546_v48, %v1464_v11  ;;  %v1371_v37 = vld [vmem:[#allocation2 + $0x38] sm:$0x1] }
 0x114   :  { %v1506_v8 = vadd.f32 %v1498_v6, %v1480_v23  ;;  %v1557_v60 = vadd.f32 %v1549_v53, %v1531_v43  ;;  %v1500_v63 = vmul.f32 %v4549_v5, %v1490_v49  ;;  %v1379_v22 = vmul.f32 %v4529_v40, %v1369_v19  ;;  %v1465_v6 = vld [vmem:[#allocation2 + $0x2c] sm:$0x1] }
 0x115   :  { %v1397_v3 = vmul.f32 %v4533_v32, %v1387_v33  ;;  %v1481_v1 = vadd.f32 %v1473_v35, %v1455_v54  ;;  %v1430_v4 = vadd.f32 %v1422_v52, %v1404_v47  ;;  %v1423_v55 = vmul.f32 %v4537_v31, %v1413_v25  ;;  %v1389_v52 = vld [vmem:[#allocation2 + $0x39] sm:$0x1]  ;;  %v1415_v25 = vld [vmem:[#allocation2 + $0x3a] sm:$0x1] }
 0x116   :  { %v1532_v16 = vadd.f32 %v1524_v2, %v1506_v8  ;;  %v1567_v7 = vadd.f32 %v4562_v46, %v1557_v60  ;;  %v1526_v10 = vmul.f32 %v4555_v15, %v1516_v59  ;;  %v1449_v62 = vmul.f32 %v4540_v51, %v1439_v61  ;;  %v1517_v2 = vld [vmem:[#allocation2 + $0x2e] sm:$0x1]  ;;  %v1441_v59 = vld [vmem:[#allocation2 + $0x3b] sm:$0x1] }
 0x117   :  { %v1405_v53 = vadd.f32 %v1397_v3, %v1379_v22  ;;  %v1507_v36 = vadd.f32 %v1499_v42, %v1481_v1  ;;  %v1456_v58 = vadd.f32 %v1448_v24, %v1430_v4  ;;  %v1552_v0 = vmul.f32 %v4558_v21, %v1542_v38  ;;  %v1492_v42 = vld [vmem:[#allocation2 + $0x35] sm:$0x1]  ;;  %v1544_v24 = vld [vmem:[#allocation2 + $0x37] sm:$0x1]  ;;  %v1467_v38 = vld [vmem:[#allocation2 + $0x3c] sm:$0x1] }
 0x118   :  { %v1558_v12 = vadd.f32 %v1550_v41, %v1532_v16  ;;  %1575 = vst [vmem:[#allocation9 + $0x16] sm:$0x1] %v1567_v7  ;;  %v1475_v34 = vmul.f32 %v4546_v48, %v1465_v6  ;;  %v1501_v56 = vmul.f32 %v4549_v5, %v1491_v50  ;;  %v1380_v35 = vmul.f32 %v4529_v40, %v1370_v26  ;;  %v1493_v22 = vld [vmem:[#allocation2 + $0x3d] sm:$0x1]  ;;  %v1582_v4 = vld [vmem:[#allocation2] sm:$0x1] }
 0x119   :  { %v1431_v18 = vadd.f32 %v1423_v55, %v1405_v53  ;;  %v1533_v14 = vadd.f32 %v1525_v13, %v1507_v36  ;;  %v1482_v28 = vadd.f32 %v1474_v20, %v1456_v58  ;;  %v1398_v29 = vmul.f32 %v4533_v32, %v1388_v27  ;;  %v1518_v13 = vld [vmem:[#allocation2 + $0x36] sm:$0x1]  ;;  %v1600_v53 = vld [vmem:[#allocation2 + $0x1] sm:$0x1] }
 0x11a   :  { %v1568_v41 = vadd.f32 %v4562_v46, %v1558_v12  ;;  %v1527_v23 = vmul.f32 %v4555_v15, %v1517_v2  ;;  %v1553_v44 = vmul.f32 %v4558_v21, %v1543_v9  ;;  %v1424_v17 = vmul.f32 %v4537_v31, %v1414_v30 }
 0x11b   :  { %v1457_v11 = vadd.f32 %v1449_v62, %v1431_v18  ;;  %v1559_v49 = vadd.f32 %v1551_v45, %v1533_v14  ;;  %v1508_v19 = vadd.f32 %v1500_v63, %v1482_v28  ;;  %v1406_v33 = vadd.f32 %v1398_v29, %v1380_v35  ;;  %v1626_v62 = vld [vmem:[#allocation2 + $0x2] sm:$0x1] }
 0x11c   :  { %1576 = vst [vmem:[#allocation9 + $0x26] sm:$0x1] %v1568_v41  ;;  %v1450_v43 = vmul.f32 %v4540_v51, %v1440_v39  ;;  %v1476_v54 = vmul.f32 %v4546_v48, %v1466_v57  ;;  %v1502_v47 = vmul.f32 %v4549_v5, %v1492_v42  ;;  %v1381_v20 = vmul.f32 %v4529_v40, %v1371_v37  ;;  %v1678_v39 = vld [vmem:[#allocation2 + $0x4] sm:$0x1]  ;;  %v1704_v57 = vld [vmem:[#allocation2 + $0x5] sm:$0x1] }
 0x11d   :  { %v1483_v8 = vadd.f32 %v1475_v34, %v1457_v11  ;;  %v1569_v45 = vadd.f32 %v4562_v46, %v1559_v49  ;;  %v1534_v61 = vadd.f32 %v1526_v10, %v1508_v19  ;;  %v1432_v60 = vadd.f32 %v1424_v17, %v1406_v33  ;;  %v1545_v34 = vld [vmem:[#allocation2 + $0x3f] sm:$0x1]  ;;  %v1601_v17 = vld [vmem:[#allocation2 + $0x9] sm:$0x1]  ;;  %v1730_v33 = vld [vmem:[#allocation2 + $0x6] sm:$0x1] }
 0x11e   :  { %v1399_v63 = vmul.f32 %v4533_v32, %v1389_v52  ;;  %v1528_v16 = vmul.f32 %v4555_v15, %v1518_v13  ;;  %v1554_v1 = vmul.f32 %v4558_v21, %v1544_v24  ;;  %v1425_v40 = vmul.f32 %v4537_v31, %v1415_v25  ;;  %v1627_v52 = vld [vmem:[#allocation2 + $0xa] sm:$0x1] }
 0x11f   :  { %v1509_v3 = vadd.f32 %v1501_v56, %v1483_v8  ;;  %1577 = vst [vmem:[#allocation9 + $0x36] sm:$0x1] %v1569_v45  ;;  %v1560_v55 = vadd.f32 %v1552_v0, %v1534_v61  ;;  %v1458_v6 = vadd.f32 %v1450_v43, %v1432_v60  ;;  %v1451_v32 = vmul.f32 %v4540_v51, %v1441_v59  ;;  %v1519_v51 = vld [vmem:[#allocation2 + $0x3e] sm:$0x1]  ;;  %v1756_v8 = vld [vmem:[#allocation2 + $0x7] sm:$0x1] }
 0x120   :  { %v1407_v50 = vadd.f32 %v1399_v63, %v1381_v20  ;;  %v1477_v7 = vmul.f32 %v4546_v48, %v1467_v38  ;;  %v1503_v10 = vmul.f32 %v4549_v5, %v1493_v22  ;;  %v4643_v31 = vstv %s4609_s13  ;;  %v1652_v5 = vld [vmem:[#allocation2 + $0x3] sm:$0x1]  ;;  %v1679_v20 = vld [vmem:[#allocation2 + $0xc] sm:$0x1]  ;;  %v1705_v60 = vld [vmem:[#allocation2 + $0xd] sm:$0x1] }
 0x121   :  { %v1535_v26 = vadd.f32 %v1527_v23, %v1509_v3  ;;  %v1570_v27 = vadd.f32 %v4562_v46, %v1560_v55  ;;  %v1484_v12 = vadd.f32 %v1476_v54, %v1458_v6  ;;  %v1592_v58 = vmul.f32 %v4643_v31, %v1582_v4  ;;  %v1584_v63 = vld [vmem:[#allocation2 + $0x10] sm:$0x1]  ;;  %v1628_v4 = vld [vmem:[#allocation2 + $0x12] sm:$0x1]  ;;  %s4965_s13 = sld [smem:[#allocation6 + $0x501]] }
 0x122   :  { %v1433_v36 = vadd.f32 %v1425_v40, %v1407_v50  ;;  %v4650_v2 = vstv %s4613_s14  ;;  %v4653_v48 = vstv %s4618_s15  ;;  %v4656_v9 = vstv %s4620_s16  ;;  %v1602_v40 = vld [vmem:[#allocation2 + $0x11] sm:$0x1]  ;;  %s4969_s14 = sld [smem:[#allocation6 + $0x502]]  ;;  %s4971_s15 = sld [smem:[#allocation6 + $0x503]] }
 0x123   :  { %v1561_v0 = vadd.f32 %v1553_v44, %v1535_v26  ;;  %1578 = vst [vmem:[#allocation9 + $0x46] sm:$0x1] %v1570_v27  ;;  %v1510_v30 = vadd.f32 %v1502_v47, %v1484_v12  ;;  %v1610_v56 = vmul.f32 %v4650_v2, %v1600_v53  ;;  %v1636_v35 = vmul.f32 %v4653_v48, %v1626_v62  ;;  %v1583_v44 = vld [vmem:[#allocation2 + $0x8] sm:$0x1]  ;;  %v1653_v47 = vld [vmem:[#allocation2 + $0xb] sm:$0x1] }
 0x124   :  { %v1459_v18 = vadd.f32 %v1451_v32, %v1433_v36  ;;  %v1529_v14 = vmul.f32 %v4555_v15, %v1519_v51  ;;  %v4663_v28 = vstv %s4626_s17  ;;  %v4666_v29 = vstv %s4628_s18  ;;  %v1757_v26 = vld [vmem:[#allocation2 + $0xf] sm:$0x1]  ;;  %v1680_v12 = vld [vmem:[#allocation2 + $0x14] sm:$0x1]  ;;  %v1706_v36 = vld [vmem:[#allocation2 + $0x15] sm:$0x1] }
 0x125   :  { %v1571_v41 = vadd.f32 %v4562_v46, %v1561_v0  ;;  %v1536_v42 = vadd.f32 %v1528_v16, %v1510_v30  ;;  %v1618_v11 = vadd.f32 %v1610_v56, %v1592_v58  ;;  %v1662_v23 = vmul.f32 %v4656_v9, %v1652_v5  ;;  %v1585_v30 = vld [vmem:[#allocation2 + $0x18] sm:$0x1]  ;;  %s4977_s16 = sld [smem:[#allocation6 + $0x504]]  ;;  %s4979_s17 = sld [smem:[#allocation6 + $0x505]] }
 0x126   :  { %v1485_v37 = vadd.f32 %v1477_v7, %v1459_v18  ;;  %v1555_v49 = vmul.f32 %v4558_v21, %v1545_v34  ;;  %v1688_v19 = vmul.f32 %v4663_v28, %v1678_v39  ;;  %v1714_v15 = vmul.f32 %v4666_v29, %v1704_v57  ;;  %v1654_v7 = vld [vmem:[#allocation2 + $0x13] sm:$0x1]  ;;  %v1603_v18 = vld [vmem:[#allocation2 + $0x19] sm:$0x1]  ;;  %v1629_v34 = vld [vmem:[#allocation2 + $0x1a] sm:$0x1] }
 0x127   :  { %1579 = vst [vmem:[#allocation9 + $0x56] sm:$0x1] %v1571_v41  ;;  %v4673_v43 = vstv %s4635_s19  ;;  %v1562_v13 = vadd.f32 %v1554_v1, %v1536_v42  ;;  %v1644_v25 = vadd.f32 %v1636_v35, %v1618_v11  ;;  %v4676_v54 = vstv %s4638_s20  ;;  %v1731_v1 = vld [vmem:[#allocation2 + $0xe] sm:$0x1]  ;;  %v1732_v41 = vld [vmem:[#allocation2 + $0x16] sm:$0x1] }
 0x128   :  { %v1511_v24 = vadd.f32 %v1503_v10, %v1485_v37  ;;  %v4679_v59 = vstv %s4645_s21  ;;  %v1593_v45 = vmul.f32 %v4643_v31, %v1583_v44  ;;  %v1611_v21 = vmul.f32 %v4650_v2, %v1601_v17  ;;  %v1655_v44 = vld [vmem:[#allocation2 + $0x1b] sm:$0x1]  ;;  %v1681_v17 = vld [vmem:[#allocation2 + $0x1c] sm:$0x1]  ;;  %s4986_s18 = sld [smem:[#allocation6 + $0x506]]  ;;  %s4988_s19 = sld [smem:[#allocation6 + $0x507]] }
 0x129   :  { %v1637_v61 = vmul.f32 %v4653_v48, %v1627_v52  ;;  %v1572_v38 = vadd.f32 %v4562_v46, %v1562_v13  ;;  %v1670_v3 = vadd.f32 %v1662_v23, %v1644_v25  ;;  %v1740_v16 = vmul.f32 %v4673_v43, %v1730_v33  ;;  %v1586_v33 = vld [vmem:[#allocation2 + $0x20] sm:$0x1]  ;;  %s4992_s20 = sld [smem:[#allocation7 + $0xa]]  ;;  %s5077_s21 = sld [smem:[#allocation6 + $0x580]] }
 0x12a   :  { %v1537_v22 = vadd.f32 %v1529_v14, %v1511_v24  ;;  %v1766_v55 = vmul.f32 %v4676_v54, %v1756_v8  ;;  %v1619_v6 = vadd.f32 %v1611_v21, %v1593_v45  ;;  %v1663_v50 = vmul.f32 %v4656_v9, %v1653_v47  ;;  %v1758_v14 = vld [vmem:[#allocation2 + $0x17] sm:$0x1]  ;;  %v1604_v47 = vld [vmem:[#allocation2 + $0x21] sm:$0x1] }
 0x12b   :  { %v1689_v32 = vmul.f32 %v4663_v28, %v1679_v20  ;;  %1580 = vst [vmem:[#allocation9 + $0x66] sm:$0x1] %v1572_v38  ;;  %v1696_v53 = vadd.f32 %v1688_v19, %v1670_v3  ;;  %v1715_v62 = vmul.f32 %v4666_v29, %v1705_v60  ;;  %v1594_v27 = vmul.f32 %v4643_v31, %v1584_v63  ;;  %v1630_v20 = vld [vmem:[#allocation2 + $0x22] sm:$0x1]  ;;  %v1733_v63 = vld [vmem:[#allocation2 + $0x1e] sm:$0x1] }
 0x12c   :  { %v1563_v10 = vadd.f32 %v1555_v49, %v1537_v22  ;;  %v1645_v51 = vadd.f32 %v1637_v61, %v1619_v6  ;;  %v1741_v58 = vmul.f32 %v4673_v43, %v1731_v1  ;;  %v1612_v0 = vmul.f32 %v4650_v2, %v1602_v40  ;;  %v1759_v38 = vld [vmem:[#allocation2 + $0x1f] sm:$0x1]  ;;  %v1656_v40 = vld [vmem:[#allocation2 + $0x23] sm:$0x1] }
 0x12d   :  { %v1638_v5 = vmul.f32 %v4653_v48, %v1628_v4  ;;  %v1722_v35 = vadd.f32 %v1714_v15, %v1696_v53  ;;  %v1767_v39 = vmul.f32 %v4676_v54, %v1757_v26  ;;  %v1664_v57 = vmul.f32 %v4656_v9, %v1654_v7  ;;  %v1707_v15 = vld [vmem:[#allocation2 + $0x1d] sm:$0x1]  ;;  %v1682_v4 = vld [vmem:[#allocation2 + $0x24] sm:$0x1]  ;;  %v1708_v26 = vld [vmem:[#allocation2 + $0x25] sm:$0x1] }
 0x12e   :  { %v1573_v56 = vadd.f32 %v4562_v46, %v1563_v10  ;;  %v1671_v42 = vadd.f32 %v1663_v50, %v1645_v51  ;;  %v1620_v37 = vadd.f32 %v1612_v0, %v1594_v27  ;;  %v1690_v11 = vmul.f32 %v4663_v28, %v1680_v12  ;;  %v1587_v7 = vld [vmem:[#allocation2 + $0x28] sm:$0x1]  ;;  %v1605_v12 = vld [vmem:[#allocation2 + $0x29] sm:$0x1] }
 0x12f   :  { %v1716_v23 = vmul.f32 %v4666_v29, %v1706_v36  ;;  %v1748_v52 = vadd.f32 %v1740_v16, %v1722_v35  ;;  %v1595_v49 = vmul.f32 %v4643_v31, %v1585_v30  ;;  %v1613_v46 = vmul.f32 %v4650_v2, %v1603_v18  ;;  %v1631_v36 = vld [vmem:[#allocation2 + $0x2a] sm:$0x1]  ;;  %v1734_v18 = vld [vmem:[#allocation2 + $0x26] sm:$0x1] }
 0x130   :  { %1581 = vst [vmem:[#allocation9 + $0x76] sm:$0x1] %v1573_v56  ;;  %v1639_v19 = vmul.f32 %v4653_v48, %v1629_v34  ;;  %v1697_v13 = vadd.f32 %v1689_v32, %v1671_v42  ;;  %v1646_v24 = vadd.f32 %v1638_v5, %v1620_v37  ;;  %v1742_v25 = vmul.f32 %v4673_v43, %v1732_v41  ;;  %v1760_v34 = vld [vmem:[#allocation2 + $0x27] sm:$0x1]  ;;  %v1657_v41 = vld [vmem:[#allocation2 + $0x2b] sm:$0x1] }
 0x131   :  { %v1768_v8 = vmul.f32 %v4676_v54, %v1758_v14  ;;  %v1774_v45 = vadd.f32 %v1766_v55, %v1748_v52  ;;  %v1621_v21 = vadd.f32 %v1613_v46, %v1595_v49  ;;  %v1665_v61 = vmul.f32 %v4656_v9, %v1655_v44  ;;  %v1683_v44 = vld [vmem:[#allocation2 + $0x2c] sm:$0x1]  ;;  %v1588_v52 = vld [vmem:[#allocation2 + $0x30] sm:$0x1] }
 0x132   :  { %v1691_v60 = vmul.f32 %v4663_v28, %v1681_v17  ;;  %v1723_v22 = vadd.f32 %v1715_v62, %v1697_v13  ;;  %v1672_v3 = vadd.f32 %v1664_v57, %v1646_v24  ;;  %v1717_v16 = vmul.f32 %v4666_v29, %v1707_v15  ;;  %v1709_v17 = vld [vmem:[#allocation2 + $0x2d] sm:$0x1] }
 0x133   :  { %v1596_v1 = vmul.f32 %v4643_v31, %v1586_v33  ;;  %v1784_v6 = vadd.f32 %v4679_v59, %v1774_v45  ;;  %v1647_v50 = vadd.f32 %v1639_v19, %v1621_v21  ;;  %v1614_v55 = vmul.f32 %v4650_v2, %v1604_v47  ;;  %v1606_v19 = vld [vmem:[#allocation2 + $0x31] sm:$0x1]  ;;  %v1735_v47 = vld [vmem:[#allocation2 + $0x2e] sm:$0x1]  ;;  %v1658_v45 = vld [vmem:[#allocation2 + $0x33] sm:$0x1] }
 0x134   :  { %v1640_v32 = vmul.f32 %v4653_v48, %v1630_v20  ;;  %v1749_v10 = vadd.f32 %v1741_v58, %v1723_v22  ;;  %v1698_v53 = vadd.f32 %v1690_v11, %v1672_v3  ;;  %v1743_v62 = vmul.f32 %v4673_v43, %v1733_v63  ;;  %v1632_v20 = vld [vmem:[#allocation2 + $0x32] sm:$0x1] }
 0x135   :  { %v1769_v27 = vmul.f32 %v4676_v54, %v1759_v38  ;;  %1792 = vst [vmem:[#allocation9 + $0x7] sm:$0x1] %v1784_v6  ;;  %v1673_v51 = vadd.f32 %v1665_v61, %v1647_v50  ;;  %v1622_v0 = vadd.f32 %v1614_v55, %v1596_v1  ;;  %v1666_v5 = vmul.f32 %v4656_v9, %v1656_v40  ;;  %v1684_v38 = vld [vmem:[#allocation2 + $0x34] sm:$0x1]  ;;  %v1710_v40 = vld [vmem:[#allocation2 + $0x35] sm:$0x1] }
 0x136   :  { %v1692_v30 = vmul.f32 %v4663_v28, %v1682_v4  ;;  %v1775_v56 = vadd.f32 %v1767_v39, %v1749_v10  ;;  %v1724_v35 = vadd.f32 %v1716_v23, %v1698_v53  ;;  %v1718_v58 = vmul.f32 %v4666_v29, %v1708_v26  ;;  %v1589_v4 = vld [vmem:[#allocation2 + $0x38] sm:$0x1] }
 0x137   :  { %v1597_v57 = vmul.f32 %v4643_v31, %v1587_v7  ;;  %v1699_v14 = vadd.f32 %v1691_v60, %v1673_v51  ;;  %v1648_v42 = vadd.f32 %v1640_v32, %v1622_v0  ;;  %v1615_v37 = vmul.f32 %v4650_v2, %v1605_v12  ;;  %v1736_v32 = vld [vmem:[#allocation2 + $0x36] sm:$0x1]  ;;  %v1607_v12 = vld [vmem:[#allocation2 + $0x39] sm:$0x1] }
 0x138   :  { %v1641_v11 = vmul.f32 %v4653_v48, %v1631_v36  ;;  %v1785_v49 = vadd.f32 %v4679_v59, %v1775_v56  ;;  %v1750_v46 = vadd.f32 %v1742_v25, %v1724_v35  ;;  %v1744_v39 = vmul.f32 %v4673_v43, %v1734_v18  ;;  %v1761_v25 = vld [vmem:[#allocation2 + $0x2f] sm:$0x1]  ;;  %v1633_v36 = vld [vmem:[#allocation2 + $0x3a] sm:$0x1]  ;;  %v1659_v18 = vld [vmem:[#allocation2 + $0x3b] sm:$0x1] }
 0x139   :  { %v1770_v23 = vmul.f32 %v4676_v54, %v1760_v34  ;;  %v1725_v15 = vadd.f32 %v1717_v16, %v1699_v14  ;;  %v1674_v33 = vadd.f32 %v1666_v5, %v1648_v42  ;;  %v1623_v13 = vadd.f32 %v1615_v37, %v1597_v57  ;;  %v1711_v57 = vld [vmem:[#allocation2 + $0x3d] sm:$0x1]  ;;  %v1800_v37 = vld [vmem:[#allocation2] sm:$0x1] }
 0x13a   :  { %v1667_v24 = vmul.f32 %v4656_v9, %v1657_v41  ;;  %1793 = vst [vmem:[#allocation9 + $0x17] sm:$0x1] %v1785_v49  ;;  %v1776_v21 = vadd.f32 %v1768_v8, %v1750_v46  ;;  %v1693_v61 = vmul.f32 %v4663_v28, %v1683_v44  ;;  %v1719_v60 = vmul.f32 %v4666_v29, %v1709_v17 }
 0x13b   :  { %v1598_v63 = vmul.f32 %v4643_v31, %v1588_v52  ;;  %v1751_v22 = vadd.f32 %v1743_v62, %v1725_v15  ;;  %v1700_v3 = vadd.f32 %v1692_v30, %v1674_v33  ;;  %v1649_v16 = vadd.f32 %v1641_v11, %v1623_v13  ;;  %v1762_v62 = vld [vmem:[#allocation2 + $0x37] sm:$0x1]  ;;  %v1737_v13 = vld [vmem:[#allocation2 + $0x3e] sm:$0x1] }
 0x13c   :  { %v1616_v1 = vmul.f32 %v4650_v2, %v1606_v19  ;;  %v1786_v8 = vadd.f32 %v4679_v59, %v1776_v21  ;;  %v1745_v6 = vmul.f32 %v4673_v43, %v1735_v47  ;;  %v1642_v50 = vmul.f32 %v4653_v48, %v1632_v20  ;;  %v1844_v19 = vld [vmem:[#allocation2 + $0x2] sm:$0x1] }
 0x13d   :  { %v1668_v55 = vmul.f32 %v4656_v9, %v1658_v45  ;;  %v1777_v26 = vadd.f32 %v1769_v27, %v1751_v22  ;;  %v1726_v7 = vadd.f32 %v1718_v58, %v1700_v3  ;;  %v1675_v10 = vadd.f32 %v1667_v24, %v1649_v16  ;;  %v1685_v58 = vld [vmem:[#allocation2 + $0x3c] sm:$0x1]  ;;  %v1896_v22 = vld [vmem:[#allocation2 + $0x4] sm:$0x1]  ;;  %v1922_v16 = vld [vmem:[#allocation2 + $0x5] sm:$0x1] }
 0x13e   :  { %v1624_v53 = vadd.f32 %v1616_v1, %v1598_v63  ;;  %1794 = vst [vmem:[#allocation9 + $0x27] sm:$0x1] %v1786_v8  ;;  %v1771_v51 = vmul.f32 %v4676_v54, %v1761_v25  ;;  %v1694_v0 = vmul.f32 %v4663_v28, %v1684_v38  ;;  %v1720_v5 = vmul.f32 %v4666_v29, %v1710_v40 }
 0x13f   :  { %v1599_v30 = vmul.f32 %v4643_v31, %v1589_v4  ;;  %v1787_v27 = vadd.f32 %v4679_v59, %v1777_v26  ;;  %v1752_v34 = vadd.f32 %v1744_v39, %v1726_v7  ;;  %v1701_v56 = vadd.f32 %v1693_v61, %v1675_v10  ;;  %v1818_v39 = vld [vmem:[#allocation2 + $0x1] sm:$0x1]  ;;  %v1763_v61 = vld [vmem:[#allocation2 + $0x3f] sm:$0x1]  ;;  %v1974_v10 = vld [vmem:[#allocation2 + $0x7] sm:$0x1] }
 0x140   :  { %v1650_v35 = vadd.f32 %v1642_v50, %v1624_v53  ;;  %v1746_v41 = vmul.f32 %v4673_v43, %v1736_v32  ;;  %v1772_v14 = vmul.f32 %v4676_v54, %v1762_v62  ;;  %v1617_v42 = vmul.f32 %v4650_v2, %v1607_v12  ;;  %v1948_v50 = vld [vmem:[#allocation2 + $0x6] sm:$0x1]  ;;  %v1819_v32 = vld [vmem:[#allocation2 + $0x9] sm:$0x1]  ;;  %v1845_v62 = vld [vmem:[#allocation2 + $0xa] sm:$0x1] }
 0x141   :  { %v1643_v31 = vmul.f32 %v4653_v48, %v1633_v36  ;;  %1795 = vst [vmem:[#allocation9 + $0x37] sm:$0x1] %v1787_v27  ;;  %v1778_v11 = vadd.f32 %v1770_v23, %v1752_v34  ;;  %v1727_v44 = vadd.f32 %v1719_v60, %v1701_v56  ;;  %v1669_v52 = vmul.f32 %v4656_v9, %v1659_v18  ;;  %v1897_v34 = vld [vmem:[#allocation2 + $0xc] sm:$0x1]  ;;  %v1923_v56 = vld [vmem:[#allocation2 + $0xd] sm:$0x1] }
 0x142   :  { %v1676_v17 = vadd.f32 %v1668_v55, %v1650_v35  ;;  %v1625_v49 = vadd.f32 %v1617_v42, %v1599_v30  ;;  %v1695_v46 = vmul.f32 %v4663_v28, %v1685_v58  ;;  %v1721_v2 = vmul.f32 %v4666_v29, %v1711_v57  ;;  %v1870_v28 = vld [vmem:[#allocation2 + $0x3] sm:$0x1]  ;;  %v1801_v55 = vld [vmem:[#allocation2 + $0x8] sm:$0x1]  ;;  %v1802_v35 = vld [vmem:[#allocation2 + $0x10] sm:$0x1] }
 0x143   :  { %v4760_v48 = vstv %s4726_s22  ;;  %v1788_v15 = vadd.f32 %v4679_v59, %v1778_v11  ;;  %v1753_v33 = vadd.f32 %v1745_v6, %v1727_v44  ;;  %v4765_v9 = vstv %s4729_s23  ;;  %v1820_v42 = vld [vmem:[#allocation2 + $0x11] sm:$0x1]  ;;  %s5081_s22 = sld [smem:[#allocation6 + $0x581]]  ;;  %s5086_s23 = sld [smem:[#allocation6 + $0x582]] }
 0x144   :  { %v1702_v23 = vadd.f32 %v1694_v0, %v1676_v17  ;;  %v1810_v24 = vmul.f32 %v4760_v48, %v1800_v37  ;;  %v1651_v47 = vadd.f32 %v1643_v31, %v1625_v49  ;;  %v4768_v20 = vstv %s4735_s24  ;;  %v1846_v31 = vld [vmem:[#allocation2 + $0x12] sm:$0x1]  ;;  %v1975_v49 = vld [vmem:[#allocation2 + $0xf] sm:$0x1]  ;;  %s5088_s24 = sld [smem:[#allocation6 + $0x583]] }
 0x145   :  { %v4771_v29 = vstv %s4737_s26  ;;  %1796 = vst [vmem:[#allocation9 + $0x47] sm:$0x1] %v1788_v15  ;;  %v1779_v45 = vadd.f32 %v1771_v51, %v1753_v33  ;;  %v1828_v60 = vmul.f32 %v4765_v9, %v1818_v39  ;;  %v1854_v25 = vmul.f32 %v4768_v20, %v1844_v19  ;;  %v1898_v33 = vld [vmem:[#allocation2 + $0x14] sm:$0x1]  ;;  %s5094_s26 = sld [smem:[#allocation6 + $0x584]] }
 0x146   :  { %v1728_v21 = vadd.f32 %v1720_v5, %v1702_v23  ;;  %v1677_v63 = vadd.f32 %v1669_v52, %v1651_v47  ;;  %v1747_v38 = vmul.f32 %v4673_v43, %v1737_v13  ;;  %v4779_v3 = vstv %s4743_s27  ;;  %v1871_v5 = vld [vmem:[#allocation2 + $0xb] sm:$0x1]  ;;  %v1949_v52 = vld [vmem:[#allocation2 + $0xe] sm:$0x1]  ;;  %s5096_s27 = sld [smem:[#allocation6 + $0x585]] }
 0x147   :  { %v4782_v1 = vstv %s4745_s28  ;;  %v1789_v40 = vadd.f32 %v4679_v59, %v1779_v45  ;;  %v1836_v8 = vadd.f32 %v1828_v60, %v1810_v24  ;;  %v1880_v6 = vmul.f32 %v4771_v29, %v1870_v28  ;;  %v1924_v28 = vld [vmem:[#allocation2 + $0x15] sm:$0x1]  ;;  %v1803_v45 = vld [vmem:[#allocation2 + $0x18] sm:$0x1]  ;;  %s5103_s28 = sld [smem:[#allocation6 + $0x586]] }
 0x148   :  { %v1754_v4 = vadd.f32 %v1746_v41, %v1728_v21  ;;  %v1703_v26 = vadd.f32 %v1695_v46, %v1677_v63  ;;  %v1773_v7 = vmul.f32 %v4676_v54, %v1763_v61  ;;  %v4788_v43 = vstv %s4752_s29  ;;  %v1872_v46 = vld [vmem:[#allocation2 + $0x13] sm:$0x1]  ;;  %v1821_v21 = vld [vmem:[#allocation2 + $0x19] sm:$0x1]  ;;  %s5106_s29 = sld [smem:[#allocation6 + $0x587]] }
 0x149   :  { %v4791_v53 = vstv %s4754_s30  ;;  %1797 = vst [vmem:[#allocation9 + $0x57] sm:$0x1] %v1789_v40  ;;  %v1862_v36 = vadd.f32 %v1854_v25, %v1836_v8  ;;  %v1906_v51 = vmul.f32 %v4779_v3, %v1896_v22  ;;  %v1932_v0 = vmul.f32 %v4782_v1, %v1922_v16  ;;  %v1847_v22 = vld [vmem:[#allocation2 + $0x1a] sm:$0x1]  ;;  %s5113_s30 = sld [smem:[#allocation7 + $0xb]] }
 0x14a   :  { %v1780_v12 = vadd.f32 %v1772_v14, %v1754_v4  ;;  %v1729_v30 = vadd.f32 %v1721_v2, %v1703_v26  ;;  %v1958_v18 = vmul.f32 %v4788_v43, %v1948_v50  ;;  %v1811_v54 = vmul.f32 %v4760_v48, %v1801_v55  ;;  %v1873_v50 = vld [vmem:[#allocation2 + $0x1b] sm:$0x1] }
 0x14b   :  { %v1829_v27 = vmul.f32 %v4765_v9, %v1819_v32  ;;  %v1888_v57 = vadd.f32 %v1880_v6, %v1862_v36  ;;  %v1984_v41 = vmul.f32 %v4791_v53, %v1974_v10  ;;  %v1855_v14 = vmul.f32 %v4768_v20, %v1845_v62  ;;  %v1976_v6 = vld [vmem:[#allocation2 + $0x17] sm:$0x1]  ;;  %v1899_v10 = vld [vmem:[#allocation2 + $0x1c] sm:$0x1]  ;;  %v1925_v62 = vld [vmem:[#allocation2 + $0x1d] sm:$0x1] }
 0x14c   :  { %v1790_v58 = vadd.f32 %v4679_v59, %v1780_v12  ;;  %v1755_v37 = vadd.f32 %v1747_v38, %v1729_v30  ;;  %v4802_v11 = vstv %s4773_s4  ;;  %v1881_v17 = vmul.f32 %v4771_v29, %v1871_v5  ;;  %v1950_v38 = vld [vmem:[#allocation2 + $0x16] sm:$0x1]  ;;  %v1822_v5 = vld [vmem:[#allocation2 + $0x21] sm:$0x1]  ;;  %s5194_s4 = sld [smem:[#allocation6 + $0x600]] }
 0x14d   :  { %v1837_v44 = vadd.f32 %v1829_v27, %v1811_v54  ;;  %v1914_v2 = vadd.f32 %v1906_v51, %v1888_v57  ;;  %v1907_v39 = vmul.f32 %v4779_v3, %v1897_v34  ;;  %v1933_v19 = vmul.f32 %v4782_v1, %v1923_v56  ;;  %v1951_v34 = vld [vmem:[#allocation2 + $0x1e] sm:$0x1]  ;;  %v1848_v56 = vld [vmem:[#allocation2 + $0x22] sm:$0x1] }
 0x14e   :  { %1798 = vst [vmem:[#allocation9 + $0x67] sm:$0x1] %v1790_v58  ;;  %v1812_v15 = vmul.f32 %v4760_v48, %v1802_v35  ;;  %v1781_v23 = vadd.f32 %v1773_v7, %v1755_v37  ;;  %v1830_v24 = vmul.f32 %v4765_v9, %v1820_v42  ;;  %v1856_v47 = vmul.f32 %v4768_v20, %v1846_v31  ;;  %v1977_v42 = vld [vmem:[#allocation2 + $0x1f] sm:$0x1]  ;;  %v1874_v31 = vld [vmem:[#allocation2 + $0x23] sm:$0x1] }
 0x14f   :  { %v1863_v13 = vadd.f32 %v1855_v14, %v1837_v44  ;;  %v1940_v61 = vadd.f32 %v1932_v0, %v1914_v2  ;;  %v1959_v60 = vmul.f32 %v4788_v43, %v1949_v52  ;;  %v1985_v25 = vmul.f32 %v4791_v53, %v1975_v49  ;;  %v1804_v0 = vld [vmem:[#allocation2 + $0x20] sm:$0x1]  ;;  %v1900_v52 = vld [vmem:[#allocation2 + $0x24] sm:$0x1]  ;;  %v1926_v49 = vld [vmem:[#allocation2 + $0x25] sm:$0x1] }
 0x150   :  { %v1882_v63 = vmul.f32 %v4771_v29, %v1872_v46  ;;  %v1791_v16 = vadd.f32 %v4679_v59, %v1781_v23  ;;  %v1838_v4 = vadd.f32 %v1830_v24, %v1812_v15  ;;  %v1908_v8 = vmul.f32 %v4779_v3, %v1898_v33  ;;  %v1805_v15 = vld [vmem:[#allocation2 + $0x28] sm:$0x1]  ;;  %v1823_v33 = vld [vmem:[#allocation2 + $0x29] sm:$0x1] }
 0x151   :  { %v1889_v40 = vadd.f32 %v1881_v17, %v1863_v13  ;;  %v1966_v55 = vadd.f32 %v1958_v18, %v1940_v61  ;;  %v1934_v32 = vmul.f32 %v4782_v1, %v1924_v28  ;;  %v1813_v26 = vmul.f32 %v4760_v48, %v1803_v45  ;;  %v1952_v28 = vld [vmem:[#allocation2 + $0x26] sm:$0x1]  ;;  %v1849_v45 = vld [vmem:[#allocation2 + $0x2a] sm:$0x1] }
 0x152   :  { %v1831_v7 = vmul.f32 %v4765_v9, %v1821_v21  ;;  %1799 = vst [vmem:[#allocation9 + $0x77] sm:$0x1] %v1791_v16  ;;  %v1864_v36 = vadd.f32 %v1856_v47, %v1838_v4  ;;  %v1960_v59 = vmul.f32 %v4788_v43, %v1950_v38  ;;  %v1857_v51 = vmul.f32 %v4768_v20, %v1847_v22  ;;  %v1875_v38 = vld [vmem:[#allocation2 + $0x2b] sm:$0x1] }
 0x153   :  { %v1915_v12 = vadd.f32 %v1907_v39, %v1889_v40  ;;  %v1992_v30 = vadd.f32 %v1984_v41, %v1966_v55  ;;  %v1986_v18 = vmul.f32 %v4791_v53, %v1976_v6  ;;  %v1883_v27 = vmul.f32 %v4771_v29, %v1873_v50  ;;  %v1978_v40 = vld [vmem:[#allocation2 + $0x27] sm:$0x1]  ;;  %v1901_v6 = vld [vmem:[#allocation2 + $0x2c] sm:$0x1]  ;;  %v1927_v50 = vld [vmem:[#allocation2 + $0x2d] sm:$0x1] }
 0x154   :  { %v1839_v54 = vadd.f32 %v1831_v7, %v1813_v26  ;;  %v1890_v58 = vadd.f32 %v1882_v63, %v1864_v36  ;;  %v1909_v57 = vmul.f32 %v4779_v3, %v1899_v10  ;;  %v1935_v14 = vmul.f32 %v4782_v1, %v1925_v62  ;;  %v1953_v7 = vld [vmem:[#allocation2 + $0x2e] sm:$0x1]  ;;  %v1806_v10 = vld [vmem:[#allocation2 + $0x30] sm:$0x1] }
 0x155   :  { %v1941_v35 = vadd.f32 %v1933_v19, %v1915_v12  ;;  %v2002_v37 = vadd.f32 %v4802_v11, %v1992_v30  ;;  %v1814_v41 = vmul.f32 %v4760_v48, %v1804_v0  ;;  %v1832_v17 = vmul.f32 %v4765_v9, %v1822_v5  ;;  %v1979_v0 = vld [vmem:[#allocation2 + $0x2f] sm:$0x1]  ;;  %v1824_v5 = vld [vmem:[#allocation2 + $0x31] sm:$0x1]  ;;  %v1850_v30 = vld [vmem:[#allocation2 + $0x32] sm:$0x1] }
 0x156   :  { %v1865_v44 = vadd.f32 %v1857_v51, %v1839_v54  ;;  %v1916_v2 = vadd.f32 %v1908_v8, %v1890_v58  ;;  %v1961_v39 = vmul.f32 %v4788_v43, %v1951_v34  ;;  %v1858_v19 = vmul.f32 %v4768_v20, %v1848_v56  ;;  %v1876_v56 = vld [vmem:[#allocation2 + $0x33] sm:$0x1]  ;;  %v1928_v58 = vld [vmem:[#allocation2 + $0x35] sm:$0x1] }
 0x157   :  { %v1967_v46 = vadd.f32 %v1959_v60, %v1941_v35  ;;  %2010 = vst [vmem:[#allocation9 + $0x8] sm:$0x1] %v2002_v37  ;;  %v1987_v13 = vmul.f32 %v4791_v53, %v1977_v42  ;;  %v1840_v24 = vadd.f32 %v1832_v17, %v1814_v41  ;;  %v1884_v47 = vmul.f32 %v4771_v29, %v1874_v31  ;;  %v1902_v35 = vld [vmem:[#allocation2 + $0x34] sm:$0x1]  ;;  %v1954_v37 = vld [vmem:[#allocation2 + $0x36] sm:$0x1] }
 0x158   :  { %v1891_v23 = vadd.f32 %v1883_v27, %v1865_v44  ;;  %v1942_v61 = vadd.f32 %v1934_v32, %v1916_v2  ;;  %v1910_v60 = vmul.f32 %v4779_v3, %v1900_v52  ;;  %v1936_v63 = vmul.f32 %v4782_v1, %v1926_v49  ;;  %v1807_v52 = vld [vmem:[#allocation2 + $0x38] sm:$0x1]  ;;  %v1825_v49 = vld [vmem:[#allocation2 + $0x39] sm:$0x1] }
 0x159   :  { %v1993_v21 = vadd.f32 %v1985_v25, %v1967_v46  ;;  %v1866_v16 = vadd.f32 %v1858_v19, %v1840_v24  ;;  %v1815_v4 = vmul.f32 %v4760_v48, %v1805_v15  ;;  %v1833_v8 = vmul.f32 %v4765_v9, %v1823_v33  ;;  %v1851_v15 = vld [vmem:[#allocation2 + $0x3a] sm:$0x1] }
 0x15a   :  { %v1917_v22 = vadd.f32 %v1909_v57, %v1891_v23  ;;  %v1968_v26 = vadd.f32 %v1960_v59, %v1942_v61  ;;  %v1962_v25 = vmul.f32 %v4788_v43, %v1952_v28  ;;  %v1859_v32 = vmul.f32 %v4768_v20, %v1849_v45  ;;  %v1980_v28 = vld [vmem:[#allocation2 + $0x37] sm:$0x1]  ;;  %v1877_v45 = vld [vmem:[#allocation2 + $0x3b] sm:$0x1] }
 0x15b   :  { %v2003_v55 = vadd.f32 %v4802_v11, %v1993_v21  ;;  %v1892_v12 = vadd.f32 %v1884_v47, %v1866_v16  ;;  %v1841_v36 = vadd.f32 %v1833_v8, %v1815_v4  ;;  %v1885_v51 = vmul.f32 %v4771_v29, %v1875_v38  ;;  %v1929_v38 = vld [vmem:[#allocation2 + $0x3d] sm:$0x1]  ;;  %v2018_v8 = vld [vmem:[#allocation2] sm:$0x1] }
 0x15c   :  { %v1943_v62 = vadd.f32 %v1935_v14, %v1917_v22  ;;  %v1994_v54 = vadd.f32 %v1986_v18, %v1968_v26  ;;  %v1988_v27 = vmul.f32 %v4791_v53, %v1978_v40  ;;  %v1911_v59 = vmul.f32 %v4779_v3, %v1901_v6  ;;  %v2036_v26 = vld [vmem:[#allocation2 + $0x1] sm:$0x1] }
 0x15d   :  { %2011 = vst [vmem:[#allocation9 + $0x18] sm:$0x1] %v2003_v55  ;;  %v1937_v34 = vmul.f32 %v4782_v1, %v1927_v50  ;;  %v1918_v14 = vadd.f32 %v1910_v60, %v1892_v12  ;;  %v1867_v42 = vadd.f32 %v1859_v32, %v1841_v36  ;;  %v1816_v31 = vmul.f32 %v4760_v48, %v1806_v10  ;;  %v2062_v12 = vld [vmem:[#allocation2 + $0x2] sm:$0x1] }
 0x15e   :  { %v1969_v57 = vadd.f32 %v1961_v39, %v1943_v62  ;;  %v2004_v18 = vadd.f32 %v4802_v11, %v1994_v54  ;;  %v1963_v44 = vmul.f32 %v4788_v43, %v1953_v7  ;;  %v1834_v41 = vmul.f32 %v4765_v9, %v1824_v5 }
 0x15f   :  { %v1860_v17 = vmul.f32 %v4768_v20, %v1850_v30  ;;  %v1944_v2 = vadd.f32 %v1936_v63, %v1918_v14  ;;  %v1893_v39 = vadd.f32 %v1885_v51, %v1867_v42  ;;  %v1989_v19 = vmul.f32 %v4791_v53, %v1979_v0  ;;  %v1903_v63 = vld [vmem:[#allocation2 + $0x3c] sm:$0x1]  ;;  %v1955_v0 = vld [vmem:[#allocation2 + $0x3e] sm:$0x1]  ;;  %v2019_v42 = vld [vmem:[#allocation2 + $0x8] sm:$0x1] }
 0x160   :  { %v1995_v46 = vadd.f32 %v1987_v13, %v1969_v57  ;;  %2012 = vst [vmem:[#allocation9 + $0x28] sm:$0x1] %v2004_v18  ;;  %v1842_v33 = vadd.f32 %v1834_v41, %v1816_v31  ;;  %v1886_v23 = vmul.f32 %v4771_v29, %v1876_v56  ;;  %v1912_v24 = vmul.f32 %v4779_v3, %v1902_v35 }
 0x161   :  { %v1938_v47 = vmul.f32 %v4782_v1, %v1928_v58  ;;  %v1970_v21 = vadd.f32 %v1962_v25, %v1944_v2  ;;  %v1919_v61 = vadd.f32 %v1911_v59, %v1893_v39  ;;  %v1817_v60 = vmul.f32 %v4760_v48, %v1807_v52  ;;  %v2114_v59 = vld [vmem:[#allocation2 + $0x4] sm:$0x1]  ;;  %v1981_v58 = vld [vmem:[#allocation2 + $0x3f] sm:$0x1]  ;;  %v2166_v2 = vld [vmem:[#allocation2 + $0x6] sm:$0x1] }
 0x162   :  { %v2005_v13 = vadd.f32 %v4802_v11, %v1995_v46  ;;  %v1868_v22 = vadd.f32 %v1860_v17, %v1842_v33  ;;  %v1964_v16 = vmul.f32 %v4788_v43, %v1954_v37  ;;  %v1835_v40 = vmul.f32 %v4765_v9, %v1825_v49  ;;  %v2037_v39 = vld [vmem:[#allocation2 + $0x9] sm:$0x1] }
 0x163   :  { %v1861_v4 = vmul.f32 %v4768_v20, %v1851_v15  ;;  %v1996_v6 = vadd.f32 %v1988_v27, %v1970_v21  ;;  %v1945_v50 = vadd.f32 %v1937_v34, %v1919_v61  ;;  %v1990_v55 = vmul.f32 %v4791_v53, %v1980_v28  ;;  %v2089_v21 = vld [vmem:[#allocation2 + $0xb] sm:$0x1]  ;;  %v2115_v61 = vld [vmem:[#allocation2 + $0xc] sm:$0x1] }
 0x164   :  { %2013 = vst [vmem:[#allocation9 + $0x38] sm:$0x1] %v2005_v13  ;;  %v1887_v48 = vmul.f32 %v4771_v29, %v1877_v45  ;;  %v1894_v25 = vadd.f32 %v1886_v23, %v1868_v22  ;;  %v1843_v32 = vadd.f32 %v1835_v40, %v1817_v60  ;;  %v1913_v9 = vmul.f32 %v4779_v3, %v1903_v63  ;;  %v2141_v60 = vld [vmem:[#allocation2 + $0xd] sm:$0x1]  ;;  %v2038_v40 = vld [vmem:[#allocation2 + $0x11] sm:$0x1] }
 0x165   :  { %v1939_v20 = vmul.f32 %v4782_v1, %v1929_v38  ;;  %v2006_v7 = vadd.f32 %v4802_v11, %v1996_v6  ;;  %v1971_v10 = vadd.f32 %v1963_v44, %v1945_v50  ;;  %v4878_v62 = vstv %s4843_s5  ;;  %v2088_v1 = vld [vmem:[#allocation2 + $0x3] sm:$0x1]  ;;  %v2140_v44 = vld [vmem:[#allocation2 + $0x5] sm:$0x1]  ;;  %s5197_s5 = sld [smem:[#allocation6 + $0x601]] }
 0x166   :  { %v4881_v29 = vstv %s4845_s6  ;;  %v1920_v36 = vadd.f32 %v1912_v24, %v1894_v25  ;;  %v1869_v51 = vadd.f32 %v1861_v4, %v1843_v32  ;;  %v2028_v3 = vmul.f32 %v4878_v62, %v2018_v8  ;;  %s5203_s6 = sld [smem:[#allocation6 + $0x602]] }
 0x167   :  { %v2046_v5 = vmul.f32 %v4881_v29, %v2036_v26  ;;  %2014 = vst [vmem:[#allocation9 + $0x48] sm:$0x1] %v2006_v7  ;;  %v1997_v30 = vadd.f32 %v1989_v19, %v1971_v10  ;;  %v4888_v54 = vstv %s4851_s0  ;;  %v4891_v27 = vstv %s4854_s7  ;;  %v2063_v19 = vld [vmem:[#allocation2 + $0xa] sm:$0x1]  ;;  %v2064_v26 = vld [vmem:[#allocation2 + $0x12] sm:$0x1] }
 0x168   :  { %v4894_v34 = vstv %s4856_s8  ;;  %v1946_v56 = vadd.f32 %v1938_v47, %v1920_v36  ;;  %v1895_v35 = vadd.f32 %v1887_v48, %v1869_v51  ;;  %v2072_v14 = vmul.f32 %v4888_v54, %v2062_v12  ;;  %v2193_v48 = vld [vmem:[#allocation2 + $0xf] sm:$0x1]  ;;  %v2090_v7 = vld [vmem:[#allocation2 + $0x13] sm:$0x1]  ;;  %s5205_s0 = sld [smem:[#allocation6 + $0x603]]  ;;  %s5211_s7 = sld [smem:[#allocation6 + $0x604]] }
 0x169   :  { %v2054_v57 = vadd.f32 %v2046_v5, %v2028_v3  ;;  %v2007_v31 = vadd.f32 %v4802_v11, %v1997_v30  ;;  %v1965_v37 = vmul.f32 %v4788_v43, %v1955_v0  ;;  %v2098_v18 = vmul.f32 %v4891_v27, %v2088_v1  ;;  %v2192_v43 = vld [vmem:[#allocation2 + $0x7] sm:$0x1]  ;;  %v2116_v0 = vld [vmem:[#allocation2 + $0x14] sm:$0x1]  ;;  %v2142_v3 = vld [vmem:[#allocation2 + $0x15] sm:$0x1] }
 0x16a   :  { %v4901_v41 = vstv %s4863_s2  ;;  %v1972_v17 = vadd.f32 %v1964_v16, %v1946_v56  ;;  %v1921_v52 = vadd.f32 %v1913_v9, %v1895_v35  ;;  %v2124_v46 = vmul.f32 %v4894_v34, %v2114_v59  ;;  %v2020_v16 = vld [vmem:[#allocation2 + $0x10] sm:$0x1]  ;;  %v2021_v5 = vld [vmem:[#allocation2 + $0x18] sm:$0x1]  ;;  %v2039_v35 = vld [vmem:[#allocation2 + $0x19] sm:$0x1] }
 0x16b   :  { %v2080_v49 = vadd.f32 %v2072_v14, %v2054_v57  ;;  %2015 = vst [vmem:[#allocation9 + $0x58] sm:$0x1] %v2007_v31  ;;  %v1991_v15 = vmul.f32 %v4791_v53, %v1981_v58  ;;  %v4906_v33 = vstv %s4870_s9  ;;  %v4909_v23 = vstv %s4872_s10  ;;  %v2065_v58 = vld [vmem:[#allocation2 + $0x1a] sm:$0x1]  ;;  %s5213_s8 = sld [smem:[#allocation6 + $0x605]]  ;;  %s5220_s2 = sld [smem:[#allocation6 + $0x606]] }
 0x16c   :  { %v2029_v24 = vmul.f32 %v4878_v62, %v2019_v42  ;;  %v1998_v47 = vadd.f32 %v1990_v55, %v1972_v17  ;;  %v1947_v28 = vadd.f32 %v1939_v20, %v1921_v52  ;;  %v2150_v13 = vmul.f32 %v4901_v41, %v2140_v44  ;;  %v2167_v55 = vld [vmem:[#allocation2 + $0xe] sm:$0x1]  ;;  %v2091_v44 = vld [vmem:[#allocation2 + $0x1b] sm:$0x1]  ;;  %s5222_s9 = sld [smem:[#allocation6 + $0x607]]  ;;  %s5241_s10 = sld [smem:[#allocation7 + $0xc]] }
 0x16d   :  { %v2106_v45 = vadd.f32 %v2098_v18, %v2080_v49  ;;  %v2176_v63 = vmul.f32 %v4906_v33, %v2166_v2  ;;  %v4915_v38 = vstv %s4883_s11  ;;  %v2047_v53 = vmul.f32 %v4881_v29, %v2037_v39  ;;  %v2194_v18 = vld [vmem:[#allocation2 + $0x17] sm:$0x1]  ;;  %v2117_v2 = vld [vmem:[#allocation2 + $0x1c] sm:$0x1]  ;;  %s5306_s11 = sld [smem:[#allocation6 + $0x680]] }
 0x16e   :  { %v2073_v22 = vmul.f32 %v4888_v54, %v2063_v19  ;;  %v2008_v4 = vadd.f32 %v4802_v11, %v1998_v47  ;;  %v1973_v8 = vadd.f32 %v1965_v37, %v1947_v28  ;;  %v2202_v50 = vmul.f32 %v4909_v23, %v2192_v43  ;;  %v2168_v37 = vld [vmem:[#allocation2 + $0x16] sm:$0x1]  ;;  %v2143_v43 = vld [vmem:[#allocation2 + $0x1d] sm:$0x1]  ;;  %v2040_v47 = vld [vmem:[#allocation2 + $0x21] sm:$0x1] }
 0x16f   :  { %v2132_v6 = vadd.f32 %v2124_v46, %v2106_v45  ;;  %v2055_v25 = vadd.f32 %v2047_v53, %v2029_v24  ;;  %v2099_v32 = vmul.f32 %v4891_v27, %v2089_v21  ;;  %v2125_v9 = vmul.f32 %v4894_v34, %v2115_v61  ;;  %v2022_v24 = vld [vmem:[#allocation2 + $0x20] sm:$0x1]  ;;  %v2169_v61 = vld [vmem:[#allocation2 + $0x1e] sm:$0x1] }
 0x170   :  { %v2151_v20 = vmul.f32 %v4901_v41, %v2141_v60  ;;  %2016 = vst [vmem:[#allocation9 + $0x68] sm:$0x1] %v2008_v4  ;;  %v1999_v10 = vadd.f32 %v1991_v15, %v1973_v8  ;;  %v2030_v36 = vmul.f32 %v4878_v62, %v2020_v16  ;;  %v2048_v51 = vmul.f32 %v4881_v29, %v2038_v40  ;;  %v2066_v60 = vld [vmem:[#allocation2 + $0x22] sm:$0x1]  ;;  %v2195_v40 = vld [vmem:[#allocation2 + $0x1f] sm:$0x1] }
 0x171   :  { %v2158_v12 = vadd.f32 %v2150_v13, %v2132_v6  ;;  %v2081_v1 = vadd.f32 %v2073_v22, %v2055_v25  ;;  %v2177_v30 = vmul.f32 %v4906_v33, %v2167_v55  ;;  %v2203_v59 = vmul.f32 %v4909_v23, %v2193_v48  ;;  %v2092_v4 = vld [vmem:[#allocation2 + $0x23] sm:$0x1]  ;;  %v2118_v48 = vld [vmem:[#allocation2 + $0x24] sm:$0x1] }
 0x172   :  { %v2074_v56 = vmul.f32 %v4888_v54, %v2064_v26  ;;  %v2009_v57 = vadd.f32 %v4802_v11, %v1999_v10  ;;  %v2056_v42 = vadd.f32 %v2048_v51, %v2030_v36  ;;  %v2100_v31 = vmul.f32 %v4891_v27, %v2090_v7  ;;  %v2144_v26 = vld [vmem:[#allocation2 + $0x25] sm:$0x1]  ;;  %v2023_v10 = vld [vmem:[#allocation2 + $0x28] sm:$0x1] }
 0x173   :  { %v2184_v14 = vadd.f32 %v2176_v63, %v2158_v12  ;;  %v2107_v17 = vadd.f32 %v2099_v32, %v2081_v1  ;;  %v2126_v52 = vmul.f32 %v4894_v34, %v2116_v0  ;;  %v2152_v49 = vmul.f32 %v4901_v41, %v2142_v3  ;;  %v2041_v12 = vld [vmem:[#allocation2 + $0x29] sm:$0x1]  ;;  %v2170_v3 = vld [vmem:[#allocation2 + $0x26] sm:$0x1] }
 0x174   :  { %v2031_v46 = vmul.f32 %v4878_v62, %v2021_v5  ;;  %2017 = vst [vmem:[#allocation9 + $0x78] sm:$0x1] %v2009_v57  ;;  %v2082_v19 = vadd.f32 %v2074_v56, %v2056_v42  ;;  %v2049_v11 = vmul.f32 %v4881_v29, %v2039_v35  ;;  %v2075_v15 = vmul.f32 %v4888_v54, %v2065_v58  ;;  %v2067_v5 = vld [vmem:[#allocation2 + $0x2a] sm:$0x1]  ;;  %v2093_v57 = vld [vmem:[#allocation2 + $0x2b] sm:$0x1] }
 0x175   :  { %v2210_v39 = vadd.f32 %v2202_v50, %v2184_v14  ;;  %v2133_v28 = vadd.f32 %v2125_v9, %v2107_v17  ;;  %v2178_v45 = vmul.f32 %v4906_v33, %v2168_v37  ;;  %v2204_v13 = vmul.f32 %v4909_v23, %v2194_v18  ;;  %v2119_v18 = vld [vmem:[#allocation2 + $0x2c] sm:$0x1] }
 0x176   :  { %v2101_v21 = vmul.f32 %v4891_v27, %v2091_v44  ;;  %v2108_v53 = vadd.f32 %v2100_v31, %v2082_v19  ;;  %v2057_v22 = vadd.f32 %v2049_v11, %v2031_v46  ;;  %v2127_v16 = vmul.f32 %v4894_v34, %v2117_v2  ;;  %v2196_v31 = vld [vmem:[#allocation2 + $0x27] sm:$0x1]  ;;  %v2145_v46 = vld [vmem:[#allocation2 + $0x2d] sm:$0x1]  ;;  %v2024_v2 = vld [vmem:[#allocation2 + $0x30] sm:$0x1] }
 0x177   :  { %v2220_v63 = vadd.f32 %v4915_v38, %v2210_v39  ;;  %v2159_v8 = vadd.f32 %v2151_v20, %v2133_v28  ;;  %v2153_v6 = vmul.f32 %v4901_v41, %v2143_v43  ;;  %v2032_v50 = vmul.f32 %v4878_v62, %v2022_v24  ;;  %v2068_v43 = vld [vmem:[#allocation2 + $0x32] sm:$0x1] }
 0x178   :  { %v2050_v55 = vmul.f32 %v4881_v29, %v2040_v47  ;;  %v2134_v25 = vadd.f32 %v2126_v52, %v2108_v53  ;;  %v2083_v32 = vadd.f32 %v2075_v15, %v2057_v22  ;;  %v2179_v9 = vmul.f32 %v4906_v33, %v2169_v61  ;;  %v2042_v15 = vld [vmem:[#allocation2 + $0x31] sm:$0x1]  ;;  %v2197_v61 = vld [vmem:[#allocation2 + $0x2f] sm:$0x1] }
 0x179   :  { %2228 = vst [vmem:[#allocation9 + $0x9] sm:$0x1] %v2220_v63  ;;  %v2076_v7 = vmul.f32 %v4888_v54, %v2066_v60  ;;  %v2185_v36 = vadd.f32 %v2177_v30, %v2159_v8  ;;  %v2205_v20 = vmul.f32 %v4909_v23, %v2195_v40  ;;  %v2102_v0 = vmul.f32 %v4891_v27, %v2092_v4  ;;  %v2094_v60 = vld [vmem:[#allocation2 + $0x33] sm:$0x1]  ;;  %v2120_v40 = vld [vmem:[#allocation2 + $0x34] sm:$0x1] }
 0x17a   :  { %v2058_v51 = vadd.f32 %v2050_v55, %v2032_v50  ;;  %v2160_v1 = vadd.f32 %v2152_v49, %v2134_v25  ;;  %v2109_v56 = vadd.f32 %v2101_v21, %v2083_v32  ;;  %v2128_v35 = vmul.f32 %v4894_v34, %v2118_v48  ;;  %v2171_v21 = vld [vmem:[#allocation2 + $0x2e] sm:$0x1]  ;;  %v2146_v4 = vld [vmem:[#allocation2 + $0x35] sm:$0x1]  ;;  %v2025_v55 = vld [vmem:[#allocation2 + $0x38] sm:$0x1] }
 0x17b   :  { %v2154_v58 = vmul.f32 %v4901_v41, %v2144_v26  ;;  %v2211_v14 = vadd.f32 %v2203_v59, %v2185_v36  ;;  %v2033_v37 = vmul.f32 %v4878_v62, %v2023_v10  ;;  %v2051_v30 = vmul.f32 %v4881_v29, %v2041_v12  ;;  %v2043_v48 = vld [vmem:[#allocation2 + $0x39] sm:$0x1]  ;;  %v2069_v10 = vld [vmem:[#allocation2 + $0x3a] sm:$0x1] }
 0x17c   :  { %v2084_v42 = vadd.f32 %v2076_v7, %v2058_v51  ;;  %v2186_v44 = vadd.f32 %v2178_v45, %v2160_v1  ;;  %v2135_v17 = vadd.f32 %v2127_v16, %v2109_v56  ;;  %v2180_v52 = vmul.f32 %v4906_v33, %v2170_v3  ;;  %v2198_v3 = vld [vmem:[#allocation2 + $0x37] sm:$0x1] }
 0x17d   :  { %v2077_v49 = vmul.f32 %v4888_v54, %v2067_v5  ;;  %v2221_v39 = vadd.f32 %v4915_v38, %v2211_v14  ;;  %v2059_v11 = vadd.f32 %v2051_v30, %v2033_v37  ;;  %v2103_v59 = vmul.f32 %v4891_v27, %v2093_v57  ;;  %v2095_v5 = vld [vmem:[#allocation2 + $0x3b] sm:$0x1]  ;;  %v2121_v57 = vld [vmem:[#allocation2 + $0x3c] sm:$0x1]  ;;  %v2147_v37 = vld [vmem:[#allocation2 + $0x3d] sm:$0x1] }
 0x17e   :  { %v2110_v19 = vadd.f32 %v2102_v0, %v2084_v42  ;;  %v2212_v24 = vadd.f32 %v2204_v13, %v2186_v44  ;;  %v2161_v47 = vadd.f32 %v2153_v6, %v2135_v17  ;;  %v2206_v28 = vmul.f32 %v4909_v23, %v2196_v31  ;;  %v2172_v0 = vld [vmem:[#allocation2 + $0x36] sm:$0x1]  ;;  %v2236_v17 = vld [vmem:[#allocation2] sm:$0x1] }
 0x17f   :  { %v2129_v45 = vmul.f32 %v4894_v34, %v2119_v18  ;;  %2229 = vst [vmem:[#allocation9 + $0x19] sm:$0x1] %v2221_v39  ;;  %v2085_v53 = vadd.f32 %v2077_v49, %v2059_v11  ;;  %v2155_v22 = vmul.f32 %v4901_v41, %v2145_v46  ;;  %v2034_v16 = vmul.f32 %v4878_v62, %v2024_v2  ;;  %v2254_v46 = vld [vmem:[#allocation2 + $0x1] sm:$0x1] }
 0x180   :  { %v2136_v63 = vadd.f32 %v2128_v35, %v2110_v19  ;;  %v2222_v13 = vadd.f32 %v4915_v38, %v2212_v24  ;;  %v2187_v8 = vadd.f32 %v2179_v9, %v2161_v47  ;;  %v2052_v6 = vmul.f32 %v4881_v29, %v2042_v15  ;;  %v2306_v15 = vld [vmem:[#allocation2 + $0x3] sm:$0x1] }
 0x181   :  { %v2078_v50 = vmul.f32 %v4888_v54, %v2068_v43  ;;  %v2111_v25 = vadd.f32 %v2103_v59, %v2085_v53  ;;  %v2181_v32 = vmul.f32 %v4906_v33, %v2171_v21  ;;  %v2207_v7 = vmul.f32 %v4909_v23, %v2197_v61  ;;  %v2280_v59 = vld [vmem:[#allocation2 + $0x2] sm:$0x1] }
 0x182   :  { %v2162_v26 = vadd.f32 %v2154_v58, %v2136_v63  ;;  %2230 = vst [vmem:[#allocation9 + $0x29] sm:$0x1] %v2222_v13  ;;  %v2213_v9 = vadd.f32 %v2205_v20, %v2187_v8  ;;  %v2060_v12 = vadd.f32 %v2052_v6, %v2034_v16  ;;  %v2104_v36 = vmul.f32 %v4891_v27, %v2094_v60  ;;  %v2332_v16 = vld [vmem:[#allocation2 + $0x4] sm:$0x1]  ;;  %v2358_v8 = vld [vmem:[#allocation2 + $0x5] sm:$0x1] }
 0x183   :  { %v2130_v51 = vmul.f32 %v4894_v34, %v2120_v40  ;;  %v2137_v56 = vadd.f32 %v2129_v45, %v2111_v25  ;;  %v2156_v35 = vmul.f32 %v4901_v41, %v2146_v4  ;;  %v2035_v58 = vmul.f32 %v4878_v62, %v2025_v55  ;;  %v2199_v45 = vld [vmem:[#allocation2 + $0x3f] sm:$0x1]  ;;  %v2237_v25 = vld [vmem:[#allocation2 + $0x8] sm:$0x1] }
 0x184   :  { %v2188_v1 = vadd.f32 %v2180_v52, %v2162_v26  ;;  %v2223_v20 = vadd.f32 %v4915_v38, %v2213_v9  ;;  %v2086_v14 = vadd.f32 %v2078_v50, %v2060_v12  ;;  %v2053_v42 = vmul.f32 %v4881_v29, %v2043_v48  ;;  %v2384_v12 = vld [vmem:[#allocation2 + $0x6] sm:$0x1] }
 0x185   :  { %v2079_v31 = vmul.f32 %v4888_v54, %v2069_v10  ;;  %v2163_v18 = vadd.f32 %v2155_v22, %v2137_v56  ;;  %v2182_v44 = vmul.f32 %v4906_v33, %v2172_v0  ;;  %v2208_v62 = vmul.f32 %v4909_v23, %v2198_v3  ;;  %v2333_v56 = vld [vmem:[#allocation2 + $0xc] sm:$0x1] }
 0x186   :  { %v2214_v30 = vadd.f32 %v2206_v28, %v2188_v1  ;;  %2231 = vst [vmem:[#allocation9 + $0x39] sm:$0x1] %v2223_v20  ;;  %v2112_v52 = vadd.f32 %v2104_v36, %v2086_v14  ;;  %v2061_v49 = vadd.f32 %v2053_v42, %v2035_v58  ;;  %v2105_v29 = vmul.f32 %v4891_v27, %v2095_v5  ;;  %v2173_v28 = vld [vmem:[#allocation2 + $0x3e] sm:$0x1]  ;;  %v2359_v14 = vld [vmem:[#allocation2 + $0xd] sm:$0x1] }
 0x187   :  { %v2131_v54 = vmul.f32 %v4894_v34, %v2121_v57  ;;  %v2189_v39 = vadd.f32 %v2181_v32, %v2163_v18  ;;  %v2157_v19 = vmul.f32 %v4901_v41, %v2147_v37  ;;  %v4997_v11 = vstv %s4960_s12  ;;  %v2255_v32 = vld [vmem:[#allocation2 + $0x9] sm:$0x1]  ;;  %v2238_v42 = vld [vmem:[#allocation2 + $0x10] sm:$0x1]  ;;  %s5312_s12 = sld [smem:[#allocation6 + $0x681]] }
 0x188   :  { %v2224_v2 = vadd.f32 %v4915_v38, %v2214_v30  ;;  %v2138_v43 = vadd.f32 %v2130_v51, %v2112_v52  ;;  %v2087_v24 = vadd.f32 %v2079_v31, %v2061_v49  ;;  %v2246_v27 = vmul.f32 %v4997_v11, %v2236_v17  ;;  %v2410_v51 = vld [vmem:[#allocation2 + $0x7] sm:$0x1]  ;;  %v2256_v31 = vld [vmem:[#allocation2 + $0x11] sm:$0x1]  ;;  %v2282_v17 = vld [vmem:[#allocation2 + $0x12] sm:$0x1] }
 0x189   :  { %v5001_v34 = vstv %s4965_s13  ;;  %v2215_v47 = vadd.f32 %v2207_v7, %v2189_v39  ;;  %v5005_v61 = vstv %s4969_s14  ;;  %v5008_v41 = vstv %s4971_s15  ;;  %v2281_v7 = vld [vmem:[#allocation2 + $0xa] sm:$0x1]  ;;  %s5319_s13 = sld [smem:[#allocation6 + $0x682]]  ;;  %s5322_s14 = sld [smem:[#allocation6 + $0x683]] }
 0x18a   :  { %2232 = vst [vmem:[#allocation9 + $0x49] sm:$0x1] %v2224_v2  ;;  %v2264_v21 = vmul.f32 %v5001_v34, %v2254_v46  ;;  %v2164_v60 = vadd.f32 %v2156_v35, %v2138_v43  ;;  %v2113_v63 = vadd.f32 %v2105_v29, %v2087_v24  ;;  %v2290_v53 = vmul.f32 %v5005_v61, %v2280_v59  ;;  %v2411_v46 = vld [vmem:[#allocation2 + $0xf] sm:$0x1]  ;;  %v2308_v2 = vld [vmem:[#allocation2 + $0x13] sm:$0x1] }
 0x18b   :  { %v2316_v22 = vmul.f32 %v5008_v41, %v2306_v15  ;;  %v2225_v40 = vadd.f32 %v4915_v38, %v2215_v47  ;;  %v5014_v13 = vstv %s4977_s16  ;;  %v5017_v6 = vstv %s4979_s17  ;;  %v2334_v43 = vld [vmem:[#allocation2 + $0x14] sm:$0x1]  ;;  %v2360_v24 = vld [vmem:[#allocation2 + $0x15] sm:$0x1]  ;;  %s5324_s15 = sld [smem:[#allocation6 + $0x684]]  ;;  %s5331_s16 = sld [smem:[#allocation6 + $0x685]] }
 0x18c   :  { %v2272_v4 = vadd.f32 %v2264_v21, %v2246_v27  ;;  %v2190_v50 = vadd.f32 %v2182_v44, %v2164_v60  ;;  %v2139_v55 = vadd.f32 %v2131_v54, %v2113_v63  ;;  %v2183_v48 = vmul.f32 %v4906_v33, %v2173_v28  ;;  %v2239_v21 = vld [vmem:[#allocation2 + $0x18] sm:$0x1]  ;;  %v2257_v60 = vld [vmem:[#allocation2 + $0x19] sm:$0x1]  ;;  %v2283_v63 = vld [vmem:[#allocation2 + $0x1a] sm:$0x1] }
 0x18d   :  { %v2209_v26 = vmul.f32 %v4909_v23, %v2199_v45  ;;  %2233 = vst [vmem:[#allocation9 + $0x59] sm:$0x1] %v2225_v40  ;;  %v2342_v9 = vmul.f32 %v5014_v13, %v2332_v16  ;;  %v5023_v36 = vstv %s4986_s18  ;;  %v5026_v0 = vstv %s4988_s19  ;;  %v2307_v23 = vld [vmem:[#allocation2 + $0xb] sm:$0x1]  ;;  %s5338_s17 = sld [smem:[#allocation6 + $0x686]]  ;;  %s5340_s18 = sld [smem:[#allocation6 + $0x687]] }
 0x18e   :  { %v2298_v10 = vadd.f32 %v2290_v53, %v2272_v4  ;;  %v2216_v3 = vadd.f32 %v2208_v62, %v2190_v50  ;;  %v2165_v5 = vadd.f32 %v2157_v19, %v2139_v55  ;;  %v2368_v1 = vmul.f32 %v5017_v6, %v2358_v8  ;;  %v2385_v62 = vld [vmem:[#allocation2 + $0xe] sm:$0x1]  ;;  %v2386_v4 = vld [vmem:[#allocation2 + $0x16] sm:$0x1]  ;;  %v2412_v8 = vld [vmem:[#allocation2 + $0x17] sm:$0x1] }
 0x18f   :  { %v5030_v33 = vstv %s4992_s20  ;;  %v2247_v58 = vmul.f32 %v4997_v11, %v2237_v25  ;;  %v2265_v57 = vmul.f32 %v5001_v34, %v2255_v32  ;;  %v2291_v20 = vmul.f32 %v5005_v61, %v2281_v7  ;;  %v2309_v25 = vld [vmem:[#allocation2 + $0x1b] sm:$0x1]  ;;  %v2335_v32 = vld [vmem:[#allocation2 + $0x1c] sm:$0x1]  ;;  %s5351_s19 = sld [smem:[#allocation7 + $0xd]]  ;;  %s5426_s20 = sld [smem:[#allocation6 + $0x700]] }
 0x190   :  { %v2324_v35 = vadd.f32 %v2316_v22, %v2298_v10  ;;  %v2226_v37 = vadd.f32 %v4915_v38, %v2216_v3  ;;  %v2191_v30 = vadd.f32 %v2183_v48, %v2165_v5  ;;  %v2394_v18 = vmul.f32 %v5023_v36, %v2384_v12  ;;  %v2361_v12 = vld [vmem:[#allocation2 + $0x1d] sm:$0x1] }
 0x191   :  { %v2420_v44 = vmul.f32 %v5026_v0, %v2410_v51  ;;  %v2273_v49 = vadd.f32 %v2265_v57, %v2247_v58  ;;  %v2317_v29 = vmul.f32 %v5008_v41, %v2307_v23  ;;  %v2343_v54 = vmul.f32 %v5014_v13, %v2333_v56  ;;  %v2240_v51 = vld [vmem:[#allocation2 + $0x20] sm:$0x1]  ;;  %v2258_v56 = vld [vmem:[#allocation2 + $0x21] sm:$0x1] }
 0x192   :  { %v2350_v52 = vadd.f32 %v2342_v9, %v2324_v35  ;;  %2234 = vst [vmem:[#allocation9 + $0x69] sm:$0x1] %v2226_v37  ;;  %v2217_v39 = vadd.f32 %v2209_v26, %v2191_v30  ;;  %v2369_v19 = vmul.f32 %v5017_v6, %v2359_v14  ;;  %v2248_v59 = vmul.f32 %v4997_v11, %v2238_v42  ;;  %v2284_v35 = vld [vmem:[#allocation2 + $0x22] sm:$0x1]  ;;  %v2387_v42 = vld [vmem:[#allocation2 + $0x1e] sm:$0x1] }
 0x193   :  { %v2266_v15 = vmul.f32 %v5001_v34, %v2256_v31  ;;  %v2299_v47 = vadd.f32 %v2291_v20, %v2273_v49  ;;  %v2395_v28 = vmul.f32 %v5023_v36, %v2385_v62  ;;  %v2292_v45 = vmul.f32 %v5005_v61, %v2282_v17  ;;  %v2413_v31 = vld [vmem:[#allocation2 + $0x1f] sm:$0x1]  ;;  %v2310_v37 = vld [vmem:[#allocation2 + $0x23] sm:$0x1]  ;;  %v2336_v17 = vld [vmem:[#allocation2 + $0x24] sm:$0x1] }
 0x194   :  { %v2376_v27 = vadd.f32 %v2368_v1, %v2350_v52  ;;  %v2227_v53 = vadd.f32 %v4915_v38, %v2217_v39  ;;  %v2421_v22 = vmul.f32 %v5026_v0, %v2411_v46  ;;  %v2318_v40 = vmul.f32 %v5008_v41, %v2308_v2  ;;  %v2362_v46 = vld [vmem:[#allocation2 + $0x25] sm:$0x1]  ;;  %v2241_v2 = vld [vmem:[#allocation2 + $0x28] sm:$0x1]  ;;  %v2259_v39 = vld [vmem:[#allocation2 + $0x29] sm:$0x1] }
 0x195   :  { %v2274_v16 = vadd.f32 %v2266_v15, %v2248_v59  ;;  %v2325_v55 = vadd.f32 %v2317_v29, %v2299_v47  ;;  %v2344_v48 = vmul.f32 %v5014_v13, %v2334_v43  ;;  %v2370_v26 = vmul.f32 %v5017_v6, %v2360_v24  ;;  %v2285_v24 = vld [vmem:[#allocation2 + $0x2a] sm:$0x1] }
 0x196   :  { %v2402_v50 = vadd.f32 %v2394_v18, %v2376_v27  ;;  %2235 = vst [vmem:[#allocation9 + $0x79] sm:$0x1] %v2227_v53  ;;  %v2249_v10 = vmul.f32 %v4997_v11, %v2239_v21  ;;  %v2267_v38 = vmul.f32 %v5001_v34, %v2257_v60  ;;  %v2293_v9 = vmul.f32 %v5005_v61, %v2283_v63  ;;  %v2388_v60 = vld [vmem:[#allocation2 + $0x26] sm:$0x1]  ;;  %v2311_v63 = vld [vmem:[#allocation2 + $0x2b] sm:$0x1] }
 0x197   :  { %v2300_v7 = vadd.f32 %v2292_v45, %v2274_v16  ;;  %v2351_v5 = vadd.f32 %v2343_v54, %v2325_v55  ;;  %v2396_v1 = vmul.f32 %v5023_v36, %v2386_v4  ;;  %v2422_v23 = vmul.f32 %v5026_v0, %v2412_v8 }
 0x198   :  { %v2428_v3 = vadd.f32 %v2420_v44, %v2402_v50  ;;  %v2275_v57 = vadd.f32 %v2267_v38, %v2249_v10  ;;  %v2319_v20 = vmul.f32 %v5008_v41, %v2309_v25  ;;  %v2345_v14 = vmul.f32 %v5014_v13, %v2335_v32  ;;  %v2363_v25 = vld [vmem:[#allocation2 + $0x2d] sm:$0x1]  ;;  %v2242_v32 = vld [vmem:[#allocation2 + $0x30] sm:$0x1] }
 0x199   :  { %v2326_v58 = vadd.f32 %v2318_v40, %v2300_v7  ;;  %v2377_v18 = vadd.f32 %v2369_v19, %v2351_v5  ;;  %v2371_v44 = vmul.f32 %v5017_v6, %v2361_v12  ;;  %v2250_v62 = vmul.f32 %v4997_v11, %v2240_v51  ;;  %v2414_v40 = vld [vmem:[#allocation2 + $0x27] sm:$0x1] }
 0x19a   :  { %v2438_v30 = vadd.f32 %v5030_v33, %v2428_v3  ;;  %v2301_v49 = vadd.f32 %v2293_v9, %v2275_v57  ;;  %v2268_v29 = vmul.f32 %v5001_v34, %v2258_v56  ;;  %v2294_v54 = vmul.f32 %v5005_v61, %v2284_v35  ;;  %v2260_v9 = vld [vmem:[#allocation2 + $0x31] sm:$0x1]  ;;  %v2415_v56 = vld [vmem:[#allocation2 + $0x2f] sm:$0x1]  ;;  %v2286_v35 = vld [vmem:[#allocation2 + $0x32] sm:$0x1] }
 0x19b   :  { %v2352_v52 = vadd.f32 %v2344_v48, %v2326_v58  ;;  %v2403_v59 = vadd.f32 %v2395_v28, %v2377_v18  ;;  %v2397_v15 = vmul.f32 %v5023_v36, %v2387_v42  ;;  %v2423_v19 = vmul.f32 %v5026_v0, %v2413_v31  ;;  %v2312_v42 = vld [vmem:[#allocation2 + $0x33] sm:$0x1]  ;;  %v2338_v31 = vld [vmem:[#allocation2 + $0x34] sm:$0x1] }
 0x19c   :  { %2446 = vst [vmem:[#allocation9 + $0xa] sm:$0x1] %v2438_v30  ;;  %v2320_v43 = vmul.f32 %v5008_v41, %v2310_v37  ;;  %v2327_v47 = vadd.f32 %v2319_v20, %v2301_v49  ;;  %v2276_v45 = vadd.f32 %v2268_v29, %v2250_v62  ;;  %v2346_v21 = vmul.f32 %v5014_v13, %v2336_v17  ;;  %v2243_v62 = vld [vmem:[#allocation2 + $0x38] sm:$0x1] }
 0x19d   :  { %v2378_v27 = vadd.f32 %v2370_v26, %v2352_v52  ;;  %v2429_v53 = vadd.f32 %v2421_v22, %v2403_v59  ;;  %v2372_v16 = vmul.f32 %v5017_v6, %v2362_v46  ;;  %v2251_v28 = vmul.f32 %v4997_v11, %v2241_v2  ;;  %v2337_v26 = vld [vmem:[#allocation2 + $0x2c] sm:$0x1] }
 0x19e   :  { %v2269_v4 = vmul.f32 %v5001_v34, %v2259_v39  ;;  %v2353_v50 = vadd.f32 %v2345_v14, %v2327_v47  ;;  %v2302_v55 = vadd.f32 %v2294_v54, %v2276_v45  ;;  %v2295_v48 = vmul.f32 %v5005_v61, %v2285_v24  ;;  %v2261_v54 = vld [vmem:[#allocation2 + $0x39] sm:$0x1]  ;;  %v2287_v24 = vld [vmem:[#allocation2 + $0x3a] sm:$0x1] }
 0x19f   :  { %v2404_v8 = vadd.f32 %v2396_v1, %v2378_v27  ;;  %v2439_v7 = vadd.f32 %v5030_v33, %v2429_v53  ;;  %v2398_v10 = vmul.f32 %v5023_v36, %v2388_v60  ;;  %v2321_v38 = vmul.f32 %v5008_v41, %v2311_v63  ;;  %v2389_v1 = vld [vmem:[#allocation2 + $0x2e] sm:$0x1]  ;;  %v2313_v60 = vld [vmem:[#allocation2 + $0x3b] sm:$0x1] }
 0x1a0   :  { %v2277_v22 = vadd.f32 %v2269_v4, %v2251_v28  ;;  %v2379_v51 = vadd.f32 %v2371_v44, %v2353_v50  ;;  %v2328_v3 = vadd.f32 %v2320_v43, %v2302_v55  ;;  %v2424_v5 = vmul.f32 %v5026_v0, %v2414_v40  ;;  %v2364_v44 = vld [vmem:[#allocation2 + $0x35] sm:$0x1]  ;;  %v2416_v43 = vld [vmem:[#allocation2 + $0x37] sm:$0x1]  ;;  %v2339_v40 = vld [vmem:[#allocation2 + $0x3c] sm:$0x1] }
 0x1a1   :  { %v2430_v12 = vadd.f32 %v2422_v23, %v2404_v8  ;;  %2447 = vst [vmem:[#allocation9 + $0x1a] sm:$0x1] %v2439_v7  ;;  %v2347_v57 = vmul.f32 %v5014_v13, %v2337_v26  ;;  %v2373_v20 = vmul.f32 %v5017_v6, %v2363_v25  ;;  %v2252_v14 = vmul.f32 %v4997_v11, %v2242_v32  ;;  %v2365_v28 = vld [vmem:[#allocation2 + $0x3d] sm:$0x1]  ;;  %v2454_v55 = vld [vmem:[#allocation2] sm:$0x1] }
 0x1a2   :  { %v2303_v58 = vadd.f32 %v2295_v48, %v2277_v22  ;;  %v2405_v37 = vadd.f32 %v2397_v15, %v2379_v51  ;;  %v2354_v30 = vadd.f32 %v2346_v21, %v2328_v3  ;;  %v2270_v18 = vmul.f32 %v5001_v34, %v2260_v9  ;;  %v2390_v15 = vld [vmem:[#allocation2 + $0x36] sm:$0x1]  ;;  %v2472_v22 = vld [vmem:[#allocation2 + $0x1] sm:$0x1] }
 0x1a3   :  { %v2440_v23 = vadd.f32 %v5030_v33, %v2430_v12  ;;  %v2399_v52 = vmul.f32 %v5023_v36, %v2389_v1  ;;  %v2425_v49 = vmul.f32 %v5026_v0, %v2415_v56  ;;  %v2296_v29 = vmul.f32 %v5005_v61, %v2286_v35 }
 0x1a4   :  { %v2329_v17 = vadd.f32 %v2321_v38, %v2303_v58  ;;  %v2431_v46 = vadd.f32 %v2423_v19, %v2405_v37  ;;  %v2380_v2 = vadd.f32 %v2372_v16, %v2354_v30  ;;  %v2278_v39 = vadd.f32 %v2270_v18, %v2252_v14  ;;  %v2498_v38 = vld [vmem:[#allocation2 + $0x2] sm:$0x1] }
 0x1a5   :  { %2448 = vst [vmem:[#allocation9 + $0x2a] sm:$0x1] %v2440_v23  ;;  %v2322_v59 = vmul.f32 %v5008_v41, %v2312_v42  ;;  %v2348_v47 = vmul.f32 %v5014_v13, %v2338_v31  ;;  %v2374_v45 = vmul.f32 %v5017_v6, %v2364_v44  ;;  %v2253_v21 = vmul.f32 %v4997_v11, %v2243_v62  ;;  %v2550_v42 = vld [vmem:[#allocation2 + $0x4] sm:$0x1]  ;;  %v2576_v31 = vld [vmem:[#allocation2 + $0x5] sm:$0x1] }
 0x1a6   :  { %v2355_v27 = vadd.f32 %v2347_v57, %v2329_v17  ;;  %v2441_v19 = vadd.f32 %v5030_v33, %v2431_v46  ;;  %v2406_v63 = vadd.f32 %v2398_v10, %v2380_v2  ;;  %v2304_v53 = vadd.f32 %v2296_v29, %v2278_v39  ;;  %v2417_v57 = vld [vmem:[#allocation2 + $0x3f] sm:$0x1]  ;;  %v2473_v29 = vld [vmem:[#allocation2 + $0x9] sm:$0x1]  ;;  %v2602_v39 = vld [vmem:[#allocation2 + $0x6] sm:$0x1] }
 0x1a7   :  { %v2271_v16 = vmul.f32 %v5001_v34, %v2261_v54  ;;  %v2400_v8 = vmul.f32 %v5023_v36, %v2390_v15  ;;  %v2426_v50 = vmul.f32 %v5026_v0, %v2416_v43  ;;  %v2297_v11 = vmul.f32 %v5005_v61, %v2287_v24  ;;  %v2499_v54 = vld [vmem:[#allocation2 + $0xa] sm:$0x1] }
 0x1a8   :  { %v2381_v4 = vadd.f32 %v2373_v20, %v2355_v27  ;;  %2449 = vst [vmem:[#allocation9 + $0x3a] sm:$0x1] %v2441_v19  ;;  %v2432_v48 = vadd.f32 %v2424_v5, %v2406_v63  ;;  %v2330_v26 = vadd.f32 %v2322_v59, %v2304_v53  ;;  %v2323_v34 = vmul.f32 %v5008_v41, %v2313_v60  ;;  %v2391_v41 = vld [vmem:[#allocation2 + $0x3e] sm:$0x1]  ;;  %v2628_v27 = vld [vmem:[#allocation2 + $0x7] sm:$0x1] }
 0x1a9   :  { %v2279_v25 = vadd.f32 %v2271_v16, %v2253_v21  ;;  %v2349_v7 = vmul.f32 %v5014_v13, %v2339_v40  ;;  %v2375_v10 = vmul.f32 %v5017_v6, %v2365_v28  ;;  %v5111_v61 = vstv %s5077_s21  ;;  %v2524_v6 = vld [vmem:[#allocation2 + $0x3] sm:$0x1]  ;;  %v2551_v21 = vld [vmem:[#allocation2 + $0xc] sm:$0x1]  ;;  %v2577_v53 = vld [vmem:[#allocation2 + $0xd] sm:$0x1] }
 0x1aa   :  { %v2407_v32 = vadd.f32 %v2399_v52, %v2381_v4  ;;  %v2442_v9 = vadd.f32 %v5030_v33, %v2432_v48  ;;  %v2356_v12 = vadd.f32 %v2348_v47, %v2330_v26  ;;  %v2464_v3 = vmul.f32 %v5111_v61, %v2454_v55  ;;  %v2456_v16 = vld [vmem:[#allocation2 + $0x10] sm:$0x1]  ;;  %v2500_v55 = vld [vmem:[#allocation2 + $0x12] sm:$0x1]  ;;  %s5433_s21 = sld [smem:[#allocation6 + $0x701]] }
 0x1ab   :  { %v2305_v51 = vadd.f32 %v2297_v11, %v2279_v25  ;;  %v5118_v1 = vstv %s5081_s22  ;;  %v5121_v13 = vstv %s5086_s23  ;;  %v5124_v56 = vstv %s5088_s24  ;;  %v2474_v11 = vld [vmem:[#allocation2 + $0x11] sm:$0x1]  ;;  %s5437_s22 = sld [smem:[#allocation6 + $0x702]]  ;;  %s5439_s23 = sld [smem:[#allocation6 + $0x703]] }
 0x1ac   :  { %v2433_v5 = vadd.f32 %v2425_v49, %v2407_v32  ;;  %2450 = vst [vmem:[#allocation9 + $0x4a] sm:$0x1] %v2442_v9  ;;  %v2382_v35 = vadd.f32 %v2374_v45, %v2356_v12  ;;  %v2482_v20 = vmul.f32 %v5118_v1, %v2472_v22  ;;  %v2508_v14 = vmul.f32 %v5121_v13, %v2498_v38  ;;  %v2455_v49 = vld [vmem:[#allocation2 + $0x8] sm:$0x1]  ;;  %v2525_v45 = vld [vmem:[#allocation2 + $0xb] sm:$0x1] }
 0x1ad   :  { %v2331_v58 = vadd.f32 %v2323_v34, %v2305_v51  ;;  %v2401_v37 = vmul.f32 %v5023_v36, %v2391_v41  ;;  %v5131_v30 = vstv %s5094_s26  ;;  %v5134_v18 = vstv %s5096_s27  ;;  %v2629_v32 = vld [vmem:[#allocation2 + $0xf] sm:$0x1]  ;;  %v2552_v12 = vld [vmem:[#allocation2 + $0x14] sm:$0x1]  ;;  %v2578_v51 = vld [vmem:[#allocation2 + $0x15] sm:$0x1] }
 0x1ae   :  { %v2443_v23 = vadd.f32 %v5030_v33, %v2433_v5  ;;  %v2408_v44 = vadd.f32 %v2400_v8, %v2382_v35  ;;  %v2490_v17 = vadd.f32 %v2482_v20, %v2464_v3  ;;  %v2534_v52 = vmul.f32 %v5124_v56, %v2524_v6  ;;  %v2457_v35 = vld [vmem:[#allocation2 + $0x18] sm:$0x1]  ;;  %s5445_s24 = sld [smem:[#allocation6 + $0x704]]  ;;  %s5447_s26 = sld [smem:[#allocation6 + $0x705]] }
 0x1af   :  { %v2357_v62 = vadd.f32 %v2349_v7, %v2331_v58  ;;  %v2427_v46 = vmul.f32 %v5026_v0, %v2417_v57  ;;  %v2560_v2 = vmul.f32 %v5131_v30, %v2550_v42  ;;  %v2586_v36 = vmul.f32 %v5134_v18, %v2576_v31  ;;  %v2526_v7 = vld [vmem:[#allocation2 + $0x13] sm:$0x1]  ;;  %v2475_v58 = vld [vmem:[#allocation2 + $0x19] sm:$0x1]  ;;  %v2501_v57 = vld [vmem:[#allocation2 + $0x1a] sm:$0x1] }
 0x1b0   :  { %2451 = vst [vmem:[#allocation9 + $0x5a] sm:$0x1] %v2443_v23  ;;  %v5141_v59 = vstv %s5103_s28  ;;  %v2434_v15 = vadd.f32 %v2426_v50, %v2408_v44  ;;  %v2516_v24 = vadd.f32 %v2508_v14, %v2490_v17  ;;  %v5144_v47 = vstv %s5106_s29  ;;  %v2603_v50 = vld [vmem:[#allocation2 + $0xe] sm:$0x1]  ;;  %v2604_v23 = vld [vmem:[#allocation2 + $0x16] sm:$0x1] }
 0x1b1   :  { %v2383_v43 = vadd.f32 %v2375_v10, %v2357_v62  ;;  %v5147_v60 = vstv %s5113_s30  ;;  %v2465_v19 = vmul.f32 %v5111_v61, %v2455_v49  ;;  %v2483_v0 = vmul.f32 %v5118_v1, %v2473_v29  ;;  %v2527_v49 = vld [vmem:[#allocation2 + $0x1b] sm:$0x1]  ;;  %v2553_v29 = vld [vmem:[#allocation2 + $0x1c] sm:$0x1]  ;;  %s5454_s27 = sld [smem:[#allocation6 + $0x706]]  ;;  %s5456_s28 = sld [smem:[#allocation6 + $0x707]] }
 0x1b2   :  { %v2509_v63 = vmul.f32 %v5121_v13, %v2499_v54  ;;  %v2444_v40 = vadd.f32 %v5030_v33, %v2434_v15  ;;  %v2542_v4 = vadd.f32 %v2534_v52, %v2516_v24  ;;  %v2612_v8 = vmul.f32 %v5141_v59, %v2602_v39  ;;  %v2458_v39 = vld [vmem:[#allocation2 + $0x20] sm:$0x1]  ;;  %s5460_s29 = sld [smem:[#allocation7 + $0xe]]  ;;  %s5545_s30 = sld [smem:[#allocation6 + $0x780]] }
 0x1b3   :  { %v2409_v28 = vadd.f32 %v2401_v37, %v2383_v43  ;;  %v2638_v48 = vmul.f32 %v5144_v47, %v2628_v27  ;;  %v2491_v26 = vadd.f32 %v2483_v0, %v2465_v19  ;;  %v2535_v25 = vmul.f32 %v5124_v56, %v2525_v45  ;;  %v2630_v37 = vld [vmem:[#allocation2 + $0x17] sm:$0x1]  ;;  %v2476_v45 = vld [vmem:[#allocation2 + $0x21] sm:$0x1] }
 0x1b4   :  { %v2561_v34 = vmul.f32 %v5131_v30, %v2551_v21  ;;  %2452 = vst [vmem:[#allocation9 + $0x6a] sm:$0x1] %v2444_v40  ;;  %v2568_v22 = vadd.f32 %v2560_v2, %v2542_v4  ;;  %v2587_v38 = vmul.f32 %v5134_v18, %v2577_v53  ;;  %v2466_v9 = vmul.f32 %v5111_v61, %v2456_v16  ;;  %v2502_v21 = vld [vmem:[#allocation2 + $0x22] sm:$0x1]  ;;  %v2605_v16 = vld [vmem:[#allocation2 + $0x1e] sm:$0x1] }
 0x1b5   :  { %v2435_v10 = vadd.f32 %v2427_v46, %v2409_v28  ;;  %v2517_v41 = vadd.f32 %v2509_v63, %v2491_v26  ;;  %v2613_v3 = vmul.f32 %v5141_v59, %v2603_v50  ;;  %v2484_v5 = vmul.f32 %v5118_v1, %v2474_v11  ;;  %v2631_v40 = vld [vmem:[#allocation2 + $0x1f] sm:$0x1]  ;;  %v2528_v11 = vld [vmem:[#allocation2 + $0x23] sm:$0x1] }
 0x1b6   :  { %v2510_v6 = vmul.f32 %v5121_v13, %v2500_v55  ;;  %v2594_v14 = vadd.f32 %v2586_v36, %v2568_v22  ;;  %v2639_v42 = vmul.f32 %v5144_v47, %v2629_v32  ;;  %v2536_v31 = vmul.f32 %v5124_v56, %v2526_v7  ;;  %v2579_v36 = vld [vmem:[#allocation2 + $0x1d] sm:$0x1]  ;;  %v2554_v55 = vld [vmem:[#allocation2 + $0x24] sm:$0x1]  ;;  %v2580_v32 = vld [vmem:[#allocation2 + $0x25] sm:$0x1] }
 0x1b7   :  { %v2445_v20 = vadd.f32 %v5030_v33, %v2435_v10  ;;  %v2543_v44 = vadd.f32 %v2535_v25, %v2517_v41  ;;  %v2492_v62 = vadd.f32 %v2484_v5, %v2466_v9  ;;  %v2562_v17 = vmul.f32 %v5131_v30, %v2552_v12  ;;  %v2459_v7 = vld [vmem:[#allocation2 + $0x28] sm:$0x1]  ;;  %v2477_v12 = vld [vmem:[#allocation2 + $0x29] sm:$0x1] }
 0x1b8   :  { %v2588_v52 = vmul.f32 %v5134_v18, %v2578_v51  ;;  %v2620_v54 = vadd.f32 %v2612_v8, %v2594_v14  ;;  %v2467_v46 = vmul.f32 %v5111_v61, %v2457_v35  ;;  %v2485_v33 = vmul.f32 %v5118_v1, %v2475_v58  ;;  %v2503_v51 = vld [vmem:[#allocation2 + $0x2a] sm:$0x1]  ;;  %v2606_v58 = vld [vmem:[#allocation2 + $0x26] sm:$0x1] }
 0x1b9   :  { %2453 = vst [vmem:[#allocation9 + $0x7a] sm:$0x1] %v2445_v20  ;;  %v2511_v2 = vmul.f32 %v5121_v13, %v2501_v57  ;;  %v2569_v15 = vadd.f32 %v2561_v34, %v2543_v44  ;;  %v2518_v43 = vadd.f32 %v2510_v6, %v2492_v62  ;;  %v2614_v24 = vmul.f32 %v5141_v59, %v2604_v23  ;;  %v2632_v57 = vld [vmem:[#allocation2 + $0x27] sm:$0x1]  ;;  %v2529_v23 = vld [vmem:[#allocation2 + $0x2b] sm:$0x1] }
 0x1ba   :  { %v2640_v27 = vmul.f32 %v5144_v47, %v2630_v37  ;;  %v2646_v19 = vadd.f32 %v2638_v48, %v2620_v54  ;;  %v2493_v0 = vadd.f32 %v2485_v33, %v2467_v46  ;;  %v2537_v63 = vmul.f32 %v5124_v56, %v2527_v49  ;;  %v2555_v49 = vld [vmem:[#allocation2 + $0x2c] sm:$0x1]  ;;  %v2460_v54 = vld [vmem:[#allocation2 + $0x30] sm:$0x1] }
 0x1bb   :  { %v2563_v53 = vmul.f32 %v5131_v30, %v2553_v29  ;;  %v2595_v28 = vadd.f32 %v2587_v38, %v2569_v15  ;;  %v2544_v4 = vadd.f32 %v2536_v31, %v2518_v43  ;;  %v2589_v8 = vmul.f32 %v5134_v18, %v2579_v36  ;;  %v2581_v29 = vld [vmem:[#allocation2 + $0x2d] sm:$0x1] }
 0x1bc   :  { %v2468_v50 = vmul.f32 %v5111_v61, %v2458_v39  ;;  %v2656_v26 = vadd.f32 %v5147_v60, %v2646_v19  ;;  %v2519_v25 = vadd.f32 %v2511_v2, %v2493_v0  ;;  %v2486_v48 = vmul.f32 %v5118_v1, %v2476_v45  ;;  %v2478_v2 = vld [vmem:[#allocation2 + $0x31] sm:$0x1]  ;;  %v2607_v45 = vld [vmem:[#allocation2 + $0x2e] sm:$0x1]  ;;  %v2530_v19 = vld [vmem:[#allocation2 + $0x33] sm:$0x1] }
 0x1bd   :  { %v2512_v34 = vmul.f32 %v5121_v13, %v2502_v21  ;;  %v2621_v10 = vadd.f32 %v2613_v3, %v2595_v28  ;;  %v2570_v22 = vadd.f32 %v2562_v17, %v2544_v4  ;;  %v2615_v38 = vmul.f32 %v5141_v59, %v2605_v16  ;;  %v2504_v21 = vld [vmem:[#allocation2 + $0x32] sm:$0x1] }
 0x1be   :  { %v2641_v9 = vmul.f32 %v5144_v47, %v2631_v40  ;;  %2664 = vst [vmem:[#allocation9 + $0xb] sm:$0x1] %v2656_v26  ;;  %v2545_v41 = vadd.f32 %v2537_v63, %v2519_v25  ;;  %v2494_v5 = vadd.f32 %v2486_v48, %v2468_v50  ;;  %v2538_v6 = vmul.f32 %v5124_v56, %v2528_v11  ;;  %v2556_v40 = vld [vmem:[#allocation2 + $0x34] sm:$0x1]  ;;  %v2582_v11 = vld [vmem:[#allocation2 + $0x35] sm:$0x1] }
 0x1bf   :  { %v2564_v35 = vmul.f32 %v5131_v30, %v2554_v55  ;;  %v2647_v20 = vadd.f32 %v2639_v42, %v2621_v10  ;;  %v2596_v14 = vadd.f32 %v2588_v52, %v2570_v22  ;;  %v2590_v3 = vmul.f32 %v5134_v18, %v2580_v32  ;;  %v2461_v55 = vld [vmem:[#allocation2 + $0x38] sm:$0x1] }
 0x1c0   :  { %v2469_v31 = vmul.f32 %v5111_v61, %v2459_v7  ;;  %v2571_v37 = vadd.f32 %v2563_v53, %v2545_v41  ;;  %v2520_v44 = vadd.f32 %v2512_v34, %v2494_v5  ;;  %v2487_v62 = vmul.f32 %v5118_v1, %v2477_v12  ;;  %v2608_v34 = vld [vmem:[#allocation2 + $0x36] sm:$0x1]  ;;  %v2479_v12 = vld [vmem:[#allocation2 + $0x39] sm:$0x1] }
 0x1c1   :  { %v2513_v17 = vmul.f32 %v5121_v13, %v2503_v51  ;;  %v2657_v46 = vadd.f32 %v5147_v60, %v2647_v20  ;;  %v2622_v33 = vadd.f32 %v2614_v24, %v2596_v14  ;;  %v2616_v42 = vmul.f32 %v5141_v59, %v2606_v58  ;;  %v2633_v24 = vld [vmem:[#allocation2 + $0x2f] sm:$0x1]  ;;  %v2505_v51 = vld [vmem:[#allocation2 + $0x3a] sm:$0x1]  ;;  %v2531_v58 = vld [vmem:[#allocation2 + $0x3b] sm:$0x1] }
 0x1c2   :  { %v2642_v52 = vmul.f32 %v5144_v47, %v2632_v57  ;;  %v2597_v36 = vadd.f32 %v2589_v8, %v2571_v37  ;;  %v2546_v39 = vadd.f32 %v2538_v6, %v2520_v44  ;;  %v2495_v15 = vadd.f32 %v2487_v62, %v2469_v31  ;;  %v2583_v31 = vld [vmem:[#allocation2 + $0x3d] sm:$0x1]  ;;  %v2672_v62 = vld [vmem:[#allocation2] sm:$0x1] }
 0x1c3   :  { %v2539_v43 = vmul.f32 %v5124_v56, %v2529_v23  ;;  %2665 = vst [vmem:[#allocation9 + $0x1b] sm:$0x1] %v2657_v46  ;;  %v2648_v0 = vadd.f32 %v2640_v27, %v2622_v33  ;;  %v2565_v63 = vmul.f32 %v5131_v30, %v2555_v49  ;;  %v2591_v53 = vmul.f32 %v5134_v18, %v2581_v29 }
 0x1c4   :  { %v2470_v16 = vmul.f32 %v5111_v61, %v2460_v54  ;;  %v2623_v28 = vadd.f32 %v2615_v38, %v2597_v36  ;;  %v2572_v4 = vadd.f32 %v2564_v35, %v2546_v39  ;;  %v2521_v8 = vadd.f32 %v2513_v17, %v2495_v15  ;;  %v2634_v38 = vld [vmem:[#allocation2 + $0x37] sm:$0x1]  ;;  %v2609_v15 = vld [vmem:[#allocation2 + $0x3e] sm:$0x1] }
 0x1c5   :  { %v2488_v50 = vmul.f32 %v5118_v1, %v2478_v2  ;;  %v2658_v27 = vadd.f32 %v5147_v60, %v2648_v0  ;;  %v2617_v26 = vmul.f32 %v5141_v59, %v2607_v45  ;;  %v2514_v25 = vmul.f32 %v5121_v13, %v2504_v21  ;;  %v2716_v2 = vld [vmem:[#allocation2 + $0x2] sm:$0x1] }
 0x1c6   :  { %v2540_v48 = vmul.f32 %v5124_v56, %v2530_v19  ;;  %v2649_v32 = vadd.f32 %v2641_v9, %v2623_v28  ;;  %v2598_v7 = vadd.f32 %v2590_v3, %v2572_v4  ;;  %v2547_v10 = vadd.f32 %v2539_v43, %v2521_v8  ;;  %v2557_v3 = vld [vmem:[#allocation2 + $0x3c] sm:$0x1]  ;;  %v2768_v28 = vld [vmem:[#allocation2 + $0x4] sm:$0x1]  ;;  %v2794_v8 = vld [vmem:[#allocation2 + $0x5] sm:$0x1] }
 0x1c7   :  { %v2496_v22 = vadd.f32 %v2488_v50, %v2470_v16  ;;  %2666 = vst [vmem:[#allocation9 + $0x2b] sm:$0x1] %v2658_v27  ;;  %v2643_v41 = vmul.f32 %v5144_v47, %v2633_v24  ;;  %v2566_v5 = vmul.f32 %v5131_v30, %v2556_v40  ;;  %v2592_v6 = vmul.f32 %v5134_v18, %v2582_v11 }
 0x1c8   :  { %v2471_v35 = vmul.f32 %v5111_v61, %v2461_v55  ;;  %v2659_v9 = vadd.f32 %v5147_v60, %v2649_v32  ;;  %v2624_v57 = vadd.f32 %v2616_v42, %v2598_v7  ;;  %v2573_v20 = vadd.f32 %v2565_v63, %v2547_v10  ;;  %v2690_v42 = vld [vmem:[#allocation2 + $0x1] sm:$0x1]  ;;  %v2635_v63 = vld [vmem:[#allocation2 + $0x3f] sm:$0x1]  ;;  %v2846_v10 = vld [vmem:[#allocation2 + $0x7] sm:$0x1] }
 0x1c9   :  { %v2522_v14 = vadd.f32 %v2514_v25, %v2496_v22  ;;  %v2618_v23 = vmul.f32 %v5141_v59, %v2608_v34  ;;  %v2644_v37 = vmul.f32 %v5144_v47, %v2634_v38  ;;  %v2489_v44 = vmul.f32 %v5118_v1, %v2479_v12  ;;  %v2820_v25 = vld [vmem:[#allocation2 + $0x6] sm:$0x1]  ;;  %v2691_v34 = vld [vmem:[#allocation2 + $0x9] sm:$0x1]  ;;  %v2717_v38 = vld [vmem:[#allocation2 + $0xa] sm:$0x1] }
 0x1ca   :  { %v2515_v61 = vmul.f32 %v5121_v13, %v2505_v51  ;;  %2667 = vst [vmem:[#allocation9 + $0x3b] sm:$0x1] %v2659_v9  ;;  %v2650_v17 = vadd.f32 %v2642_v52, %v2624_v57  ;;  %v2599_v49 = vadd.f32 %v2591_v53, %v2573_v20  ;;  %v2541_v54 = vmul.f32 %v5124_v56, %v2531_v58  ;;  %v2769_v57 = vld [vmem:[#allocation2 + $0xc] sm:$0x1]  ;;  %v2795_v20 = vld [vmem:[#allocation2 + $0xd] sm:$0x1] }
 0x1cb   :  { %v2548_v29 = vadd.f32 %v2540_v48, %v2522_v14  ;;  %v2497_v46 = vadd.f32 %v2489_v44, %v2471_v35  ;;  %v2567_v33 = vmul.f32 %v5131_v30, %v2557_v3  ;;  %v2593_v1 = vmul.f32 %v5134_v18, %v2583_v31  ;;  %v2742_v30 = vld [vmem:[#allocation2 + $0x3] sm:$0x1]  ;;  %v2673_v48 = vld [vmem:[#allocation2 + $0x8] sm:$0x1]  ;;  %v2674_v14 = vld [vmem:[#allocation2 + $0x10] sm:$0x1] }
 0x1cc   :  { %v5228_v13 = vstv %s5194_s4  ;;  %v2660_v36 = vadd.f32 %v5147_v60, %v2650_v17  ;;  %v2625_v39 = vadd.f32 %v2617_v26, %v2599_v49  ;;  %v5233_v56 = vstv %s5197_s5  ;;  %v2692_v44 = vld [vmem:[#allocation2 + $0x11] sm:$0x1]  ;;  %s5549_s4 = sld [smem:[#allocation6 + $0x781]]  ;;  %s5554_s5 = sld [smem:[#allocation6 + $0x782]] }
 0x1cd   :  { %v2574_v52 = vadd.f32 %v2566_v5, %v2548_v29  ;;  %v2682_v43 = vmul.f32 %v5228_v13, %v2672_v62  ;;  %v2523_v45 = vadd.f32 %v2515_v61, %v2497_v46  ;;  %v5236_v21 = vstv %s5203_s6  ;;  %v2718_v61 = vld [vmem:[#allocation2 + $0x12] sm:$0x1]  ;;  %v2847_v46 = vld [vmem:[#allocation2 + $0xf] sm:$0x1]  ;;  %s5556_s6 = sld [smem:[#allocation6 + $0x783]] }
 0x1ce   :  { %v5239_v18 = vstv %s5205_s0  ;;  %2668 = vst [vmem:[#allocation9 + $0x4b] sm:$0x1] %v2660_v36  ;;  %v2651_v19 = vadd.f32 %v2643_v41, %v2625_v39  ;;  %v2700_v53 = vmul.f32 %v5233_v56, %v2690_v42  ;;  %v2726_v24 = vmul.f32 %v5236_v21, %v2716_v2  ;;  %v2770_v39 = vld [vmem:[#allocation2 + $0x14] sm:$0x1]  ;;  %s5562_s0 = sld [smem:[#allocation6 + $0x784]] }
 0x1cf   :  { %v2600_v0 = vadd.f32 %v2592_v6, %v2574_v52  ;;  %v2549_v16 = vadd.f32 %v2541_v54, %v2523_v45  ;;  %v2619_v40 = vmul.f32 %v5141_v59, %v2609_v15  ;;  %v5247_v4 = vstv %s5211_s7  ;;  %v2743_v6 = vld [vmem:[#allocation2 + $0xb] sm:$0x1]  ;;  %v2821_v54 = vld [vmem:[#allocation2 + $0xe] sm:$0x1]  ;;  %s5566_s7 = sld [smem:[#allocation6 + $0x785]] }
 0x1d0   :  { %v5250_v50 = vstv %s5213_s8  ;;  %v2661_v11 = vadd.f32 %v5147_v60, %v2651_v19  ;;  %v2708_v27 = vadd.f32 %v2700_v53, %v2682_v43  ;;  %v2752_v26 = vmul.f32 %v5239_v18, %v2742_v30  ;;  %v2796_v30 = vld [vmem:[#allocation2 + $0x15] sm:$0x1]  ;;  %v2675_v19 = vld [vmem:[#allocation2 + $0x18] sm:$0x1]  ;;  %s5571_s8 = sld [smem:[#allocation6 + $0x786]] }
 0x1d1   :  { %v2626_v55 = vadd.f32 %v2618_v23, %v2600_v0  ;;  %v2575_v32 = vadd.f32 %v2567_v33, %v2549_v16  ;;  %v2645_v7 = vmul.f32 %v5144_v47, %v2635_v63  ;;  %v5256_v59 = vstv %s5220_s2  ;;  %v2744_v33 = vld [vmem:[#allocation2 + $0x13] sm:$0x1]  ;;  %v2693_v0 = vld [vmem:[#allocation2 + $0x19] sm:$0x1]  ;;  %s5574_s2 = sld [smem:[#allocation6 + $0x787]] }
 0x1d2   :  { %v5259_v22 = vstv %s5222_s9  ;;  %2669 = vst [vmem:[#allocation9 + $0x5b] sm:$0x1] %v2661_v11  ;;  %v2734_v51 = vadd.f32 %v2726_v24, %v2708_v27  ;;  %v2778_v41 = vmul.f32 %v5247_v4, %v2768_v28  ;;  %v2804_v5 = vmul.f32 %v5250_v50, %v2794_v8  ;;  %v2719_v28 = vld [vmem:[#allocation2 + $0x1a] sm:$0x1]  ;;  %s5583_s9 = sld [smem:[#allocation7 + $0xf]] }
 0x1d3   :  { %v2652_v12 = vadd.f32 %v2644_v37, %v2626_v55  ;;  %v2601_v35 = vadd.f32 %v2593_v1, %v2575_v32  ;;  %v2830_v58 = vmul.f32 %v5256_v59, %v2820_v25  ;;  %v2683_v47 = vmul.f32 %v5228_v13, %v2673_v48  ;;  %v2745_v25 = vld [vmem:[#allocation2 + $0x1b] sm:$0x1] }
 0x1d4   :  { %v2701_v9 = vmul.f32 %v5233_v56, %v2691_v34  ;;  %v2760_v31 = vadd.f32 %v2752_v26, %v2734_v51  ;;  %v2856_v23 = vmul.f32 %v5259_v22, %v2846_v10  ;;  %v2727_v37 = vmul.f32 %v5236_v21, %v2717_v38  ;;  %v2848_v26 = vld [vmem:[#allocation2 + $0x17] sm:$0x1]  ;;  %v2771_v10 = vld [vmem:[#allocation2 + $0x1c] sm:$0x1]  ;;  %v2797_v38 = vld [vmem:[#allocation2 + $0x1d] sm:$0x1] }
 0x1d5   :  { %v2662_v3 = vadd.f32 %v5147_v60, %v2652_v12  ;;  %v2627_v62 = vadd.f32 %v2619_v40, %v2601_v35  ;;  %v5270_v17 = vstv %s5241_s10  ;;  %v2753_v29 = vmul.f32 %v5239_v18, %v2743_v6  ;;  %v2822_v40 = vld [vmem:[#allocation2 + $0x16] sm:$0x1]  ;;  %v2694_v6 = vld [vmem:[#allocation2 + $0x21] sm:$0x1]  ;;  %s3792_s10 = smov [#allocation9]  }
 0x1d6   :  { %v2709_v49 = vadd.f32 %v2701_v9, %v2683_v47  ;;  %v2786_v1 = vadd.f32 %v2778_v41, %v2760_v31  ;;  %v2779_v42 = vmul.f32 %v5247_v4, %v2769_v57  ;;  %v2805_v2 = vmul.f32 %v5250_v50, %v2795_v20  ;;  %v2823_v57 = vld [vmem:[#allocation2 + $0x1e] sm:$0x1]  ;;  %v2720_v20 = vld [vmem:[#allocation2 + $0x22] sm:$0x1] }
 0x1d7   :  { %2670 = vst [vmem:[#allocation9 + $0x6b] sm:$0x1] %v2662_v3  ;;  %v2684_v36 = vmul.f32 %v5228_v13, %v2674_v14  ;;  %v2653_v52 = vadd.f32 %v2645_v7, %v2627_v62  ;;  %v2702_v43 = vmul.f32 %v5233_v56, %v2692_v44  ;;  %v2728_v45 = vmul.f32 %v5236_v21, %v2718_v61  ;;  %v2849_v44 = vld [vmem:[#allocation2 + $0x1f] sm:$0x1]  ;;  %v2746_v61 = vld [vmem:[#allocation2 + $0x23] sm:$0x1] }
 0x1d8   :  { %v2735_v15 = vadd.f32 %v2727_v37, %v2709_v49  ;;  %v2812_v63 = vadd.f32 %v2804_v5, %v2786_v1  ;;  %v2831_v53 = vmul.f32 %v5256_v59, %v2821_v54  ;;  %v2857_v24 = vmul.f32 %v5259_v22, %v2847_v46  ;;  %v2676_v5 = vld [vmem:[#allocation2 + $0x20] sm:$0x1]  ;;  %v2772_v54 = vld [vmem:[#allocation2 + $0x24] sm:$0x1]  ;;  %v2798_v46 = vld [vmem:[#allocation2 + $0x25] sm:$0x1] }
 0x1d9   :  { %v2754_v16 = vmul.f32 %v5239_v18, %v2744_v33  ;;  %v2663_v8 = vadd.f32 %v5147_v60, %v2653_v52  ;;  %v2710_v55 = vadd.f32 %v2702_v43, %v2684_v36  ;;  %v2780_v27 = vmul.f32 %v5247_v4, %v2770_v39  ;;  %v2677_v36 = vld [vmem:[#allocation2 + $0x28] sm:$0x1]  ;;  %v2695_v39 = vld [vmem:[#allocation2 + $0x29] sm:$0x1] }
 0x1da   :  { %v2761_v11 = vadd.f32 %v2753_v29, %v2735_v15  ;;  %v2838_v48 = vadd.f32 %v2830_v58, %v2812_v63  ;;  %v2806_v34 = vmul.f32 %v5250_v50, %v2796_v30  ;;  %v2685_v32 = vmul.f32 %v5228_v13, %v2675_v19  ;;  %v2824_v30 = vld [vmem:[#allocation2 + $0x26] sm:$0x1]  ;;  %v2721_v19 = vld [vmem:[#allocation2 + $0x2a] sm:$0x1] }
 0x1db   :  { %v2703_v7 = vmul.f32 %v5233_v56, %v2693_v0  ;;  %2671 = vst [vmem:[#allocation9 + $0x7b] sm:$0x1] %v2663_v8  ;;  %v2736_v51 = vadd.f32 %v2728_v45, %v2710_v55  ;;  %v2832_v60 = vmul.f32 %v5256_v59, %v2822_v40  ;;  %v2729_v41 = vmul.f32 %v5236_v21, %v2719_v28  ;;  %v2747_v40 = vld [vmem:[#allocation2 + $0x2b] sm:$0x1] }
 0x1dc   :  { %v2787_v12 = vadd.f32 %v2779_v42, %v2761_v11  ;;  %v2864_v35 = vadd.f32 %v2856_v23, %v2838_v48  ;;  %v2858_v58 = vmul.f32 %v5259_v22, %v2848_v26  ;;  %v2755_v9 = vmul.f32 %v5239_v18, %v2745_v25  ;;  %v2850_v11 = vld [vmem:[#allocation2 + $0x27] sm:$0x1]  ;;  %v2773_v26 = vld [vmem:[#allocation2 + $0x2c] sm:$0x1]  ;;  %v2799_v25 = vld [vmem:[#allocation2 + $0x2d] sm:$0x1] }
 0x1dd   :  { %v2711_v47 = vadd.f32 %v2703_v7, %v2685_v32  ;;  %v2762_v3 = vadd.f32 %v2754_v16, %v2736_v51  ;;  %v2781_v31 = vmul.f32 %v5247_v4, %v2771_v10  ;;  %v2807_v37 = vmul.f32 %v5250_v50, %v2797_v38  ;;  %v2678_v7 = vld [vmem:[#allocation2 + $0x30] sm:$0x1] }
 0x1de   :  { %v2813_v14 = vadd.f32 %v2805_v2, %v2787_v12  ;;  %v2874_v62 = vadd.f32 %v5270_v17, %v2864_v35  ;;  %v2686_v23 = vmul.f32 %v5228_v13, %v2676_v5  ;;  %v2704_v29 = vmul.f32 %v5233_v56, %v2694_v6  ;;  %v2696_v5 = vld [vmem:[#allocation2 + $0x31] sm:$0x1]  ;;  %v2722_v6 = vld [vmem:[#allocation2 + $0x32] sm:$0x1] }
 0x1df   :  { %v2737_v49 = vadd.f32 %v2729_v41, %v2711_v47  ;;  %v2788_v1 = vadd.f32 %v2780_v27, %v2762_v3  ;;  %v2833_v42 = vmul.f32 %v5256_v59, %v2823_v57  ;;  %v2730_v2 = vmul.f32 %v5236_v21, %v2720_v20  ;;  %v2825_v41 = vld [vmem:[#allocation2 + $0x2e] sm:$0x1]  ;;  %v2851_v57 = vld [vmem:[#allocation2 + $0x2f] sm:$0x1]  ;;  %v2679_v20 = vld [vmem:[#allocation2 + $0x38] sm:$0x1] }
 0x1e0   :  { %v2839_v33 = vadd.f32 %v2831_v53, %v2813_v14  ;;  %2882 = vst [vmem:[#allocation9 + $0xc] sm:$0x1] %v2874_v62  ;;  %v2859_v15 = vmul.f32 %v5259_v22, %v2849_v44  ;;  %v2712_v43 = vadd.f32 %v2704_v29, %v2686_v23  ;;  %v2756_v45 = vmul.f32 %v5239_v18, %v2746_v61  ;;  %v2748_v44 = vld [vmem:[#allocation2 + $0x33] sm:$0x1]  ;;  %v2774_v61 = vld [vmem:[#allocation2 + $0x34] sm:$0x1] }
 0x1e1   :  { %v2763_v52 = vadd.f32 %v2755_v9, %v2737_v49  ;;  %v2814_v63 = vadd.f32 %v2806_v34, %v2788_v1  ;;  %v2782_v53 = vmul.f32 %v5247_v4, %v2772_v54  ;;  %v2808_v16 = vmul.f32 %v5250_v50, %v2798_v46  ;;  %v2800_v62 = vld [vmem:[#allocation2 + $0x35] sm:$0x1]  ;;  %v2697_v54 = vld [vmem:[#allocation2 + $0x39] sm:$0x1]  ;;  %v2723_v46 = vld [vmem:[#allocation2 + $0x3a] sm:$0x1] }
 0x1e2   :  { %v2865_v0 = vadd.f32 %v2857_v24, %v2839_v33  ;;  %v2738_v8 = vadd.f32 %v2730_v2, %v2712_v43  ;;  %v2687_v55 = vmul.f32 %v5228_v13, %v2677_v36  ;;  %v2705_v27 = vmul.f32 %v5233_v56, %v2695_v39  ;;  %v2826_v36 = vld [vmem:[#allocation2 + $0x36] sm:$0x1] }
 0x1e3   :  { %v2789_v28 = vadd.f32 %v2781_v31, %v2763_v52  ;;  %v2840_v32 = vadd.f32 %v2832_v60, %v2814_v63  ;;  %v2834_v24 = vmul.f32 %v5256_v59, %v2824_v30  ;;  %v2731_v34 = vmul.f32 %v5236_v21, %v2721_v19  ;;  %v2852_v30 = vld [vmem:[#allocation2 + $0x37] sm:$0x1]  ;;  %v2749_v19 = vld [vmem:[#allocation2 + $0x3b] sm:$0x1] }
 0x1e4   :  { %v2875_v48 = vadd.f32 %v5270_v17, %v2865_v0  ;;  %v2764_v38 = vadd.f32 %v2756_v45, %v2738_v8  ;;  %v2713_v12 = vadd.f32 %v2705_v27, %v2687_v55  ;;  %v2757_v51 = vmul.f32 %v5239_v18, %v2747_v40  ;;  %v2801_v40 = vld [vmem:[#allocation2 + $0x3d] sm:$0x1]  ;;  %v2890_v27 = vld [vmem:[#allocation2] sm:$0x1] }
 0x1e5   :  { %v2815_v10 = vadd.f32 %v2807_v37, %v2789_v28  ;;  %v2866_v35 = vadd.f32 %v2858_v58, %v2840_v32  ;;  %v2860_v47 = vmul.f32 %v5259_v22, %v2850_v11  ;;  %v2783_v60 = vmul.f32 %v5247_v4, %v2773_v26  ;;  %v2908_v32 = vld [vmem:[#allocation2 + $0x1] sm:$0x1] }
 0x1e6   :  { %2883 = vst [vmem:[#allocation9 + $0x1c] sm:$0x1] %v2875_v48  ;;  %v2809_v9 = vmul.f32 %v5250_v50, %v2799_v25  ;;  %v2790_v3 = vadd.f32 %v2782_v53, %v2764_v38  ;;  %v2739_v31 = vadd.f32 %v2731_v34, %v2713_v12  ;;  %v2688_v37 = vmul.f32 %v5228_v13, %v2678_v7  ;;  %v2934_v12 = vld [vmem:[#allocation2 + $0x2] sm:$0x1] }
 0x1e7   :  { %v2841_v14 = vadd.f32 %v2833_v42, %v2815_v10  ;;  %v2876_v58 = vadd.f32 %v5270_v17, %v2866_v35  ;;  %v2835_v49 = vmul.f32 %v5256_v59, %v2825_v41  ;;  %v2706_v23 = vmul.f32 %v5233_v56, %v2696_v5  ;;  %v2827_v5 = vld [vmem:[#allocation2 + $0x3e] sm:$0x1] }
 0x1e8   :  { %v2732_v29 = vmul.f32 %v5236_v21, %v2722_v6  ;;  %v2816_v1 = vadd.f32 %v2808_v16, %v2790_v3  ;;  %v2765_v42 = vadd.f32 %v2757_v51, %v2739_v31  ;;  %v2861_v2 = vmul.f32 %v5259_v22, %v2851_v57  ;;  %v2775_v16 = vld [vmem:[#allocation2 + $0x3c] sm:$0x1]  ;;  %v2853_v3 = vld [vmem:[#allocation2 + $0x3f] sm:$0x1] }
 0x1e9   :  { %v2867_v33 = vadd.f32 %v2859_v15, %v2841_v14  ;;  %2884 = vst [vmem:[#allocation9 + $0x2c] sm:$0x1] %v2876_v58  ;;  %v2714_v39 = vadd.f32 %v2706_v23, %v2688_v37  ;;  %v2758_v52 = vmul.f32 %v5239_v18, %v2748_v44  ;;  %v2784_v43 = vmul.f32 %v5247_v4, %v2774_v61  ;;  %v2891_v44 = vld [vmem:[#allocation2 + $0x8] sm:$0x1] }
 0x1ea   :  { %v2810_v45 = vmul.f32 %v5250_v50, %v2800_v62  ;;  %v2842_v0 = vadd.f32 %v2834_v24, %v2816_v1  ;;  %v2791_v63 = vadd.f32 %v2783_v60, %v2765_v42  ;;  %v2689_v53 = vmul.f32 %v5228_v13, %v2679_v20  ;;  %v3038_v1 = vld [vmem:[#allocation2 + $0x6] sm:$0x1]  ;;  %v2909_v42 = vld [vmem:[#allocation2 + $0x9] sm:$0x1] }
 0x1eb   :  { %v2877_v15 = vadd.f32 %v5270_v17, %v2867_v33  ;;  %v2740_v28 = vadd.f32 %v2732_v29, %v2714_v39  ;;  %v2836_v8 = vmul.f32 %v5256_v59, %v2826_v36  ;;  %v2707_v11 = vmul.f32 %v5233_v56, %v2697_v54 }
 0x1ec   :  { %v2733_v55 = vmul.f32 %v5236_v21, %v2723_v46  ;;  %v2868_v26 = vadd.f32 %v2860_v47, %v2842_v0  ;;  %v2817_v25 = vadd.f32 %v2809_v9, %v2791_v63  ;;  %v2862_v48 = vmul.f32 %v5259_v22, %v2852_v30  ;;  %v2986_v9 = vld [vmem:[#allocation2 + $0x4] sm:$0x1]  ;;  %v2961_v0 = vld [vmem:[#allocation2 + $0xb] sm:$0x1]  ;;  %v2987_v63 = vld [vmem:[#allocation2 + $0xc] sm:$0x1] }
 0x1ed   :  { %2885 = vst [vmem:[#allocation9 + $0x3c] sm:$0x1] %v2877_v15  ;;  %v2759_v13 = vmul.f32 %v5239_v18, %v2749_v19  ;;  %v2766_v24 = vadd.f32 %v2758_v52, %v2740_v28  ;;  %v2715_v34 = vadd.f32 %v2707_v11, %v2689_v53  ;;  %v2785_v56 = vmul.f32 %v5247_v4, %v2775_v16  ;;  %v3013_v53 = vld [vmem:[#allocation2 + $0xd] sm:$0x1]  ;;  %v2910_v11 = vld [vmem:[#allocation2 + $0x11] sm:$0x1] }
 0x1ee   :  { %v2811_v21 = vmul.f32 %v5250_v50, %v2801_v40  ;;  %v2878_v7 = vadd.f32 %v5270_v17, %v2868_v26  ;;  %v2843_v10 = vadd.f32 %v2835_v49, %v2817_v25  ;;  %v5346_v38 = vstv %s5306_s11  ;;  %v2960_v50 = vld [vmem:[#allocation2 + $0x3] sm:$0x1]  ;;  %v3012_v49 = vld [vmem:[#allocation2 + $0x5] sm:$0x1]  ;;  %s3549_s11 = sshll.u32 %s3792_s10, 4  ;;  %s3550_s11 = int_to_ptr.vmem [resolvable:$true] %s3549_s11 }
 0x1ef   :  { %v5349_v18 = vstv %s5312_s12  ;;  %v2792_v51 = vadd.f32 %v2784_v43, %v2766_v24  ;;  %v2741_v41 = vadd.f32 %v2733_v55, %v2715_v34  ;;  %v2900_v4 = vmul.f32 %v5346_v38, %v2890_v27  ;;  %s3757_s12 = scalar_lea.vmem %s3550_s11, 2048  ;;  %p3762_p5 = scmp.lt.s32.totalorder %s3550_s11, %s3550_s11 }
 0x1f0   :  { %v2918_v6 = vmul.f32 %v5349_v18, %v2908_v32  ;;  %2886 = vst [vmem:[#allocation9 + $0x4c] sm:$0x1] %v2878_v7  ;;  %v2869_v35 = vadd.f32 %v2861_v2, %v2843_v10  ;;  %v5356_v47 = vstv %s5319_s13  ;;  %v5359_v60 = vstv %s5322_s14  ;;  %v2935_v2 = vld [vmem:[#allocation2 + $0xa] sm:$0x1]  ;;  %v2936_v32 = vld [vmem:[#allocation2 + $0x12] sm:$0x1]  ;;  %p3758_p4 = scmp.ne.s32.totalorder %s3550_s11, %s3757_s12  ;;  %p3763_p6 = scmp.lt.s32.totalorder %s3757_s12, %s3757_s12 }
 0x1f1   :  { %v5362_v57 = vstv %s5324_s15  ;;  %v2818_v20 = vadd.f32 %v2810_v45, %v2792_v51  ;;  %v2767_v14 = vadd.f32 %v2759_v13, %v2741_v41  ;;  %v2944_v37 = vmul.f32 %v5356_v47, %v2934_v12  ;;  %v3065_v13 = vld [vmem:[#allocation2 + $0xf] sm:$0x1]  ;;  %v2962_v7 = vld [vmem:[#allocation2 + $0x13] sm:$0x1] }
 0x1f2   :  { %v2926_v31 = vadd.f32 %v2918_v6, %v2900_v4  ;;  %v2879_v61 = vadd.f32 %v5270_v17, %v2869_v35  ;;  %v2837_v62 = vmul.f32 %v5256_v59, %v2827_v5  ;;  %v2970_v58 = vmul.f32 %v5359_v60, %v2960_v50  ;;  %v3064_v59 = vld [vmem:[#allocation2 + $0x7] sm:$0x1]  ;;  %v2988_v5 = vld [vmem:[#allocation2 + $0x14] sm:$0x1]  ;;  %v3014_v4 = vld [vmem:[#allocation2 + $0x15] sm:$0x1]  ;;  %p3764_p7 = por %p3763_p6, %p3762_p5 }
 0x1f3   :  { %v5369_v23 = vstv %s5331_s16  ;;  %v2844_v29 = vadd.f32 %v2836_v8, %v2818_v20  ;;  %v2793_v54 = vadd.f32 %v2785_v56, %v2767_v14  ;;  %v2996_v33 = vmul.f32 %v5362_v57, %v2986_v9  ;;  %v2892_v8 = vld [vmem:[#allocation2 + $0x10] sm:$0x1]  ;;  %v2893_v6 = vld [vmem:[#allocation2 + $0x18] sm:$0x1]  ;;  %v2911_v14 = vld [vmem:[#allocation2 + $0x19] sm:$0x1] }
 0x1f4   :  { %v2952_v46 = vadd.f32 %v2944_v37, %v2926_v31  ;;  %2887 = vst [vmem:[#allocation9 + $0x5c] sm:$0x1] %v2879_v61  ;;  %v2863_v36 = vmul.f32 %v5259_v22, %v2853_v3  ;;  %v5374_v39 = vstv %s5338_s17  ;;  %v5377_v52 = vstv %s5340_s18  ;;  %v2937_v3 = vld [vmem:[#allocation2 + $0x1a] sm:$0x1]  ;;  %p3765_p8 = pnand %p3764_p7, %p3758_p4 }
 0x1f5   :  { %v2901_v43 = vmul.f32 %v5346_v38, %v2891_v44  ;;  %v2870_v45 = vadd.f32 %v2862_v48, %v2844_v29  ;;  %v2819_v30 = vadd.f32 %v2811_v21, %v2793_v54  ;;  %v3022_v15 = vmul.f32 %v5369_v23, %v3012_v49  ;;  %v3039_v48 = vld [vmem:[#allocation2 + $0xe] sm:$0x1]  ;;  %v2963_v49 = vld [vmem:[#allocation2 + $0x1b] sm:$0x1] }
 0x1f6   :  { %v2978_v19 = vadd.f32 %v2970_v58, %v2952_v46  ;;  %v3048_v16 = vmul.f32 %v5374_v39, %v3038_v1  ;;  %v5383_v40 = vstv %s5351_s19  ;;  %v2919_v22 = vmul.f32 %v5349_v18, %v2909_v42  ;;  %v3066_v58 = vld [vmem:[#allocation2 + $0x17] sm:$0x1]  ;;  %v2989_v1 = vld [vmem:[#allocation2 + $0x1c] sm:$0x1] }
 0x1f7   :  { %v2945_v28 = vmul.f32 %v5356_v47, %v2935_v2  ;;  %v2880_v55 = vadd.f32 %v5270_v17, %v2870_v45  ;;  %v2845_v27 = vadd.f32 %v2837_v62, %v2819_v30  ;;  %v3074_v25 = vmul.f32 %v5377_v52, %v3064_v59  ;;  %v3040_v62 = vld [vmem:[#allocation2 + $0x16] sm:$0x1]  ;;  %v3015_v59 = vld [vmem:[#allocation2 + $0x1d] sm:$0x1]  ;;  %v2912_v45 = vld [vmem:[#allocation2 + $0x21] sm:$0x1] }
 0x1f8   :  { %v3004_v26 = vadd.f32 %v2996_v33, %v2978_v19  ;;  %v2927_v24 = vadd.f32 %v2919_v22, %v2901_v43  ;;  %v2971_v34 = vmul.f32 %v5359_v60, %v2961_v0  ;;  %v2997_v56 = vmul.f32 %v5362_v57, %v2987_v63  ;;  %v2894_v43 = vld [vmem:[#allocation2 + $0x20] sm:$0x1]  ;;  %v3041_v63 = vld [vmem:[#allocation2 + $0x1e] sm:$0x1] }
 0x1f9   :  { %v3023_v21 = vmul.f32 %v5369_v23, %v3013_v53  ;;  %2888 = vst [vmem:[#allocation9 + $0x6c] sm:$0x1] %v2880_v55  ;;  %v2871_v10 = vadd.f32 %v2863_v36, %v2845_v27  ;;  %v2902_v51 = vmul.f32 %v5346_v38, %v2892_v8  ;;  %v2920_v41 = vmul.f32 %v5349_v18, %v2910_v11  ;;  %v2938_v53 = vld [vmem:[#allocation2 + $0x22] sm:$0x1]  ;;  %v3067_v11 = vld [vmem:[#allocation2 + $0x1f] sm:$0x1] }
 0x1fa   :  { %v3030_v12 = vadd.f32 %v3022_v15, %v3004_v26  ;;  %v2953_v50 = vadd.f32 %v2945_v28, %v2927_v24  ;;  %v3049_v35 = vmul.f32 %v5374_v39, %v3039_v48  ;;  %v3075_v9 = vmul.f32 %v5377_v52, %v3065_v13  ;;  %v2964_v55 = vld [vmem:[#allocation2 + $0x23] sm:$0x1]  ;;  %v2990_v13 = vld [vmem:[#allocation2 + $0x24] sm:$0x1] }
 0x1fb   :  { %v2946_v20 = vmul.f32 %v5356_v47, %v2936_v32  ;;  %v2881_v31 = vadd.f32 %v5270_v17, %v2871_v10  ;;  %v2928_v44 = vadd.f32 %v2920_v41, %v2902_v51  ;;  %v2972_v61 = vmul.f32 %v5359_v60, %v2962_v7  ;;  %v3016_v32 = vld [vmem:[#allocation2 + $0x25] sm:$0x1]  ;;  %v2895_v10 = vld [vmem:[#allocation2 + $0x28] sm:$0x1] }
 0x1fc   :  { %v3056_v37 = vadd.f32 %v3048_v16, %v3030_v12  ;;  %v2979_v29 = vadd.f32 %v2971_v34, %v2953_v50  ;;  %v2998_v54 = vmul.f32 %v5362_v57, %v2988_v5  ;;  %v3024_v46 = vmul.f32 %v5369_v23, %v3014_v4  ;;  %v2913_v12 = vld [vmem:[#allocation2 + $0x29] sm:$0x1]  ;;  %v3042_v4 = vld [vmem:[#allocation2 + $0x26] sm:$0x1] }
 0x1fd   :  { %v2903_v33 = vmul.f32 %v5346_v38, %v2893_v6  ;;  %2889 = vst [vmem:[#allocation9 + $0x7c] sm:$0x1] %v2881_v31  ;;  %v2954_v2 = vadd.f32 %v2946_v20, %v2928_v44  ;;  %v2921_v17 = vmul.f32 %v5349_v18, %v2911_v14  ;;  %v2947_v36 = vmul.f32 %v5356_v47, %v2937_v3  ;;  %v2939_v6 = vld [vmem:[#allocation2 + $0x2a] sm:$0x1]  ;;  %v2965_v31 = vld [vmem:[#allocation2 + $0x2b] sm:$0x1] }
 0x1fe   :  { %v3082_v42 = vadd.f32 %v3074_v25, %v3056_v37  ;;  %v3005_v30 = vadd.f32 %v2997_v56, %v2979_v29  ;;  %v3050_v19 = vmul.f32 %v5374_v39, %v3040_v62  ;;  %v3076_v15 = vmul.f32 %v5377_v52, %v3066_v58  ;;  %v2991_v58 = vld [vmem:[#allocation2 + $0x2c] sm:$0x1] }
 0x1ff   :  { %v2973_v0 = vmul.f32 %v5359_v60, %v2963_v49  ;;  %v2980_v22 = vadd.f32 %v2972_v61, %v2954_v2  ;;  %v2929_v28 = vadd.f32 %v2921_v17, %v2903_v33  ;;  %v2999_v8 = vmul.f32 %v5362_v57, %v2989_v1  ;;  %v3068_v61 = vld [vmem:[#allocation2 + $0x27] sm:$0x1]  ;;  %v3017_v33 = vld [vmem:[#allocation2 + $0x2d] sm:$0x1]  ;;  %v2896_v1 = vld [vmem:[#allocation2 + $0x30] sm:$0x1] }
 0x200   :  { %v3092_v16 = vadd.f32 %v5383_v40, %v3082_v42  ;;  %v3031_v27 = vadd.f32 %v3023_v21, %v3005_v30  ;;  %v3025_v26 = vmul.f32 %v5369_v23, %v3015_v59  ;;  %v2904_v25 = vmul.f32 %v5346_v38, %v2894_v43  ;;  %v2940_v59 = vld [vmem:[#allocation2 + $0x32] sm:$0x1] }
 0x201   :  { %v2922_v48 = vmul.f32 %v5349_v18, %v2912_v45  ;;  %v3006_v24 = vadd.f32 %v2998_v54, %v2980_v22  ;;  %v2955_v34 = vadd.f32 %v2947_v36, %v2929_v28  ;;  %v3051_v56 = vmul.f32 %v5374_v39, %v3041_v63  ;;  %v2914_v36 = vld [vmem:[#allocation2 + $0x31] sm:$0x1]  ;;  %v3069_v63 = vld [vmem:[#allocation2 + $0x2f] sm:$0x1] }
 0x202   :  { %3100 = vst [vmem:[#allocation9 + $0xd] sm:$0x1] %v3092_v16  ;;  %v2948_v7 = vmul.f32 %v5356_v47, %v2938_v53  ;;  %v3057_v51 = vadd.f32 %v3049_v35, %v3031_v27  ;;  %v3077_v21 = vmul.f32 %v5377_v52, %v3067_v11  ;;  %v2974_v5 = vmul.f32 %v5359_v60, %v2964_v55  ;;  %v2992_v11 = vld [vmem:[#allocation2 + $0x34] sm:$0x1]  ;;  %v2897_v55 = vld [vmem:[#allocation2 + $0x38] sm:$0x1] }
 0x203   :  { %v2930_v41 = vadd.f32 %v2922_v48, %v2904_v25  ;;  %v3032_v50 = vadd.f32 %v3024_v46, %v3006_v24  ;;  %v2981_v20 = vadd.f32 %v2973_v0, %v2955_v34  ;;  %v3000_v14 = vmul.f32 %v5362_v57, %v2990_v13  ;;  %v3043_v0 = vld [vmem:[#allocation2 + $0x2e] sm:$0x1]  ;;  %v3018_v48 = vld [vmem:[#allocation2 + $0x35] sm:$0x1]  ;;  %v2915_v13 = vld [vmem:[#allocation2 + $0x39] sm:$0x1] }
 0x204   :  { %v3026_v3 = vmul.f32 %v5369_v23, %v3016_v32  ;;  %v3083_v37 = vadd.f32 %v3075_v9, %v3057_v51  ;;  %v2905_v62 = vmul.f32 %v5346_v38, %v2895_v10  ;;  %v2923_v35 = vmul.f32 %v5349_v18, %v2913_v12  ;;  %v2941_v10 = vld [vmem:[#allocation2 + $0x3a] sm:$0x1] }
 0x205   :  { %v2956_v44 = vadd.f32 %v2948_v7, %v2930_v41  ;;  %v3058_v49 = vadd.f32 %v3050_v19, %v3032_v50  ;;  %v3007_v29 = vadd.f32 %v2999_v8, %v2981_v20  ;;  %v3052_v54 = vmul.f32 %v5374_v39, %v3042_v4  ;;  %v2966_v8 = vld [vmem:[#allocation2 + $0x33] sm:$0x1]  ;;  %v3070_v4 = vld [vmem:[#allocation2 + $0x37] sm:$0x1] }
 0x206   :  { %v2949_v46 = vmul.f32 %v5356_v47, %v2939_v6  ;;  %v3093_v42 = vadd.f32 %v5383_v40, %v3083_v37  ;;  %v2931_v17 = vadd.f32 %v2923_v35, %v2905_v62  ;;  %v2975_v9 = vmul.f32 %v5359_v60, %v2965_v31  ;;  %v2967_v6 = vld [vmem:[#allocation2 + $0x3b] sm:$0x1]  ;;  %v2993_v31 = vld [vmem:[#allocation2 + $0x3c] sm:$0x1]  ;;  %v3019_v62 = vld [vmem:[#allocation2 + $0x3d] sm:$0x1] }
 0x207   :  { %v2982_v2 = vadd.f32 %v2974_v5, %v2956_v44  ;;  %v3084_v43 = vadd.f32 %v3076_v15, %v3058_v49  ;;  %v3033_v45 = vadd.f32 %v3025_v26, %v3007_v29  ;;  %v3078_v30 = vmul.f32 %v5377_v52, %v3068_v61  ;;  %v3044_v5 = vld [vmem:[#allocation2 + $0x36] sm:$0x1]  ;;  %v3108_v29 = vld [vmem:[#allocation2] sm:$0x1] }
 0x208   :  { %v3001_v19 = vmul.f32 %v5362_v57, %v2991_v58  ;;  %3101 = vst [vmem:[#allocation9 + $0x1d] sm:$0x1] %v3093_v42  ;;  %v2957_v16 = vadd.f32 %v2949_v46, %v2931_v17  ;;  %v3027_v22 = vmul.f32 %v5369_v23, %v3017_v33  ;;  %v2906_v28 = vmul.f32 %v5346_v38, %v2896_v1  ;;  %v3126_v33 = vld [vmem:[#allocation2 + $0x1] sm:$0x1] }
 0x209   :  { %v3008_v53 = vadd.f32 %v3000_v14, %v2982_v2  ;;  %v3094_v15 = vadd.f32 %v5383_v40, %v3084_v43  ;;  %v3059_v27 = vadd.f32 %v3051_v56, %v3033_v45  ;;  %v2924_v26 = vmul.f32 %v5349_v18, %v2914_v36  ;;  %v3178_v36 = vld [vmem:[#allocation2 + $0x3] sm:$0x1] }
 0x20a   :  { %v2950_v25 = vmul.f32 %v5356_v47, %v2940_v59  ;;  %v2983_v24 = vadd.f32 %v2975_v9, %v2957_v16  ;;  %v3053_v34 = vmul.f32 %v5374_v39, %v3043_v0  ;;  %v3079_v7 = vmul.f32 %v5377_v52, %v3069_v63  ;;  %v3152_v9 = vld [vmem:[#allocation2 + $0x2] sm:$0x1] }
 0x20b   :  { %v3034_v32 = vadd.f32 %v3026_v3, %v3008_v53  ;;  %3102 = vst [vmem:[#allocation9 + $0x2d] sm:$0x1] %v3094_v15  ;;  %v3085_v56 = vadd.f32 %v3077_v21, %v3059_v27  ;;  %v2932_v12 = vadd.f32 %v2924_v26, %v2906_v28  ;;  %v2976_v51 = vmul.f32 %v5359_v60, %v2966_v8  ;;  %v3204_v8 = vld [vmem:[#allocation2 + $0x4] sm:$0x1]  ;;  %v3230_v27 = vld [vmem:[#allocation2 + $0x5] sm:$0x1] }
 0x20c   :  { %v3002_v41 = vmul.f32 %v5362_v57, %v2992_v11  ;;  %v3009_v20 = vadd.f32 %v3001_v19, %v2983_v24  ;;  %v3028_v14 = vmul.f32 %v5369_v23, %v3018_v48  ;;  %v2907_v3 = vmul.f32 %v5346_v38, %v2897_v55  ;;  %v3071_v19 = vld [vmem:[#allocation2 + $0x3f] sm:$0x1]  ;;  %v3109_v24 = vld [vmem:[#allocation2 + $0x8] sm:$0x1] }
 0x20d   :  { %v3060_v50 = vadd.f32 %v3052_v54, %v3034_v32  ;;  %v3095_v21 = vadd.f32 %v5383_v40, %v3085_v56  ;;  %v2958_v37 = vadd.f32 %v2950_v25, %v2932_v12  ;;  %v2925_v44 = vmul.f32 %v5349_v18, %v2915_v13  ;;  %v3256_v12 = vld [vmem:[#allocation2 + $0x6] sm:$0x1] }
 0x20e   :  { %v2951_v61 = vmul.f32 %v5356_v47, %v2941_v10  ;;  %v3035_v58 = vadd.f32 %v3027_v22, %v3009_v20  ;;  %v3054_v49 = vmul.f32 %v5374_v39, %v3044_v5  ;;  %v3080_v38 = vmul.f32 %v5377_v52, %v3070_v4  ;;  %v3205_v20 = vld [vmem:[#allocation2 + $0xc] sm:$0x1] }
 0x20f   :  { %v3086_v35 = vadd.f32 %v3078_v30, %v3060_v50  ;;  %3103 = vst [vmem:[#allocation9 + $0x3d] sm:$0x1] %v3095_v21  ;;  %v2984_v54 = vadd.f32 %v2976_v51, %v2958_v37  ;;  %v2933_v46 = vadd.f32 %v2925_v44, %v2907_v3  ;;  %v2977_v18 = vmul.f32 %v5359_v60, %v2967_v6  ;;  %v3045_v30 = vld [vmem:[#allocation2 + $0x3e] sm:$0x1]  ;;  %v3231_v37 = vld [vmem:[#allocation2 + $0xd] sm:$0x1] }
 0x210   :  { %v3003_v47 = vmul.f32 %v5362_v57, %v2993_v31  ;;  %v3061_v42 = vadd.f32 %v3053_v34, %v3035_v58  ;;  %v3029_v2 = vmul.f32 %v5369_v23, %v3019_v62  ;;  %v5465_v17 = vstv %s5426_s20  ;;  %v3127_v34 = vld [vmem:[#allocation2 + $0x9] sm:$0x1]  ;;  %v3110_v44 = vld [vmem:[#allocation2 + $0x10] sm:$0x1] }
 0x211   :  { %v3096_v1 = vadd.f32 %v5383_v40, %v3086_v35  ;;  %v3010_v59 = vadd.f32 %v3002_v41, %v2984_v54  ;;  %v2959_v43 = vadd.f32 %v2951_v61, %v2933_v46  ;;  %v3118_v60 = vmul.f32 %v5465_v17, %v3108_v29  ;;  %v3282_v41 = vld [vmem:[#allocation2 + $0x7] sm:$0x1]  ;;  %v3128_v61 = vld [vmem:[#allocation2 + $0x11] sm:$0x1]  ;;  %v3154_v29 = vld [vmem:[#allocation2 + $0x12] sm:$0x1] }
 0x212   :  { %v5469_v57 = vstv %s5433_s21  ;;  %v3087_v45 = vadd.f32 %v3079_v7, %v3061_v42  ;;  %v5473_v63 = vstv %s5437_s22  ;;  %v5476_v23 = vstv %s5439_s23  ;;  %v3153_v7 = vld [vmem:[#allocation2 + $0xa] sm:$0x1] }
 0x213   :  { %3104 = vst [vmem:[#allocation9 + $0x4d] sm:$0x1] %v3096_v1  ;;  %v3136_v0 = vmul.f32 %v5469_v57, %v3126_v33  ;;  %v3036_v53 = vadd.f32 %v3028_v14, %v3010_v59  ;;  %v2985_v16 = vadd.f32 %v2977_v18, %v2959_v43  ;;  %v3162_v22 = vmul.f32 %v5473_v63, %v3152_v9  ;;  %v3283_v33 = vld [vmem:[#allocation2 + $0xf] sm:$0x1]  ;;  %v3180_v1 = vld [vmem:[#allocation2 + $0x13] sm:$0x1] }
 0x214   :  { %v3188_v28 = vmul.f32 %v5476_v23, %v3178_v36  ;;  %v3097_v11 = vadd.f32 %v5383_v40, %v3087_v45  ;;  %v5482_v15 = vstv %s5445_s24  ;;  %v5485_v26 = vstv %s5447_s26  ;;  %v3206_v59 = vld [vmem:[#allocation2 + $0x14] sm:$0x1]  ;;  %v3232_v43 = vld [vmem:[#allocation2 + $0x15] sm:$0x1] }
 0x215   :  { %v3144_v55 = vadd.f32 %v3136_v0, %v3118_v60  ;;  %v3062_v25 = vadd.f32 %v3054_v49, %v3036_v53  ;;  %v3011_v48 = vadd.f32 %v3003_v47, %v2985_v16  ;;  %v3055_v13 = vmul.f32 %v5374_v39, %v3045_v30  ;;  %v3111_v0 = vld [vmem:[#allocation2 + $0x18] sm:$0x1]  ;;  %v3129_v53 = vld [vmem:[#allocation2 + $0x19] sm:$0x1]  ;;  %v3155_v16 = vld [vmem:[#allocation2 + $0x1a] sm:$0x1] }
 0x216   :  { %v3081_v32 = vmul.f32 %v5377_v52, %v3071_v19  ;;  %3105 = vst [vmem:[#allocation9 + $0x5d] sm:$0x1] %v3097_v11  ;;  %v3214_v56 = vmul.f32 %v5482_v15, %v3204_v8  ;;  %v5491_v51 = vstv %s5454_s27  ;;  %v5494_v5 = vstv %s5456_s28  ;;  %v3179_v52 = vld [vmem:[#allocation2 + $0xb] sm:$0x1] }
 0x217   :  { %v3170_v10 = vadd.f32 %v3162_v22, %v3144_v55  ;;  %v3088_v4 = vadd.f32 %v3080_v38, %v3062_v25  ;;  %v3037_v6 = vadd.f32 %v3029_v2, %v3011_v48  ;;  %v3240_v50 = vmul.f32 %v5485_v26, %v3230_v27  ;;  %v3257_v38 = vld [vmem:[#allocation2 + $0xe] sm:$0x1]  ;;  %v3258_v55 = vld [vmem:[#allocation2 + $0x16] sm:$0x1]  ;;  %v3284_v27 = vld [vmem:[#allocation2 + $0x17] sm:$0x1] }
 0x218   :  { %v5498_v39 = vstv %s5460_s29  ;;  %v3119_v3 = vmul.f32 %v5465_v17, %v3109_v24  ;;  %v3137_v31 = vmul.f32 %v5469_v57, %v3127_v34  ;;  %v3163_v21 = vmul.f32 %v5473_v63, %v3153_v7  ;;  %v3181_v24 = vld [vmem:[#allocation2 + $0x1b] sm:$0x1]  ;;  %v3207_v34 = vld [vmem:[#allocation2 + $0x1c] sm:$0x1] }
 0x219   :  { %v3196_v14 = vadd.f32 %v3188_v28, %v3170_v10  ;;  %v3098_v62 = vadd.f32 %v5383_v40, %v3088_v4  ;;  %v3063_v35 = vadd.f32 %v3055_v13, %v3037_v6  ;;  %v3266_v58 = vmul.f32 %v5491_v51, %v3256_v12  ;;  %v3233_v12 = vld [vmem:[#allocation2 + $0x1d] sm:$0x1] }
 0x21a   :  { %v3292_v49 = vmul.f32 %v5494_v5, %v3282_v41  ;;  %v3145_v46 = vadd.f32 %v3137_v31, %v3119_v3  ;;  %v3189_v18 = vmul.f32 %v5476_v23, %v3179_v52  ;;  %v3215_v47 = vmul.f32 %v5482_v15, %v3205_v20  ;;  %v3112_v41 = vld [vmem:[#allocation2 + $0x20] sm:$0x1]  ;;  %v3130_v20 = vld [vmem:[#allocation2 + $0x21] sm:$0x1] }
 0x21b   :  { %v3222_v54 = vadd.f32 %v3214_v56, %v3196_v14  ;;  %3106 = vst [vmem:[#allocation9 + $0x6d] sm:$0x1] %v3098_v62  ;;  %v3089_v42 = vadd.f32 %v3081_v32, %v3063_v35  ;;  %v3241_v2 = vmul.f32 %v5485_v26, %v3231_v37  ;;  %v3120_v9 = vmul.f32 %v5465_v17, %v3110_v44  ;;  %v3156_v14 = vld [vmem:[#allocation2 + $0x22] sm:$0x1]  ;;  %v3259_v44 = vld [vmem:[#allocation2 + $0x1e] sm:$0x1] }
 0x21c   :  { %v3138_v36 = vmul.f32 %v5469_v57, %v3128_v61  ;;  %v3171_v45 = vadd.f32 %v3163_v21, %v3145_v46  ;;  %v3267_v30 = vmul.f32 %v5491_v51, %v3257_v38  ;;  %v3164_v19 = vmul.f32 %v5473_v63, %v3154_v29  ;;  %v3285_v61 = vld [vmem:[#allocation2 + $0x1f] sm:$0x1]  ;;  %v3182_v62 = vld [vmem:[#allocation2 + $0x23] sm:$0x1]  ;;  %v3208_v29 = vld [vmem:[#allocation2 + $0x24] sm:$0x1] }
 0x21d   :  { %v3248_v60 = vadd.f32 %v3240_v50, %v3222_v54  ;;  %v3099_v22 = vadd.f32 %v5383_v40, %v3089_v42  ;;  %v3293_v28 = vmul.f32 %v5494_v5, %v3283_v33  ;;  %v3190_v11 = vmul.f32 %v5476_v23, %v3180_v1  ;;  %v3234_v33 = vld [vmem:[#allocation2 + $0x25] sm:$0x1]  ;;  %v3113_v1 = vld [vmem:[#allocation2 + $0x28] sm:$0x1]  ;;  %v3131_v42 = vld [vmem:[#allocation2 + $0x29] sm:$0x1] }
 0x21e   :  { %v3146_v8 = vadd.f32 %v3138_v36, %v3120_v9  ;;  %v3197_v48 = vadd.f32 %v3189_v18, %v3171_v45  ;;  %v3216_v13 = vmul.f32 %v5482_v15, %v3206_v59  ;;  %v3242_v32 = vmul.f32 %v5485_v26, %v3232_v43  ;;  %v3157_v43 = vld [vmem:[#allocation2 + $0x2a] sm:$0x1] }
 0x21f   :  { %v3274_v25 = vadd.f32 %v3266_v58, %v3248_v60  ;;  %3107 = vst [vmem:[#allocation9 + $0x7d] sm:$0x1] %v3099_v22  ;;  %v3121_v10 = vmul.f32 %v5465_v17, %v3111_v0  ;;  %v3139_v40 = vmul.f32 %v5469_v57, %v3129_v53  ;;  %v3165_v56 = vmul.f32 %v5473_v63, %v3155_v16  ;;  %v3260_v53 = vld [vmem:[#allocation2 + $0x26] sm:$0x1]  ;;  %v3183_v16 = vld [vmem:[#allocation2 + $0x2b] sm:$0x1] }
 0x220   :  { %v3172_v7 = vadd.f32 %v3164_v19, %v3146_v8  ;;  %v3223_v6 = vadd.f32 %v3215_v47, %v3197_v48  ;;  %v3268_v50 = vmul.f32 %v5491_v51, %v3258_v55  ;;  %v3294_v52 = vmul.f32 %v5494_v5, %v3284_v27 }
 0x221   :  { %v3300_v4 = vadd.f32 %v3292_v49, %v3274_v25  ;;  %v3147_v31 = vadd.f32 %v3139_v40, %v3121_v10  ;;  %v3191_v21 = vmul.f32 %v5476_v23, %v3181_v24  ;;  %v3217_v37 = vmul.f32 %v5482_v15, %v3207_v34  ;;  %v3235_v24 = vld [vmem:[#allocation2 + $0x2d] sm:$0x1]  ;;  %v3114_v34 = vld [vmem:[#allocation2 + $0x30] sm:$0x1] }
 0x222   :  { %v3198_v3 = vadd.f32 %v3190_v11, %v3172_v7  ;;  %v3249_v58 = vadd.f32 %v3241_v2, %v3223_v6  ;;  %v3243_v49 = vmul.f32 %v5485_v26, %v3233_v12  ;;  %v3122_v38 = vmul.f32 %v5465_v17, %v3112_v41  ;;  %v3286_v11 = vld [vmem:[#allocation2 + $0x27] sm:$0x1] }
 0x223   :  { %v3310_v35 = vadd.f32 %v5498_v39, %v3300_v4  ;;  %v3173_v46 = vadd.f32 %v3165_v56, %v3147_v31  ;;  %v3140_v18 = vmul.f32 %v5469_v57, %v3130_v20  ;;  %v3166_v47 = vmul.f32 %v5473_v63, %v3156_v14  ;;  %v3132_v56 = vld [vmem:[#allocation2 + $0x31] sm:$0x1]  ;;  %v3287_v20 = vld [vmem:[#allocation2 + $0x2f] sm:$0x1]  ;;  %v3158_v14 = vld [vmem:[#allocation2 + $0x32] sm:$0x1] }
 0x224   :  { %v3224_v54 = vadd.f32 %v3216_v13, %v3198_v3  ;;  %v3275_v9 = vadd.f32 %v3267_v30, %v3249_v58  ;;  %v3269_v36 = vmul.f32 %v5491_v51, %v3259_v44  ;;  %v3295_v2 = vmul.f32 %v5494_v5, %v3285_v61  ;;  %v3184_v44 = vld [vmem:[#allocation2 + $0x33] sm:$0x1]  ;;  %v3115_v61 = vld [vmem:[#allocation2 + $0x38] sm:$0x1] }
 0x225   :  { %3318 = vst [vmem:[#allocation9 + $0xe] sm:$0x1] %v3310_v35  ;;  %v3192_v59 = vmul.f32 %v5476_v23, %v3182_v62  ;;  %v3199_v45 = vadd.f32 %v3191_v21, %v3173_v46  ;;  %v3148_v19 = vadd.f32 %v3140_v18, %v3122_v38  ;;  %v3218_v0 = vmul.f32 %v5482_v15, %v3208_v29  ;;  %v3236_v38 = vld [vmem:[#allocation2 + $0x35] sm:$0x1] }
 0x226   :  { %v3250_v60 = vadd.f32 %v3242_v32, %v3224_v54  ;;  %v3301_v22 = vadd.f32 %v3293_v28, %v3275_v9  ;;  %v3244_v8 = vmul.f32 %v5485_v26, %v3234_v33  ;;  %v3123_v30 = vmul.f32 %v5465_v17, %v3113_v1  ;;  %v3209_v32 = vld [vmem:[#allocation2 + $0x2c] sm:$0x1] }
 0x227   :  { %v3141_v55 = vmul.f32 %v5469_v57, %v3131_v42  ;;  %v3225_v25 = vadd.f32 %v3217_v37, %v3199_v45  ;;  %v3174_v48 = vadd.f32 %v3166_v47, %v3148_v19  ;;  %v3167_v13 = vmul.f32 %v5473_v63, %v3157_v43  ;;  %v3133_v47 = vld [vmem:[#allocation2 + $0x39] sm:$0x1]  ;;  %v3159_v43 = vld [vmem:[#allocation2 + $0x3a] sm:$0x1] }
 0x228   :  { %v3276_v27 = vadd.f32 %v3268_v50, %v3250_v60  ;;  %v3311_v7 = vadd.f32 %v5498_v39, %v3301_v22  ;;  %v3270_v10 = vmul.f32 %v5491_v51, %v3260_v53  ;;  %v3193_v40 = vmul.f32 %v5476_v23, %v3183_v16  ;;  %v3261_v50 = vld [vmem:[#allocation2 + $0x2e] sm:$0x1]  ;;  %v3185_v53 = vld [vmem:[#allocation2 + $0x3b] sm:$0x1] }
 0x229   :  { %v3149_v28 = vadd.f32 %v3141_v55, %v3123_v30  ;;  %v3251_v41 = vadd.f32 %v3243_v49, %v3225_v25  ;;  %v3200_v4 = vadd.f32 %v3192_v59, %v3174_v48  ;;  %v3296_v6 = vmul.f32 %v5494_v5, %v3286_v11  ;;  %v3210_v49 = vld [vmem:[#allocation2 + $0x34] sm:$0x1]  ;;  %v3288_v59 = vld [vmem:[#allocation2 + $0x37] sm:$0x1]  ;;  %v3211_v11 = vld [vmem:[#allocation2 + $0x3c] sm:$0x1] }
 0x22a   :  { %v3302_v12 = vadd.f32 %v3294_v52, %v3276_v27  ;;  %3319 = vst [vmem:[#allocation9 + $0x1e] sm:$0x1] %v3311_v7  ;;  %v3219_v31 = vmul.f32 %v5482_v15, %v3209_v32  ;;  %v3245_v21 = vmul.f32 %v5485_v26, %v3235_v24  ;;  %v3124_v37 = vmul.f32 %v5465_v17, %v3114_v34  ;;  %v3237_v30 = vld [vmem:[#allocation2 + $0x3d] sm:$0x1]  ;;  %v3326_v48 = vld [vmem:[#allocation2] sm:$0x1] }
 0x22b   :  { %v3175_v3 = vadd.f32 %v3167_v13, %v3149_v28  ;;  %v3277_v62 = vadd.f32 %v3269_v36, %v3251_v41  ;;  %v3226_v35 = vadd.f32 %v3218_v0, %v3200_v4  ;;  %v3142_v58 = vmul.f32 %v5469_v57, %v3132_v56  ;;  %v3262_v36 = vld [vmem:[#allocation2 + $0x36] sm:$0x1]  ;;  %v3344_v28 = vld [vmem:[#allocation2 + $0x1] sm:$0x1]  ;;  %v3263_v4 = vld [vmem:[#allocation2 + $0x3e] sm:$0x1] }
 0x22c   :  { %v3312_v52 = vadd.f32 %v5498_v39, %v3302_v12  ;;  %v3271_v54 = vmul.f32 %v5491_v51, %v3261_v50  ;;  %v3297_v46 = vmul.f32 %v5494_v5, %v3287_v20  ;;  %v3168_v18 = vmul.f32 %v5473_v63, %v3158_v14 }
 0x22d   :  { %v3201_v29 = vadd.f32 %v3193_v40, %v3175_v3  ;;  %v3303_v33 = vadd.f32 %v3295_v2, %v3277_v62  ;;  %v3252_v1 = vadd.f32 %v3244_v8, %v3226_v35  ;;  %v3150_v42 = vadd.f32 %v3142_v58, %v3124_v37  ;;  %v3370_v40 = vld [vmem:[#allocation2 + $0x2] sm:$0x1]  ;;  %v3327_v58 = vld [vmem:[#allocation2 + $0x8] sm:$0x1] }
 0x22e   :  { %3320 = vst [vmem:[#allocation9 + $0x2e] sm:$0x1] %v3312_v52  ;;  %v3194_v9 = vmul.f32 %v5476_v23, %v3184_v44  ;;  %v3220_v45 = vmul.f32 %v5482_v15, %v3210_v49  ;;  %v3246_v19 = vmul.f32 %v5485_v26, %v3236_v38  ;;  %v3125_v0 = vmul.f32 %v5465_v17, %v3115_v61  ;;  %v3422_v44 = vld [vmem:[#allocation2 + $0x4] sm:$0x1] }
 0x22f   :  { %v3227_v60 = vadd.f32 %v3219_v31, %v3201_v29  ;;  %v3313_v16 = vadd.f32 %v5498_v39, %v3303_v33  ;;  %v3278_v2 = vadd.f32 %v3270_v10, %v3252_v1  ;;  %v3176_v22 = vadd.f32 %v3168_v18, %v3150_v42  ;;  %v3289_v31 = vld [vmem:[#allocation2 + $0x3f] sm:$0x1]  ;;  %v3345_v18 = vld [vmem:[#allocation2 + $0x9] sm:$0x1] }
 0x230   :  { %v3143_v8 = vmul.f32 %v5469_v57, %v3133_v47  ;;  %v3272_v27 = vmul.f32 %v5491_v51, %v3262_v36  ;;  %v3298_v25 = vmul.f32 %v5494_v5, %v3288_v59  ;;  %v3169_v17 = vmul.f32 %v5473_v63, %v3159_v43  ;;  %v3371_v47 = vld [vmem:[#allocation2 + $0xa] sm:$0x1]  ;;  %v3474_v59 = vld [vmem:[#allocation2 + $0x6] sm:$0x1]  ;;  %v3500_v43 = vld [vmem:[#allocation2 + $0x7] sm:$0x1] }
 0x231   :  { %v3253_v55 = vadd.f32 %v3245_v21, %v3227_v60  ;;  %3321 = vst [vmem:[#allocation9 + $0x3e] sm:$0x1] %v3313_v16  ;;  %v3304_v13 = vadd.f32 %v3296_v6, %v3278_v2  ;;  %v3202_v32 = vadd.f32 %v3194_v9, %v3176_v22  ;;  %v3195_v57 = vmul.f32 %v5476_v23, %v3185_v53  ;;  %v3396_v6 = vld [vmem:[#allocation2 + $0x3] sm:$0x1]  ;;  %v3423_v16 = vld [vmem:[#allocation2 + $0xc] sm:$0x1] }
 0x232   :  { %v3151_v24 = vadd.f32 %v3143_v8, %v3125_v0  ;;  %v3221_v7 = vmul.f32 %v5482_v15, %v3211_v11  ;;  %v3247_v10 = vmul.f32 %v5485_v26, %v3237_v30  ;;  %v5579_v63 = vstv %s5545_s30  ;;  %v3328_v2 = vld [vmem:[#allocation2 + $0x10] sm:$0x1] }
 0x233   :  { %v3279_v34 = vadd.f32 %v3271_v54, %v3253_v55  ;;  %v3314_v56 = vadd.f32 %v5498_v39, %v3304_v13  ;;  %v3228_v12 = vadd.f32 %v3220_v45, %v3202_v32  ;;  %v3336_v23 = vmul.f32 %v5579_v63, %v3326_v48  ;;  %v3448_v54 = vld [vmem:[#allocation2 + $0x5] sm:$0x1]  ;;  %v3397_v45 = vld [vmem:[#allocation2 + $0xb] sm:$0x1]  ;;  %v3449_v55 = vld [vmem:[#allocation2 + $0xd] sm:$0x1] }
 0x234   :  { %v3177_v41 = vadd.f32 %v3169_v17, %v3151_v24  ;;  %v5586_v20 = vstv %s5549_s4  ;;  %v5589_v15 = vstv %s5554_s5  ;;  %v5592_v26 = vstv %s5556_s6  ;;  %v3475_v24 = vld [vmem:[#allocation2 + $0xe] sm:$0x1] }
 0x235   :  { %v3305_v50 = vadd.f32 %v3297_v46, %v3279_v34  ;;  %3322 = vst [vmem:[#allocation9 + $0x4e] sm:$0x1] %v3314_v56  ;;  %v3254_v14 = vadd.f32 %v3246_v19, %v3228_v12  ;;  %v3354_v21 = vmul.f32 %v5586_v20, %v3344_v28  ;;  %v3380_v37 = vmul.f32 %v5589_v15, %v3370_v40  ;;  %v3398_v40 = vld [vmem:[#allocation2 + $0x13] sm:$0x1]  ;;  %v3424_v56 = vld [vmem:[#allocation2 + $0x14] sm:$0x1] }
 0x236   :  { %v3203_v3 = vadd.f32 %v3195_v57, %v3177_v41  ;;  %v3273_v52 = vmul.f32 %v5491_v51, %v3263_v4  ;;  %v3406_v62 = vmul.f32 %v5592_v26, %v3396_v6  ;;  %v5600_v35 = vstv %s5562_s0  ;;  %v3501_v57 = vld [vmem:[#allocation2 + $0xf] sm:$0x1]  ;;  %v3329_v6 = vld [vmem:[#allocation2 + $0x18] sm:$0x1] }
 0x237   :  { %v3315_v61 = vadd.f32 %v5498_v39, %v3305_v50  ;;  %v3280_v49 = vadd.f32 %v3272_v27, %v3254_v14  ;;  %v3362_v29 = vadd.f32 %v3354_v21, %v3336_v23  ;;  %v5603_v46 = vstv %s5566_s7  ;;  %v3346_v27 = vld [vmem:[#allocation2 + $0x11] sm:$0x1]  ;;  %v3347_v50 = vld [vmem:[#allocation2 + $0x19] sm:$0x1]  ;;  %v3373_v14 = vld [vmem:[#allocation2 + $0x1a] sm:$0x1] }
 0x238   :  { %v3229_v38 = vadd.f32 %v3221_v7, %v3203_v3  ;;  %v3299_v33 = vmul.f32 %v5494_v5, %v3289_v31  ;;  %v3432_v1 = vmul.f32 %v5600_v35, %v3422_v44  ;;  %v5608_v51 = vstv %s5571_s8  ;;  %v3450_v44 = vld [vmem:[#allocation2 + $0x15] sm:$0x1] }
 0x239   :  { %3323 = vst [vmem:[#allocation9 + $0x5e] sm:$0x1] %v3315_v61  ;;  %v3306_v42 = vadd.f32 %v3298_v25, %v3280_v49  ;;  %v3388_v36 = vadd.f32 %v3380_v37, %v3362_v29  ;;  %v5611_v60 = vstv %s5574_s2  ;;  %v3458_v19 = vmul.f32 %v5603_v46, %v3448_v54  ;;  %v3372_v25 = vld [vmem:[#allocation2 + $0x12] sm:$0x1]  ;;  %v3476_v61 = vld [vmem:[#allocation2 + $0x16] sm:$0x1] }
 0x23a   :  { %v3255_v9 = vadd.f32 %v3247_v10, %v3229_v38  ;;  %v3337_v0 = vmul.f32 %v5579_v63, %v3327_v58  ;;  %v3355_v53 = vmul.f32 %v5586_v20, %v3345_v18  ;;  %v3381_v5 = vmul.f32 %v5589_v15, %v3371_v47  ;;  %v3502_v38 = vld [vmem:[#allocation2 + $0x17] sm:$0x1]  ;;  %v3399_v29 = vld [vmem:[#allocation2 + $0x1b] sm:$0x1] }
 0x23b   :  { %v3316_v22 = vadd.f32 %v5498_v39, %v3306_v42  ;;  %v3414_v11 = vadd.f32 %v3406_v62, %v3388_v36  ;;  %v5619_v30 = vstv %s5583_s9  ;;  %v3484_v17 = vmul.f32 %v5608_v51, %v3474_v59 }
 0x23c   :  { %v3281_v8 = vadd.f32 %v3273_v52, %v3255_v9  ;;  %v3510_v48 = vmul.f32 %v5611_v60, %v3500_v43  ;;  %v3363_v13 = vadd.f32 %v3355_v53, %v3337_v0  ;;  %v3407_v32 = vmul.f32 %v5592_v26, %v3397_v45  ;;  %v3348_v43 = vld [vmem:[#allocation2 + $0x21] sm:$0x1]  ;;  %v3374_v45 = vld [vmem:[#allocation2 + $0x22] sm:$0x1] }
 0x23d   :  { %3324 = vst [vmem:[#allocation9 + $0x6e] sm:$0x1] %v3316_v22  ;;  %v3440_v7 = vadd.f32 %v3432_v1, %v3414_v11  ;;  %v3433_v10 = vmul.f32 %v5600_v35, %v3423_v16  ;;  %v3338_v28 = vmul.f32 %v5579_v63, %v3328_v2  ;;  %v3459_v41 = vmul.f32 %v5603_v46, %v3449_v55  ;;  %v3330_v1 = vld [vmem:[#allocation2 + $0x20] sm:$0x1]  ;;  %v3451_v16 = vld [vmem:[#allocation2 + $0x1d] sm:$0x1] }
 0x23e   :  { %v3307_v34 = vadd.f32 %v3299_v33, %v3281_v8  ;;  %v3389_v12 = vadd.f32 %v3381_v5, %v3363_v13  ;;  %v3356_v4 = vmul.f32 %v5586_v20, %v3346_v27  ;;  %v3382_v23 = vmul.f32 %v5589_v15, %v3372_v25  ;;  %v3425_v33 = vld [vmem:[#allocation2 + $0x1c] sm:$0x1]  ;;  %v3477_v2 = vld [vmem:[#allocation2 + $0x1e] sm:$0x1]  ;;  %v3503_v55 = vld [vmem:[#allocation2 + $0x1f] sm:$0x1] }
 0x23f   :  { %v3466_v31 = vadd.f32 %v3458_v19, %v3440_v7  ;;  %v3485_v21 = vmul.f32 %v5608_v51, %v3475_v24  ;;  %v3511_v37 = vmul.f32 %v5611_v60, %v3501_v57  ;;  %v3408_v58 = vmul.f32 %v5592_v26, %v3398_v40  ;;  %v3400_v25 = vld [vmem:[#allocation2 + $0x23] sm:$0x1]  ;;  %v3426_v24 = vld [vmem:[#allocation2 + $0x24] sm:$0x1]  ;;  %v3331_v57 = vld [vmem:[#allocation2 + $0x28] sm:$0x1] }
 0x240   :  { %v3317_v3 = vadd.f32 %v5498_v39, %v3307_v34  ;;  %v3415_v52 = vadd.f32 %v3407_v32, %v3389_v12  ;;  %v3364_v62 = vadd.f32 %v3356_v4, %v3338_v28  ;;  %v3434_v49 = vmul.f32 %v5600_v35, %v3424_v56  ;;  %v3349_v40 = vld [vmem:[#allocation2 + $0x29] sm:$0x1]  ;;  %v3375_v56 = vld [vmem:[#allocation2 + $0x2a] sm:$0x1] }
 0x241   :  { %v3492_v54 = vadd.f32 %v3484_v17, %v3466_v31  ;;  %v3339_v18 = vmul.f32 %v5579_v63, %v3329_v6  ;;  %v3357_v39 = vmul.f32 %v5586_v20, %v3347_v50  ;;  %v3383_v47 = vmul.f32 %v5589_v15, %v3373_v14  ;;  %v3452_v6 = vld [vmem:[#allocation2 + $0x25] sm:$0x1]  ;;  %v3478_v50 = vld [vmem:[#allocation2 + $0x26] sm:$0x1] }
 0x242   :  { %3325 = vst [vmem:[#allocation9 + $0x7e] sm:$0x1] %v3317_v3  ;;  %v3441_v42 = vadd.f32 %v3433_v10, %v3415_v52  ;;  %v3390_v9 = vadd.f32 %v3382_v23, %v3364_v62  ;;  %v3460_v36 = vmul.f32 %v5603_v46, %v3450_v44  ;;  %v3486_v59 = vmul.f32 %v5608_v51, %v3476_v61  ;;  %v3401_v44 = vld [vmem:[#allocation2 + $0x2b] sm:$0x1]  ;;  %v3504_v62 = vld [vmem:[#allocation2 + $0x27] sm:$0x1] }
 0x243   :  { %v3518_v19 = vadd.f32 %v3510_v48, %v3492_v54  ;;  %v3512_v0 = vmul.f32 %v5611_v60, %v3502_v38  ;;  %v3365_v53 = vadd.f32 %v3357_v39, %v3339_v18  ;;  %v3409_v5 = vmul.f32 %v5592_v26, %v3399_v29  ;;  %v3427_v38 = vld [vmem:[#allocation2 + $0x2c] sm:$0x1]  ;;  %v3332_v29 = vld [vmem:[#allocation2 + $0x30] sm:$0x1] }
 0x244   :  { %v3467_v22 = vadd.f32 %v3459_v41, %v3441_v42  ;;  %v3416_v8 = vadd.f32 %v3408_v58, %v3390_v9  ;;  %v3435_v11 = vmul.f32 %v5600_v35, %v3425_v33  ;;  %v3340_v27 = vmul.f32 %v5579_v63, %v3330_v1 }
 0x245   :  { %v3528_v17 = vadd.f32 %v5619_v30, %v3518_v19  ;;  %v3391_v13 = vadd.f32 %v3383_v47, %v3365_v53  ;;  %v3358_v48 = vmul.f32 %v5586_v20, %v3348_v43  ;;  %v3384_v32 = vmul.f32 %v5589_v15, %v3374_v45  ;;  %v3350_v47 = vld [vmem:[#allocation2 + $0x31] sm:$0x1]  ;;  %v3376_v43 = vld [vmem:[#allocation2 + $0x32] sm:$0x1]  ;;  %v3402_v45 = vld [vmem:[#allocation2 + $0x33] sm:$0x1] }
 0x246   :  { %v3493_v34 = vadd.f32 %v3485_v21, %v3467_v22  ;;  %v3442_v7 = vadd.f32 %v3434_v49, %v3416_v8  ;;  %v3461_v10 = vmul.f32 %v5603_v46, %v3451_v16  ;;  %v3487_v28 = vmul.f32 %v5608_v51, %v3477_v2  ;;  %v3479_v8 = vld [vmem:[#allocation2 + $0x2e] sm:$0x1] }
 0x247   :  { %3536 = vst [vmem:[#allocation9 + $0xf] sm:$0x1] %v3528_v17  ;;  %v3417_v12 = vadd.f32 %v3409_v5, %v3391_v13  ;;  %v3513_v41 = vmul.f32 %v5611_v60, %v3503_v55  ;;  %v3366_v4 = vadd.f32 %v3358_v48, %v3340_v27  ;;  %v3410_v23 = vmul.f32 %v5592_v26, %v3400_v25  ;;  %v3428_v55 = vld [vmem:[#allocation2 + $0x34] sm:$0x1]  ;;  %v3333_v27 = vld [vmem:[#allocation2 + $0x38] sm:$0x1] }
 0x248   :  { %v3519_v14 = vadd.f32 %v3511_v37, %v3493_v34  ;;  %v3468_v3 = vadd.f32 %v3460_v36, %v3442_v7  ;;  %v3436_v31 = vmul.f32 %v5600_v35, %v3426_v24  ;;  %v3341_v21 = vmul.f32 %v5579_v63, %v3331_v57  ;;  %v3453_v36 = vld [vmem:[#allocation2 + $0x2d] sm:$0x1]  ;;  %v3505_v57 = vld [vmem:[#allocation2 + $0x2f] sm:$0x1]  ;;  %v3351_v7 = vld [vmem:[#allocation2 + $0x39] sm:$0x1] }
 0x249   :  { %v3443_v61 = vadd.f32 %v3435_v11, %v3417_v12  ;;  %v3392_v52 = vadd.f32 %v3384_v32, %v3366_v4  ;;  %v3359_v58 = vmul.f32 %v5586_v20, %v3349_v40  ;;  %v3385_v49 = vmul.f32 %v5589_v15, %v3375_v56  ;;  %v3454_v56 = vld [vmem:[#allocation2 + $0x35] sm:$0x1] }
 0x24a   :  { %v3529_v54 = vadd.f32 %v5619_v30, %v3519_v14  ;;  %v3494_v18 = vadd.f32 %v3486_v59, %v3468_v3  ;;  %v3462_v37 = vmul.f32 %v5603_v46, %v3452_v6  ;;  %v3488_v39 = vmul.f32 %v5608_v51, %v3478_v50  ;;  %v3480_v3 = vld [vmem:[#allocation2 + $0x36] sm:$0x1] }
 0x24b   :  { %v3469_v33 = vadd.f32 %v3461_v10, %v3443_v61  ;;  %v3418_v1 = vadd.f32 %v3410_v23, %v3392_v52  ;;  %v3367_v42 = vadd.f32 %v3359_v58, %v3341_v21  ;;  %v3411_v9 = vmul.f32 %v5592_v26, %v3401_v44  ;;  %v3377_v10 = vld [vmem:[#allocation2 + $0x3a] sm:$0x1]  ;;  %v3506_v58 = vld [vmem:[#allocation2 + $0x37] sm:$0x1] }
 0x24c   :  { %3537 = vst [vmem:[#allocation9 + $0x1f] sm:$0x1] %v3529_v54  ;;  %v3520_v19 = vadd.f32 %v3512_v0, %v3494_v18  ;;  %v3514_v53 = vmul.f32 %v5611_v60, %v3504_v62  ;;  %v3437_v5 = vmul.f32 %v5600_v35, %v3427_v38  ;;  %v3342_v59 = vmul.f32 %v5579_v63, %v3332_v29 }
 0x24d   :  { %v3495_v16 = vadd.f32 %v3487_v28, %v3469_v33  ;;  %v3444_v2 = vadd.f32 %v3436_v31, %v3418_v1  ;;  %v3393_v22 = vadd.f32 %v3385_v49, %v3367_v42  ;;  %v3360_v11 = vmul.f32 %v5586_v20, %v3350_v47  ;;  %v3481_v42 = vld [vmem:[#allocation2 + $0x3e] sm:$0x1] }
 0x24e   :  { %v3530_v25 = vadd.f32 %v5619_v30, %v3520_v19  ;;  %v3463_v17 = vmul.f32 %v5603_v46, %v3453_v36  ;;  %v3386_v0 = vmul.f32 %v5589_v15, %v3376_v43  ;;  %v3412_v13 = vmul.f32 %v5592_v26, %v3402_v45  ;;  %v3507_v45 = vld [vmem:[#allocation2 + $0x3f] sm:$0x1] }
 0x24f   :  { %v3521_v48 = vadd.f32 %v3513_v41, %v3495_v16  ;;  %v3470_v32 = vadd.f32 %v3462_v37, %v3444_v2  ;;  %v3419_v24 = vadd.f32 %v3411_v9, %v3393_v22  ;;  %v3368_v34 = vadd.f32 %v3360_v11, %v3342_v59  ;;  %v3403_v41 = vld [vmem:[#allocation2 + $0x3b] sm:$0x1] }
 0x250   :  { %3538 = vst [vmem:[#allocation9 + $0x2f] sm:$0x1] %v3530_v25  ;;  %v3489_v28 = vmul.f32 %v5608_v51, %v3479_v8  ;;  %v3438_v40 = vmul.f32 %v5600_v35, %v3428_v55  ;;  %v3343_v12 = vmul.f32 %v5579_v63, %v3333_v27  ;;  %v3515_v14 = vmul.f32 %v5611_v60, %v3505_v57  ;;  %v3429_v63 = vld [vmem:[#allocation2 + $0x3c] sm:$0x1] }
 0x251   :  { %v3531_v4 = vadd.f32 %v5619_v30, %v3521_v48  ;;  %v3496_v23 = vadd.f32 %v3488_v39, %v3470_v32  ;;  %v3445_v6 = vadd.f32 %v3437_v5, %v3419_v24  ;;  %v3394_v50 = vadd.f32 %v3386_v0, %v3368_v34 }
 0x252   :  { %v3361_v31 = vmul.f32 %v5586_v20, %v3351_v7  ;;  %v3387_v21 = vmul.f32 %v5589_v15, %v3377_v10  ;;  %v3464_v62 = vmul.f32 %v5603_v46, %v3454_v56  ;;  %v3413_v38 = vmul.f32 %v5592_v26, %v3403_v41  ;;  %v3455_v20 = vld [vmem:[#allocation2 + $0x3d] sm:$0x1] }
 0x253   :  { %3539 = vst [vmem:[#allocation9 + $0x3f] sm:$0x1] %v3531_v4  ;;  %v3522_v44 = vadd.f32 %v3514_v53, %v3496_v23  ;;  %v3471_v61 = vadd.f32 %v3463_v17, %v3445_v6  ;;  %v3420_v52 = vadd.f32 %v3412_v13, %v3394_v50  ;;  %v3490_v37 = vmul.f32 %v5608_v51, %v3480_v3 }
 0x254   :  { %v3369_v49 = vadd.f32 %v3361_v31, %v3343_v12  ;;  %v3439_v15 = vmul.f32 %v5600_v35, %v3429_v63  ;;  %v3516_v1 = vmul.f32 %v5611_v60, %v3506_v58  ;;  %v3465_v36 = vmul.f32 %v5603_v46, %v3455_v20 }
 0x255   :  { %v3532_v29 = vadd.f32 %v5619_v30, %v3522_v44  ;;  %v3497_v54 = vadd.f32 %v3489_v28, %v3471_v61  ;;  %v3446_v18 = vadd.f32 %v3438_v40, %v3420_v52  ;;  %v3491_v53 = vmul.f32 %v5608_v51, %v3481_v42 }
 0x256   :  { %v3395_v39 = vadd.f32 %v3387_v21, %v3369_v49  ;;  %v3517_v35 = vmul.f32 %v5611_v60, %v3507_v45 }
 0x257   :  { %3540 = vst [vmem:[#allocation9 + $0x4f] sm:$0x1] %v3532_v29  ;;  %v3523_v47 = vadd.f32 %v3515_v14, %v3497_v54  ;;  %v3472_v33 = vadd.f32 %v3464_v62, %v3446_v18 }
 0x258   :  { %v3421_v9 = vadd.f32 %v3413_v38, %v3395_v39 }
 0x259   :  { %v3533_v26 = vadd.f32 %v5619_v30, %v3523_v47  ;;  %v3498_v43 = vadd.f32 %v3490_v37, %v3472_v33 }
 0x25a   :  { %v3447_v19 = vadd.f32 %v3439_v15, %v3421_v9 }
 0x25b   :  { %3541 = vst [vmem:[#allocation9 + $0x5f] sm:$0x1] %v3533_v26  ;;  %v3524_v5 = vadd.f32 %v3516_v1, %v3498_v43 }
 0x25c   :  { %v3473_v59 = vadd.f32 %v3465_v36, %v3447_v19 }
 0x25d   :  { %v3534_v16 = vadd.f32 %v5619_v30, %v3524_v5 }
 0x25e   :  { %v3499_v2 = vadd.f32 %v3491_v53, %v3473_v59 }
 0x25f   :  { %3542 = vst [vmem:[#allocation9 + $0x6f] sm:$0x1] %v3534_v16 }
 0x260   :  { %v3525_v22 = vadd.f32 %v3517_v35, %v3499_v2 }
 0x262   :  { %v3535_v46 = vadd.f32 %v5619_v30, %v3525_v22 }
 0x264   :  { %3543 = vst [vmem:[#allocation9 + $0x7f] sm:$0x1] %v3535_v46 }
 0x265   :  { %3768 = shalt.err (!%p3765_p8)
}
 0x266   :  { %s3769_s15 = scalar_lea.hbm %s5703_s3, 2048 }
 0x267   :  { %p3770_p9 = scmp.ne.s32.totalorder %s5703_s3, %s3769_s15  ;;  %p3773_p10 = scmp.lt.u32.totalorder %s3769_s15, %s5703_s3 }
 0x269   :  { %p3775_p11 = pnand %p3773_p10, %p3770_p9 }
 0x26b   :  { %3778 = shalt.err (!%p3775_p11)
}
 0x26c   :  { %3555 = dma.vmem_to_hbm [thread:$0]  %s3550_s11, 2048, %s5703_s3, [#allocation4], %s3788_s1, %s3788_s1, %s3789_s25  }
 0x26d   :  { %3785 = dma.done.wait [#allocation4], 2048  }
 0x26e   :  { %3786 = vsyncadd [#allocation4], 4294965248 }
 0x26f   :  { %3559 = vsyncpa [#allocation3], 1 }
 0x270   :  { %3560 = vsyncpa [#allocation4], 1 }
 0x271   :  { %3561 = vsyncpa [#allocation5], 1 }
 0x272   :  { %3562 = vsyncpa [#allocation8], 1 }

</bundles_post_ra>
